<compile_context>
chip_gen: v5e
topology: v5e:2x2
jax: 0.10.0
libtpu: 0.0.40
codegen_flags: <defaults>
</compile_context>

<pallas_src>
import jax
import jax.numpy as jnp
from jax import lax
from jax.experimental import pallas as pl
from jax.experimental.pallas import tpu as pltpu


# Network geometry (MNIST-style 28x28x1 input, the natural size for this stack).
H_IN, W_IN, C_IN = 28, 28, 1
K1, C1 = 5, 32            # conv1: 5x5, 1 -> 32
K2, C2 = 5, 64            # conv2: 5x5, 32 -> 64
K3, C3 = 3, 128           # conv3: 3x3, 64 -> 128
N_CLS = 10
N_CLS_PAD = 128           # lane-dense fc output (sliced to 10 in the wrapper)

K1_TAPS = K1 * K1 * C_IN  # 25
K1_TAPS_PAD = 32          # conv1 im2col K padded to 32
K2_TAPS = K2 * K2 * C1    # 800
K3_TAPS = K3 * K3 * C2    # 576

H1, W1 = H_IN - K1 + 1, W_IN - K1 + 1       # 24, 24  conv1 output
HP1, WP1 = H1 // 2, W1 // 2                 # 12, 12  pool1 output
H2, W2 = HP1 - K2 + 1, WP1 - K2 + 1         # 8, 8    conv2 output
HP2, WP2 = H2 // 2, W2 // 2                 # 4, 4    pool2 output
H3, W3 = HP2 - K3 + 1, WP2 - K3 + 1         # 2, 2    conv3 output

BATCH_BLOCK = 4           # images per grid step (M=256 for conv2 on v6e/v7x)


# ------------------------- fused forward kernel -----------------------------

def _fused_forward_kernel(xc_ref, w1_ref, b1_ref, w2_ref, b2_ref, w3_ref, b3_ref,
                          wf_ref, bf_ref, o_ref,
                          rm1_ref, p1_ref, lhs2_ref, rm2_ref, p2_ref, lhs3_ref):
    f32 = jnp.float32
    B = xc_ref.shape[0]                                       # images this step

    # ---- conv1 + ReLU: one MXU matmul on the wrapper-built im2col slab.
    x2d = xc_ref[...].reshape(B * H1 * W1, K1_TAPS_PAD)       # free reshape
    c1 = jnp.dot(x2d, w1_ref[...], preferred_element_type=f32)
    c1 = jnp.maximum(c1 + b1_ref[...], 0.0)                   # (B*576, 32)

    # ---- pool1: row-pair max is a reduce over a non-tiled axis; the column
    # half uses stride-2 sublane loads from a small staging buffer.
    rm1_ref[...] = jnp.max(c1.reshape(B * HP1, 2, W1, C1), axis=1)   # (B*12,24,32)
    p1 = jnp.maximum(rm1_ref[:, pl.ds(0, WP1, stride=2), :],
                     rm1_ref[:, pl.ds(1, WP1, stride=2), :])          # (B*12,12,32)
    p1_ref[...] = p1.reshape(B, HP1, WP1, C1)

    # ---- conv2 + ReLU: build the (B*64, 800) im2col slab once, then one fat
    # matmul against the wrapper-reshaped (800, 64) weight.
    for kh in range(K2):
        for kw in range(K2):
            tap = kh * K2 + kw
            src = p1_ref[:, kh:kh + H2, kw:kw + W2, :]                # (B,8,8,32)
            lhs2_ref[:, tap * C1:(tap + 1) * C1] = src.reshape(B * H2 * W2, C1)
    c2 = jnp.dot(lhs2_ref[...], w2_ref[...], preferred_element_type=f32)
    c2 = jnp.maximum(c2 + b2_ref[...], 0.0)                   # (B*64, 64)

    # ---- pool2 (same structure as pool1).
    rm2_ref[...] = jnp.max(c2.reshape(B * HP2, 2, W2, C2), axis=1)   # (B*4,8,64)
    p2 = jnp.maximum(rm2_ref[:, pl.ds(0, WP2, stride=2), :],
                     rm2_ref[:, pl.ds(1, WP2, stride=2), :])          # (B*4,4,64)
    p2_ref[...] = p2.reshape(B, HP2, WP2, C2)

    # ---- conv3 + ReLU: (B*4, 576) im2col slab, single matmul.
    for kh in range(K3):
        for kw in range(K3):
            tap = kh * K3 + kw
            src = p2_ref[:, kh:kh + H3, kw:kw + W3, :]                # (B,2,2,64)
            lhs3_ref[:, tap * C2:(tap + 1) * C2] = src.reshape(B * H3 * W3, C2)
    c3 = jnp.dot(lhs3_ref[...], w3_ref[...], preferred_element_type=f32)
    c3 = jnp.maximum(c3 + b3_ref[...], 0.0)                   # (B*4, 128)

    # ---- global average pool + fc head (output padded to 128 lanes).
    pooled = jnp.sum(c3.reshape(B, H3 * W3, C3), axis=1) * (1.0 / float(H3 * W3))
    o_ref[...] = (jnp.dot(pooled, wf_ref[...], preferred_element_type=f32)
                  + bf_ref[...])                              # (B, 128)


def neural_network_forward(x_nchw, params, *, block_b=BATCH_BLOCK):
    """Forward pass matching the PyTorch module.  x_nchw: (N, 1, 28, 28) f32."""
    x = jnp.transpose(x_nchw, (0, 2, 3, 1)).astype(jnp.float32)   # NCHW -> NHWC
    n = x.shape[0]
    b = min(block_b, n)
    g = pl.cdiv(n, b)
    n_pad = g * b

    # conv1 im2col in the wrapper (plain-JAX layout plumbing); K padded 25 -> 32.
    pats = [x[:, kh:kh + H1, kw:kw + W1, 0]
            for kh in range(K1) for kw in range(K1)]              # 25 x (n,24,24)
    x_col = jnp.stack(pats, axis=-1).reshape(n, H1 * W1, K1_TAPS)
    x_col = jnp.pad(x_col, ((0, n_pad - n), (0, 0), (0, K1_TAPS_PAD - K1_TAPS)))

    # Weights pre-reshaped to matmul form; fc padded to 128 output lanes.
    w1c = jnp.pad(params["w1"].reshape(K1_TAPS, C1),
                  ((0, K1_TAPS_PAD - K1_TAPS), (0, 0)))
    w2c = params["w2"].reshape(K2_TAPS, C2)
    w3c = params["w3"].reshape(K3_TAPS, C3)
    wfp = jnp.pad(params["wf"], ((0, 0), (0, N_CLS_PAD - N_CLS)))
    bfp = jnp.pad(params["bf"], ((0, 0), (0, N_CLS_PAD - N_CLS)))

    grid_spec = pltpu.PrefetchScalarGridSpec(
        num_scalar_prefetch=0,
        grid=(g,),
        in_specs=[
            pl.BlockSpec((b, H1 * W1, K1_TAPS_PAD), lambda i: (i, 0, 0)),
            pl.BlockSpec((K1_TAPS_PAD, C1), lambda i: (0, 0)),
            pl.BlockSpec((1, C1), lambda i: (0, 0)),
            pl.BlockSpec((K2_TAPS, C2), lambda i: (0, 0)),
            pl.BlockSpec((1, C2), lambda i: (0, 0)),
            pl.BlockSpec((K3_TAPS, C3), lambda i: (0, 0)),
            pl.BlockSpec((1, C3), lambda i: (0, 0)),
            pl.BlockSpec((C3, N_CLS_PAD), lambda i: (0, 0)),
            pl.BlockSpec((1, N_CLS_PAD), lambda i: (0, 0)),
        ],
        out_specs=pl.BlockSpec((None, b, N_CLS_PAD), lambda i: (i, 0, 0)),
        scratch_shapes=[
            pltpu.VMEM((b * HP1, W1, C1), jnp.float32),      # rm1: pool1 row max
            pltpu.VMEM((b, HP1, WP1, C1), jnp.float32),      # p1 : pooled conv1
            pltpu.VMEM((b * H2 * W2, K2_TAPS), jnp.float32), # lhs2: conv2 im2col
            pltpu.VMEM((b * HP2, W2, C2), jnp.float32),      # rm2: pool2 row max
            pltpu.VMEM((b, HP2, WP2, C2), jnp.float32),      # p2 : pooled conv2
            pltpu.VMEM((b * H3 * W3, K3_TAPS), jnp.float32), # lhs3: conv3 im2col
        ],
    )
    out = pl.pallas_call(
        _fused_forward_kernel,
        out_shape=jax.ShapeDtypeStruct((g, b, N_CLS_PAD), jnp.float32),
        grid_spec=grid_spec,
        compiler_params=pltpu.CompilerParams(
            dimension_semantics=("parallel",)),   # batch-block axis -> both TCs
    )(x_col, w1c, params["b1"], w2c, params["b2"],
      w3c, params["b3"], wfp, bfp)
    return out.reshape(n_pad, N_CLS_PAD)[:n, :N_CLS]


# ------------------------- pure-JAX reference check --------------------------

def reference_forward(x_nchw, params):
    x = jnp.transpose(x_nchw, (0, 2, 3, 1))

    def conv(x, w, b):
        y = lax.conv_general_dilated(x, w, (1, 1), "VALID",
                                     dimension_numbers=("NHWC", "HWIO", "NHWC"),
                                     precision=lax.Precision.HIGHEST)
        return jax.nn.relu(y + b.reshape(1, 1, 1, -1))

    def pool(x):
        N, H, W, C = x.shape
        return jnp.max(x.reshape(N, H // 2, 2, W // 2, 2, C), axis=(2, 4))

    x = pool(conv(x, params["w1"], params["b1"]))
    x = pool(conv(x, params["w2"], params["b2"]))
    x = conv(x, params["w3"], params["b3"])
    x = jnp.mean(x, axis=(1, 2))
    return jnp.dot(x, params["wf"], precision=lax.Precision.HIGHEST) + params["bf"]


# ------------------------------- params init --------------------------------

def init_params(key):
    ks = jax.random.split(key, 8)

    def u(k, shape, fan_in):
        bound = 1.0 / float(fan_in) ** 0.5
        return jax.random.uniform(k, shape, jnp.float32, -bound, bound)

    return {
        "w1": u(ks[0], (K1, K1, C_IN, C1), K1 * K1 * C_IN),
        "b1": u(ks[1], (1, C1), K1 * K1 * C_IN),
        "w2": u(ks[2], (K2, K2, C1, C2), K2 * K2 * C1),
        "b2": u(ks[3], (1, C2), K2 * K2 * C1),
        "w3": u(ks[4], (K3, K3, C2, C3), K3 * K3 * C2),
        "b3": u(ks[5], (1, C3), K3 * K3 * C2),
        "wf": u(ks[6], (C3, N_CLS), C3),
        "bf": u(ks[7], (1, N_CLS), C3),
    }


if __name__ == "__main__":
    key = jax.random.PRNGKey(0)
    pkey, xkey = jax.random.split(key)
    params = init_params(pkey)

    # PyTorch-style NCHW input: batch=2, 1 channel, 28x28.
    x = jax.random.normal(xkey, (2, 1, 28, 28), jnp.float32)

    out = jax.block_until_ready(neural_network_forward(x, params))
    ref = jax.block_until_ready(reference_forward(x, params))

    assert out.shape == (2, 10), out.shape
    # MXU matmuls use default (bf16-pass) precision; allow a slightly looser
    # tolerance than exact-f32 while still catching any structural bug.
    if not jnp.allclose(out, ref, rtol=2e-2, atol=2e-2):
        raise AssertionError(
            f"kernel/reference mismatch, max abs err = "
            f"{float(jnp.max(jnp.abs(out - ref)))}")
    print("KERNEL_OK")
</pallas_src>

<mosaic_0001>
module attributes {stable_mosaic.version = 11 : i64} {
  func.func @_fused_forward_kernel(%arg0: i32, %arg1: memref<2x576x32xf32, #tpu.memory_space<vmem>>, %arg2: memref<32x32xf32, #tpu.memory_space<vmem>>, %arg3: memref<1x32xf32, #tpu.memory_space<vmem>>, %arg4: memref<800x64xf32, #tpu.memory_space<vmem>>, %arg5: memref<1x64xf32, #tpu.memory_space<vmem>>, %arg6: memref<576x128xf32, #tpu.memory_space<vmem>>, %arg7: memref<1x128xf32, #tpu.memory_space<vmem>>, %arg8: memref<128x128xf32, #tpu.memory_space<vmem>>, %arg9: memref<1x128xf32, #tpu.memory_space<vmem>>, %arg10: memref<1x2x128xf32, #tpu.memory_space<vmem>>, %arg11: memref<24x24x32xf32, #tpu.memory_space<vmem>>, %arg12: memref<2x12x12x32xf32, #tpu.memory_space<vmem>>, %arg13: memref<128x800xf32, #tpu.memory_space<vmem>>, %arg14: memref<8x8x64xf32, #tpu.memory_space<vmem>>, %arg15: memref<2x4x4x64xf32, #tpu.memory_space<vmem>>, %arg16: memref<8x576xf32, #tpu.memory_space<vmem>>) attributes {dimension_semantics = [#tpu.dimension_semantics<parallel>], iteration_bounds = array<i64: 1>, scalar_prefetch = 0 : i64, scratch_operands = 6 : i64, tpu.core_type = #tpu.core_type<tc>, window_params = [{transform_indices = @transform_0, window_bounds = array<i64: 2, 576, 32>}, {pipeline_mode = #tpu.pipeline_mode<synchronous>, transform_indices = @transform_1, window_bounds = array<i64: 32, 32>}, {pipeline_mode = #tpu.pipeline_mode<synchronous>, transform_indices = @transform_2, window_bounds = array<i64: 1, 32>}, {pipeline_mode = #tpu.pipeline_mode<synchronous>, transform_indices = @transform_3, window_bounds = array<i64: 800, 64>}, {pipeline_mode = #tpu.pipeline_mode<synchronous>, transform_indices = @transform_4, window_bounds = array<i64: 1, 64>}, {pipeline_mode = #tpu.pipeline_mode<synchronous>, transform_indices = @transform_5, window_bounds = array<i64: 576, 128>}, {pipeline_mode = #tpu.pipeline_mode<synchronous>, transform_indices = @transform_6, window_bounds = array<i64: 1, 128>}, {pipeline_mode = #tpu.pipeline_mode<synchronous>, transform_indices = @transform_7, window_bounds = array<i64: 128, 128>}, {pipeline_mode = #tpu.pipeline_mode<synchronous>, transform_indices = @transform_8, window_bounds = array<i64: 1, 128>}, {transform_indices = @transform_9, window_bounds = array<i64: 1, 2, 128>}]} {
    %c0 = arith.constant 0 : index
    %c0_0 = arith.constant 0 : index
    %c0_1 = arith.constant 0 : index
    %0 = vector.load %arg1[%c0, %c0_0, %c0_1] : memref<2x576x32xf32, #tpu.memory_space<vmem>>, vector<2x576x32xf32>
    %1 = vector.shape_cast %0 : vector<2x576x32xf32> to vector<1152x32xf32>
    %c0_2 = arith.constant 0 : index
    %c0_3 = arith.constant 0 : index
    %2 = vector.load %arg2[%c0_2, %c0_3] : memref<32x32xf32, #tpu.memory_space<vmem>>, vector<32x32xf32>
    %cst = arith.constant dense<0.000000e+00> : vector<1152x32xf32>
    %3 = tpu.matmul %1, %2, %cst {dimension_numbers = #tpu.dot_dimension_numbers<[1], [0], [0], [1], [0, 0, 1, 1], [], []>} : vector<1152x32xf32>, vector<32x32xf32>, vector<1152x32xf32> -> vector<1152x32xf32>
    %c0_4 = arith.constant 0 : index
    %c0_5 = arith.constant 0 : index
    %4 = vector.load %arg3[%c0_4, %c0_5] : memref<1x32xf32, #tpu.memory_space<vmem>>, vector<1x32xf32>
    %5 = vector.broadcast %4 : vector<1x32xf32> to vector<1152x32xf32>
    %6 = arith.addf %3, %5 : vector<1152x32xf32>
    %cst_6 = arith.constant 0.000000e+00 : f32
    %7 = vector.broadcast %cst_6 : f32 to vector<1152x32xf32>
    %8 = arith.maximumf %6, %7 : vector<1152x32xf32>
    %9 = vector.shape_cast %8 : vector<1152x32xf32> to vector<24x2x24x32xf32>
    %cst_7 = arith.constant dense<0xFF800000> : vector<24x24x32xf32>
    %10 = vector.multi_reduction <maximumf>, %9, %cst_7 [1] : vector<24x2x24x32xf32> to vector<24x24x32xf32>
    %c0_8 = arith.constant 0 : index
    %c0_9 = arith.constant 0 : index
    %c0_10 = arith.constant 0 : index
    %11 = vector.load %arg11[%c0_8, %c0_9, %c0_10] : memref<24x24x32xf32, #tpu.memory_space<vmem>>, vector<24x24x32xf32>
    tpu.vector_store %arg11[%c0_8, %c0_9, %c0_10], %10 {strides = array<i32>} : memref<24x24x32xf32, #tpu.memory_space<vmem>>, vector<24x24x32xf32>,
    %c0_11 = arith.constant 0 : index
    %c0_12 = arith.constant 0 : index
    %c0_13 = arith.constant 0 : index
    %12 = tpu.strided_load %arg11[%c0_11, %c0_12, %c0_13] {strides = array<i32: 1, 2, 1>} : memref<24x24x32xf32, #tpu.memory_space<vmem>>, vector<24x12x32xf32>
    %c0_14 = arith.constant 0 : index
    %c1 = arith.constant 1 : index
    %c0_15 = arith.constant 0 : index
    %13 = tpu.strided_load %arg11[%c0_14, %c1, %c0_15] {strides = array<i32: 1, 2, 1>} : memref<24x24x32xf32, #tpu.memory_space<vmem>>, vector<24x12x32xf32>
    %14 = arith.maximumf %12, %13 : vector<24x12x32xf32>
    %15 = vector.shape_cast %14 : vector<24x12x32xf32> to vector<2x12x12x32xf32>
    %c0_16 = arith.constant 0 : index
    %c0_17 = arith.constant 0 : index
    %c0_18 = arith.constant 0 : index
    %c0_19 = arith.constant 0 : index
    %16 = vector.load %arg12[%c0_16, %c0_17, %c0_18, %c0_19] : memref<2x12x12x32xf32, #tpu.memory_space<vmem>>, vector<2x12x12x32xf32>
    tpu.vector_store %arg12[%c0_16, %c0_17, %c0_18, %c0_19], %15 {strides = array<i32>} : memref<2x12x12x32xf32, #tpu.memory_space<vmem>>, vector<2x12x12x32xf32>,
    %c0_20 = arith.constant 0 : index
    %c0_21 = arith.constant 0 : index
    %c0_22 = arith.constant 0 : index
    %c0_23 = arith.constant 0 : index
    %17 = vector.load %arg12[%c0_20, %c0_21, %c0_22, %c0_23] : memref<2x12x12x32xf32, #tpu.memory_space<vmem>>, vector<2x8x8x32xf32>
    %18 = vector.shape_cast %17 : vector<2x8x8x32xf32> to vector<128x32xf32>
    %c0_24 = arith.constant 0 : index
    %c0_25 = arith.constant 0 : index
    %19 = vector.load %arg13[%c0_24, %c0_25] : memref<128x800xf32, #tpu.memory_space<vmem>>, vector<128x32xf32>
    tpu.vector_store %arg13[%c0_24, %c0_25], %18 {strides = array<i32>} : memref<128x800xf32, #tpu.memory_space<vmem>>, vector<128x32xf32>,
    %c0_26 = arith.constant 0 : index
    %c0_27 = arith.constant 0 : index
    %c1_28 = arith.constant 1 : index
    %c0_29 = arith.constant 0 : index
    %20 = vector.load %arg12[%c0_26, %c0_27, %c1_28, %c0_29] : memref<2x12x12x32xf32, #tpu.memory_space<vmem>>, vector<2x8x8x32xf32>
    %21 = vector.shape_cast %20 : vector<2x8x8x32xf32> to vector<128x32xf32>
    %c0_30 = arith.constant 0 : index
    %c32 = arith.constant 32 : index
    %22 = vector.load %arg13[%c0_30, %c32] : memref<128x800xf32, #tpu.memory_space<vmem>>, vector<128x32xf32>
    tpu.vector_store %arg13[%c0_30, %c32], %21 {strides = array<i32>} : memref<128x800xf32, #tpu.memory_space<vmem>>, vector<128x32xf32>,
    %c0_31 = arith.constant 0 : index
    %c0_32 = arith.constant 0 : index
    %c2 = arith.constant 2 : index
    %c0_33 = arith.constant 0 : index
    %23 = vector.load %arg12[%c0_31, %c0_32, %c2, %c0_33] : memref<2x12x12x32xf32, #tpu.memory_space<vmem>>, vector<2x8x8x32xf32>
    %24 = vector.shape_cast %23 : vector<2x8x8x32xf32> to vector<128x32xf32>
    %c0_34 = arith.constant 0 : index
    %c64 = arith.constant 64 : index
    %25 = vector.load %arg13[%c0_34, %c64] : memref<128x800xf32, #tpu.memory_space<vmem>>, vector<128x32xf32>
    tpu.vector_store %arg13[%c0_34, %c64], %24 {strides = array<i32>} : memref<128x800xf32, #tpu.memory_space<vmem>>, vector<128x32xf32>,
    %c0_35 = arith.constant 0 : index
    %c0_36 = arith.constant 0 : index
    %c3 = arith.constant 3 : index
    %c0_37 = arith.constant 0 : index
    %26 = vector.load %arg12[%c0_35, %c0_36, %c3, %c0_37] : memref<2x12x12x32xf32, #tpu.memory_space<vmem>>, vector<2x8x8x32xf32>
    %27 = vector.shape_cast %26 : vector<2x8x8x32xf32> to vector<128x32xf32>
    %c0_38 = arith.constant 0 : index
    %c96 = arith.constant 96 : index
    %28 = vector.load %arg13[%c0_38, %c96] : memref<128x800xf32, #tpu.memory_space<vmem>>, vector<128x32xf32>
    tpu.vector_store %arg13[%c0_38, %c96], %27 {strides = array<i32>} : memref<128x800xf32, #tpu.memory_space<vmem>>, vector<128x32xf32>,
    %c0_39 = arith.constant 0 : index
    %c0_40 = arith.constant 0 : index
    %c4 = arith.constant 4 : index
    %c0_41 = arith.constant 0 : index
    %29 = vector.load %arg12[%c0_39, %c0_40, %c4, %c0_41] : memref<2x12x12x32xf32, #tpu.memory_space<vmem>>, vector<2x8x8x32xf32>
    %30 = vector.shape_cast %29 : vector<2x8x8x32xf32> to vector<128x32xf32>
    %c0_42 = arith.constant 0 : index
    %c128 = arith.constant 128 : index
    %31 = vector.load %arg13[%c0_42, %c128] : memref<128x800xf32, #tpu.memory_space<vmem>>, vector<128x32xf32>
    tpu.vector_store %arg13[%c0_42, %c128], %30 {strides = array<i32>} : memref<128x800xf32, #tpu.memory_space<vmem>>, vector<128x32xf32>,
    %c0_43 = arith.constant 0 : index
    %c1_44 = arith.constant 1 : index
    %c0_45 = arith.constant 0 : index
    %c0_46 = arith.constant 0 : index
    %32 = vector.load %arg12[%c0_43, %c1_44, %c0_45, %c0_46] : memref<2x12x12x32xf32, #tpu.memory_space<vmem>>, vector<2x8x8x32xf32>
    %33 = vector.shape_cast %32 : vector<2x8x8x32xf32> to vector<128x32xf32>
    %c0_47 = arith.constant 0 : index
    %c160 = arith.constant 160 : index
    %34 = vector.load %arg13[%c0_47, %c160] : memref<128x800xf32, #tpu.memory_space<vmem>>, vector<128x32xf32>
    tpu.vector_store %arg13[%c0_47, %c160], %33 {strides = array<i32>} : memref<128x800xf32, #tpu.memory_space<vmem>>, vector<128x32xf32>,
    %c0_48 = arith.constant 0 : index
    %c1_49 = arith.constant 1 : index
    %c1_50 = arith.constant 1 : index
    %c0_51 = arith.constant 0 : index
    %35 = vector.load %arg12[%c0_48, %c1_49, %c1_50, %c0_51] : memref<2x12x12x32xf32, #tpu.memory_space<vmem>>, vector<2x8x8x32xf32>
    %36 = vector.shape_cast %35 : vector<2x8x8x32xf32> to vector<128x32xf32>
    %c0_52 = arith.constant 0 : index
    %c192 = arith.constant 192 : index
    %37 = vector.load %arg13[%c0_52, %c192] : memref<128x800xf32, #tpu.memory_space<vmem>>, vector<128x32xf32>
    tpu.vector_store %arg13[%c0_52, %c192], %36 {strides = array<i32>} : memref<128x800xf32, #tpu.memory_space<vmem>>, vector<128x32xf32>,
    %c0_53 = arith.constant 0 : index
    %c1_54 = arith.constant 1 : index
    %c2_55 = arith.constant 2 : index
    %c0_56 = arith.constant 0 : index
    %38 = vector.load %arg12[%c0_53, %c1_54, %c2_55, %c0_56] : memref<2x12x12x32xf32, #tpu.memory_space<vmem>>, vector<2x8x8x32xf32>
    %39 = vector.shape_cast %38 : vector<2x8x8x32xf32> to vector<128x32xf32>
    %c0_57 = arith.constant 0 : index
    %c224 = arith.constant 224 : index
    %40 = vector.load %arg13[%c0_57, %c224] : memref<128x800xf32, #tpu.memory_space<vmem>>, vector<128x32xf32>
    tpu.vector_store %arg13[%c0_57, %c224], %39 {strides = array<i32>} : memref<128x800xf32, #tpu.memory_space<vmem>>, vector<128x32xf32>,
    %c0_58 = arith.constant 0 : index
    %c1_59 = arith.constant 1 : index
    %c3_60 = arith.constant 3 : index
    %c0_61 = arith.constant 0 : index
    %41 = vector.load %arg12[%c0_58, %c1_59, %c3_60, %c0_61] : memref<2x12x12x32xf32, #tpu.memory_space<vmem>>, vector<2x8x8x32xf32>
    %42 = vector.shape_cast %41 : vector<2x8x8x32xf32> to vector<128x32xf32>
    %c0_62 = arith.constant 0 : index
    %c256 = arith.constant 256 : index
    %43 = vector.load %arg13[%c0_62, %c256] : memref<128x800xf32, #tpu.memory_space<vmem>>, vector<128x32xf32>
    tpu.vector_store %arg13[%c0_62, %c256], %42 {strides = array<i32>} : memref<128x800xf32, #tpu.memory_space<vmem>>, vector<128x32xf32>,
    %c0_63 = arith.constant 0 : index
    %c1_64 = arith.constant 1 : index
    %c4_65 = arith.constant 4 : index
    %c0_66 = arith.constant 0 : index
    %44 = vector.load %arg12[%c0_63, %c1_64, %c4_65, %c0_66] : memref<2x12x12x32xf32, #tpu.memory_space<vmem>>, vector<2x8x8x32xf32>
    %45 = vector.shape_cast %44 : vector<2x8x8x32xf32> to vector<128x32xf32>
    %c0_67 = arith.constant 0 : index
    %c288 = arith.constant 288 : index
    %46 = vector.load %arg13[%c0_67, %c288] : memref<128x800xf32, #tpu.memory_space<vmem>>, vector<128x32xf32>
    tpu.vector_store %arg13[%c0_67, %c288], %45 {strides = array<i32>} : memref<128x800xf32, #tpu.memory_space<vmem>>, vector<128x32xf32>,
    %c0_68 = arith.constant 0 : index
    %c2_69 = arith.constant 2 : index
    %c0_70 = arith.constant 0 : index
    %c0_71 = arith.constant 0 : index
    %47 = vector.load %arg12[%c0_68, %c2_69, %c0_70, %c0_71] : memref<2x12x12x32xf32, #tpu.memory_space<vmem>>, vector<2x8x8x32xf32>
    %48 = vector.shape_cast %47 : vector<2x8x8x32xf32> to vector<128x32xf32>
    %c0_72 = arith.constant 0 : index
    %c320 = arith.constant 320 : index
    %49 = vector.load %arg13[%c0_72, %c320] : memref<128x800xf32, #tpu.memory_space<vmem>>, vector<128x32xf32>
    tpu.vector_store %arg13[%c0_72, %c320], %48 {strides = array<i32>} : memref<128x800xf32, #tpu.memory_space<vmem>>, vector<128x32xf32>,
    %c0_73 = arith.constant 0 : index
    %c2_74 = arith.constant 2 : index
    %c1_75 = arith.constant 1 : index
    %c0_76 = arith.constant 0 : index
    %50 = vector.load %arg12[%c0_73, %c2_74, %c1_75, %c0_76] : memref<2x12x12x32xf32, #tpu.memory_space<vmem>>, vector<2x8x8x32xf32>
    %51 = vector.shape_cast %50 : vector<2x8x8x32xf32> to vector<128x32xf32>
    %c0_77 = arith.constant 0 : index
    %c352 = arith.constant 352 : index
    %52 = vector.load %arg13[%c0_77, %c352] : memref<128x800xf32, #tpu.memory_space<vmem>>, vector<128x32xf32>
    tpu.vector_store %arg13[%c0_77, %c352], %51 {strides = array<i32>} : memref<128x800xf32, #tpu.memory_space<vmem>>, vector<128x32xf32>,
    %c0_78 = arith.constant 0 : index
    %c2_79 = arith.constant 2 : index
    %c2_80 = arith.constant 2 : index
    %c0_81 = arith.constant 0 : index
    %53 = vector.load %arg12[%c0_78, %c2_79, %c2_80, %c0_81] : memref<2x12x12x32xf32, #tpu.memory_space<vmem>>, vector<2x8x8x32xf32>
    %54 = vector.shape_cast %53 : vector<2x8x8x32xf32> to vector<128x32xf32>
    %c0_82 = arith.constant 0 : index
    %c384 = arith.constant 384 : index
    %55 = vector.load %arg13[%c0_82, %c384] : memref<128x800xf32, #tpu.memory_space<vmem>>, vector<128x32xf32>
    tpu.vector_store %arg13[%c0_82, %c384], %54 {strides = array<i32>} : memref<128x800xf32, #tpu.memory_space<vmem>>, vector<128x32xf32>,
    %c0_83 = arith.constant 0 : index
    %c2_84 = arith.constant 2 : index
    %c3_85 = arith.constant 3 : index
    %c0_86 = arith.constant 0 : index
    %56 = vector.load %arg12[%c0_83, %c2_84, %c3_85, %c0_86] : memref<2x12x12x32xf32, #tpu.memory_space<vmem>>, vector<2x8x8x32xf32>
    %57 = vector.shape_cast %56 : vector<2x8x8x32xf32> to vector<128x32xf32>
    %c0_87 = arith.constant 0 : index
    %c416 = arith.constant 416 : index
    %58 = vector.load %arg13[%c0_87, %c416] : memref<128x800xf32, #tpu.memory_space<vmem>>, vector<128x32xf32>
    tpu.vector_store %arg13[%c0_87, %c416], %57 {strides = array<i32>} : memref<128x800xf32, #tpu.memory_space<vmem>>, vector<128x32xf32>,
    %c0_88 = arith.constant 0 : index
    %c2_89 = arith.constant 2 : index
    %c4_90 = arith.constant 4 : index
    %c0_91 = arith.constant 0 : index
    %59 = vector.load %arg12[%c0_88, %c2_89, %c4_90, %c0_91] : memref<2x12x12x32xf32, #tpu.memory_space<vmem>>, vector<2x8x8x32xf32>
    %60 = vector.shape_cast %59 : vector<2x8x8x32xf32> to vector<128x32xf32>
    %c0_92 = arith.constant 0 : index
    %c448 = arith.constant 448 : index
    %61 = vector.load %arg13[%c0_92, %c448] : memref<128x800xf32, #tpu.memory_space<vmem>>, vector<128x32xf32>
    tpu.vector_store %arg13[%c0_92, %c448], %60 {strides = array<i32>} : memref<128x800xf32, #tpu.memory_space<vmem>>, vector<128x32xf32>,
    %c0_93 = arith.constant 0 : index
    %c3_94 = arith.constant 3 : index
    %c0_95 = arith.constant 0 : index
    %c0_96 = arith.constant 0 : index
    %62 = vector.load %arg12[%c0_93, %c3_94, %c0_95, %c0_96] : memref<2x12x12x32xf32, #tpu.memory_space<vmem>>, vector<2x8x8x32xf32>
    %63 = vector.shape_cast %62 : vector<2x8x8x32xf32> to vector<128x32xf32>
    %c0_97 = arith.constant 0 : index
    %c480 = arith.constant 480 : index
    %64 = vector.load %arg13[%c0_97, %c480] : memref<128x800xf32, #tpu.memory_space<vmem>>, vector<128x32xf32>
    tpu.vector_store %arg13[%c0_97, %c480], %63 {strides = array<i32>} : memref<128x800xf32, #tpu.memory_space<vmem>>, vector<128x32xf32>,
    %c0_98 = arith.constant 0 : index
    %c3_99 = arith.constant 3 : index
    %c1_100 = arith.constant 1 : index
    %c0_101 = arith.constant 0 : index
    %65 = vector.load %arg12[%c0_98, %c3_99, %c1_100, %c0_101] : memref<2x12x12x32xf32, #tpu.memory_space<vmem>>, vector<2x8x8x32xf32>
    %66 = vector.shape_cast %65 : vector<2x8x8x32xf32> to vector<128x32xf32>
    %c0_102 = arith.constant 0 : index
    %c512 = arith.constant 512 : index
    %67 = vector.load %arg13[%c0_102, %c512] : memref<128x800xf32, #tpu.memory_space<vmem>>, vector<128x32xf32>
    tpu.vector_store %arg13[%c0_102, %c512], %66 {strides = array<i32>} : memref<128x800xf32, #tpu.memory_space<vmem>>, vector<128x32xf32>,
    %c0_103 = arith.constant 0 : index
    %c3_104 = arith.constant 3 : index
    %c2_105 = arith.constant 2 : index
    %c0_106 = arith.constant 0 : index
    %68 = vector.load %arg12[%c0_103, %c3_104, %c2_105, %c0_106] : memref<2x12x12x32xf32, #tpu.memory_space<vmem>>, vector<2x8x8x32xf32>
    %69 = vector.shape_cast %68 : vector<2x8x8x32xf32> to vector<128x32xf32>
    %c0_107 = arith.constant 0 : index
    %c544 = arith.constant 544 : index
    %70 = vector.load %arg13[%c0_107, %c544] : memref<128x800xf32, #tpu.memory_space<vmem>>, vector<128x32xf32>
    tpu.vector_store %arg13[%c0_107, %c544], %69 {strides = array<i32>} : memref<128x800xf32, #tpu.memory_space<vmem>>, vector<128x32xf32>,
    %c0_108 = arith.constant 0 : index
    %c3_109 = arith.constant 3 : index
    %c3_110 = arith.constant 3 : index
    %c0_111 = arith.constant 0 : index
    %71 = vector.load %arg12[%c0_108, %c3_109, %c3_110, %c0_111] : memref<2x12x12x32xf32, #tpu.memory_space<vmem>>, vector<2x8x8x32xf32>
    %72 = vector.shape_cast %71 : vector<2x8x8x32xf32> to vector<128x32xf32>
    %c0_112 = arith.constant 0 : index
    %c576 = arith.constant 576 : index
    %73 = vector.load %arg13[%c0_112, %c576] : memref<128x800xf32, #tpu.memory_space<vmem>>, vector<128x32xf32>
    tpu.vector_store %arg13[%c0_112, %c576], %72 {strides = array<i32>} : memref<128x800xf32, #tpu.memory_space<vmem>>, vector<128x32xf32>,
    %c0_113 = arith.constant 0 : index
    %c3_114 = arith.constant 3 : index
    %c4_115 = arith.constant 4 : index
    %c0_116 = arith.constant 0 : index
    %74 = vector.load %arg12[%c0_113, %c3_114, %c4_115, %c0_116] : memref<2x12x12x32xf32, #tpu.memory_space<vmem>>, vector<2x8x8x32xf32>
    %75 = vector.shape_cast %74 : vector<2x8x8x32xf32> to vector<128x32xf32>
    %c0_117 = arith.constant 0 : index
    %c608 = arith.constant 608 : index
    %76 = vector.load %arg13[%c0_117, %c608] : memref<128x800xf32, #tpu.memory_space<vmem>>, vector<128x32xf32>
    tpu.vector_store %arg13[%c0_117, %c608], %75 {strides = array<i32>} : memref<128x800xf32, #tpu.memory_space<vmem>>, vector<128x32xf32>,
    %c0_118 = arith.constant 0 : index
    %c4_119 = arith.constant 4 : index
    %c0_120 = arith.constant 0 : index
    %c0_121 = arith.constant 0 : index
    %77 = vector.load %arg12[%c0_118, %c4_119, %c0_120, %c0_121] : memref<2x12x12x32xf32, #tpu.memory_space<vmem>>, vector<2x8x8x32xf32>
    %78 = vector.shape_cast %77 : vector<2x8x8x32xf32> to vector<128x32xf32>
    %c0_122 = arith.constant 0 : index
    %c640 = arith.constant 640 : index
    %79 = vector.load %arg13[%c0_122, %c640] : memref<128x800xf32, #tpu.memory_space<vmem>>, vector<128x32xf32>
    tpu.vector_store %arg13[%c0_122, %c640], %78 {strides = array<i32>} : memref<128x800xf32, #tpu.memory_space<vmem>>, vector<128x32xf32>,
    %c0_123 = arith.constant 0 : index
    %c4_124 = arith.constant 4 : index
    %c1_125 = arith.constant 1 : index
    %c0_126 = arith.constant 0 : index
    %80 = vector.load %arg12[%c0_123, %c4_124, %c1_125, %c0_126] : memref<2x12x12x32xf32, #tpu.memory_space<vmem>>, vector<2x8x8x32xf32>
    %81 = vector.shape_cast %80 : vector<2x8x8x32xf32> to vector<128x32xf32>
    %c0_127 = arith.constant 0 : index
    %c672 = arith.constant 672 : index
    %82 = vector.load %arg13[%c0_127, %c672] : memref<128x800xf32, #tpu.memory_space<vmem>>, vector<128x32xf32>
    tpu.vector_store %arg13[%c0_127, %c672], %81 {strides = array<i32>} : memref<128x800xf32, #tpu.memory_space<vmem>>, vector<128x32xf32>,
    %c0_128 = arith.constant 0 : index
    %c4_129 = arith.constant 4 : index
    %c2_130 = arith.constant 2 : index
    %c0_131 = arith.constant 0 : index
    %83 = vector.load %arg12[%c0_128, %c4_129, %c2_130, %c0_131] : memref<2x12x12x32xf32, #tpu.memory_space<vmem>>, vector<2x8x8x32xf32>
    %84 = vector.shape_cast %83 : vector<2x8x8x32xf32> to vector<128x32xf32>
    %c0_132 = arith.constant 0 : index
    %c704 = arith.constant 704 : index
    %85 = vector.load %arg13[%c0_132, %c704] : memref<128x800xf32, #tpu.memory_space<vmem>>, vector<128x32xf32>
    tpu.vector_store %arg13[%c0_132, %c704], %84 {strides = array<i32>} : memref<128x800xf32, #tpu.memory_space<vmem>>, vector<128x32xf32>,
    %c0_133 = arith.constant 0 : index
    %c4_134 = arith.constant 4 : index
    %c3_135 = arith.constant 3 : index
    %c0_136 = arith.constant 0 : index
    %86 = vector.load %arg12[%c0_133, %c4_134, %c3_135, %c0_136] : memref<2x12x12x32xf32, #tpu.memory_space<vmem>>, vector<2x8x8x32xf32>
    %87 = vector.shape_cast %86 : vector<2x8x8x32xf32> to vector<128x32xf32>
    %c0_137 = arith.constant 0 : index
    %c736 = arith.constant 736 : index
    %88 = vector.load %arg13[%c0_137, %c736] : memref<128x800xf32, #tpu.memory_space<vmem>>, vector<128x32xf32>
    tpu.vector_store %arg13[%c0_137, %c736], %87 {strides = array<i32>} : memref<128x800xf32, #tpu.memory_space<vmem>>, vector<128x32xf32>,
    %c0_138 = arith.constant 0 : index
    %c4_139 = arith.constant 4 : index
    %c4_140 = arith.constant 4 : index
    %c0_141 = arith.constant 0 : index
    %89 = vector.load %arg12[%c0_138, %c4_139, %c4_140, %c0_141] : memref<2x12x12x32xf32, #tpu.memory_space<vmem>>, vector<2x8x8x32xf32>
    %90 = vector.shape_cast %89 : vector<2x8x8x32xf32> to vector<128x32xf32>
    %c0_142 = arith.constant 0 : index
    %c768 = arith.constant 768 : index
    %91 = vector.load %arg13[%c0_142, %c768] : memref<128x800xf32, #tpu.memory_space<vmem>>, vector<128x32xf32>
    tpu.vector_store %arg13[%c0_142, %c768], %90 {strides = array<i32>} : memref<128x800xf32, #tpu.memory_space<vmem>>, vector<128x32xf32>,
    %c0_143 = arith.constant 0 : index
    %c0_144 = arith.constant 0 : index
    %92 = vector.load %arg13[%c0_143, %c0_144] : memref<128x800xf32, #tpu.memory_space<vmem>>, vector<128x800xf32>
    %c0_145 = arith.constant 0 : index
    %c0_146 = arith.constant 0 : index
    %93 = vector.load %arg4[%c0_145, %c0_146] : memref<800x64xf32, #tpu.memory_space<vmem>>, vector<800x64xf32>
    %cst_147 = arith.constant dense<0.000000e+00> : vector<128x64xf32>
    %94 = tpu.matmul %92, %93, %cst_147 {dimension_numbers = #tpu.dot_dimension_numbers<[1], [0], [0], [1], [0, 0, 1, 1], [], []>} : vector<128x800xf32>, vector<800x64xf32>, vector<128x64xf32> -> vector<128x64xf32>
    %c0_148 = arith.constant 0 : index
    %c0_149 = arith.constant 0 : index
    %95 = vector.load %arg5[%c0_148, %c0_149] : memref<1x64xf32, #tpu.memory_space<vmem>>, vector<1x64xf32>
    %96 = vector.broadcast %95 : vector<1x64xf32> to vector<128x64xf32>
    %97 = arith.addf %94, %96 : vector<128x64xf32>
    %cst_150 = arith.constant 0.000000e+00 : f32
    %98 = vector.broadcast %cst_150 : f32 to vector<128x64xf32>
    %99 = arith.maximumf %97, %98 : vector<128x64xf32>
    %100 = vector.shape_cast %99 : vector<128x64xf32> to vector<8x2x8x64xf32>
    %cst_151 = arith.constant dense<0xFF800000> : vector<8x8x64xf32>
    %101 = vector.multi_reduction <maximumf>, %100, %cst_151 [1] : vector<8x2x8x64xf32> to vector<8x8x64xf32>
    %c0_152 = arith.constant 0 : index
    %c0_153 = arith.constant 0 : index
    %c0_154 = arith.constant 0 : index
    %102 = vector.load %arg14[%c0_152, %c0_153, %c0_154] : memref<8x8x64xf32, #tpu.memory_space<vmem>>, vector<8x8x64xf32>
    tpu.vector_store %arg14[%c0_152, %c0_153, %c0_154], %101 {strides = array<i32>} : memref<8x8x64xf32, #tpu.memory_space<vmem>>, vector<8x8x64xf32>,
    %c0_155 = arith.constant 0 : index
    %c0_156 = arith.constant 0 : index
    %c0_157 = arith.constant 0 : index
    %103 = tpu.strided_load %arg14[%c0_155, %c0_156, %c0_157] {strides = array<i32: 1, 2, 1>} : memref<8x8x64xf32, #tpu.memory_space<vmem>>, vector<8x4x64xf32>
    %c0_158 = arith.constant 0 : index
    %c1_159 = arith.constant 1 : index
    %c0_160 = arith.constant 0 : index
    %104 = tpu.strided_load %arg14[%c0_158, %c1_159, %c0_160] {strides = array<i32: 1, 2, 1>} : memref<8x8x64xf32, #tpu.memory_space<vmem>>, vector<8x4x64xf32>
    %105 = arith.maximumf %103, %104 : vector<8x4x64xf32>
    %106 = vector.shape_cast %105 : vector<8x4x64xf32> to vector<2x4x4x64xf32>
    %c0_161 = arith.constant 0 : index
    %c0_162 = arith.constant 0 : index
    %c0_163 = arith.constant 0 : index
    %c0_164 = arith.constant 0 : index
    %107 = vector.load %arg15[%c0_161, %c0_162, %c0_163, %c0_164] : memref<2x4x4x64xf32, #tpu.memory_space<vmem>>, vector<2x4x4x64xf32>
    tpu.vector_store %arg15[%c0_161, %c0_162, %c0_163, %c0_164], %106 {strides = array<i32>} : memref<2x4x4x64xf32, #tpu.memory_space<vmem>>, vector<2x4x4x64xf32>,
    %c0_165 = arith.constant 0 : index
    %c0_166 = arith.constant 0 : index
    %c0_167 = arith.constant 0 : index
    %c0_168 = arith.constant 0 : index
    %108 = vector.load %arg15[%c0_165, %c0_166, %c0_167, %c0_168] : memref<2x4x4x64xf32, #tpu.memory_space<vmem>>, vector<2x2x2x64xf32>
    %109 = vector.shape_cast %108 : vector<2x2x2x64xf32> to vector<8x64xf32>
    %c0_169 = arith.constant 0 : index
    %c0_170 = arith.constant 0 : index
    %110 = vector.load %arg16[%c0_169, %c0_170] : memref<8x576xf32, #tpu.memory_space<vmem>>, vector<8x64xf32>
    tpu.vector_store %arg16[%c0_169, %c0_170], %109 {strides = array<i32>} : memref<8x576xf32, #tpu.memory_space<vmem>>, vector<8x64xf32>,
    %c0_171 = arith.constant 0 : index
    %c0_172 = arith.constant 0 : index
    %c1_173 = arith.constant 1 : index
    %c0_174 = arith.constant 0 : index
    %111 = vector.load %arg15[%c0_171, %c0_172, %c1_173, %c0_174] : memref<2x4x4x64xf32, #tpu.memory_space<vmem>>, vector<2x2x2x64xf32>
    %112 = vector.shape_cast %111 : vector<2x2x2x64xf32> to vector<8x64xf32>
    %c0_175 = arith.constant 0 : index
    %c64_176 = arith.constant 64 : index
    %113 = vector.load %arg16[%c0_175, %c64_176] : memref<8x576xf32, #tpu.memory_space<vmem>>, vector<8x64xf32>
    tpu.vector_store %arg16[%c0_175, %c64_176], %112 {strides = array<i32>} : memref<8x576xf32, #tpu.memory_space<vmem>>, vector<8x64xf32>,
    %c0_177 = arith.constant 0 : index
    %c0_178 = arith.constant 0 : index
    %c2_179 = arith.constant 2 : index
    %c0_180 = arith.constant 0 : index
    %114 = vector.load %arg15[%c0_177, %c0_178, %c2_179, %c0_180] : memref<2x4x4x64xf32, #tpu.memory_space<vmem>>, vector<2x2x2x64xf32>
    %115 = vector.shape_cast %114 : vector<2x2x2x64xf32> to vector<8x64xf32>
    %c0_181 = arith.constant 0 : index
    %c128_182 = arith.constant 128 : index
    %116 = vector.load %arg16[%c0_181, %c128_182] : memref<8x576xf32, #tpu.memory_space<vmem>>, vector<8x64xf32>
    tpu.vector_store %arg16[%c0_181, %c128_182], %115 {strides = array<i32>} : memref<8x576xf32, #tpu.memory_space<vmem>>, vector<8x64xf32>,
    %c0_183 = arith.constant 0 : index
    %c1_184 = arith.constant 1 : index
    %c0_185 = arith.constant 0 : index
    %c0_186 = arith.constant 0 : index
    %117 = vector.load %arg15[%c0_183, %c1_184, %c0_185, %c0_186] : memref<2x4x4x64xf32, #tpu.memory_space<vmem>>, vector<2x2x2x64xf32>
    %118 = vector.shape_cast %117 : vector<2x2x2x64xf32> to vector<8x64xf32>
    %c0_187 = arith.constant 0 : index
    %c192_188 = arith.constant 192 : index
    %119 = vector.load %arg16[%c0_187, %c192_188] : memref<8x576xf32, #tpu.memory_space<vmem>>, vector<8x64xf32>
    tpu.vector_store %arg16[%c0_187, %c192_188], %118 {strides = array<i32>} : memref<8x576xf32, #tpu.memory_space<vmem>>, vector<8x64xf32>,
    %c0_189 = arith.constant 0 : index
    %c1_190 = arith.constant 1 : index
    %c1_191 = arith.constant 1 : index
    %c0_192 = arith.constant 0 : index
    %120 = vector.load %arg15[%c0_189, %c1_190, %c1_191, %c0_192] : memref<2x4x4x64xf32, #tpu.memory_space<vmem>>, vector<2x2x2x64xf32>
    %121 = vector.shape_cast %120 : vector<2x2x2x64xf32> to vector<8x64xf32>
    %c0_193 = arith.constant 0 : index
    %c256_194 = arith.constant 256 : index
    %122 = vector.load %arg16[%c0_193, %c256_194] : memref<8x576xf32, #tpu.memory_space<vmem>>, vector<8x64xf32>
    tpu.vector_store %arg16[%c0_193, %c256_194], %121 {strides = array<i32>} : memref<8x576xf32, #tpu.memory_space<vmem>>, vector<8x64xf32>,
    %c0_195 = arith.constant 0 : index
    %c1_196 = arith.constant 1 : index
    %c2_197 = arith.constant 2 : index
    %c0_198 = arith.constant 0 : index
    %123 = vector.load %arg15[%c0_195, %c1_196, %c2_197, %c0_198] : memref<2x4x4x64xf32, #tpu.memory_space<vmem>>, vector<2x2x2x64xf32>
    %124 = vector.shape_cast %123 : vector<2x2x2x64xf32> to vector<8x64xf32>
    %c0_199 = arith.constant 0 : index
    %c320_200 = arith.constant 320 : index
    %125 = vector.load %arg16[%c0_199, %c320_200] : memref<8x576xf32, #tpu.memory_space<vmem>>, vector<8x64xf32>
    tpu.vector_store %arg16[%c0_199, %c320_200], %124 {strides = array<i32>} : memref<8x576xf32, #tpu.memory_space<vmem>>, vector<8x64xf32>,
    %c0_201 = arith.constant 0 : index
    %c2_202 = arith.constant 2 : index
    %c0_203 = arith.constant 0 : index
    %c0_204 = arith.constant 0 : index
    %126 = vector.load %arg15[%c0_201, %c2_202, %c0_203, %c0_204] : memref<2x4x4x64xf32, #tpu.memory_space<vmem>>, vector<2x2x2x64xf32>
    %127 = vector.shape_cast %126 : vector<2x2x2x64xf32> to vector<8x64xf32>
    %c0_205 = arith.constant 0 : index
    %c384_206 = arith.constant 384 : index
    %128 = vector.load %arg16[%c0_205, %c384_206] : memref<8x576xf32, #tpu.memory_space<vmem>>, vector<8x64xf32>
    tpu.vector_store %arg16[%c0_205, %c384_206], %127 {strides = array<i32>} : memref<8x576xf32, #tpu.memory_space<vmem>>, vector<8x64xf32>,
    %c0_207 = arith.constant 0 : index
    %c2_208 = arith.constant 2 : index
    %c1_209 = arith.constant 1 : index
    %c0_210 = arith.constant 0 : index
    %129 = vector.load %arg15[%c0_207, %c2_208, %c1_209, %c0_210] : memref<2x4x4x64xf32, #tpu.memory_space<vmem>>, vector<2x2x2x64xf32>
    %130 = vector.shape_cast %129 : vector<2x2x2x64xf32> to vector<8x64xf32>
    %c0_211 = arith.constant 0 : index
    %c448_212 = arith.constant 448 : index
    %131 = vector.load %arg16[%c0_211, %c448_212] : memref<8x576xf32, #tpu.memory_space<vmem>>, vector<8x64xf32>
    tpu.vector_store %arg16[%c0_211, %c448_212], %130 {strides = array<i32>} : memref<8x576xf32, #tpu.memory_space<vmem>>, vector<8x64xf32>,
    %c0_213 = arith.constant 0 : index
    %c2_214 = arith.constant 2 : index
    %c2_215 = arith.constant 2 : index
    %c0_216 = arith.constant 0 : index
    %132 = vector.load %arg15[%c0_213, %c2_214, %c2_215, %c0_216] : memref<2x4x4x64xf32, #tpu.memory_space<vmem>>, vector<2x2x2x64xf32>
    %133 = vector.shape_cast %132 : vector<2x2x2x64xf32> to vector<8x64xf32>
    %c0_217 = arith.constant 0 : index
    %c512_218 = arith.constant 512 : index
    %134 = vector.load %arg16[%c0_217, %c512_218] : memref<8x576xf32, #tpu.memory_space<vmem>>, vector<8x64xf32>
    tpu.vector_store %arg16[%c0_217, %c512_218], %133 {strides = array<i32>} : memref<8x576xf32, #tpu.memory_space<vmem>>, vector<8x64xf32>,
    %c0_219 = arith.constant 0 : index
    %c0_220 = arith.constant 0 : index
    %135 = vector.load %arg16[%c0_219, %c0_220] : memref<8x576xf32, #tpu.memory_space<vmem>>, vector<8x576xf32>
    %c0_221 = arith.constant 0 : index
    %c0_222 = arith.constant 0 : index
    %136 = vector.load %arg6[%c0_221, %c0_222] : memref<576x128xf32, #tpu.memory_space<vmem>>, vector<576x128xf32>
    %cst_223 = arith.constant dense<0.000000e+00> : vector<8x128xf32>
    %137 = tpu.matmul %135, %136, %cst_223 {dimension_numbers = #tpu.dot_dimension_numbers<[1], [0], [0], [1], [0, 0, 1, 1], [], []>} : vector<8x576xf32>, vector<576x128xf32>, vector<8x128xf32> -> vector<8x128xf32>
    %c0_224 = arith.constant 0 : index
    %c0_225 = arith.constant 0 : index
    %138 = vector.load %arg7[%c0_224, %c0_225] : memref<1x128xf32, #tpu.memory_space<vmem>>, vector<1x128xf32>
    %139 = vector.broadcast %138 : vector<1x128xf32> to vector<8x128xf32>
    %140 = arith.addf %137, %139 : vector<8x128xf32>
    %cst_226 = arith.constant 0.000000e+00 : f32
    %141 = vector.broadcast %cst_226 : f32 to vector<8x128xf32>
    %142 = arith.maximumf %140, %141 : vector<8x128xf32>
    %143 = vector.shape_cast %142 : vector<8x128xf32> to vector<2x4x128xf32>
    %cst_227 = arith.constant dense<0.000000e+00> : vector<2x128xf32>
    %144 = vector.multi_reduction <add>, %143, %cst_227 [1] : vector<2x4x128xf32> to vector<2x128xf32>
    %cst_228 = arith.constant 2.500000e-01 : f32
    %145 = vector.broadcast %cst_228 : f32 to vector<2x128xf32>
    %146 = arith.mulf %144, %145 : vector<2x128xf32>
    %c0_229 = arith.constant 0 : index
    %c0_230 = arith.constant 0 : index
    %147 = vector.load %arg8[%c0_229, %c0_230] : memref<128x128xf32, #tpu.memory_space<vmem>>, vector<128x128xf32>
    %cst_231 = arith.constant dense<0.000000e+00> : vector<2x128xf32>
    %148 = tpu.matmul %146, %147, %cst_231 {dimension_numbers = #tpu.dot_dimension_numbers<[1], [0], [0], [1], [0, 0, 1, 1], [], []>} : vector<2x128xf32>, vector<128x128xf32>, vector<2x128xf32> -> vector<2x128xf32>
    %c0_232 = arith.constant 0 : index
    %c0_233 = arith.constant 0 : index
    %149 = vector.load %arg9[%c0_232, %c0_233] : memref<1x128xf32, #tpu.memory_space<vmem>>, vector<1x128xf32>
    %150 = vector.broadcast %149 : vector<1x128xf32> to vector<2x128xf32>
    %151 = arith.addf %148, %150 : vector<2x128xf32>
    %c0_234 = arith.constant 0 : index
    %c0_235 = arith.constant 0 : index
    %c0_236 = arith.constant 0 : index
    %152 = vector.load %arg10[%c0_234, %c0_235, %c0_236] : memref<1x2x128xf32, #tpu.memory_space<vmem>>, vector<1x2x128xf32>
    %153 = vector.shape_cast %152 : vector<1x2x128xf32> to vector<2x128xf32>
    %154 = vector.shape_cast %151 : vector<2x128xf32> to vector<1x2x128xf32>
    tpu.vector_store %arg10[%c0_234, %c0_235, %c0_236], %154 {strides = array<i32>} : memref<1x2x128xf32, #tpu.memory_space<vmem>>, vector<1x2x128xf32>,
    return
  }
  func.func @transform_0(%arg0: i32) -> (i32, i32, i32) {
    %c0_i32 = arith.constant 0 : i32
    %c0_i32_0 = arith.constant 0 : i32
    %c0_i32_1 = arith.constant 0 : i32
    return %arg0, %c0_i32, %c0_i32_0 : i32, i32, i32
  }
  func.func @transform_1(%arg0: i32) -> (i32, i32) {
    %c0_i32 = arith.constant 0 : i32
    %c0_i32_0 = arith.constant 0 : i32
    %c0_i32_1 = arith.constant 0 : i32
    return %c0_i32, %c0_i32_0 : i32, i32
  }
  func.func @transform_2(%arg0: i32) -> (i32, i32) {
    %c0_i32 = arith.constant 0 : i32
    %c0_i32_0 = arith.constant 0 : i32
    %c0_i32_1 = arith.constant 0 : i32
    return %c0_i32, %c0_i32_0 : i32, i32
  }
  func.func @transform_3(%arg0: i32) -> (i32, i32) {
    %c0_i32 = arith.constant 0 : i32
    %c0_i32_0 = arith.constant 0 : i32
    %c0_i32_1 = arith.constant 0 : i32
    return %c0_i32, %c0_i32_0 : i32, i32
  }
  func.func @transform_4(%arg0: i32) -> (i32, i32) {
    %c0_i32 = arith.constant 0 : i32
    %c0_i32_0 = arith.constant 0 : i32
    %c0_i32_1 = arith.constant 0 : i32
    return %c0_i32, %c0_i32_0 : i32, i32
  }
  func.func @transform_5(%arg0: i32) -> (i32, i32) {
    %c0_i32 = arith.constant 0 : i32
    %c0_i32_0 = arith.constant 0 : i32
    %c0_i32_1 = arith.constant 0 : i32
    return %c0_i32, %c0_i32_0 : i32, i32
  }
  func.func @transform_6(%arg0: i32) -> (i32, i32) {
    %c0_i32 = arith.constant 0 : i32
    %c0_i32_0 = arith.constant 0 : i32
    %c0_i32_1 = arith.constant 0 : i32
    return %c0_i32, %c0_i32_0 : i32, i32
  }
  func.func @transform_7(%arg0: i32) -> (i32, i32) {
    %c0_i32 = arith.constant 0 : i32
    %c0_i32_0 = arith.constant 0 : i32
    %c0_i32_1 = arith.constant 0 : i32
    return %c0_i32, %c0_i32_0 : i32, i32
  }
  func.func @transform_8(%arg0: i32) -> (i32, i32) {
    %c0_i32 = arith.constant 0 : i32
    %c0_i32_0 = arith.constant 0 : i32
    %c0_i32_1 = arith.constant 0 : i32
    return %c0_i32, %c0_i32_0 : i32, i32
  }
  func.func @transform_9(%arg0: i32) -> (i32, i32, i32) {
    %c0_i32 = arith.constant 0 : i32
    %c0_i32_0 = arith.constant 0 : i32
    %c0_i32_1 = arith.constant 0 : i32
    return %arg0, %c0_i32, %c0_i32_0 : i32, i32, i32
  }
}

</mosaic_0001>

<bundles_post_ra>
// kernel: tpu_custom_call.1
= control target key start
LH: loop header
LB: loop body
LE: loop exit
PB: predicated region body
PF: predicated region fallthrough
CT: control target
= control target key end

     0   :  { %vm185_vm0 = vcmask 261120   ;;  %s8401_s0 = inlined_call_operand.vmem [shape: f32[2,576,32], index: 0, kind: input, shape index: {}]   ;;  %s8402_s1 = inlined_call_operand.vmem [shape: f32[32,32], index: 1, kind: input, shape index: {}]   ;;  %s8403_s2 = inlined_call_operand.vmem [shape: f32[1,32], index: 2, kind: input, shape index: {}]   ;;  %s8404_s3 = inlined_call_operand.vmem [shape: f32[800,64], index: 3, kind: input, shape index: {}]   ;;  %s8405_s4 = inlined_call_operand.vmem [shape: f32[1,64], index: 4, kind: input, shape index: {}]   ;;  %s8406_s5 = inlined_call_operand.vmem [shape: f32[576,128], index: 5, kind: input, shape index: {}]   ;;  %s8407_s6 = inlined_call_operand.vmem [shape: f32[1,128], index: 6, kind: input, shape index: {}]   ;;  %s8408_s7 = inlined_call_operand.vmem [shape: f32[128,128], index: 7, kind: input, shape index: {}]   ;;  %s8409_s8 = inlined_call_operand.vmem [shape: f32[1,128], index: 8, kind: input, shape index: {}]   ;;  %s8410_s9 = inlined_call_operand.hbm [shape: f32[1,2,128], index: 9, kind: output, shape index: {}]  }
   0x1   :  { %v180_v0 = vld [vmem:[%s8402_s1 + $0x18] sm:$0xff]  ;;  %v179_v1 = vld [vmem:[%s8402_s1 + $0x10] sm:$0xff]  ;;  %v178_v2 = vld [vmem:[%s8402_s1 + $0x8] sm:$0xff] }
   0x2   :  { %630 = vmatpush.msra.mxu0 %v180_v0  ;;  %5163 = vmatpush.msra.mxu1 %v180_v0  ;;  %v177_v3 = vld [vmem:[%s8402_s1] sm:$0xff]  ;;  %v103_v5 = vld [vmem:[%s8401_s0 + $0x230] sm:$0xff]  ;;  %v120_v6 = vld [vmem:[%s8401_s0 + $0x2b8] sm:$0xff] }
   0x3   :  { %5164 = vmatpush.msra.mxu2 %v180_v0  ;;  %5165 = vmatpush.msra.mxu3 %v180_v0  ;;  %v33_v4 = vld [vmem:[%s8401_s0] sm:$0xff]  ;;  %v150_v7 = vld [vmem:[%s8401_s0 + $0x3a8] sm:$0xff] }
   0x4   :  { %631 = vmatpush.msra.mxu0 %v179_v1  ;;  %5166 = vmatpush.msra.mxu1 %v179_v1 }
   0x5   :  { %5167 = vmatpush.msra.mxu2 %v179_v1  ;;  %5168 = vmatpush.msra.mxu3 %v179_v1 }
   0x6   :  { %632 = vmatpush.msra.mxu0 %v178_v2  ;;  %5169 = vmatpush.msra.mxu1 %v178_v2 }
   0x7   :  { %5170 = vmatpush.msra.mxu2 %v178_v2  ;;  %5171 = vmatpush.msra.mxu3 %v178_v2 }
   0x8   :  { %633 = vmatpush.msra.mxu0 %v177_v3  ;;  %5172 = vmatpush.msra.mxu1 %v177_v3 }
   0x9   :  { %5173 = vmatpush.msra.mxu2 %v177_v3  ;;  %5174 = vmatpush.msra.mxu3 %v177_v3 }
   0xa   :  { %14 = vsyncpa [#allocation9], 0  ;;  %5002 = vmatmul.msk.f32.vlgmr.msra.gmra.mxu0 %vm185_vm0, %v33_v4  ;;  %5072 = vmatmul.msk.f32.vlgmr.msra.gmra.mxu1 %vm185_vm0, %v103_v5  ;;  %v34_v8 = vld [vmem:[%s8401_s0 + $0x8] sm:$0xff]  ;;  %v104_v9 = vld [vmem:[%s8401_s0 + $0x238] sm:$0xff]  ;;  %vm1739_vm1 = vcmask 257024   ;;  %s5212_s17 = smov 96  }
   0xb   :  { %5089 = vmatmul.msk.f32.vlgmr.msra.gmra.mxu2 %vm185_vm0, %v120_v6  ;;  %5119 = vmatmul.msk.f32.vlgmr.msra.gmra.mxu3 %vm185_vm0, %v150_v7  ;;  %v121_v10 = vld [vmem:[%s8401_s0 + $0x2c0] sm:$0xff]  ;;  %v151_v11 = vld [vmem:[%s8401_s0 + $0x3b0] sm:$0xff]  ;;  %v122_v14 = vld [vmem:[%s8401_s0 + $0x2c8] sm:$0xff]  ;;  %s5213_s18 = smov 32   ;;  %s5214_s23 = smov 64   ;;  %vm1899_vm2 = vcmask 523520  }
   0xc   :  { %v35_v12 = vld [vmem:[%s8401_s0 + $0x10] sm:$0xff]  ;;  %v105_v13 = vld [vmem:[%s8401_s0 + $0x240] sm:$0xff]  ;;  %v152_v15 = vld [vmem:[%s8401_s0 + $0x3b8] sm:$0xff]  ;;  %vm1996_vm3 = vcmask 785920   ;;  %vm2093_vm4 = vcmask 1048320   ;;  %vm4481_vm5 = vcmask 523264  }
   0xd   :  { %v36_v16 = vld [vmem:[%s8401_s0 + $0x18] sm:$0xff]  ;;  %v106_v17 = vld [vmem:[%s8401_s0 + $0x248] sm:$0xff]  ;;  %v123_v18 = vld [vmem:[%s8401_s0 + $0x2d0] sm:$0xff]  ;;  %vm4553_vm6 = vcmask 519168   ;;  %vm4599_vm7 = vcmask 1048064   ;;  %vm4923_vm8 = vcmask 1043456  }
   0xe   :  { %v153_v19 = vld [vmem:[%s8401_s0 + $0x3c0] sm:$0xff]  ;;  %v107_v21 = vld [vmem:[%s8401_s0 + $0x250] sm:$0xff]  ;;  %v124_v22 = vld [vmem:[%s8401_s0 + $0x2d8] sm:$0xff]  ;;  %vm4962_vm9 = vcmask 1041409   ;;  %s5215_s26 = smov [#allocation8]  }
   0xf   :  { %v37_v20 = vld [vmem:[%s8401_s0 + $0x20] sm:$0xff]  ;;  %v154_v23 = vld [vmem:[%s8401_s0 + $0x3c8] sm:$0xff]  ;;  %v108_v25 = vld [vmem:[%s8401_s0 + $0x258] sm:$0xff] }
  0x10   :  { %v38_v24 = vld [vmem:[%s8401_s0 + $0x28] sm:$0xff]  ;;  %v125_v26 = vld [vmem:[%s8401_s0 + $0x2e0] sm:$0xff]  ;;  %v155_v27 = vld [vmem:[%s8401_s0 + $0x3d0] sm:$0xff] }
  0x11   :  { %v39_v28 = vld [vmem:[%s8401_s0 + $0x30] sm:$0xff]  ;;  %v109_v29 = vld [vmem:[%s8401_s0 + $0x260] sm:$0xff]  ;;  %v126_v30 = vld [vmem:[%s8401_s0 + $0x2e8] sm:$0xff] }
  0x12   :  { %5003 = vmatmul.msk.f32.gmra.mxu0 %vm185_vm0, %v34_v8  ;;  %5073 = vmatmul.msk.f32.gmra.mxu1 %vm185_vm0, %v104_v9  ;;  %v156_v31 = vld [vmem:[%s8401_s0 + $0x3d8] sm:$0xff]  ;;  %v110_v33 = vld [vmem:[%s8401_s0 + $0x268] sm:$0xff]  ;;  %v127_v34 = vld [vmem:[%s8401_s0 + $0x2f0] sm:$0xff] }
  0x13   :  { %5090 = vmatmul.msk.f32.gmra.mxu2 %vm185_vm0, %v121_v10  ;;  %5120 = vmatmul.msk.f32.gmra.mxu3 %vm185_vm0, %v151_v11  ;;  %v40_v32 = vld [vmem:[%s8401_s0 + $0x38] sm:$0xff]  ;;  %v157_v35 = vld [vmem:[%s8401_s0 + $0x3e0] sm:$0xff]  ;;  %v111_v37 = vld [vmem:[%s8401_s0 + $0x270] sm:$0xff] }
  0x14   :  { %v41_v36 = vld [vmem:[%s8401_s0 + $0x40] sm:$0xff]  ;;  %v128_v38 = vld [vmem:[%s8401_s0 + $0x2f8] sm:$0xff]  ;;  %v158_v39 = vld [vmem:[%s8401_s0 + $0x3e8] sm:$0xff] }
  0x15   :  { %v42_v40 = vld [vmem:[%s8401_s0 + $0x48] sm:$0xff]  ;;  %v112_v41 = vld [vmem:[%s8401_s0 + $0x278] sm:$0xff]  ;;  %v129_v42 = vld [vmem:[%s8401_s0 + $0x300] sm:$0xff] }
  0x16   :  { %v43_v43 = vld [vmem:[%s8401_s0 + $0x50] sm:$0xff]  ;;  %v113_v44 = vld [vmem:[%s8401_s0 + $0x280] sm:$0xff]  ;;  %v130_v45 = vld [vmem:[%s8401_s0 + $0x308] sm:$0xff] }
  0x17   :  { %v44_v46 = vld [vmem:[%s8401_s0 + $0x58] sm:$0xff]  ;;  %v114_v47 = vld [vmem:[%s8401_s0 + $0x288] sm:$0xff]  ;;  %v131_v48 = vld [vmem:[%s8401_s0 + $0x310] sm:$0xff] }
  0x18   :  { %v45_v49 = vld [vmem:[%s8401_s0 + $0x60] sm:$0xff]  ;;  %v115_v50 = vld [vmem:[%s8401_s0 + $0x290] sm:$0xff]  ;;  %v132_v51 = vld [vmem:[%s8401_s0 + $0x318] sm:$0xff] }
  0x19   :  { %v46_v52 = vld [vmem:[%s8401_s0 + $0x68] sm:$0xff]  ;;  %v116_v53 = vld [vmem:[%s8401_s0 + $0x298] sm:$0xff]  ;;  %v133_v54 = vld [vmem:[%s8401_s0 + $0x320] sm:$0xff] }
  0x1a   :  { %5004 = vmatmul.msk.f32.gmra.mxu0 %vm185_vm0, %v35_v12  ;;  %5074 = vmatmul.msk.f32.gmra.mxu1 %vm185_vm0, %v105_v13  ;;  %v47_v55 = vld [vmem:[%s8401_s0 + $0x70] sm:$0xff]  ;;  %v117_v56 = vld [vmem:[%s8401_s0 + $0x2a0] sm:$0xff]  ;;  %v134_v57 = vld [vmem:[%s8401_s0 + $0x328] sm:$0xff] }
  0x1b   :  { %5091 = vmatmul.msk.f32.gmra.mxu2 %vm185_vm0, %v122_v14  ;;  %5121 = vmatmul.msk.f32.gmra.mxu3 %vm185_vm0, %v152_v15  ;;  %v48_v58 = vld [vmem:[%s8401_s0 + $0x78] sm:$0xff]  ;;  %v118_v59 = vld [vmem:[%s8401_s0 + $0x2a8] sm:$0xff]  ;;  %v135_v60 = vld [vmem:[%s8401_s0 + $0x330] sm:$0xff] }
  0x1c   :  { %v49_v63 = vld [vmem:[%s8401_s0 + $0x80] sm:$0xff]  ;;  %v119_v0 = vld [vmem:[%s8401_s0 + $0x2b0] sm:$0xff]  ;;  %v136_v1 = vld [vmem:[%s8401_s0 + $0x338] sm:$0xff] }
  0x1d   :  { %v50_v6 = vld [vmem:[%s8401_s0 + $0x88] sm:$0xff]  ;;  %v137_v7 = vld [vmem:[%s8401_s0 + $0x340] sm:$0xff]  ;;  %v51_v12 = vld [vmem:[%s8401_s0 + $0x90] sm:$0xff] }
  0x1e   :  { %v138_v13 = vld [vmem:[%s8401_s0 + $0x348] sm:$0xff]  ;;  %v5547_v14 = vld [vmem:[%s8403_s2] ss:$0 sm:$0xff] }
  0x22   :  { %5005 = vmatmul.msk.f32.gmra.mxu0 %vm185_vm0, %v36_v16  ;;  %5075 = vmatmul.msk.f32.gmra.mxu1 %vm185_vm0, %v106_v17 }
  0x23   :  { %5092 = vmatmul.msk.f32.gmra.mxu2 %vm185_vm0, %v123_v18  ;;  %5122 = vmatmul.msk.f32.gmra.mxu3 %vm185_vm0, %v153_v19 }
  0x2a   :  { %5006 = vmatmul.msk.f32.gmra.mxu0 %vm185_vm0, %v37_v20  ;;  %5076 = vmatmul.msk.f32.gmra.mxu1 %vm185_vm0, %v107_v21  ;;  %v52_v20 = vld [vmem:[%s8401_s0 + $0x98] sm:$0xff] }
  0x2b   :  { %5093 = vmatmul.msk.f32.gmra.mxu2 %vm185_vm0, %v124_v22  ;;  %5123 = vmatmul.msk.f32.gmra.mxu3 %vm185_vm0, %v154_v23  ;;  %v139_v23 = vld [vmem:[%s8401_s0 + $0x350] sm:$0xff] }
  0x32   :  { %5007 = vmatmul.msk.f32.gmra.mxu0 %vm185_vm0, %v38_v24  ;;  %5077 = vmatmul.msk.f32.gmra.mxu1 %vm185_vm0, %v108_v25 }
  0x33   :  { %5094 = vmatmul.msk.f32.gmra.mxu2 %vm185_vm0, %v125_v26  ;;  %5124 = vmatmul.msk.f32.gmra.mxu3 %vm185_vm0, %v155_v27 }
  0x3a   :  { %5008 = vmatmul.msk.f32.gmra.mxu0 %vm185_vm0, %v39_v28  ;;  %5078 = vmatmul.msk.f32.gmra.mxu1 %vm185_vm0, %v109_v29 }
  0x3b   :  { %5095 = vmatmul.msk.f32.gmra.mxu2 %vm185_vm0, %v126_v30  ;;  %5125 = vmatmul.msk.f32.gmra.mxu3 %vm185_vm0, %v156_v31 }
  0x42   :  { %5009 = vmatmul.msk.f32.gmra.mxu0 %vm185_vm0, %v40_v32  ;;  %5079 = vmatmul.msk.f32.gmra.mxu1 %vm185_vm0, %v110_v33  ;;  %v53_v33 = vld [vmem:[%s8401_s0 + $0xa0] sm:$0xff] }
  0x43   :  { %5096 = vmatmul.msk.f32.gmra.mxu2 %vm185_vm0, %v127_v34  ;;  %5126 = vmatmul.msk.f32.gmra.mxu3 %vm185_vm0, %v157_v35 }
  0x4a   :  { %5010 = vmatmul.msk.f32.gmra.mxu0 %vm185_vm0, %v41_v36  ;;  %5080 = vmatmul.msk.f32.gmra.mxu1 %vm185_vm0, %v111_v37  ;;  %v140_v36 = vld [vmem:[%s8401_s0 + $0x358] sm:$0xff] }
  0x4b   :  { %5097 = vmatmul.msk.f32.gmra.mxu2 %vm185_vm0, %v128_v38  ;;  %5127 = vmatmul.msk.f32.gmra.mxu3 %vm185_vm0, %v158_v39 }
  0x52   :  { %5011 = vmatmul.msk.f32.gmra.mxu0 %vm185_vm0, %v42_v40  ;;  %5081 = vmatmul.msk.f32.gmra.mxu1 %vm185_vm0, %v112_v41 }
  0x53   :  { %5098 = vmatmul.msk.f32.gmra.mxu2 %vm185_vm0, %v129_v42 }
  0x5a   :  { %5012 = vmatmul.msk.f32.gmra.mxu0 %vm185_vm0, %v43_v43  ;;  %5082 = vmatmul.msk.f32.gmra.mxu1 %vm185_vm0, %v113_v44 }
  0x5b   :  { %5099 = vmatmul.msk.f32.gmra.mxu2 %vm185_vm0, %v130_v45 }
  0x62   :  { %5013 = vmatmul.msk.f32.gmra.mxu0 %vm185_vm0, %v44_v46  ;;  %5083 = vmatmul.msk.f32.gmra.mxu1 %vm185_vm0, %v114_v47 }
  0x63   :  { %5100 = vmatmul.msk.f32.gmra.mxu2 %vm185_vm0, %v131_v48  ;;  %v54_v48 = vld [vmem:[%s8401_s0 + $0xa8] sm:$0xff] }
  0x6a   :  { %5014 = vmatmul.msk.f32.gmra.mxu0 %vm185_vm0, %v45_v49  ;;  %5084 = vmatmul.msk.f32.gmra.mxu1 %vm185_vm0, %v115_v50 }
  0x6b   :  { %5101 = vmatmul.msk.f32.gmra.mxu2 %vm185_vm0, %v132_v51 }
  0x72   :  { %5015 = vmatmul.msk.f32.gmra.mxu0 %vm185_vm0, %v46_v52  ;;  %5085 = vmatmul.msk.f32.gmra.mxu1 %vm185_vm0, %v116_v53  ;;  %v141_v52 = vld [vmem:[%s8401_s0 + $0x360] sm:$0xff] }
  0x73   :  { %5102 = vmatmul.msk.f32.gmra.mxu2 %vm185_vm0, %v133_v54 }
  0x7a   :  { %5016 = vmatmul.msk.f32.gmra.mxu0 %vm185_vm0, %v47_v55  ;;  %5086 = vmatmul.msk.f32.gmra.mxu1 %vm185_vm0, %v117_v56 }
  0x7b   :  { %5103 = vmatmul.msk.f32.gmra.mxu2 %vm185_vm0, %v134_v57 }
  0x82   :  { %5017 = vmatmul.msk.f32.gmra.mxu0 %vm185_vm0, %v48_v58  ;;  %5087 = vmatmul.msk.f32.gmra.mxu1 %vm185_vm0, %v118_v59 }
  0x83   :  { %5104 = vmatmul.msk.f32.gmra.mxu2 %vm185_vm0, %v135_v60 }
  0x87   :  { %v635_v61 = vpop.f32.mrf.mxu0  ;;  %v5506_v62 = vpop.f32.mrf.mxu1 }
  0x88   :  { %v636_v15 = vadd.f32 %v5547_v14, %v635_v61 }
  0x8a   :  { %5018 = vmatmul.msk.f32.gmra.mxu0 %vm185_vm0, %v49_v63  ;;  %5088 = vmatmul.msk.f32.gmra.mxu1 %vm185_vm0, %v119_v0  ;;  %v1067_v21 = vmax.f32 %v636_v15, 0.0  ;;  %v142_v15 = vld [vmem:[%s8401_s0 + $0x368] sm:$0xff] }
  0x8b   :  { %5105 = vmatmul.msk.f32.gmra.mxu2 %vm185_vm0, %v136_v1 }
  0x8c   :  { %v1211_v25 = vsel %vm185_vm0, %v1067_v21, -inf }
  0x8e   :  { %v5520_v2 = vpop.f32.mrf.mxu2  ;;  %v5522_v3 = vpop.f32.mrf.mxu3 }
  0x8f   :  { %v638_v4 = vpop.f32.mrf.mxu0  ;;  %v5524_v5 = vpop.f32.mrf.mxu1 }
  0x90   :  { %v639_v26 = vadd.f32 %v5547_v14, %v638_v4 }
  0x92   :  { %5019 = vmatmul.msk.f32.gmra.mxu0 %vm185_vm0, %v50_v6  ;;  %v1068_v34 = vmax.f32 %v639_v26, 0.0 }
  0x93   :  { %5106 = vmatmul.msk.f32.gmra.mxu2 %vm185_vm0, %v137_v7 }
  0x94   :  { %v1214_v39 = vsel %vm185_vm0, %v1068_v34, -inf }
  0x96   :  { %v5534_v8 = vpop.f32.mrf.mxu2  ;;  %v5536_v9 = vpop.f32.mrf.mxu3 }
  0x97   :  { %v641_v10 = vpop.f32.mrf.mxu0  ;;  %v851_v11 = vpop.f32.mrf.mxu1 }
  0x98   :  { %v642_v38 = vadd.f32 %v5547_v14, %v641_v10  ;;  %v852_v40 = vadd.f32 %v5547_v14, %v851_v11  ;;  %v55_v10 = vld [vmem:[%s8401_s0 + $0xb0] sm:$0xff] }
  0x9a   :  { %5020 = vmatmul.msk.f32.gmra.mxu0 %vm185_vm0, %v51_v12  ;;  %v1069_v45 = vmax.f32 %v642_v38, 0.0  ;;  %v1139_v49 = vmax.f32 %v852_v40, 0.0 }
  0x9b   :  { %5107 = vmatmul.msk.f32.gmra.mxu2 %vm185_vm0, %v138_v13 }
  0x9c   :  { %v1217_v55 = vsel %vm185_vm0, %v1069_v45, -inf  ;;  %v1319_v56 = vsel %vm185_vm0, %v1139_v49, -inf }
  0x9e   :  { %v5552_v16 = vpop.f32.mrf.mxu2  ;;  %v5554_v17 = vpop.f32.mrf.mxu3 }
  0x9f   :  { %v644_v18 = vpop.f32.mrf.mxu0  ;;  %v854_v19 = vpop.f32.mrf.mxu1 }
  0xa0   :  { %v645_v22 = vadd.f32 %v5547_v14, %v644_v18  ;;  %v855_v57 = vadd.f32 %v5547_v14, %v854_v19 }
  0xa2   :  { %v1070_v24 = vmax.f32 %v645_v22, 0.0  ;;  %5021 = vmatmul.msk.f32.gmra.mxu0 %vm185_vm0, %v52_v20  ;;  %v1140_v12 = vmax.f32 %v855_v57, 0.0 }
  0xa3   :  { %5108 = vmatmul.msk.f32.gmra.mxu2 %vm185_vm0, %v139_v23 }
  0xa4   :  { %v1212_v27 = vsel %vm185_vm0, %v1070_v24, -inf  ;;  %v1322_v21 = vsel %vm185_vm0, %v1140_v12, -inf }
  0xa5   :  { %v1213_v28 = vmax.f32 %v1211_v25, %v1212_v27 }
  0xa6   :  { %v905_v29 = vpop.f32.mrf.mxu2  ;;  %v995_v30 = vpop.f32.mrf.mxu3 }
  0xa7   :  { %1427 = vst.msk [vmem:[#allocation2] sm:$0xff] %vm185_vm0, %v1213_v28  ;;  %v647_v31 = vpop.f32.mrf.mxu0  ;;  %v857_v32 = vpop.f32.mrf.mxu1  ;;  %v996_v18 = vadd.f32 %v5547_v14, %v995_v30  ;;  %v906_v20 = vadd.f32 %v5547_v14, %v905_v29 }
  0xa8   :  { %v648_v35 = vadd.f32 %v5547_v14, %v647_v31  ;;  %v858_v22 = vadd.f32 %v5547_v14, %v857_v32  ;;  %v56_v32 = vld [vmem:[%s8401_s0 + $0xb8] sm:$0xff] }
  0xa9   :  { %v1187_v24 = vmax.f32 %v996_v18, 0.0  ;;  %v1157_v31 = vmax.f32 %v906_v20, 0.0 }
  0xaa   :  { %v1071_v37 = vmax.f32 %v648_v35, 0.0  ;;  %5022 = vmatmul.msk.f32.gmra.mxu0 %vm185_vm0, %v53_v33 }
  0xab   :  { %5109 = vmatmul.msk.f32.gmra.mxu2 %vm185_vm0, %v140_v36 }
  0xac   :  { %v1215_v41 = vsel %vm185_vm0, %v1071_v37, -inf  ;;  %v1141_v37 = vmax.f32 %v858_v22, 0.0 }
  0xad   :  { %v1216_v42 = vmax.f32 %v1214_v39, %v1215_v41  ;;  %v143_v39 = vld [vmem:[%s8401_s0 + $0x370] sm:$0xff]  ;;  %v1391_v41 = vsel %vm185_vm0, %v1187_v24, -inf }
  0xae   :  { %v5582_v43 = vpop.f32.mrf.mxu2  ;;  %v5584_v44 = vpop.f32.mrf.mxu3 }
  0xaf   :  { %1428 = vst.msk [vmem:[#allocation2 + $0x8] sm:$0xff] %vm185_vm0, %v1216_v42  ;;  %v650_v46 = vpop.f32.mrf.mxu0  ;;  %v860_v47 = vpop.f32.mrf.mxu1  ;;  %v999_v42 = vadd.f32 %v5547_v14, %v5584_v44  ;;  %v909_v49 = vadd.f32 %v5547_v14, %v5582_v43  ;;  %v1325_v44 = vsel %vm185_vm0, %v1141_v37, -inf }
  0xb0   :  { %v651_v50 = vadd.f32 %v5547_v14, %v650_v46  ;;  %v861_v51 = vadd.f32 %v5547_v14, %v860_v47 }
  0xb2   :  { %v1072_v53 = vmax.f32 %v651_v50, 0.0  ;;  %v1142_v54 = vmax.f32 %v861_v51, 0.0  ;;  %5023 = vmatmul.msk.f32.gmra.mxu0 %vm185_vm0, %v54_v48  ;;  %v1346_v48 = vsel %vm185_vm0, %v1157_v31, -inf }
  0xb3   :  { %5110 = vmatmul.msk.f32.gmra.mxu2 %vm185_vm0, %v141_v52 }
  0xb4   :  { %v1218_v58 = vsel %vm185_vm0, %v1072_v53, -inf  ;;  %v1320_v59 = vsel %vm185_vm0, %v1142_v54, -inf }
  0xb5   :  { %v1219_v60 = vmax.f32 %v1217_v55, %v1218_v58  ;;  %v1321_v61 = vmax.f32 %v1319_v56, %v1320_v59  ;;  %v1188_v55 = vmax.f32 %v999_v42, 0.0 }
  0xb6   :  { %v5602_v63 = vpop.f32.mrf.mxu2  ;;  %v5604_v0 = vpop.f32.mrf.mxu3  ;;  %v1499_v1 = vld [vmem:[#allocation2] ss:$2 sm:$0xff]  ;;  %v1595_v4 = vld [vmem:[#allocation2 + $0x1] ss:$2 sm:$0xff] }
  0xb7   :  { %1429 = vst.msk [vmem:[#allocation2 + $0x10] sm:$0xff] %vm185_vm0, %v1219_v60  ;;  %v5607_v6 = vpop.f32.mrf.mxu0  ;;  %v863_v7 = vpop.f32.mrf.mxu1  ;;  %v1690_v11 = vmax.f32 %v1499_v1, %v1595_v4  ;;  %v1158_v60 = vmax.f32 %v909_v49, 0.0  ;;  %v1394_v18 = vsel %vm185_vm0, %v1188_v55, -inf  ;;  %v912_v24 = vadd.f32 %v5547_v14, %v5602_v63 }
  0xb8   :  { %1463 = vst.msk [vmem:[#allocation2 + $0x120] sm:$0xff] %vm185_vm0, %v1321_v61  ;;  %v864_v13 = vadd.f32 %v5547_v14, %v863_v7 }
  0xb9   :  { %1738 = vst.msk [vmem:[#allocation3] sm:$0xff] %vm185_vm0, %v1690_v11 }
  0xba   :  { %v1143_v19 = vmax.f32 %v864_v13, 0.0  ;;  %5024 = vmatmul.msk.f32.gmra.mxu0 %vm185_vm0, %v55_v10  ;;  %v57_v10 = vld [vmem:[%s8401_s0 + $0xc0] sm:$0xff] }
  0xbb   :  { %5111 = vmatmul.msk.f32.gmra.mxu2 %vm185_vm0, %v142_v15  ;;  %v144_v15 = vld [vmem:[%s8401_s0 + $0x378] sm:$0xff] }
  0xbc   :  { %v1323_v23 = vsel %vm185_vm0, %v1143_v19, -inf  ;;  %v1002_v19 = vadd.f32 %v5547_v14, %v5604_v0  ;;  %v1349_v0 = vsel %vm185_vm0, %v1158_v60, -inf }
  0xbd   :  { %v1324_v25 = vmax.f32 %v1322_v21, %v1323_v23  ;;  %v654_v23 = vadd.f32 %v5547_v14, %v5607_v6 }
  0xbe   :  { %v914_v26 = vpop.f32.mrf.mxu2  ;;  %v1004_v27 = vpop.f32.mrf.mxu3  ;;  %v1501_v28 = vld [vmem:[#allocation2 + $0x10] ss:$2 sm:$0xf]  ;;  %v1597_v30 = vld [vmem:[#allocation2 + $0x11] ss:$2 sm:$0xf] }
  0xbf   :  { %1464 = vst.msk [vmem:[#allocation2 + $0x128] sm:$0xff] %vm185_vm0, %v1324_v25  ;;  %v915_v29 = vadd.f32 %v5547_v14, %v914_v26  ;;  %v1005_v33 = vadd.f32 %v5547_v14, %v1004_v27  ;;  %v5628_v34 = vpop.f32.mrf.mxu0  ;;  %v866_v35 = vpop.f32.mrf.mxu1  ;;  %v1691_v36 = vmax.f32 %v1501_v28, %v1597_v30  ;;  %v1189_v30 = vmax.f32 %v1002_v19, 0.0 }
  0xc0   :  { %v867_v38 = vadd.f32 %v5547_v14, %v866_v35  ;;  %v1787_v40 = vld [vmem:[#allocation3] sm:$0xff]  ;;  %v1073_v31 = vmax.f32 %v654_v23, 0.0  ;;  %v1159_v35 = vmax.f32 %v912_v24, 0.0 }
  0xc1   :  { %v1160_v45 = vmax.f32 %v915_v29, 0.0  ;;  %v1190_v46 = vmax.f32 %v1005_v33, 0.0  ;;  %1740 = vst.msk [vmem:[#allocation3 + $0x8] sm:$0xf] %vm1739_vm1, %v1691_v36  ;;  %v58_v33 = vld [vmem:[%s8401_s0 + $0xc8] sm:$0xff] }
  0xc2   :  { %v1144_v47 = vmax.f32 %v867_v38, 0.0  ;;  %5025 = vmatmul.msk.f32.gmra.mxu0 %vm185_vm0, %v56_v32  ;;  %1803 = vst.msk [vmem:[#allocation4] sm:$0xff] %vm185_vm0, %v1787_v40  ;;  %v145_v38 = vld [vmem:[%s8401_s0 + $0x380] sm:$0xff] }
  0xc3   :  { %v1347_v50 = vsel %vm185_vm0, %v1160_v45, -inf  ;;  %v1392_v51 = vsel %vm185_vm0, %v1190_v46, -inf  ;;  %5112 = vmatmul.msk.f32.gmra.mxu2 %vm185_vm0, %v143_v39  ;;  %v1397_v46 = vsel %vm185_vm0, %v1189_v30, -inf }
  0xc4   :  { %v1348_v52 = vmax.f32 %v1346_v48, %v1347_v50  ;;  %v1393_v53 = vmax.f32 %v1391_v41, %v1392_v51  ;;  %v1326_v54 = vsel %vm185_vm0, %v1144_v47, -inf  ;;  %v1220_v50 = vsel %vm185_vm0, %v1073_v31, -inf }
  0xc5   :  { %v1327_v56 = vmax.f32 %v1325_v44, %v1326_v54  ;;  %v657_v51 = vadd.f32 %v5547_v14, %v5628_v34 }
  0xc6   :  { %1472 = vst.msk [vmem:[#allocation2 + $0x168] sm:$0xff] %vm185_vm0, %v1348_v52  ;;  %v917_v57 = vpop.f32.mrf.mxu2  ;;  %v1007_v58 = vpop.f32.mrf.mxu3  ;;  %v1547_v59 = vld [vmem:[#allocation2 + $0x120] ss:$2 sm:$0xff]  ;;  %v1643_v43 = vld [vmem:[#allocation2 + $0x121] ss:$2 sm:$0xff]  ;;  %v1352_v52 = vsel %vm185_vm0, %v1159_v35, -inf }
  0xc7   :  { %1487 = vst.msk [vmem:[#allocation2 + $0x1e0] sm:$0xff] %vm185_vm0, %v1393_v53  ;;  %v918_v61 = vadd.f32 %v5547_v14, %v917_v57  ;;  %v1008_v1 = vadd.f32 %v5547_v14, %v1007_v58  ;;  %v5655_v4 = vpop.f32.mrf.mxu0  ;;  %v5657_v7 = vpop.f32.mrf.mxu1  ;;  %v1714_v11 = vmax.f32 %v1547_v59, %v1643_v43  ;;  %v1074_v43 = vmax.f32 %v657_v51, 0.0 }
  0xc8   :  { %1465 = vst.msk [vmem:[#allocation2 + $0x130] sm:$0xff] %vm185_vm0, %v1327_v56  ;;  %v2013_v12 = vld [vmem:[#allocation3 + $0x3] sm:$0xff]  ;;  %v870_v19 = vadd.f32 %v5547_v14, %v5657_v7 }
  0xc9   :  { %v1819_v13 = vld [vmem:[#allocation3 + $0x1] sm:$0xff]  ;;  %v1161_v20 = vmax.f32 %v918_v61, 0.0  ;;  %v1191_v21 = vmax.f32 %v1008_v1, 0.0  ;;  %2045 = vrot.lane.b32.xlu1 %v2013_v12, %s5212_s17  ;;  %1763 = vst.msk [vmem:[#allocation3 + $0xc0] sm:$0xff] %vm185_vm0, %v1714_v11 }
  0xca   :  { %1851 = vrot.lane.b32.xlu0 %v1819_v13, %s5213_s18  ;;  %v2110_v22 = vld [vmem:[#allocation3 + $0x4] sm:$0xff]  ;;  %5026 = vmatmul.msk.f32.gmra.mxu0 %vm185_vm0, %v57_v10 }
  0xcb   :  { %2126 = vst.msk [vmem:[#allocation4 + $0x8] sm:$0xff] %vm185_vm0, %v2110_v22  ;;  %v1350_v25 = vsel %vm185_vm0, %v1161_v20, -inf  ;;  %v1395_v26 = vsel %vm185_vm0, %v1191_v21, -inf  ;;  %5113 = vmatmul.msk.f32.gmra.mxu2 %vm185_vm0, %v144_v15  ;;  %v1916_v41 = vld [vmem:[#allocation3 + $0x2] sm:$0xff]  ;;  %v1223_v22 = vsel %vm185_vm0, %v1074_v43, -inf }
  0xcc   :  { %v1351_v27 = vmax.f32 %v1349_v0, %v1350_v25  ;;  %v1396_v28 = vmax.f32 %v1394_v18, %v1395_v26  ;;  %v59_v13 = vld [vmem:[%s8401_s0 + $0xd0] sm:$0xff]  ;;  %v660_v18 = vadd.f32 %v5547_v14, %v5655_v4  ;;  %v146_v21 = vld [vmem:[%s8401_s0 + $0x388] sm:$0xff]  ;;  %v1145_v26 = vmax.f32 %v870_v19, 0.0 }
  0xce   :  { %1473 = vst.msk [vmem:[#allocation2 + $0x170] sm:$0xff] %vm185_vm0, %v1351_v27  ;;  %v920_v6 = vpop.f32.mrf.mxu2  ;;  %v1010_v29 = vpop.f32.mrf.mxu3  ;;  %v1075_v7 = vmax.f32 %v660_v18, 0.0 }
  0xcf   :  { %1488 = vst.msk [vmem:[#allocation2 + $0x1e8] sm:$0xff] %vm185_vm0, %v1396_v28  ;;  %v921_v63 = vadd.f32 %v5547_v14, %v920_v6  ;;  %v1011_v32 = vadd.f32 %v5547_v14, %v1010_v29  ;;  %v662_v36 = vpop.f32.mrf.mxu0  ;;  %v5689_v37 = vpop.f32.mrf.mxu1  ;;  %v1549_v39 = vld [vmem:[#allocation2 + $0x130] ss:$2 sm:$0xf] }
  0xd0   :  { %v663_v40 = vadd.f32 %v5547_v14, %v662_v36  ;;  %v1645_v42 = vld [vmem:[#allocation2 + $0x131] ss:$2 sm:$0xf]  ;;  %v1795_v45 = vld [vmem:[#allocation3 + $0xc0] sm:$0xff] }
  0xd1   :  { %v1162_v47 = vmax.f32 %v921_v63, 0.0  ;;  %v1192_v48 = vmax.f32 %v1011_v32, 0.0  ;;  %v1715_v49 = vmax.f32 %v1549_v39, %v1645_v42  ;;  %1811 = vst.msk [vmem:[#allocation4 + $0x1c0] sm:$0xff] %vm185_vm0, %v1795_v45  ;;  %v60_v36 = vld [vmem:[%s8401_s0 + $0xd8] sm:$0xff]  ;;  %v1226_v42 = vsel %vm185_vm0, %v1075_v7, -inf  ;;  %v147_v45 = vld [vmem:[%s8401_s0 + $0x390] sm:$0xff] }
  0xd2   :  { %1948 = vrot.lane.b32.xlu0 %v1916_v41, %s5214_s23  ;;  %v1076_v44 = vmax.f32 %v663_v40, 0.0  ;;  %5027 = vmatmul.msk.f32.gmra.mxu0 %vm185_vm0, %v58_v33 }
  0xd3   :  { %v1353_v53 = vsel %vm185_vm0, %v1162_v47, -inf  ;;  %v1398_v54 = vsel %vm185_vm0, %v1192_v48, -inf  ;;  %5114 = vmatmul.msk.f32.gmra.mxu2 %vm185_vm0, %v145_v38  ;;  %1764 = vst.msk [vmem:[#allocation3 + $0xc8] sm:$0xf] %vm1739_vm1, %v1715_v49  ;;  %v1328_v47 = vsel %vm185_vm0, %v1145_v26, -inf  ;;  %v873_v48 = vadd.f32 %v5547_v14, %v5689_v37 }
  0xd4   :  { %v1354_v55 = vmax.f32 %v1352_v52, %v1353_v53  ;;  %v1399_v56 = vmax.f32 %v1397_v46, %v1398_v54  ;;  %v1221_v57 = vsel %vm185_vm0, %v1076_v44, -inf }
  0xd5   :  { %v1222_v58 = vmax.f32 %v1220_v50, %v1221_v57  ;;  %v1559_v59 = vld [vmem:[#allocation2 + $0x168] ss:$2 sm:$0xff]  ;;  %v1655_v34 = vld [vmem:[#allocation2 + $0x169] ss:$2 sm:$0xff]  ;;  %v1146_v53 = vmax.f32 %v873_v48, 0.0 }
  0xd6   :  { %1474 = vst.msk [vmem:[#allocation2 + $0x178] sm:$0xff] %vm185_vm0, %v1354_v55  ;;  %v5709_v60 = vpop.f32.mrf.mxu2  ;;  %v1720_v61 = vmax.f32 %v1559_v59, %v1655_v34  ;;  %v1579_v1 = vld [vmem:[#allocation2 + $0x1e0] ss:$2 sm:$0xff]  ;;  %v1675_v10 = vld [vmem:[#allocation2 + $0x1e1] ss:$2 sm:$0xff]  ;;  %v61_v34 = vld [vmem:[%s8401_s0 + $0xe0] sm:$0xff] }
  0xd7   :  { %1489 = vst.msk [vmem:[#allocation2 + $0x1f0] sm:$0xff] %vm185_vm0, %v1399_v56  ;;  %v665_v11 = vpop.f32.mrf.mxu0  ;;  %v5712_v12 = vpop.f32.mrf.mxu1  ;;  %v1730_v15 = vmax.f32 %v1579_v1, %v1675_v10  ;;  %v924_v10 = vadd.f32 %v5547_v14, %v5709_v60  ;;  %v1331_v18 = vsel %vm185_vm0, %v1146_v53, -inf  ;;  %v63_v53 = vld [vmem:[%s8401_s0 + $0xf0] sm:$0xff] }
  0xd8   :  { %1430 = vst.msk [vmem:[#allocation2 + $0x18] sm:$0xff] %vm185_vm0, %v1222_v58  ;;  %v666_v20 = vadd.f32 %v5547_v14, %v665_v11  ;;  %v876_v11 = vadd.f32 %v5547_v14, %v5712_v12 }
  0xd9   :  { %1769 = vst.msk [vmem:[#allocation3 + $0xf0] sm:$0xff] %vm185_vm0, %v1720_v61 }
  0xda   :  { %v1077_v23 = vmax.f32 %v666_v20, 0.0  ;;  %v2021_v0 = vld [vmem:[#allocation3 + $0xc3] sm:$0xff]  ;;  %5028 = vmatmul.msk.f32.gmra.mxu0 %vm185_vm0, %v59_v13  ;;  %1779 = vst.msk [vmem:[#allocation3 + $0x140] sm:$0xff] %vm185_vm0, %v1730_v15  ;;  %v148_v13 = vld [vmem:[%s8401_s0 + $0x398] sm:$0xff] }
  0xdb   :  { %v1924_v24 = vld [vmem:[#allocation3 + $0xc2] sm:$0xff]  ;;  %2061 = vrot.lane.b32.xlu2 %v2021_v0, %s5212_s17  ;;  %5115 = vmatmul.msk.f32.gmra.mxu2 %vm185_vm0, %v146_v21  ;;  %v1163_v21 = vmax.f32 %v924_v10, 0.0 }
  0xdc   :  { %v1827_v25 = vld [vmem:[#allocation3 + $0xc1] sm:$0xff]  ;;  %1964 = vrot.lane.b32.xlu1 %v1924_v24, %s5214_s23  ;;  %v1224_v27 = vsel %vm185_vm0, %v1077_v23, -inf }
  0xdd   :  { %v2118_v4 = vld [vmem:[#allocation3 + $0xc4] sm:$0xff]  ;;  %1867 = vrot.lane.b32.xlu0 %v1827_v25, %s5213_s18  ;;  %v1225_v28 = vmax.f32 %v1223_v22, %v1224_v27  ;;  %v1561_v30 = vld [vmem:[#allocation2 + $0x178] ss:$2 sm:$0xf]  ;;  %v1147_v22 = vmax.f32 %v876_v11, 0.0 }
  0xde   :  { %2134 = vst.msk [vmem:[#allocation4 + $0x1c8] sm:$0xff] %vm185_vm0, %v2118_v4  ;;  %v1657_v31 = vld [vmem:[#allocation2 + $0x179] ss:$2 sm:$0xf]  ;;  %v5736_v6 = vpop.f32.mrf.mxu2 }
  0xdf   :  { %v1721_v29 = vmax.f32 %v1561_v30, %v1657_v31  ;;  %v1581_v33 = vld [vmem:[#allocation2 + $0x1f0] ss:$2 sm:$0xf]  ;;  %v1677_v35 = vld [vmem:[#allocation2 + $0x1f1] ss:$2 sm:$0xf]  ;;  %v668_v63 = vpop.f32.mrf.mxu0  ;;  %v878_v32 = vpop.f32.mrf.mxu1 }
  0xe0   :  { %1431 = vst.msk [vmem:[#allocation2 + $0x20] sm:$0xff] %vm185_vm0, %v1225_v28  ;;  %v1731_v38 = vmax.f32 %v1581_v33, %v1677_v35  ;;  %v669_v39 = vadd.f32 %v5547_v14, %v668_v63  ;;  %v879_v40 = vadd.f32 %v5547_v14, %v878_v32  ;;  %v2569_v41 = vld [vmem:[#allocation3 + $0xf0] sm:$0xff]  ;;  %v62_v30 = vld [vmem:[%s8401_s0 + $0xe8] sm:$0xff]  ;;  %v1355_v63 = vsel %vm185_vm0, %v1163_v21, -inf }
  0xe1   :  { %1770 = vst.msk [vmem:[#allocation3 + $0xf8] sm:$0xf] %vm1739_vm1, %v1721_v29  ;;  %v3406_v46 = vld [vmem:[#allocation3 + $0x140] sm:$0xff]  ;;  %v927_v32 = vadd.f32 %v5547_v14, %v5736_v6 }
  0xe2   :  { %1780 = vst.msk [vmem:[#allocation3 + $0x148] sm:$0xf] %vm1739_vm1, %v1731_v38  ;;  %v1078_v49 = vmax.f32 %v669_v39, 0.0  ;;  %v1148_v50 = vmax.f32 %v879_v40, 0.0  ;;  %5029 = vmatmul.msk.f32.gmra.mxu0 %vm185_vm0, %v60_v36  ;;  %v5792_v60 = vld [vmem:[#allocation3 + $0x140] sm:$0xff]  ;;  %v149_v38 = vld [vmem:[%s8401_s0 + $0x3a0] sm:$0xff] }
  0xe3   :  { %1814 = vst.msk [vmem:[#allocation4 + $0x268] sm:$0xff] %vm185_vm0, %v2569_v41  ;;  %2610 = vrot.lane.b32.xlu2 %v2569_v41, %s5214_s23  ;;  %5116 = vmatmul.msk.f32.gmra.mxu2 %vm185_vm0, %v147_v45  ;;  %v1334_v40 = vsel %vm185_vm0, %v1147_v22, -inf  ;;  %v897_v45 = vadd.f32 %v5547_v14, %v5520_v2  ;;  %v1164_v48 = vmax.f32 %v927_v32, 0.0 }
  0xe4   :  { %3422 = vst.msk [vmem:[#allocation4 + $0x2c8] sm:$0xff] %vm185_vm0, %v3406_v46  ;;  %v1227_v51 = vsel %vm185_vm0, %v1078_v49, -inf  ;;  %v1329_v44 = vsel %vm185_vm0, %v1148_v50, -inf }
  0xe5   :  { %2195 = vrot.lane.b32.xlu0 %v2569_v41, %s5213_s18  ;;  %v1228_v52 = vmax.f32 %v1226_v42, %v1227_v51  ;;  %v1330_v37 = vmax.f32 %v1328_v47, %v1329_v44 }
  0xe6   :  { %v5761_v54 = vpop.f32.mrf.mxu2 }
  0xe7   :  { %v1503_v55 = vld [vmem:[#allocation2 + $0x18] ss:$2 sm:$0xff]  ;;  %v1599_v56 = vld [vmem:[#allocation2 + $0x19] ss:$2 sm:$0xff]  ;;  %1432 = vst.msk [vmem:[#allocation2 + $0x28] sm:$0xff] %vm185_vm0, %v1228_v52  ;;  %v5764_v57 = vpop.f32.mrf.mxu0  ;;  %v881_v58 = vpop.f32.mrf.mxu1 }
  0xe8   :  { %v5766_v59 = vld [vmem:[#allocation3 + $0xf2] sm:$0xff]  ;;  %v1692_v43 = vmax.f32 %v1503_v55, %v1599_v56  ;;  %1466 = vst.msk [vmem:[#allocation2 + $0x138] sm:$0xff] %vm185_vm0, %v1330_v37  ;;  %v882_v61 = vadd.f32 %v5547_v14, %v881_v58  ;;  %v1154_v56 = vmax.f32 %v897_v45, 0.0 }
  0xe9   :  { %1970 = vrot.lane.b32.xlu1 %v5766_v59, %s5214_s23  ;;  %v5775_v1 = vld [vmem:[#allocation3 + $0xf3] sm:$0xff]  ;;  %v5789_v20 = vld [vmem:[#allocation3 + $0x142] sm:$0xff]  ;;  %2777 = vst.msk [vmem:[#allocation4 + $0x210] sm:$0xff] %vm185_vm0, %v5766_v59 }
  0xea   :  { %1741 = vst.msk [vmem:[#allocation3 + $0x10] sm:$0xff] %vm185_vm0, %v1692_v43  ;;  %v2121_v15 = vld [vmem:[#allocation3 + $0xf4] sm:$0xff]  ;;  %v1149_v19 = vmax.f32 %v882_v61, 0.0  ;;  %5030 = vmatmul.msk.f32.gmra.mxu0 %vm185_vm0, %v61_v34  ;;  %v5801_v0 = vld [vmem:[#allocation3 + $0x143] sm:$0xff]  ;;  %v1358_v43 = vsel %vm185_vm0, %v1164_v48, -inf  ;;  %v930_v61 = vadd.f32 %v5547_v14, %v5761_v54 }
  0xeb   :  { %2457 = vst.msk [vmem:[#allocation4 + $0x240] sm:$0xff] %vm185_vm0, %v5775_v1  ;;  %3025 = vrot.lane.b32.xlu2 %v2569_v41, %s5212_s17  ;;  %5117 = vmatmul.msk.f32.gmra.mxu2 %vm185_vm0, %v148_v13  ;;  %v2665_v28 = vld [vmem:[#allocation3 + $0xf1] sm:$0xff]  ;;  %v5825_v39 = vld [vmem:[#allocation3 + $0x141] sm:$0xff]  ;;  %v672_v13 = vadd.f32 %v5547_v14, %v5764_v57 }
  0xec   :  { %v1332_v12 = vsel %vm185_vm0, %v1149_v19, -inf  ;;  %2137 = vst.msk [vmem:[#allocation4 + $0x270] sm:$0xff] %vm185_vm0, %v2121_v15  ;;  %v3081_v35 = vld [vmem:[#allocation3 + $0xf1] sm:$0xff]  ;;  %v5831_v42 = vld [vmem:[#allocation3 + $0x144] sm:$0xff]  ;;  %v1165_v22 = vmax.f32 %v930_v61, 0.0 }
  0xed   :  { %2205 = vrot.lane.b32.xlu0 %v5792_v60, %s5213_s18  ;;  %v1333_v23 = vmax.f32 %v1331_v18, %v1332_v12  ;;  %2782 = vst.msk [vmem:[#allocation4 + $0x328] sm:$0xff] %vm185_vm0, %v5789_v20  ;;  %v900_v18 = vadd.f32 %v5547_v14, %v5534_v8  ;;  %v2473_v54 = vld [vmem:[#allocation3 + $0xf4] sm:$0xff]  ;;  %v1338_v12 = vsel %vm185_vm0, %v1154_v56, -inf  ;;  %v2670_v56 = vld [vmem:[#allocation3 + $0x141] sm:$0xff] }
  0xee   :  { %v932_v24 = vpop.f32.mrf.mxu2  ;;  %v1505_v25 = vld [vmem:[#allocation2 + $0x28] ss:$2 sm:$0xf]  ;;  %v1601_v4 = vld [vmem:[#allocation2 + $0x29] ss:$2 sm:$0xf] }
  0xef   :  { %1467 = vst.msk [vmem:[#allocation2 + $0x140] sm:$0xff] %vm185_vm0, %v1333_v23  ;;  %v933_v7 = vadd.f32 %v5547_v14, %v932_v24  ;;  %v5807_v26 = vpop.f32.mrf.mxu0  ;;  %v884_v27 = vpop.f32.mrf.mxu1  ;;  %v1693_v31 = vmax.f32 %v1505_v25, %v1601_v4  ;;  %v1079_v24 = vmax.f32 %v672_v13, 0.0  ;;  %v1155_v4 = vmax.f32 %v900_v18, 0.0 }
  0xf0   :  { %v885_v29 = vadd.f32 %v5547_v14, %v884_v27  ;;  %2462 = vst.msk [vmem:[#allocation4 + $0x358] sm:$0xff] %vm185_vm0, %v5801_v0  ;;  %v1361_v32 = vsel %vm185_vm0, %v1165_v22, -inf }
  0xf1   :  { %2706 = vrot.lane.b32.xlu1 %v2665_v28, %s5212_s17  ;;  %v5814_v33 = vld [vmem:[#allocation3 + $0x10] sm:$0xff]  ;;  %v1166_v36 = vmax.f32 %v933_v7, 0.0  ;;  %1742 = vst.msk [vmem:[#allocation3 + $0x18] sm:$0xf] %vm1739_vm1, %v1693_v31  ;;  %v1341_v45 = vsel %vm185_vm0, %v1155_v4, -inf }
  0xf2   :  { %v1150_v41 = vmax.f32 %v885_v29, 0.0  ;;  %5031 = vmatmul.msk.f32.gmra.mxu0 %vm185_vm0, %v62_v30  ;;  %1804 = vst.msk [vmem:[#allocation4 + $0x38] sm:$0xff] %vm185_vm0, %v5814_v33 }
  0xf3   :  { %v1356_v6 = vsel %vm185_vm0, %v1166_v36, -inf  ;;  %2620 = vrot.lane.b32.xlu2 %v5792_v60, %s5214_s23  ;;  %3097 = vst.msk [vmem:[#allocation4 + $0x1e0] sm:$0xff] %vm185_vm0, %v3081_v35  ;;  %5118 = vmatmul.msk.f32.gmra.mxu2 %vm185_vm0, %v149_v38  ;;  %v1229_v38 = vsel %vm185_vm0, %v1079_v24, -inf }
  0xf4   :  { %v1357_v46 = vmax.f32 %v1355_v63, %v1356_v6  ;;  %v1335_v47 = vsel %vm185_vm0, %v1150_v41, -inf  ;;  %3102 = vst.msk [vmem:[#allocation4 + $0x2f8] sm:$0xff] %vm185_vm0, %v5825_v39 }
  0xf5   :  { %1873 = vrot.lane.b32.xlu0 %v2665_v28, %s5213_s18  ;;  %v1336_v49 = vmax.f32 %v1334_v40, %v1335_v47  ;;  %3742 = vst.msk [vmem:[#allocation4 + $0x2d0] sm:$0xff] %vm185_vm0, %v5831_v42  ;;  %v675_v40 = vadd.f32 %v5547_v14, %v5807_v26  ;;  %v903_v47 = vadd.f32 %v5547_v14, %v5552_v16 }
  0xf6   :  { %1475 = vst.msk [vmem:[#allocation2 + $0x180] sm:$0xff] %vm185_vm0, %v1357_v46  ;;  %v935_v50 = vpop.f32.mrf.mxu2  ;;  %v1551_v51 = vld [vmem:[#allocation2 + $0x138] ss:$2 sm:$0xff]  ;;  %v1647_v2 = vld [vmem:[#allocation2 + $0x139] ss:$2 sm:$0xff] }
  0xf7   :  { %1468 = vst.msk [vmem:[#allocation2 + $0x148] sm:$0xff] %vm185_vm0, %v1336_v49  ;;  %v936_v44 = vadd.f32 %v5547_v14, %v935_v50  ;;  %v5849_v52 = vpop.f32.mrf.mxu0  ;;  %v887_v37 = vpop.f32.mrf.mxu1  ;;  %v1716_v55 = vmax.f32 %v1551_v51, %v1647_v2 }
  0xf8   :  { %v888_v58 = vadd.f32 %v5547_v14, %v887_v37  ;;  %v5856_v34 = vld [vmem:[#allocation3 + $0x13] sm:$0xff]  ;;  %v1080_v37 = vmax.f32 %v675_v40, 0.0 }
  0xf9   :  { %2291 = vrot.lane.b32.xlu1 %v2665_v28, %s5214_s23  ;;  %v1167_v10 = vmax.f32 %v936_v44, 0.0  ;;  %1765 = vst.msk [vmem:[#allocation3 + $0xd0] sm:$0xff] %vm185_vm0, %v1716_v55  ;;  %v2111_v11 = vld [vmem:[#allocation3 + $0x14] sm:$0xff] }
  0xfa   :  { %v1151_v15 = vmax.f32 %v888_v58, 0.0  ;;  %5032 = vmatmul.msk.f32.gmra.mxu0 %vm185_vm0, %v63_v53  ;;  %2447 = vst.msk [vmem:[#allocation4 + $0x10] sm:$0xff] %vm185_vm0, %v5856_v34  ;;  %v64_v28 = vld [vmem:[%s8401_s0 + $0xf8] sm:$0xff]  ;;  %v65_v58 = vld [vmem:[%s8401_s0 + $0x100] sm:$0xff]  ;;  %v1232_v13 = vsel %vm185_vm0, %v1080_v37, -inf }
  0xfb   :  { %v1359_v19 = vsel %vm185_vm0, %v1167_v10, -inf  ;;  %3035 = vrot.lane.b32.xlu2 %v5792_v60, %s5212_s17  ;;  %2127 = vst.msk [vmem:[#allocation4 + $0x40] sm:$0xff] %vm185_vm0, %v2111_v11  ;;  %v2335_v40 = vld [vmem:[#allocation3 + $0x12] sm:$0xff] }
  0xfc   :  { %v1360_v57 = vmax.f32 %v1358_v43, %v1359_v19  ;;  %v1337_v21 = vsel %vm185_vm0, %v1151_v15, -inf  ;;  %v1156_v43 = vmax.f32 %v903_v47, 0.0  ;;  %v678_v15 = vadd.f32 %v5547_v14, %v5849_v52  ;;  %v1820_v47 = vld [vmem:[#allocation3 + $0x11] sm:$0xff] }
  0xfd   :  { %2515 = vrot.lane.b32.xlu0 %v2473_v54, %s5213_s18  ;;  %v1339_v23 = vmax.f32 %v1337_v21, %v1338_v12 }
  0xfe   :  { %1476 = vst.msk [vmem:[#allocation2 + $0x188] sm:$0xff] %vm185_vm0, %v1360_v57  ;;  %v938_v8 = vpop.f32.mrf.mxu2  ;;  %v1553_v25 = vld [vmem:[#allocation2 + $0x148] ss:$2 sm:$0xf]  ;;  %v1344_v12 = vsel %vm185_vm0, %v1156_v43, -inf }
  0xff   :  { %1469 = vst.msk [vmem:[#allocation2 + $0x150] sm:$0xff] %vm185_vm0, %v1339_v23  ;;  %v939_v60 = vadd.f32 %v5547_v14, %v938_v8  ;;  %v680_v7 = vpop.f32.mrf.mxu0  ;;  %v890_v27 = vpop.f32.mrf.mxu1  ;;  %v1649_v30 = vld [vmem:[#allocation2 + $0x149] ss:$2 sm:$0xf]  ;;  %v1081_v8 = vmax.f32 %v678_v15, 0.0  ;;  %v3866_v15 = vld [vmem:[%s8404_s3 + $0x40] sm:$0xff] }
 0x100   :  { %v681_v31 = vadd.f32 %v5547_v14, %v680_v7  ;;  %v891_v29 = vadd.f32 %v5547_v14, %v890_v27  ;;  %v5886_v35 = vld [vmem:[#allocation3 + $0xd0] sm:$0xff]  ;;  %v1717_v63 = vmax.f32 %v1553_v25, %v1649_v30 }
 0x101   :  { %2834 = vrot.lane.b32.xlu1 %v5775_v1, %s5213_s18  ;;  %v1168_v36 = vmax.f32 %v939_v60, 0.0  ;;  %1812 = vst.msk [vmem:[#allocation4 + $0x1f8] sm:$0xff] %vm185_vm0, %v5886_v35  ;;  %v66_v60 = vld [vmem:[%s8401_s0 + $0x108] sm:$0xff] }
 0x102   :  { %v1082_v41 = vmax.f32 %v681_v31, 0.0  ;;  %v1152_v6 = vmax.f32 %v891_v29, 0.0  ;;  %5033 = vmatmul.msk.f32.gmra.mxu0 %vm185_vm0, %v64_v28  ;;  %1766 = vst.msk [vmem:[#allocation3 + $0xd8] sm:$0xf] %vm1739_vm1, %v1717_v63  ;;  %v3873_v28 = vld [vmem:[%s8404_s3 + $0x78] sm:$0xff]  ;;  %v1235_v63 = vsel %vm185_vm0, %v1081_v8, -inf }
 0x103   :  { %v1362_v46 = vsel %vm185_vm0, %v1168_v36, -inf  ;;  %2067 = vrot.lane.b32.xlu2 %v5775_v1, %s5212_s17  ;;  %4010 = vmatpush.msrb.mxu1 %v3873_v28  ;;  %v2350_v36 = vld [vmem:[#allocation3 + $0x142] sm:$0xff] }
 0x104   :  { %v1363_v48 = vmax.f32 %v1361_v32, %v1362_v46  ;;  %v1230_v49 = vsel %vm185_vm0, %v1082_v41, -inf  ;;  %v1340_v26 = vsel %vm185_vm0, %v1152_v6, -inf  ;;  %v3871_v6 = vld [vmem:[%s8404_s3 + $0x68] sm:$0xff] }
 0x105   :  { %2930 = vrot.lane.b32.xlu0 %v2473_v54, %s5214_s23  ;;  %v1231_v50 = vmax.f32 %v1229_v38, %v1230_v49  ;;  %v1342_v51 = vmax.f32 %v1340_v26, %v1341_v45  ;;  %v1563_v2 = vld [vmem:[#allocation2 + $0x180] ss:$2 sm:$0xff]  ;;  %v1659_v44 = vld [vmem:[#allocation2 + $0x181] ss:$2 sm:$0xff]  ;;  %v3870_v49 = vld [vmem:[%s8404_s3 + $0x60] sm:$0xff] }
 0x106   :  { %1477 = vst.msk [vmem:[#allocation2 + $0x190] sm:$0xff] %vm185_vm0, %v1363_v48  ;;  %v5906_v53 = vpop.f32.mrf.mxu2  ;;  %v1722_v1 = vmax.f32 %v1563_v2, %v1659_v44  ;;  %v3872_v38 = vld [vmem:[%s8404_s3 + $0x70] sm:$0xff]  ;;  %v3869_v2 = vld [vmem:[%s8404_s3 + $0x58] sm:$0xff] }
 0x107   :  { %1433 = vst.msk [vmem:[#allocation2 + $0x30] sm:$0xff] %vm185_vm0, %v1231_v50  ;;  %v683_v16 = vpop.f32.mrf.mxu0  ;;  %v893_v55 = vpop.f32.mrf.mxu1  ;;  %4011 = vmatpush.msrb.mxu1 %v3872_v38  ;;  %v67_v48 = vld [vmem:[%s8401_s0 + $0x110] sm:$0xff]  ;;  %v942_v37 = vadd.f32 %v5547_v14, %v5906_v53 }
 0x108   :  { %1470 = vst.msk [vmem:[#allocation2 + $0x158] sm:$0xff] %vm185_vm0, %v1342_v51  ;;  %v684_v61 = vadd.f32 %v5547_v14, %v683_v16  ;;  %v894_v10 = vadd.f32 %v5547_v14, %v893_v55  ;;  %v3868_v16 = vld [vmem:[%s8404_s3 + $0x50] sm:$0xff] }
 0x109   :  { %2716 = vrot.lane.b32.xlu1 %v2670_v56, %s5212_s17  ;;  %v5916_v11 = vld [vmem:[#allocation3 + $0xd3] sm:$0xff]  ;;  %1771 = vst.msk [vmem:[#allocation3 + $0x100] sm:$0xff] %vm185_vm0, %v1722_v1  ;;  %4012 = vmatpush.msrb.mxu1 %v3871_v6 }
 0x10a   :  { %v1083_v18 = vmax.f32 %v684_v61, 0.0  ;;  %v1153_v19 = vmax.f32 %v894_v10, 0.0  ;;  %5034 = vmatmul.msk.f32.gmra.mxu0 %vm185_vm0, %v65_v58  ;;  %2455 = vst.msk [vmem:[#allocation4 + $0x1d0] sm:$0xff] %vm185_vm0, %v5916_v11  ;;  %v2119_v54 = vld [vmem:[#allocation3 + $0xd4] sm:$0xff]  ;;  %v3867_v58 = vld [vmem:[%s8404_s3 + $0x48] sm:$0xff]  ;;  %v1169_v61 = vmax.f32 %v942_v37, 0.0 }
 0x10b   :  { %2387 = vrot.lane.b32.xlu2 %v5766_v59, %s5212_s17  ;;  %2135 = vst.msk [vmem:[#allocation4 + $0x200] sm:$0xff] %vm185_vm0, %v2119_v54  ;;  %4013 = vmatpush.msrb.mxu1 %v3870_v49  ;;  %v3865_v54 = vld [vmem:[%s8404_s3 + $0x38] sm:$0xff] }
 0x10c   :  { %v1233_v57 = vsel %vm185_vm0, %v1083_v18, -inf  ;;  %v1343_v21 = vsel %vm185_vm0, %v1153_v19, -inf  ;;  %v68_v19 = vld [vmem:[%s8401_s0 + $0x118] sm:$0xff] }
 0x10d   :  { %2175 = vrot.lane.b32.xlu0 %v5814_v33, %s5213_s18  ;;  %v1234_v52 = vmax.f32 %v1232_v13, %v1233_v57  ;;  %v1345_v22 = vmax.f32 %v1343_v21, %v1344_v12  ;;  %v1565_v23 = vld [vmem:[#allocation2 + $0x190] ss:$2 sm:$0xf]  ;;  %v1661_v24 = vld [vmem:[#allocation2 + $0x191] ss:$2 sm:$0xf]  ;;  %4014 = vmatpush.msrb.mxu1 %v3869_v2 }
 0x10e   :  { %v5933_v25 = vpop.f32.mrf.mxu2  ;;  %v1723_v4 = vmax.f32 %v1565_v23, %v1661_v24  ;;  %v6023_v12 = vld [vmem:[%s8403_s2] ss:$0 sm:$0xff] }
 0x10f   :  { %1434 = vst.msk [vmem:[#allocation2 + $0x38] sm:$0xff] %vm185_vm0, %v1234_v52  ;;  %v686_v59 = vpop.f32.mrf.mxu0  ;;  %v1555_v7 = vld [vmem:[#allocation2 + $0x150] ss:$2 sm:$0xff]  ;;  %v1651_v27 = vld [vmem:[#allocation2 + $0x151] ss:$2 sm:$0xff]  ;;  %4015 = vmatpush.msrb.mxu1 %v3868_v16  ;;  %v945_v57 = vadd.f32 %v6023_v12, %v5933_v25 }
 0x110   :  { %1471 = vst.msk [vmem:[#allocation2 + $0x160] sm:$0xff] %vm185_vm0, %v1345_v22  ;;  %v687_v33 = vadd.f32 %v5547_v14, %v686_v59  ;;  %v5945_v30 = vld [vmem:[#allocation3 + $0x100] sm:$0xff]  ;;  %v1718_v31 = vmax.f32 %v1555_v7, %v1651_v27  ;;  %v3864_v22 = vld [vmem:[%s8404_s3 + $0x30] sm:$0xff]  ;;  %v6038_v8 = vld [vmem:[#allocation3 + $0xd1] sm:$0xff] }
 0x111   :  { %2301 = vrot.lane.b32.xlu1 %v2670_v56, %s5214_s23  ;;  %1772 = vst.msk [vmem:[#allocation3 + $0x108] sm:$0xf] %vm1739_vm1, %v1723_v4  ;;  %v3402_v29 = vld [vmem:[#allocation3 + $0x100] sm:$0xff]  ;;  %4016 = vmatpush.msrb.mxu1 %v3867_v58  ;;  %v3862_v7 = vld [vmem:[%s8404_s3 + $0x20] sm:$0xff] }
 0x112   :  { %v1084_v32 = vmax.f32 %v687_v33, 0.0  ;;  %5035 = vmatmul.msk.f32.gmra.mxu0 %vm185_vm0, %v66_v60  ;;  %1767 = vst.msk [vmem:[#allocation3 + $0xe0] sm:$0xff] %vm185_vm0, %v1718_v31  ;;  %v3863_v59 = vld [vmem:[%s8404_s3 + $0x28] sm:$0xff]  ;;  %v1170_v60 = vmax.f32 %v945_v57, 0.0  ;;  %v2463_v31 = vld [vmem:[#allocation3 + $0x14] sm:$0xff] }
 0x113   :  { %2397 = vrot.lane.b32.xlu2 %v2350_v36, %s5212_s17  ;;  %1815 = vst.msk [vmem:[#allocation4 + $0x2a0] sm:$0xff] %vm185_vm0, %v5945_v30  ;;  %4017 = vmatpush.msrb.mxu1 %v3866_v15  ;;  %v70_v58 = vld [vmem:[%s8401_s0 + $0x128] sm:$0xff] }
 0x114   :  { %v1236_v41 = vsel %vm185_vm0, %v1084_v32, -inf  ;;  %3418 = vst.msk [vmem:[#allocation4 + $0x1e8] sm:$0xff] %vm185_vm0, %v3402_v29  ;;  %v69_v29 = vld [vmem:[%s8401_s0 + $0x120] sm:$0xff]  ;;  %v3861_v32 = vld [vmem:[%s8404_s3 + $0x18] sm:$0xff] }
 0x115   :  { %2367 = vrot.lane.b32.xlu0 %v2335_v40, %s5212_s17  ;;  %v1237_v45 = vmax.f32 %v1235_v63, %v1236_v41  ;;  %4018 = vmatpush.msrb.mxu1 %v3865_v54 }
 0x116   :  { %v5963_v46 = vpop.f32.mrf.mxu2  ;;  %v1507_v27 = vld [vmem:[#allocation2 + $0x30] ss:$2 sm:$0xff]  ;;  %v1603_v63 = vld [vmem:[#allocation2 + $0x31] ss:$2 sm:$0xff] }
 0x117   :  { %v1557_v26 = vld [vmem:[#allocation2 + $0x160] ss:$2 sm:$0xf]  ;;  %v1653_v50 = vld [vmem:[#allocation2 + $0x161] ss:$2 sm:$0xf]  ;;  %v5971_v51 = vpop.f32.mrf.mxu0  ;;  %4019 = vmatpush.msrb.mxu1 %v3864_v22  ;;  %v1694_v36 = vmax.f32 %v1507_v27, %v1603_v63  ;;  %v948_v41 = vadd.f32 %v6023_v12, %v5963_v46 }
 0x118   :  { %1435 = vst.msk [vmem:[#allocation2 + $0x40] sm:$0xff] %vm185_vm0, %v1237_v45  ;;  %v1719_v44 = vmax.f32 %v1557_v26, %v1653_v50  ;;  %v5980_v1 = vld [vmem:[#allocation3 + $0x103] sm:$0xff]  ;;  %v2471_v46 = vld [vmem:[#allocation3 + $0xd4] sm:$0xff] }
 0x119   :  { %1853 = vrot.lane.b32.xlu1 %v1820_v47, %s5213_s18  ;;  %v5986_v55 = vld [vmem:[#allocation3 + $0xe0] sm:$0xff]  ;;  %2458 = vst.msk [vmem:[#allocation4 + $0x278] sm:$0xff] %vm185_vm0, %v5980_v1  ;;  %4020 = vmatpush.msrb.mxu1 %v3863_v59  ;;  %v1171_v2 = vmax.f32 %v948_v41, 0.0  ;;  %v160_v27 = vld [vmem:[%s8401_s0 + $0x3f8] sm:$0xff] }
 0x11a   :  { %5036 = vmatmul.msk.f32.gmra.mxu0 %vm185_vm0, %v67_v48  ;;  %1768 = vst.msk [vmem:[#allocation3 + $0xe8] sm:$0xf] %vm1739_vm1, %v1719_v44  ;;  %v2762_v56 = vld [vmem:[#allocation3 + $0x102] sm:$0xff] }
 0x11b   :  { %1950 = vrot.lane.b32.xlu2 %v2335_v40, %s5214_s23  ;;  %v2122_v53 = vld [vmem:[#allocation3 + $0x104] sm:$0xff]  ;;  %2778 = vst.msk [vmem:[#allocation4 + $0x248] sm:$0xff] %vm185_vm0, %v2762_v56  ;;  %4021 = vmatpush.msrb.mxu1 %v3862_v7  ;;  %v1367_v40 = vsel %vm185_vm0, %v1170_v60, -inf }
 0x11c   :  { %v5998_v43 = vld [vmem:[#allocation3 + $0x101] sm:$0xff]  ;;  %1813 = vst.msk [vmem:[#allocation4 + $0x230] sm:$0xff] %vm185_vm0, %v5986_v55 }
 0x11d   :  { %2191 = vrot.lane.b32.xlu0 %v5886_v35, %s5213_s18  ;;  %v3722_v10 = vld [vmem:[#allocation3 + $0x104] sm:$0xff]  ;;  %2138 = vst.msk [vmem:[#allocation4 + $0x2a8] sm:$0xff] %vm185_vm0, %v2122_v53  ;;  %4022 = vmatpush.msrb.mxu1 %v3861_v32  ;;  %v1925_v53 = vld [vmem:[#allocation3 + $0xd2] sm:$0xff] }
 0x11e   :  { %v950_v13 = vpop.f32.mrf.mxu2  ;;  %3098 = vst.msk [vmem:[#allocation4 + $0x218] sm:$0xff] %vm185_vm0, %v5998_v43  ;;  %v3860_v48 = vld [vmem:[%s8404_s3 + $0x10] sm:$0xff] }
 0x11f   :  { %v951_v35 = vadd.f32 %v5547_v14, %v950_v13  ;;  %v6007_v18 = vpop.f32.mrf.mxu0  ;;  %3738 = vst.msk [vmem:[#allocation4 + $0x1f0] sm:$0xff] %vm185_vm0, %v3722_v10  ;;  %v1364_v14 = vsel %vm185_vm0, %v1169_v61, -inf  ;;  %v1509_v38 = vld [vmem:[#allocation2 + $0x40] ss:$2 sm:$0xf]  ;;  %4023 = vmatpush.msrb.mxu1 %v3860_v48  ;;  %v159_v61 = vld [vmem:[%s8401_s0 + $0x3f0] sm:$0xff] }
 0x120   :  { %v1605_v45 = vld [vmem:[#allocation2 + $0x41] ss:$2 sm:$0xf]  ;;  %1743 = vst.msk [vmem:[#allocation3 + $0x20] sm:$0xff] %vm185_vm0, %v1694_v36  ;;  %5128 = vmatmul.msk.f32.gmra.mxu3 %vm185_vm0, %v159_v61  ;;  %v1370_v13 = vsel %vm185_vm0, %v1171_v2, -inf  ;;  %v71_v7 = vld [vmem:[%s8401_s0 + $0x130] sm:$0xff] }
 0x121   :  { %2271 = vrot.lane.b32.xlu1 %v1820_v47, %s5214_s23  ;;  %v1172_v21 = vmax.f32 %v951_v35, 0.0  ;;  %v6027_v52 = vld [vmem:[#allocation3 + $0xe4] sm:$0xff]  ;;  %v690_v47 = vadd.f32 %v6023_v12, %v5971_v51  ;;  %v1695_v49 = vmax.f32 %v1509_v38, %v1605_v45  ;;  %v161_v48 = vld [vmem:[%s8401_s0 + $0x400] sm:$0xff] }
 0x122   :  { %5037 = vmatmul.msk.f32.gmra.mxu0 %vm185_vm0, %v68_v19  ;;  %2136 = vst.msk [vmem:[#allocation4 + $0x238] sm:$0xff] %vm185_vm0, %v6027_v52  ;;  %v2440_v23 = vld [vmem:[#allocation3 + $0xe3] sm:$0xff]  ;;  %v693_v19 = vadd.f32 %v6023_v12, %v6007_v18 }
 0x123   :  { %v1365_v24 = vsel %vm185_vm0, %v1172_v21, -inf  ;;  %2047 = vrot.lane.b32.xlu2 %v5856_v34, %s5212_s17  ;;  %2456 = vst.msk [vmem:[#allocation4 + $0x208] sm:$0xff] %vm185_vm0, %v2440_v23  ;;  %v2760_v25 = vld [vmem:[#allocation3 + $0xe2] sm:$0xff]  ;;  %v1085_v44 = vmax.f32 %v690_v47, 0.0  ;;  %v72_v47 = vld [vmem:[%s8401_s0 + $0x138] sm:$0xff] }
 0x124   :  { %v1366_v4 = vmax.f32 %v1364_v14, %v1365_v24  ;;  %2776 = vst.msk [vmem:[#allocation4 + $0x1d8] sm:$0xff] %vm185_vm0, %v2760_v25  ;;  %v3859_v51 = vld [vmem:[%s8404_s3 + $0x8] sm:$0xff] }
 0x125   :  { %1869 = vrot.lane.b32.xlu0 %v6038_v8, %s5213_s18  ;;  %1744 = vst.msk [vmem:[#allocation3 + $0x28] sm:$0xf] %vm1739_vm1, %v1695_v49  ;;  %4024 = vmatpush.msrb.mxu1 %v3859_v51  ;;  %v1238_v35 = vsel %vm185_vm0, %v1085_v44, -inf  ;;  %v6127_v32 = vld [vmem:[#allocation3 + $0x101] sm:$0xff] }
 0x126   :  { %1478 = vst.msk [vmem:[#allocation2 + $0x198] sm:$0xff] %vm185_vm0, %v1366_v4  ;;  %v953_v34 = vpop.f32.mrf.mxu2  ;;  %v1086_v4 = vmax.f32 %v693_v19, 0.0  ;;  %v1928_v45 = vld [vmem:[#allocation3 + $0x102] sm:$0xff] }
 0x127   :  { %v954_v33 = vadd.f32 %v6023_v12, %v953_v34  ;;  %v6052_v28 = vpop.f32.mrf.mxu0  ;;  %v1789_v14 = vld [vmem:[#allocation3 + $0x20] sm:$0xff] }
 0x128   :  { %1805 = vst.msk [vmem:[#allocation4 + $0x70] sm:$0xff] %vm185_vm0, %v1789_v14  ;;  %5129 = vmatmul.msk.f32.gmra.mxu3 %vm185_vm0, %v160_v27 }
 0x129   :  { %2495 = vrot.lane.b32.xlu1 %v2463_v31, %s5213_s18  ;;  %v1173_v6 = vmax.f32 %v954_v33, 0.0  ;;  %v1241_v31 = vsel %vm185_vm0, %v1086_v4, -inf  ;;  %v74_v4 = vld [vmem:[%s8401_s0 + $0x148] sm:$0xff] }
 0x12a   :  { %5038 = vmatmul.msk.f32.gmra.mxu0 %vm185_vm0, %v69_v29  ;;  %v696_v29 = vadd.f32 %v6023_v12, %v6052_v28 }
 0x12b   :  { %v1368_v26 = vsel %vm185_vm0, %v1173_v6, -inf  ;;  %2063 = vrot.lane.b32.xlu2 %v5916_v11, %s5212_s17  ;;  %v3858_v11 = vld [vmem:[%s8404_s3] sm:$0xff] }
 0x12c   :  { %v1369_v50 = vmax.f32 %v1367_v40, %v1368_v26  ;;  %4025 = vmatpush.msrb.mxu1 %v3858_v11  ;;  %v2432_v23 = vld [vmem:[#allocation3 + $0x23] sm:$0xff]  ;;  %v1087_v28 = vmax.f32 %v696_v29, 0.0 }
 0x12d   :  { %2511 = vrot.lane.b32.xlu0 %v2471_v46, %s5213_s18  ;;  %2448 = vst.msk [vmem:[#allocation4 + $0x48] sm:$0xff] %vm185_vm0, %v2432_v23  ;;  %v2752_v18 = vld [vmem:[#allocation3 + $0x22] sm:$0xff] }
 0x12e   :  { %1479 = vst.msk [vmem:[#allocation2 + $0x1a0] sm:$0xff] %vm185_vm0, %v1369_v50  ;;  %v956_v37 = vpop.f32.mrf.mxu2  ;;  %v2112_v60 = vld [vmem:[#allocation3 + $0x24] sm:$0xff]  ;;  %v1244_v26 = vsel %vm185_vm0, %v1087_v28, -inf }
 0x12f   :  { %v957_v16 = vadd.f32 %v6023_v12, %v956_v37  ;;  %v698_v56 = vpop.f32.mrf.mxu0  ;;  %2768 = vst.msk [vmem:[#allocation4 + $0x18] sm:$0xff] %vm185_vm0, %v2752_v18  ;;  %v2474_v50 = vld [vmem:[#allocation3 + $0x104] sm:$0xff] }
 0x130   :  { %v699_v10 = vadd.f32 %v6023_v12, %v698_v56  ;;  %2128 = vst.msk [vmem:[#allocation4 + $0x78] sm:$0xff] %vm185_vm0, %v2112_v60  ;;  %5130 = vmatmul.msk.f32.gmra.mxu3 %vm185_vm0, %v161_v48  ;;  %v75_v28 = vld [vmem:[%s8401_s0 + $0x150] sm:$0xff]  ;;  %v164_v48 = vld [vmem:[%s8401_s0 + $0x418] sm:$0xff] }
 0x131   :  { %1966 = vrot.lane.b32.xlu1 %v1925_v53, %s5214_s23  ;;  %v1174_v15 = vmax.f32 %v957_v16, 0.0 }
 0x132   :  { %v1088_v54 = vmax.f32 %v699_v10, 0.0  ;;  %5039 = vmatmul.msk.f32.gmra.mxu0 %vm185_vm0, %v70_v58  ;;  %v162_v58 = vld [vmem:[%s8401_s0 + $0x408] sm:$0xff] }
 0x133   :  { %v1371_v57 = vsel %vm185_vm0, %v1174_v15, -inf  ;;  %2383 = vrot.lane.b32.xlu2 %v1925_v53, %s5212_s17 }
 0x134   :  { %v1372_v21 = vmax.f32 %v1370_v13, %v1371_v57  ;;  %v1239_v22 = vsel %vm185_vm0, %v1088_v54, -inf }
 0x135   :  { %2197 = vrot.lane.b32.xlu0 %v5945_v30, %s5213_s18  ;;  %v1240_v24 = vmax.f32 %v1238_v35, %v1239_v22  ;;  %v6104_v25 = vpop.permute.xlu2 %2061  ;;  %v1567_v61 = vld [vmem:[#allocation2 + $0x198] ss:$2 sm:$0xff]  ;;  %v1663_v10 = vld [vmem:[#allocation2 + $0x199] ss:$2 sm:$0xff] }
 0x136   :  { %1480 = vst.msk [vmem:[#allocation2 + $0x1a8] sm:$0xff] %vm185_vm0, %v1372_v21  ;;  %v959_v59 = vpop.f32.mrf.mxu2  ;;  %v1724_v13 = vmax.f32 %v1567_v61, %v1663_v10 }
 0x137   :  { %1436 = vst.msk [vmem:[#allocation2 + $0x48] sm:$0xff] %vm185_vm0, %v1240_v24  ;;  %v701_v34 = vpop.f32.mrf.mxu0  ;;  %v960_v53 = vadd.f32 %v6023_v12, %v959_v59 }
 0x138   :  { %v702_v33 = vadd.f32 %v6023_v12, %v701_v34  ;;  %5131 = vmatmul.msk.f32.gmra.mxu3 %vm185_vm0, %v162_v58  ;;  %1773 = vst.msk [vmem:[#allocation3 + $0x110] sm:$0xff] %vm185_vm0, %v1724_v13  ;;  %v3889_v13 = vld [vmem:[%s8404_s3 + $0xf8] sm:$0xff] }
 0x139   :  { %2287 = vrot.lane.b32.xlu1 %v6038_v8, %s5214_s23  ;;  %v1175_v14 = vmax.f32 %v960_v53, 0.0  ;;  %v6236_v53 = vld [vmem:[#allocation3 + $0xe2] sm:$0xff]  ;;  %4075 = vmatpush.msrb.mxu2 %v3889_v13 }
 0x13a   :  { %v1089_v63 = vmax.f32 %v702_v33, 0.0  ;;  %5040 = vmatmul.msk.f32.gmra.mxu0 %vm185_vm0, %v71_v7  ;;  %v163_v7 = vld [vmem:[%s8401_s0 + $0x410] sm:$0xff] }
 0x13b   :  { %2612 = vrot.lane.b32.xlu2 %v5945_v30, %s5214_s23  ;;  %v2046_v2 = vpop.permute.xlu1 %2045  ;;  %v1373_v59 = vsel %vm185_vm0, %v1175_v14, -inf }
 0x13c   :  { %v1852_v8 = vpop.permute.xlu0 %1851  ;;  %v1242_v36 = vsel %vm185_vm0, %v1089_v63, -inf }
 0x13d   :  { %1875 = vrot.lane.b32.xlu0 %v6127_v32, %s5213_s18  ;;  %1900 = vst.msk [vmem:[#allocation4] sm:$0xff] %vm1899_vm2, %v1852_v8  ;;  %v1243_v38 = vmax.f32 %v1241_v31, %v1242_v36  ;;  %v6133_v40 = vpop.permute.xlu2 %2610  ;;  %v1569_v15 = vld [vmem:[#allocation2 + $0x1a8] ss:$2 sm:$0xf] }
 0x13e   :  { %v962_v41 = vpop.f32.mrf.mxu2  ;;  %v1665_v35 = vld [vmem:[#allocation2 + $0x1a9] ss:$2 sm:$0xf] }
 0x13f   :  { %1437 = vst.msk [vmem:[#allocation2 + $0x50] sm:$0xff] %vm185_vm0, %v1243_v38  ;;  %v704_v6 = vpop.f32.mrf.mxu0  ;;  %v1725_v54 = vmax.f32 %v1569_v15, %v1665_v35  ;;  %v963_v60 = vadd.f32 %v6023_v12, %v962_v41  ;;  %v1800_v8 = vld [vmem:[#allocation3 + $0x110] sm:$0xff]  ;;  %v165_v15 = vld [vmem:[%s8401_s0 + $0x420] sm:$0xff] }
 0x140   :  { %v705_v49 = vadd.f32 %v6023_v12, %v704_v6  ;;  %5132 = vmatmul.msk.f32.gmra.mxu3 %vm185_vm0, %v163_v7  ;;  %1816 = vst.msk [vmem:[#allocation4 + $0x2d8] sm:$0xff] %vm185_vm0, %v1800_v8 }
 0x141   :  { %1972 = vrot.lane.b32.xlu1 %v1928_v45, %s5214_s23  ;;  %1774 = vst.msk [vmem:[#allocation3 + $0x118] sm:$0xf] %vm1739_vm1, %v1725_v54  ;;  %v1176_v31 = vmax.f32 %v963_v60, 0.0 }
 0x142   :  { %v1090_v46 = vmax.f32 %v705_v49, 0.0  ;;  %5041 = vmatmul.msk.f32.gmra.mxu0 %vm185_vm0, %v72_v47 }
 0x143   :  { %3027 = vrot.lane.b32.xlu2 %v5945_v30, %s5212_s17  ;;  %v73_v30 = vld [vmem:[%s8401_s0 + $0x140] sm:$0xff] }
 0x144   :  { %v1949_v51 = vpop.permute.xlu0 %1948  ;;  %v1245_v44 = vsel %vm185_vm0, %v1090_v46, -inf }
 0x145   :  { %2517 = vrot.lane.b32.xlu0 %v2474_v50, %s5213_s18  ;;  %1997 = vst.msk [vmem:[#allocation4] sm:$0xff] %vm1996_vm3, %v1949_v51  ;;  %v1246_v37 = vmax.f32 %v1244_v26, %v1245_v44  ;;  %v6152_v11 = vpop.permute.xlu2 %3025 }
 0x146   :  { %2094 = vst.msk [vmem:[#allocation4] sm:$0xff] %vm2093_vm4, %v2046_v2  ;;  %v965_v16 = vpop.f32.mrf.mxu2 }
 0x147   :  { %1438 = vst.msk [vmem:[#allocation2 + $0x58] sm:$0xff] %vm185_vm0, %v1246_v37  ;;  %v707_v56 = vpop.f32.mrf.mxu0  ;;  %v966_v49 = vadd.f32 %v6023_v12, %v965_v16 }
 0x148   :  { %v2763_v41 = vld [vmem:[#allocation3 + $0x112] sm:$0xff]  ;;  %v708_v26 = vadd.f32 %v6023_v12, %v707_v56  ;;  %5133 = vmatmul.msk.f32.gmra.mxu3 %vm185_vm0, %v164_v48 }
 0x149   :  { %2708 = vrot.lane.b32.xlu1 %v6127_v32, %s5212_s17  ;;  %v2123_v6 = vld [vmem:[#allocation3 + $0x114] sm:$0xff]  ;;  %2779 = vst.msk [vmem:[#allocation4 + $0x280] sm:$0xff] %vm185_vm0, %v2763_v41  ;;  %v1177_v44 = vmax.f32 %v966_v49, 0.0  ;;  %v166_v49 = vld [vmem:[%s8401_s0 + $0x428] sm:$0xff] }
 0x14a   :  { %5042 = vmatmul.msk.f32.gmra.mxu0 %vm185_vm0, %v73_v30  ;;  %2139 = vst.msk [vmem:[#allocation4 + $0x2e0] sm:$0xff] %vm185_vm0, %v2123_v6  ;;  %v1091_v37 = vmax.f32 %v708_v26, 0.0  ;;  %v6273_v7 = vld [vmem:[#allocation3 + $0x111] sm:$0xff] }
 0x14b   :  { %2069 = vrot.lane.b32.xlu2 %v5980_v1, %s5212_s17  ;;  %v1379_v35 = vsel %vm185_vm0, %v1177_v44, -inf  ;;  %3099 = vst.msk [vmem:[#allocation4 + $0x250] sm:$0xff] %vm185_vm0, %v6273_v7  ;;  %v3885_v48 = vld [vmem:[%s8404_s3 + $0xd8] sm:$0xff] }
 0x14c   :  { %v1511_v26 = vld [vmem:[#allocation2 + $0x48] ss:$2 sm:$0xff] }
 0x14d   :  { %2932 = vrot.lane.b32.xlu0 %v2474_v50, %s5214_s23  ;;  %v3746_v19 = vld [vmem:[#allocation4] sm:$0xff]  ;;  %v6171_v57 = vpop.permute.xlu2 %2620 }
 0x14e   :  { %v1965_v21 = vpop.permute.xlu1 %1964  ;;  %4026 = vmatmul.f32.vlgmr.msrb.gmra.mxu1 %v3746_v19  ;;  %v968_v23 = vpop.f32.mrf.mxu2  ;;  %v6226_v50 = vld [vmem:[#allocation3 + $0xe1] sm:$0xff]  ;;  %v1247_v19 = vsel %vm185_vm0, %v1091_v37, -inf }
 0x14f   :  { %v1868_v22 = vpop.permute.xlu0 %1867  ;;  %v969_v24 = vadd.f32 %v6023_v12, %v968_v23  ;;  %v710_v18 = vpop.f32.mrf.mxu0  ;;  %v3888_v23 = vld [vmem:[%s8404_s3 + $0xf0] sm:$0xff] }
 0x150   :  { %1908 = vst.msk [vmem:[#allocation4 + $0x1c0] sm:$0xff] %vm1899_vm2, %v1868_v22  ;;  %v711_v58 = vadd.f32 %v6023_v12, %v710_v18  ;;  %5134 = vmatmul.msk.f32.gmra.mxu3 %vm185_vm0, %v165_v15  ;;  %4076 = vmatpush.msrb.mxu2 %v3888_v23  ;;  %v987_v18 = vadd.f32 %v6023_v12, %v5522_v3 }
 0x151   :  { %2005 = vst.msk [vmem:[#allocation4 + $0x1c0] sm:$0xff] %vm1996_vm3, %v1965_v21  ;;  %2293 = vrot.lane.b32.xlu1 %v6127_v32, %s5214_s23  ;;  %v1178_v34 = vmax.f32 %v969_v24, 0.0  ;;  %v6198_v32 = vld [vmem:[#allocation3 + $0x113] sm:$0xff]  ;;  %v6254_v21 = vld [vmem:[#allocation3 + $0xe3] sm:$0xff] }
 0x152   :  { %2102 = vst.msk [vmem:[#allocation4 + $0x1c0] sm:$0xff] %vm2093_vm4, %v6104_v25  ;;  %5043 = vmatmul.msk.f32.gmra.mxu0 %vm185_vm0, %v74_v4  ;;  %v2560_v24 = vld [vmem:[#allocation3 + $0x20] sm:$0xff]  ;;  %v1092_v4 = vmax.f32 %v711_v58, 0.0  ;;  %v1184_v41 = vmax.f32 %v987_v18, 0.0  ;;  %v990_v58 = vadd.f32 %v6023_v12, %v5536_v9 }
 0x153   :  { %v1374_v27 = vsel %vm185_vm0, %v1178_v34, -inf  ;;  %2389 = vrot.lane.b32.xlu2 %v1928_v45, %s5212_s17  ;;  %v1376_v45 = vsel %vm185_vm0, %v1176_v31, -inf  ;;  %2459 = vst.msk [vmem:[#allocation4 + $0x2b0] sm:$0xff] %vm185_vm0, %v6198_v32  ;;  %v3887_v34 = vld [vmem:[%s8404_s3 + $0xe8] sm:$0xff] }
 0x154   :  { %v1375_v33 = vmax.f32 %v1373_v59, %v1374_v27  ;;  %4077 = vmatpush.msrb.mxu2 %v3887_v34  ;;  %v1250_v6 = vsel %vm185_vm0, %v1092_v4, -inf  ;;  %v1609_v9 = vld [vmem:[#allocation2 + $0x59] ss:$2 sm:$0xf]  ;;  %v78_v18 = vld [vmem:[%s8401_s0 + $0x168] sm:$0xff]  ;;  %v1185_v4 = vmax.f32 %v990_v58, 0.0 }
 0x155   :  { %2193 = vrot.lane.b32.xlu0 %v5986_v55, %s5213_s18  ;;  %v6195_v29 = vpop.permute.xlu2 %3035  ;;  %v3881_v34 = vld [vmem:[%s8404_s3 + $0xb8] sm:$0xff] }
 0x156   :  { %1481 = vst.msk [vmem:[#allocation2 + $0x1b0] sm:$0xff] %vm185_vm0, %v1375_v33  ;;  %v971_v63 = vpop.f32.mrf.mxu2 }
 0x157   :  { %v2196_v25 = vpop.permute.xlu0 %2195  ;;  %v972_v36 = vadd.f32 %v6023_v12, %v971_v63  ;;  %v6202_v38 = vpop.f32.mrf.mxu0  ;;  %v3886_v63 = vld [vmem:[%s8404_s3 + $0xe0] sm:$0xff] }
 0x158   :  { %2233 = vst.msk [vmem:[#allocation4 + $0x238] sm:$0xff] %vm1899_vm2, %v2196_v25  ;;  %v3403_v25 = vld [vmem:[#allocation3 + $0x110] sm:$0xff]  ;;  %4078 = vmatpush.msrb.mxu2 %v3886_v63  ;;  %5135 = vmatmul.msk.f32.gmra.mxu3 %vm185_vm0, %v166_v49 }
 0x159   :  { %2836 = vrot.lane.b32.xlu1 %v5980_v1, %s5213_s18  ;;  %v1179_v47 = vmax.f32 %v972_v36, 0.0  ;;  %3419 = vst.msk [vmem:[#allocation4 + $0x220] sm:$0xff] %vm185_vm0, %v3403_v25 }
 0x15a   :  { %5044 = vmatmul.msk.f32.gmra.mxu0 %vm185_vm0, %v75_v28  ;;  %v77_v28 = vld [vmem:[%s8401_s0 + $0x160] sm:$0xff]  ;;  %4079 = vmatpush.msrb.mxu2 %v3885_v48 }
 0x15b   :  { %v6218_v46 = vpop.permute.xlu1 %1970  ;;  %v1377_v1 = vsel %vm185_vm0, %v1179_v47, -inf  ;;  %2608 = vrot.lane.b32.xlu2 %v5986_v55, %s5214_s23  ;;  %v76_v55 = vld [vmem:[%s8401_s0 + $0x158] sm:$0xff] }
 0x15c   :  { %v1378_v51 = vmax.f32 %v1376_v45, %v1377_v1  ;;  %v1607_v1 = vld [vmem:[#allocation2 + $0x49] ss:$2 sm:$0xff] }
 0x15d   :  { %1871 = vrot.lane.b32.xlu0 %v6226_v50, %s5213_s18  ;;  %v6231_v2 = vpop.permute.xlu2 %2067 }
 0x15e   :  { %1482 = vst.msk [vmem:[#allocation2 + $0x1b8] sm:$0xff] %vm185_vm0, %v1378_v51  ;;  %v974_v56 = vpop.f32.mrf.mxu2  ;;  %v714_v51 = vadd.f32 %v6023_v12, %v6202_v38  ;;  %v1513_v38 = vld [vmem:[#allocation2 + $0x58] ss:$2 sm:$0xf] }
 0x15f   :  { %v6234_v16 = vpop.permute.xlu0 %2205  ;;  %v716_v30 = vpop.f32.mrf.mxu0  ;;  %v975_v61 = vadd.f32 %v6023_v12, %v974_v56 }
 0x160   :  { %v717_v10 = vadd.f32 %v6023_v12, %v716_v30  ;;  %v3884_v30 = vld [vmem:[%s8404_s3 + $0xd0] sm:$0xff] }
 0x161   :  { %1968 = vrot.lane.b32.xlu1 %v6236_v53, %s5214_s23  ;;  %v1180_v54 = vmax.f32 %v975_v61, 0.0  ;;  %4080 = vmatpush.msrb.mxu2 %v3884_v30 }
 0x162   :  { %v1094_v14 = vmax.f32 %v717_v10, 0.0  ;;  %5045 = vmatmul.msk.f32.gmra.mxu0 %vm185_vm0, %v76_v55  ;;  %v1696_v55 = vmax.f32 %v1511_v26, %v1607_v1  ;;  %v3878_v1 = vld [vmem:[%s8404_s3 + $0xa0] sm:$0xff] }
 0x163   :  { %v6256_v22 = vpop.permute.xlu1 %2706  ;;  %2065 = vrot.lane.b32.xlu2 %v6254_v21, %s5212_s17  ;;  %v1380_v59 = vsel %vm185_vm0, %v1180_v54, -inf  ;;  %v3882_v54 = vld [vmem:[%s8404_s3 + $0xc0] sm:$0xff] }
 0x164   :  { %v1248_v60 = vsel %vm185_vm0, %v1094_v14, -inf  ;;  %v1381_v27 = vmax.f32 %v1379_v35, %v1380_v59  ;;  %v1093_v35 = vmax.f32 %v714_v51, 0.0  ;;  %1745 = vst.msk [vmem:[#allocation3 + $0x30] sm:$0xff] %vm185_vm0, %v1696_v55  ;;  %v1697_v14 = vmax.f32 %v1513_v38, %v1609_v9  ;;  %v3877_v55 = vld [vmem:[%s8404_s3 + $0x98] sm:$0xff] }
 0x165   :  { %2592 = vrot.lane.b32.xlu0 %v2560_v24, %s5214_s23  ;;  %v1249_v33 = vmax.f32 %v1247_v19, %v1248_v60  ;;  %v2388_v31 = vpop.permute.xlu2 %2387  ;;  %v168_v38 = vld [vmem:[%s8401_s0 + $0x438] sm:$0xff] }
 0x166   :  { %1483 = vst.msk [vmem:[#allocation2 + $0x1c0] sm:$0xff] %vm185_vm0, %v1381_v27  ;;  %v977_v8 = vpop.f32.mrf.mxu2  ;;  %v6341_v27 = vld [vmem:[#allocation3 + $0x23] sm:$0xff]  ;;  %v1253_v25 = vsel %vm185_vm0, %v1093_v35, -inf }
 0x167   :  { %v1874_v3 = vpop.permute.xlu0 %1873  ;;  %v719_v36 = vpop.f32.mrf.mxu0  ;;  %1439 = vst.msk [vmem:[#allocation2 + $0x60] sm:$0xff] %vm185_vm0, %v1249_v33  ;;  %v978_v45 = vadd.f32 %v6023_v12, %v977_v8  ;;  %v167_v33 = vld [vmem:[%s8401_s0 + $0x430] sm:$0xff]  ;;  %v3875_v35 = vld [vmem:[%s8404_s3 + $0x88] sm:$0xff] }
 0x168   :  { %v720_v47 = vadd.f32 %v6023_v12, %v719_v36  ;;  %1911 = vst.msk [vmem:[#allocation4 + $0x268] sm:$0xff] %vm1899_vm2, %v1874_v3  ;;  %5136 = vmatmul.msk.f32.gmra.mxu3 %vm185_vm0, %v167_v33  ;;  %v1386_v36 = vsel %vm185_vm0, %v1185_v4, -inf }
 0x169   :  { %2704 = vrot.lane.b32.xlu1 %v6226_v50, %s5212_s17  ;;  %2008 = vst.msk [vmem:[#allocation4 + $0x268] sm:$0xff] %vm1996_vm3, %v6218_v46  ;;  %v1181_v44 = vmax.f32 %v978_v45, 0.0  ;;  %v1383_v46 = vsel %vm185_vm0, %v1184_v41, -inf  ;;  %v3879_v45 = vld [vmem:[%s8404_s3 + $0xa8] sm:$0xff] }
 0x16a   :  { %v1095_v37 = vmax.f32 %v720_v47, 0.0  ;;  %5046 = vmatmul.msk.f32.gmra.mxu0 %vm185_vm0, %v77_v28  ;;  %2105 = vst.msk [vmem:[#allocation4 + $0x268] sm:$0xff] %vm2093_vm4, %v6231_v2  ;;  %v3883_v2 = vld [vmem:[%s8404_s3 + $0xc8] sm:$0xff]  ;;  %v993_v28 = vadd.f32 %v6023_v12, %v5554_v17 }
 0x16b   :  { %v2292_v56 = vpop.permute.xlu1 %2291  ;;  %2385 = vrot.lane.b32.xlu2 %v6236_v53, %s5212_s17  ;;  %v1382_v61 = vsel %vm185_vm0, %v1181_v44, -inf  ;;  %4081 = vmatpush.msrb.mxu2 %v3883_v2  ;;  %1746 = vst.msk [vmem:[#allocation3 + $0x38] sm:$0xf] %vm1739_vm1, %v1697_v14  ;;  %v1790_v26 = vld [vmem:[#allocation3 + $0x30] sm:$0xff] }
 0x16c   :  { %v1251_v10 = vsel %vm185_vm0, %v1095_v37, -inf  ;;  %2329 = vst.msk [vmem:[#allocation4 + $0x238] sm:$0xff] %vm1996_vm3, %v2292_v56  ;;  %v1384_v53 = vmax.f32 %v1382_v61, %v1383_v46  ;;  %v79_v37 = vld [vmem:[%s8401_s0 + $0x170] sm:$0xff]  ;;  %v1186_v56 = vmax.f32 %v993_v28, 0.0  ;;  %v81_v28 = vld [vmem:[%s8401_s0 + $0x180] sm:$0xff] }
 0x16d   :  { %2177 = vrot.lane.b32.xlu0 %v2560_v24, %s5213_s18  ;;  %v1252_v13 = vmax.f32 %v1250_v6, %v1251_v10  ;;  %2425 = vst.msk [vmem:[#allocation4 + $0x238] sm:$0xff] %vm2093_vm4, %v2388_v31  ;;  %v6322_v15 = vpop.permute.xlu2 %2397  ;;  %4082 = vmatpush.msrb.mxu2 %v3882_v54  ;;  %v3723_v31 = vld [vmem:[#allocation3 + $0x114] sm:$0xff]  ;;  %v3876_v46 = vld [vmem:[%s8404_s3 + $0x90] sm:$0xff] }
 0x16e   :  { %1484 = vst.msk [vmem:[#allocation2 + $0x1c8] sm:$0xff] %vm185_vm0, %v1384_v53  ;;  %v980_v23 = vpop.f32.mrf.mxu2  ;;  %v2656_v61 = vld [vmem:[#allocation3 + $0x21] sm:$0xff] }
 0x16f   :  { %v2516_v19 = vpop.permute.xlu0 %2515  ;;  %v722_v24 = vpop.f32.mrf.mxu0  ;;  %1440 = vst.msk [vmem:[#allocation2 + $0x68] sm:$0xff] %vm185_vm0, %v1252_v13  ;;  %v981_v59 = vadd.f32 %v6023_v12, %v980_v23  ;;  %4083 = vmatpush.msrb.mxu2 %v3881_v34  ;;  %v1389_v13 = vsel %vm185_vm0, %v1186_v56, -inf  ;;  %v169_v34 = vld [vmem:[%s8401_s0 + $0x440] sm:$0xff]  ;;  %v1669_v56 = vld [vmem:[#allocation2 + $0x1c1] ss:$2 sm:$0xf] }
 0x170   :  { %v723_v60 = vadd.f32 %v6023_v12, %v722_v24  ;;  %2553 = vst.msk [vmem:[#allocation4 + $0x240] sm:$0xff] %vm1899_vm2, %v2516_v19  ;;  %5137 = vmatmul.msk.f32.gmra.mxu3 %vm185_vm0, %v168_v38 }
 0x171   :  { %2289 = vrot.lane.b32.xlu1 %v6226_v50, %s5214_s23  ;;  %v1182_v3 = vmax.f32 %v981_v59, 0.0  ;;  %v3880_v50 = vld [vmem:[%s8404_s3 + $0xb0] sm:$0xff]  ;;  %3739 = vst.msk [vmem:[#allocation4 + $0x228] sm:$0xff] %vm185_vm0, %v3723_v31  ;;  %v80_v59 = vld [vmem:[%s8401_s0 + $0x178] sm:$0xff] }
 0x172   :  { %v1096_v63 = vmax.f32 %v723_v60, 0.0  ;;  %5047 = vmatmul.msk.f32.gmra.mxu0 %vm185_vm0, %v78_v18  ;;  %4084 = vmatpush.msrb.mxu2 %v3880_v50  ;;  %1806 = vst.msk [vmem:[#allocation4 + $0xa8] sm:$0xff] %vm185_vm0, %v1790_v26  ;;  %v6402_v2 = vld [vmem:[#allocation3 + $0x32] sm:$0xff] }
 0x173   :  { %v2835_v8 = vpop.permute.xlu1 %2834  ;;  %2049 = vrot.lane.b32.xlu2 %v6341_v27, %s5212_s17  ;;  %v1385_v41 = vsel %vm185_vm0, %v1182_v3, -inf  ;;  %v6404_v53 = vld [vmem:[#allocation3 + $0x34] sm:$0xff]  ;;  %2769 = vst.msk [vmem:[#allocation4 + $0x50] sm:$0xff] %vm185_vm0, %v6402_v2 }
 0x174   :  { %2873 = vst.msk [vmem:[#allocation4 + $0x210] sm:$0xff] %vm1899_vm2, %v2835_v8  ;;  %v1254_v6 = vsel %vm185_vm0, %v1096_v63, -inf  ;;  %v1387_v47 = vmax.f32 %v1385_v41, %v1386_v36  ;;  %4085 = vmatpush.msrb.mxu2 %v3879_v45  ;;  %v3874_v60 = vld [vmem:[%s8404_s3 + $0x80] sm:$0xff]  ;;  %v170_v41 = vld [vmem:[%s8401_s0 + $0x448] sm:$0xff]  ;;  %v6451_v26 = vld [vmem:[#allocation3 + $0x110] sm:$0xff] }
 0x175   :  { %2513 = vrot.lane.b32.xlu0 %v6027_v52, %s5213_s18  ;;  %v1255_v48 = vmax.f32 %v1253_v25, %v1254_v6  ;;  %v6367_v49 = vpop.permute.xlu2 %1950  ;;  %2129 = vst.msk [vmem:[#allocation4 + $0xb0] sm:$0xff] %vm185_vm0, %v6404_v53  ;;  %v3073_v31 = vld [vmem:[#allocation3 + $0x31] sm:$0xff] }
 0x176   :  { %1485 = vst.msk [vmem:[#allocation2 + $0x1d0] sm:$0xff] %vm185_vm0, %v1387_v47  ;;  %v983_v51 = vpop.f32.mrf.mxu2  ;;  %4086 = vmatpush.msrb.mxu2 %v3878_v1  ;;  %v1571_v45 = vld [vmem:[#allocation2 + $0x1b0] ss:$2 sm:$0xff]  ;;  %v1667_v47 = vld [vmem:[#allocation2 + $0x1b1] ss:$2 sm:$0xff] }
 0x177   :  { %v2931_v17 = vpop.permute.xlu0 %2930  ;;  %v6374_v44 = vpop.f32.mrf.mxu0  ;;  %1441 = vst.msk [vmem:[#allocation2 + $0x70] sm:$0xff] %vm185_vm0, %v1255_v48  ;;  %v984_v30 = vadd.f32 %v6023_v12, %v983_v51  ;;  %v1726_v1 = vmax.f32 %v1571_v45, %v1667_v47  ;;  %v1573_v51 = vld [vmem:[#allocation2 + $0x1c0] ss:$2 sm:$0xf] }
 0x178   :  { %2969 = vst.msk [vmem:[#allocation4 + $0x210] sm:$0xff] %vm1996_vm3, %v2931_v17  ;;  %4087 = vmatpush.msrb.mxu2 %v3877_v55  ;;  %5138 = vmatmul.msk.f32.gmra.mxu3 %vm185_vm0, %v169_v34  ;;  %v726_v48 = vadd.f32 %v6023_v12, %v6374_v44  ;;  %v1727_v44 = vmax.f32 %v1573_v51, %v1669_v56  ;;  %v173_v56 = vld [vmem:[%s8401_s0 + $0x460] sm:$0xff] }
 0x179   :  { %2832 = vrot.lane.b32.xlu1 %v6254_v21, %s5213_s18  ;;  %v1183_v58 = vmax.f32 %v984_v30, 0.0  ;;  %v6397_v21 = vld [vmem:[#allocation3 + $0x33] sm:$0xff]  ;;  %3089 = vst.msk [vmem:[#allocation4 + $0x20] sm:$0xff] %vm185_vm0, %v3073_v31 }
 0x17a   :  { %5048 = vmatmul.msk.f32.gmra.mxu0 %vm185_vm0, %v79_v37  ;;  %4088 = vmatpush.msrb.mxu2 %v3876_v46  ;;  %2449 = vst.msk [vmem:[#allocation4 + $0x80] sm:$0xff] %vm185_vm0, %v6397_v21  ;;  %v2464_v37 = vld [vmem:[#allocation3 + $0x24] sm:$0xff]  ;;  %v1097_v55 = vmax.f32 %v726_v48, 0.0 }
 0x17b   :  { %v6393_v10 = vpop.permute.xlu1 %2716  ;;  %2688 = vrot.lane.b32.xlu2 %v2656_v61, %s5212_s17  ;;  %v1388_v9 = vsel %vm185_vm0, %v1183_v58, -inf  ;;  %1775 = vst.msk [vmem:[#allocation3 + $0x120] sm:$0xff] %vm185_vm0, %v1726_v1  ;;  %v82_v58 = vld [vmem:[%s8401_s0 + $0x188] sm:$0xff]  ;;  %v3905_v1 = vld [vmem:[%s8404_s3 + $0x178] sm:$0xff] }
 0x17c   :  { %v1390_v19 = vmax.f32 %v1388_v9, %v1389_v13  ;;  %4089 = vmatpush.msrb.mxu2 %v3875_v35  ;;  %1776 = vst.msk [vmem:[#allocation3 + $0x128] sm:$0xf] %vm1739_vm1, %v1727_v44  ;;  %v1256_v9 = vsel %vm185_vm0, %v1097_v55, -inf  ;;  %4140 = vmatpush.msrb.mxu3 %v3905_v1  ;;  %v3898_v1 = vld [vmem:[%s8404_s3 + $0x140] sm:$0xff] }
 0x17d   :  { %2928 = vrot.lane.b32.xlu0 %v6027_v52, %s5214_s23  ;;  %v2048_v54 = vpop.permute.xlu2 %2047  ;;  %v1575_v23 = vld [vmem:[#allocation2 + $0x1c8] ss:$2 sm:$0xff]  ;;  %v1671_v24 = vld [vmem:[#allocation2 + $0x1c9] ss:$2 sm:$0xff] }
 0x17e   :  { %1486 = vst.msk [vmem:[#allocation2 + $0x1d8] sm:$0xff] %vm185_vm0, %v1390_v19  ;;  %v1918_v52 = vld [vmem:[#allocation3 + $0x22] sm:$0xff]  ;;  %v1728_v4 = vmax.f32 %v1575_v23, %v1671_v24  ;;  %4090 = vmatpush.msrb.mxu2 %v3874_v60 }
 0x17f   :  { %v2176_v14 = vpop.permute.xlu0 %2175  ;;  %v728_v18 = vpop.f32.mrf.mxu0 }
 0x180   :  { %2223 = vst.msk [vmem:[#allocation4 + $0x8] sm:$0xff] %vm1899_vm2, %v2176_v14  ;;  %5139 = vmatmul.msk.f32.gmra.mxu3 %vm185_vm0, %v170_v41  ;;  %v729_v35 = vadd.f32 %v6023_v12, %v728_v18 }
 0x181   :  { %1952 = vrot.lane.b32.xlu1 %v1918_v52, %s5214_s23  ;;  %1777 = vst.msk [vmem:[#allocation3 + $0x130] sm:$0xff] %vm185_vm0, %v1728_v4 }
 0x182   :  { %5049 = vmatmul.msk.f32.gmra.mxu0 %vm185_vm0, %v80_v59  ;;  %v1098_v24 = vmax.f32 %v729_v35, 0.0  ;;  %v172_v59 = vld [vmem:[%s8401_s0 + $0x458] sm:$0xff]  ;;  %v1801_v60 = vld [vmem:[#allocation3 + $0x120] sm:$0xff] }
 0x183   :  { %v2302_v33 = vpop.permute.xlu1 %2301  ;;  %2369 = vrot.lane.b32.xlu2 %v1918_v52, %s5212_s17  ;;  %v1929_v52 = vld [vmem:[#allocation3 + $0x112] sm:$0xff]  ;;  %1817 = vst.msk [vmem:[#allocation4 + $0x310] sm:$0xff] %vm185_vm0, %v1801_v60 }
 0x184   :  { %v1259_v31 = vsel %vm185_vm0, %v1098_v24, -inf  ;;  %v174_v24 = vld [vmem:[%s8401_s0 + $0x468] sm:$0xff] }
 0x185   :  { %1855 = vrot.lane.b32.xlu0 %v2656_v61, %s5213_s18  ;;  %v6434_v25 = vpop.permute.xlu2 %2063  ;;  %v1577_v3 = vld [vmem:[#allocation2 + $0x1d8] ss:$2 sm:$0xf]  ;;  %v1673_v63 = vld [vmem:[#allocation2 + $0x1d9] ss:$2 sm:$0xf] }
 0x186   :  { %v1729_v50 = vmax.f32 %v1577_v3, %v1673_v63 }
 0x187   :  { %v2368_v8 = vpop.permute.xlu0 %2367  ;;  %v6437_v36 = vpop.f32.mrf.mxu0 }
 0x188   :  { %v6446_v6 = vld [vmem:[#allocation3 + $0x130] sm:$0xff]  ;;  %1778 = vst.msk [vmem:[#allocation3 + $0x138] sm:$0xf] %vm1739_vm1, %v1729_v50  ;;  %v732_v3 = vadd.f32 %v6023_v12, %v6437_v36  ;;  %v6512_v50 = vld [vmem:[#allocation3 + $0x122] sm:$0xff] }
 0x189   :  { %2273 = vrot.lane.b32.xlu1 %v2656_v61, %s5214_s23  ;;  %1818 = vst.msk [vmem:[#allocation4 + $0x348] sm:$0xff] %vm185_vm0, %v6446_v6 }
 0x18a   :  { %5050 = vmatmul.msk.f32.gmra.mxu0 %vm185_vm0, %v81_v28  ;;  %2780 = vst.msk [vmem:[#allocation4 + $0x2b8] sm:$0xff] %vm185_vm0, %v6512_v50  ;;  %v1099_v47 = vmax.f32 %v732_v3, 0.0  ;;  %v1613_v3 = vld [vmem:[#allocation2 + $0x71] ss:$2 sm:$0xf] }
 0x18b   :  { %v1854_v17 = vpop.permute.xlu1 %1853  ;;  %2614 = vrot.lane.b32.xlu2 %v6451_v26, %s5214_s23 }
 0x18c   :  { %1901 = vst.msk [vmem:[#allocation4 + $0x38] sm:$0xff] %vm1899_vm2, %v1854_v17  ;;  %v2667_v17 = vld [vmem:[#allocation3 + $0x111] sm:$0xff] }
 0x18d   :  { %1998 = vst.msk [vmem:[#allocation4 + $0x38] sm:$0xff] %vm1996_vm3, %v6367_v49  ;;  %2497 = vrot.lane.b32.xlu0 %v2464_v37, %s5213_s18  ;;  %v6464_v30 = vpop.permute.xlu2 %2383  ;;  %v171_v49 = vld [vmem:[%s8401_s0 + $0x450] sm:$0xff] }
 0x18e   :  { %2095 = vst.msk [vmem:[#allocation4 + $0x38] sm:$0xff] %vm2093_vm4, %v2048_v54  ;;  %5140 = vmatmul.msk.f32.gmra.mxu3 %vm185_vm0, %v171_v49 }
 0x18f   :  { %v2192_v38 = vpop.permute.xlu0 %2191  ;;  %v734_v46 = vpop.f32.mrf.mxu0  ;;  %v2125_v61 = vld [vmem:[#allocation3 + $0x134] sm:$0xff] }
 0x190   :  { %2231 = vst.msk [vmem:[#allocation4 + $0x1c8] sm:$0xff] %vm1899_vm2, %v2192_v38  ;;  %v735_v13 = vadd.f32 %v6023_v12, %v734_v46  ;;  %v6538_v44 = vld [vmem:[#allocation3 + $0x133] sm:$0xff]  ;;  %v1262_v38 = vsel %vm185_vm0, %v1099_v47, -inf }
 0x191   :  { %2816 = vrot.lane.b32.xlu1 %v6341_v27, %s5213_s18  ;;  %2141 = vst.msk [vmem:[#allocation4 + $0x350] sm:$0xff] %vm185_vm0, %v2125_v61  ;;  %v6548_v49 = vld [vmem:[#allocation3 + $0x132] sm:$0xff]  ;;  %v3904_v61 = vld [vmem:[%s8404_s3 + $0x170] sm:$0xff] }
 0x192   :  { %2238 = vst.msk [vmem:[#allocation4 + $0x350] sm:$0xff] %vm1899_vm2, %v6234_v16  ;;  %v1100_v19 = vmax.f32 %v735_v13, 0.0  ;;  %5051 = vmatmul.msk.f32.gmra.mxu0 %vm185_vm0, %v82_v58  ;;  %v6561_v13 = vld [vmem:[#allocation3 + $0x121] sm:$0xff]  ;;  %4141 = vmatpush.msrb.mxu3 %v3904_v61 }
 0x193   :  { %v2272_v54 = vpop.permute.xlu1 %2271  ;;  %2334 = vst.msk [vmem:[#allocation4 + $0x350] sm:$0xff] %vm1996_vm3, %v2302_v33  ;;  %3029 = vrot.lane.b32.xlu2 %v6451_v26, %s5212_s17  ;;  %v6505_v33 = vld [vmem:[#allocation3 + $0x123] sm:$0xff] }
 0x194   :  { %2430 = vst.msk [vmem:[#allocation4 + $0x350] sm:$0xff] %vm2093_vm4, %v6322_v15  ;;  %v1257_v27 = vsel %vm185_vm0, %v1100_v19, -inf  ;;  %v83_v15 = vld [vmem:[%s8401_s0 + $0x190] sm:$0xff]  ;;  %v3895_v61 = vld [vmem:[%s8404_s3 + $0x128] sm:$0xff] }
 0x195   :  { %2912 = vrot.lane.b32.xlu0 %v2464_v37, %s5214_s23  ;;  %v3753_v14 = vld [vmem:[#allocation4 + $0x38] sm:$0xff]  ;;  %v1258_v16 = vmax.f32 %v1256_v9, %v1257_v27  ;;  %2319 = vst.msk [vmem:[#allocation4 + $0x8] sm:$0xff] %vm1996_vm3, %v2272_v54  ;;  %v2613_v23 = vpop.permute.xlu2 %2612  ;;  %v84_v37 = vld [vmem:[%s8401_s0 + $0x198] sm:$0xff]  ;;  %v3404_v54 = vld [vmem:[#allocation3 + $0x120] sm:$0xff] }
 0x196   :  { %4029 = vmatmul.f32.gmra.mxu1 %v3753_v14  ;;  %2415 = vst.msk [vmem:[#allocation4 + $0x8] sm:$0xff] %vm2093_vm4, %v2368_v8  ;;  %5141 = vmatmul.msk.f32.gmra.mxu3 %vm185_vm0, %v172_v59  ;;  %v85_v14 = vld [vmem:[%s8401_s0 + $0x1a0] sm:$0xff] }
 0x197   :  { %v1870_v18 = vpop.permute.xlu0 %1869  ;;  %1442 = vst.msk [vmem:[#allocation2 + $0x78] sm:$0xff] %vm185_vm0, %v1258_v16  ;;  %v737_v4 = vpop.f32.mrf.mxu0  ;;  %v3405_v16 = vld [vmem:[#allocation3 + $0x130] sm:$0xff] }
 0x198   :  { %2650 = vst.msk [vmem:[#allocation4 + $0x240] sm:$0xff] %vm1996_vm3, %v2613_v23  ;;  %v738_v34 = vadd.f32 %v6023_v12, %v737_v4  ;;  %v3902_v23 = vld [vmem:[%s8404_s3 + $0x160] sm:$0xff]  ;;  %v1611_v4 = vld [vmem:[#allocation2 + $0x61] ss:$2 sm:$0xff] }
 0x199   :  { %1974 = vrot.lane.b32.xlu1 %v1929_v52, %s5214_s23  ;;  %1909 = vst.msk [vmem:[#allocation4 + $0x1f8] sm:$0xff] %vm1899_vm2, %v1870_v18  ;;  %v3901_v18 = vld [vmem:[%s8404_s3 + $0x158] sm:$0xff] }
 0x19a   :  { %v1101_v63 = vmax.f32 %v738_v34, 0.0  ;;  %5052 = vmatmul.msk.f32.gmra.mxu0 %vm185_vm0, %v83_v15  ;;  %2460 = vst.msk [vmem:[#allocation4 + $0x2e8] sm:$0xff] %vm185_vm0, %v6505_v33  ;;  %v6590_v15 = vld [vmem:[#allocation3 + $0x30] sm:$0xff] }
 0x19b   :  { %v2496_v8 = vpop.permute.xlu1 %2495  ;;  %2071 = vrot.lane.b32.xlu2 %v6198_v32, %s5212_s17  ;;  %2461 = vst.msk [vmem:[#allocation4 + $0x320] sm:$0xff] %vm185_vm0, %v6538_v44  ;;  %v1517_v34 = vld [vmem:[#allocation2 + $0x70] ss:$2 sm:$0xf] }
 0x19c   :  { %2543 = vst.msk [vmem:[#allocation4 + $0x10] sm:$0xff] %vm1899_vm2, %v2496_v8  ;;  %v1260_v28 = vsel %vm185_vm0, %v1101_v63, -inf  ;;  %v3900_v63 = vld [vmem:[%s8404_s3 + $0x150] sm:$0xff]  ;;  %v1699_v8 = vmax.f32 %v1517_v34, %v1613_v3 }
 0x19d   :  { %2199 = vrot.lane.b32.xlu0 %v6451_v26, %s5213_s18  ;;  %v1261_v36 = vmax.f32 %v1259_v31, %v1260_v28  ;;  %v3028_v41 = vpop.permute.xlu2 %3027  ;;  %v3747_v45 = vld [vmem:[#allocation4 + $0x8] sm:$0xff]  ;;  %2781 = vst.msk [vmem:[#allocation4 + $0x2f0] sm:$0xff] %vm185_vm0, %v6548_v49  ;;  %v2475_v31 = vld [vmem:[#allocation3 + $0x114] sm:$0xff] }
 0x19e   :  { %3066 = vst.msk [vmem:[#allocation4 + $0x210] sm:$0xff] %vm2093_vm4, %v3028_v41  ;;  %4091 = vmatmul.f32.vlgmr.msrb.gmra.mxu2 %v3747_v45  ;;  %v6529_v26 = vld [vmem:[#allocation3 + $0x124] sm:$0xff]  ;;  %5142 = vmatmul.msk.f32.gmra.mxu3 %vm185_vm0, %v173_v56 }
 0x19f   :  { %v2512_v48 = vpop.permute.xlu0 %2511  ;;  %1443 = vst.msk [vmem:[#allocation2 + $0x80] sm:$0xff] %vm185_vm0, %v1261_v36  ;;  %v740_v51 = vpop.f32.mrf.mxu0  ;;  %v6607_v36 = vld [vmem:[#allocation3 + $0x131] sm:$0xff]  ;;  %v3899_v45 = vld [vmem:[%s8404_s3 + $0x148] sm:$0xff]  ;;  %v3896_v56 = vld [vmem:[%s8404_s3 + $0x130] sm:$0xff] }
 0x1a0   :  { %2551 = vst.msk [vmem:[#allocation4 + $0x1d0] sm:$0xff] %vm1899_vm2, %v2512_v48  ;;  %v741_v55 = vadd.f32 %v6023_v12, %v740_v51  ;;  %v86_v48 = vld [vmem:[%s8401_s0 + $0x1a8] sm:$0xff]  ;;  %v175_v51 = vld [vmem:[%s8401_s0 + $0x470] sm:$0xff] }
 0x1a1   :  { %2710 = vrot.lane.b32.xlu1 %v2667_v17, %s5212_s17  ;;  %2140 = vst.msk [vmem:[#allocation4 + $0x318] sm:$0xff] %vm185_vm0, %v6529_v26 }
 0x1a2   :  { %v1102_v46 = vmax.f32 %v741_v55, 0.0  ;;  %5053 = vmatmul.msk.f32.gmra.mxu0 %vm185_vm0, %v84_v37  ;;  %3100 = vst.msk [vmem:[#allocation4 + $0x288] sm:$0xff] %vm185_vm0, %v6561_v13  ;;  %v3897_v37 = vld [vmem:[%s8404_s3 + $0x138] sm:$0xff] }
 0x1a3   :  { %v1967_v58 = vpop.permute.xlu1 %1966  ;;  %2391 = vrot.lane.b32.xlu2 %v1929_v52, %s5212_s17  ;;  %v1515_v52 = vld [vmem:[#allocation2 + $0x60] ss:$2 sm:$0xff]  ;;  %3420 = vst.msk [vmem:[#allocation4 + $0x258] sm:$0xff] %vm185_vm0, %v3404_v54 }
 0x1a4   :  { %2006 = vst.msk [vmem:[#allocation4 + $0x1f8] sm:$0xff] %vm1996_vm3, %v1967_v58  ;;  %v1263_v12 = vsel %vm185_vm0, %v1102_v46, -inf  ;;  %v1698_v60 = vmax.f32 %v1515_v52, %v1611_v4  ;;  %v6653_v46 = vpop.f32.mrf.mxu3  ;;  %v3891_v4 = vld [vmem:[%s8404_s3 + $0x108] sm:$0xff] }
 0x1a5   :  { %2103 = vst.msk [vmem:[#allocation4 + $0x1f8] sm:$0xff] %vm2093_vm4, %v6434_v25  ;;  %1877 = vrot.lane.b32.xlu0 %v2667_v17, %s5213_s18  ;;  %v1264_v9 = vmax.f32 %v1262_v38, %v1263_v12  ;;  %v6563_v35 = vpop.permute.xlu2 %2069  ;;  %v3903_v25 = vld [vmem:[%s8404_s3 + $0x168] sm:$0xff] }
 0x1a6   :  { %4142 = vmatpush.msrb.mxu3 %v3903_v25  ;;  %3421 = vst.msk [vmem:[#allocation4 + $0x290] sm:$0xff] %vm185_vm0, %v3405_v16  ;;  %v87_v25 = vld [vmem:[%s8401_s0 + $0x1b0] sm:$0xff]  ;;  %v176_v16 = vld [vmem:[%s8401_s0 + $0x478] sm:$0xff] }
 0x1a7   :  { %v2198_v19 = vpop.permute.xlu0 %2197  ;;  %1444 = vst.msk [vmem:[#allocation2 + $0x88] sm:$0xff] %vm185_vm0, %v1264_v9  ;;  %v6573_v27 = vpop.f32.mrf.mxu0  ;;  %5143 = vmatmul.msk.f32.gmra.mxu3 %vm185_vm0, %v174_v24  ;;  %v6690_v24 = vld [vmem:[%s8403_s2] ss:$0 sm:$0xff] }
 0x1a8   :  { %2234 = vst.msk [vmem:[#allocation4 + $0x270] sm:$0xff] %vm1899_vm2, %v2198_v19  ;;  %4143 = vmatpush.msrb.mxu3 %v3902_v23  ;;  %v1919_v19 = vld [vmem:[#allocation3 + $0x32] sm:$0xff] }
 0x1a9   :  { %2295 = vrot.lane.b32.xlu1 %v2667_v17, %s5214_s23  ;;  %1747 = vst.msk [vmem:[#allocation3 + $0x40] sm:$0xff] %vm185_vm0, %v1698_v60  ;;  %v6621_v17 = vld [vmem:[#allocation3 + $0x134] sm:$0xff] }
 0x1aa   :  { %5054 = vmatmul.msk.f32.gmra.mxu0 %vm185_vm0, %v85_v14  ;;  %4144 = vmatpush.msrb.mxu3 %v3901_v18  ;;  %1748 = vst.msk [vmem:[#allocation3 + $0x48] sm:$0xf] %vm1739_vm1, %v1699_v8  ;;  %v3894_v14 = vld [vmem:[%s8404_s3 + $0x120] sm:$0xff]  ;;  %v3893_v23 = vld [vmem:[%s8404_s3 + $0x118] sm:$0xff]  ;;  %v744_v18 = vadd.f32 %v6690_v24, %v6573_v27  ;;  %v3892_v27 = vld [vmem:[%s8404_s3 + $0x110] sm:$0xff] }
 0x1ab   :  { %v2288_v59 = vpop.permute.xlu1 %2287  ;;  %2594 = vrot.lane.b32.xlu2 %v6590_v15, %s5214_s23  ;;  %3101 = vst.msk [vmem:[#allocation4 + $0x2c0] sm:$0xff] %vm185_vm0, %v6607_v36  ;;  %v3890_v8 = vld [vmem:[%s8404_s3 + $0x100] sm:$0xff] }
 0x1ac   :  { %2327 = vst.msk [vmem:[#allocation4 + $0x1c8] sm:$0xff] %vm1996_vm3, %v2288_v59  ;;  %4145 = vmatpush.msrb.mxu3 %v3900_v63  ;;  %v6711_v60 = vpop.f32.mrf.mxu3  ;;  %v1103_v34 = vmax.f32 %v744_v18, 0.0  ;;  %v2657_v63 = vld [vmem:[#allocation3 + $0x31] sm:$0xff] }
 0x1ad   :  { %2423 = vst.msk [vmem:[#allocation4 + $0x1c8] sm:$0xff] %vm2093_vm4, %v6464_v30  ;;  %2519 = vrot.lane.b32.xlu0 %v2475_v31, %s5213_s18  ;;  %v6604_v28 = vpop.permute.xlu2 %2389  ;;  %v6613_v30 = vld [vmem:[#allocation3 + $0x124] sm:$0xff] }
 0x1ae   :  { %4146 = vmatpush.msrb.mxu3 %v3899_v45  ;;  %3740 = vst.msk [vmem:[#allocation4 + $0x260] sm:$0xff] %vm185_vm0, %v6613_v30  ;;  %v1265_v45 = vsel %vm185_vm0, %v1103_v34, -inf }
 0x1af   :  { %v1876_v41 = vpop.permute.xlu0 %1875  ;;  %v6616_v47 = vpop.f32.mrf.mxu0  ;;  %5144 = vmatmul.msk.f32.gmra.mxu3 %vm185_vm0, %v175_v51  ;;  %3741 = vst.msk [vmem:[#allocation4 + $0x298] sm:$0xff] %vm185_vm0, %v6621_v17 }
 0x1b0   :  { %1912 = vst.msk [vmem:[#allocation4 + $0x2a0] sm:$0xff] %vm1899_vm2, %v1876_v41  ;;  %4147 = vmatpush.msrb.mxu3 %v3898_v1  ;;  %v6651_v55 = vld [vmem:[#allocation3 + $0x40] sm:$0xff] }
 0x1b1   :  { %2838 = vrot.lane.b32.xlu1 %v6198_v32, %s5213_s18  ;;  %v6655_v58 = vld [vmem:[#allocation3 + $0x42] sm:$0xff]  ;;  %1807 = vst.msk [vmem:[#allocation4 + $0xe0] sm:$0xff] %vm185_vm0, %v6651_v55 }
 0x1b2   :  { %5055 = vmatmul.msk.f32.gmra.mxu0 %vm185_vm0, %v86_v48  ;;  %4148 = vmatpush.msrb.mxu3 %v3897_v37  ;;  %v6663_v9 = vld [vmem:[#allocation3 + $0x43] sm:$0xff]  ;;  %2770 = vst.msk [vmem:[#allocation4 + $0x88] sm:$0xff] %vm185_vm0, %v6655_v58  ;;  %v747_v48 = vadd.f32 %v6690_v24, %v6616_v47 }
 0x1b3   :  { %v1973_v32 = vpop.permute.xlu1 %1972  ;;  %3009 = vrot.lane.b32.xlu2 %v6590_v15, %s5212_s17  ;;  %v6671_v54 = vld [vmem:[#allocation3 + $0x44] sm:$0xff]  ;;  %2450 = vst.msk [vmem:[#allocation4 + $0xb8] sm:$0xff] %vm185_vm0, %v6663_v9 }
 0x1b4   :  { %2009 = vst.msk [vmem:[#allocation4 + $0x2a0] sm:$0xff] %vm1996_vm3, %v1973_v32  ;;  %4149 = vmatpush.msrb.mxu3 %v3896_v56  ;;  %v3394_v32 = vld [vmem:[#allocation3 + $0x40] sm:$0xff]  ;;  %v6733_v47 = vpop.f32.mrf.mxu3 }
 0x1b5   :  { %2106 = vst.msk [vmem:[#allocation4 + $0x2a0] sm:$0xff] %vm2093_vm4, %v6563_v35  ;;  %2934 = vrot.lane.b32.xlu0 %v2475_v31, %s5214_s23  ;;  %v2609_v38 = vpop.permute.xlu2 %2608  ;;  %v3074_v56 = vld [vmem:[#allocation3 + $0x41] sm:$0xff] }
 0x1b6   :  { %2648 = vst.msk [vmem:[#allocation4 + $0x1d0] sm:$0xff] %vm1996_vm3, %v2609_v38  ;;  %4150 = vmatpush.msrb.mxu3 %v3895_v61  ;;  %v1104_v61 = vmax.f32 %v747_v48, 0.0 }
 0x1b7   :  { %v2518_v12 = vpop.permute.xlu0 %2517  ;;  %v6666_v35 = vpop.f32.mrf.mxu0  ;;  %5145 = vmatmul.msk.f32.gmra.mxu3 %vm185_vm0, %v176_v16  ;;  %2130 = vst.msk [vmem:[#allocation4 + $0xe8] sm:$0xff] %vm185_vm0, %v6671_v54 }
 0x1b8   :  { %2554 = vst.msk [vmem:[#allocation4 + $0x278] sm:$0xff] %vm1899_vm2, %v2518_v12  ;;  %4151 = vmatpush.msrb.mxu3 %v3894_v14  ;;  %v1268_v18 = vsel %vm185_vm0, %v1104_v61, -inf }
 0x1b9   :  { %1954 = vrot.lane.b32.xlu1 %v1919_v19, %s5214_s23  ;;  %3410 = vst.msk [vmem:[#allocation4 + $0x28] sm:$0xff] %vm185_vm0, %v3394_v32 }
 0x1ba   :  { %5056 = vmatmul.msk.f32.gmra.mxu0 %vm185_vm0, %v87_v25  ;;  %4152 = vmatpush.msrb.mxu3 %v3893_v23  ;;  %3090 = vst.msk [vmem:[#allocation4 + $0x58] sm:$0xff] %vm185_vm0, %v3074_v56  ;;  %v3714_v25 = vld [vmem:[#allocation3 + $0x44] sm:$0xff]  ;;  %v1014_v23 = vadd.f32 %v6690_v24, %v6653_v46  ;;  %v1017_v56 = vadd.f32 %v6690_v24, %v6711_v60 }
 0x1bb   :  { %v2709_v52 = vpop.permute.xlu1 %2708  ;;  %2051 = vrot.lane.b32.xlu2 %v6397_v21, %s5212_s17  ;;  %3730 = vst.msk [vmem:[#allocation4 + $0x30] sm:$0xff] %vm185_vm0, %v3714_v25 }
 0x1bc   :  { %2746 = vst.msk [vmem:[#allocation4 + $0x240] sm:$0xff] %vm2093_vm4, %v2709_v52  ;;  %4153 = vmatpush.msrb.mxu3 %v3892_v27  ;;  %v750_v52 = vadd.f32 %v6690_v24, %v6666_v35  ;;  %v1193_v46 = vmax.f32 %v1014_v23, 0.0  ;;  %v1022_v35 = vpop.f32.mrf.mxu3 }
 0x1bd   :  { %2179 = vrot.lane.b32.xlu0 %v6590_v15, %s5213_s18  ;;  %v6709_v59 = vpop.permute.xlu2 %2065  ;;  %v88_v15 = vld [vmem:[%s8401_s0 + $0x1b8] sm:$0xff]  ;;  %v1023_v48 = vadd.f32 %v6690_v24, %v1022_v35 }
 0x1be   :  { %4154 = vmatpush.msrb.mxu3 %v3891_v4  ;;  %v2572_v4 = vld [vmem:[#allocation3 + $0x120] sm:$0xff] }
 0x1bf   :  { %v2933_v31 = vpop.permute.xlu0 %2932  ;;  %v752_v3 = vpop.f32.mrf.mxu0  ;;  %v1196_v32 = vmax.f32 %v1023_v48, 0.0 }
 0x1c0   :  { %v753_v41 = vadd.f32 %v6690_v24, %v752_v3  ;;  %4155 = vmatpush.msrb.mxu3 %v3890_v8  ;;  %v2465_v3 = vld [vmem:[#allocation3 + $0x34] sm:$0xff] }
 0x1c1   :  { %2690 = vrot.lane.b32.xlu1 %v2657_v63, %s5212_s17  ;;  %v1401_v25 = vsel %vm185_vm0, %v1196_v32, -inf }
 0x1c2   :  { %v1106_v1 = vmax.f32 %v753_v41, 0.0  ;;  %5057 = vmatmul.msk.f32.gmra.mxu0 %vm185_vm0, %v88_v15  ;;  %v1105_v41 = vmax.f32 %v750_v52, 0.0 }
 0x1c3   :  { %v2294_v51 = vpop.permute.xlu1 %2293  ;;  %2371 = vrot.lane.b32.xlu2 %v1919_v19, %s5212_s17 }
 0x1c4   :  { %2330 = vst.msk [vmem:[#allocation4 + $0x270] sm:$0xff] %vm1996_vm3, %v2294_v51  ;;  %v1266_v37 = vsel %vm185_vm0, %v1106_v1, -inf  ;;  %v90_v51 = vld [vmem:[%s8401_s0 + $0x1c8] sm:$0xff]  ;;  %v1025_v23 = vpop.f32.mrf.mxu3 }
 0x1c5   :  { %2426 = vst.msk [vmem:[#allocation4 + $0x270] sm:$0xff] %vm2093_vm4, %v6604_v28  ;;  %1857 = vrot.lane.b32.xlu0 %v2657_v63, %s5213_s18  ;;  %v1267_v38 = vmax.f32 %v1265_v45, %v1266_v37  ;;  %v6731_v12 = vpop.permute.xlu2 %2385  ;;  %v89_v28 = vld [vmem:[%s8401_s0 + $0x1c0] sm:$0xff]  ;;  %v1400_v37 = vsel %vm185_vm0, %v1193_v46, -inf }
 0x1c6   :  { %v1519_v46 = vld [vmem:[#allocation2 + $0x78] ss:$2 sm:$0xff] }
 0x1c7   :  { %v2194_v19 = vpop.permute.xlu0 %2193  ;;  %1445 = vst.msk [vmem:[#allocation2 + $0x90] sm:$0xff] %vm185_vm0, %v1267_v38  ;;  %v755_v14 = vpop.f32.mrf.mxu0  ;;  %v1271_v38 = vsel %vm185_vm0, %v1105_v41, -inf }
 0x1c8   :  { %2232 = vst.msk [vmem:[#allocation4 + $0x200] sm:$0xff] %vm1899_vm2, %v2194_v19  ;;  %v756_v16 = vadd.f32 %v6690_v24, %v755_v14  ;;  %v1402_v14 = vmax.f32 %v1400_v37, %v1401_v25 }
 0x1c9   :  { %2275 = vrot.lane.b32.xlu1 %v2657_v63, %s5214_s23 }
 0x1ca   :  { %v1107_v27 = vmax.f32 %v756_v16, 0.0  ;;  %5058 = vmatmul.msk.f32.gmra.mxu0 %vm185_vm0, %v89_v28  ;;  %v1194_v16 = vmax.f32 %v1017_v56, 0.0  ;;  %1490 = vst.msk [vmem:[#allocation2 + $0x1f8] sm:$0xff] %vm185_vm0, %v1402_v14 }
 0x1cb   :  { %v2837_v34 = vpop.permute.xlu1 %2836  ;;  %2616 = vrot.lane.b32.xlu2 %v2572_v4, %s5214_s23 }
 0x1cc   :  { %2874 = vst.msk [vmem:[#allocation4 + $0x248] sm:$0xff] %vm1899_vm2, %v2837_v34  ;;  %v1269_v63 = vsel %vm185_vm0, %v1107_v27, -inf  ;;  %v91_v27 = vld [vmem:[%s8401_s0 + $0x1d0] sm:$0xff]  ;;  %v1026_v34 = vadd.f32 %v6690_v24, %v1025_v23 }
 0x1cd   :  { %2970 = vst.msk [vmem:[#allocation4 + $0x248] sm:$0xff] %vm1996_vm3, %v2933_v31  ;;  %2499 = vrot.lane.b32.xlu0 %v2465_v3, %s5213_s18  ;;  %v1270_v15 = vmax.f32 %v1268_v18, %v1269_v63  ;;  %v6756_v8 = vpop.permute.xlu2 %2049 }
 0x1cf   :  { %v1872_v45 = vpop.permute.xlu0 %1871  ;;  %1446 = vst.msk [vmem:[#allocation2 + $0x98] sm:$0xff] %vm185_vm0, %v1270_v15  ;;  %v758_v1 = vpop.f32.mrf.mxu0  ;;  %v1615_v15 = vld [vmem:[#allocation2 + $0x79] ss:$2 sm:$0xff] }
 0x1d0   :  { %1910 = vst.msk [vmem:[#allocation4 + $0x230] sm:$0xff] %vm1899_vm2, %v1872_v45  ;;  %v759_v31 = vadd.f32 %v6690_v24, %v758_v1  ;;  %v1700_v41 = vmax.f32 %v1519_v46, %v1615_v15  ;;  %v1521_v45 = vld [vmem:[#allocation2 + $0x88] ss:$2 sm:$0xf] }
 0x1d1   :  { %2818 = vrot.lane.b32.xlu1 %v6397_v21, %s5213_s18  ;;  %v1617_v1 = vld [vmem:[#allocation2 + $0x89] ss:$2 sm:$0xf] }
 0x1d2   :  { %v1108_v61 = vmax.f32 %v759_v31, 0.0  ;;  %5059 = vmatmul.msk.f32.gmra.mxu0 %vm185_vm0, %v90_v51  ;;  %v1028_v31 = vpop.f32.mrf.mxu3  ;;  %1749 = vst.msk [vmem:[#allocation3 + $0x50] sm:$0xff] %vm185_vm0, %v1700_v41  ;;  %v1701_v37 = vmax.f32 %v1521_v45, %v1617_v1  ;;  %v94_v45 = vld [vmem:[%s8401_s0 + $0x1e8] sm:$0xff] }
 0x1d3   :  { %v1969_v19 = vpop.permute.xlu1 %1968  ;;  %3031 = vrot.lane.b32.xlu2 %v2572_v4, %s5212_s17 }
 0x1d4   :  { %2007 = vst.msk [vmem:[#allocation4 + $0x230] sm:$0xff] %vm1996_vm3, %v1969_v19  ;;  %v1272_v21 = vsel %vm185_vm0, %v1108_v61, -inf  ;;  %v92_v61 = vld [vmem:[%s8401_s0 + $0x1d8] sm:$0xff]  ;;  %v1020_v19 = vadd.f32 %v6690_v24, %v6733_v47 }
 0x1d5   :  { %2104 = vst.msk [vmem:[#allocation4 + $0x230] sm:$0xff] %vm2093_vm4, %v6709_v59  ;;  %2914 = vrot.lane.b32.xlu0 %v2465_v3, %s5214_s23  ;;  %v1273_v60 = vmax.f32 %v1271_v38, %v1272_v21  ;;  %v2689_v28 = vpop.permute.xlu2 %2688  ;;  %v1403_v59 = vsel %vm185_vm0, %v1194_v16, -inf  ;;  %v1197_v3 = vmax.f32 %v1026_v34, 0.0  ;;  %v2668_v38 = vld [vmem:[#allocation3 + $0x121] sm:$0xff] }
 0x1d6   :  { %1750 = vst.msk [vmem:[#allocation3 + $0x58] sm:$0xf] %vm1739_vm1, %v1701_v37  ;;  %v1195_v14 = vmax.f32 %v1020_v19, 0.0 }
 0x1d7   :  { %v2593_v18 = vpop.permute.xlu0 %2592  ;;  %1447 = vst.msk [vmem:[#allocation2 + $0xa0] sm:$0xff] %vm185_vm0, %v1273_v60  ;;  %v761_v52 = vpop.f32.mrf.mxu0  ;;  %v1404_v35 = vsel %vm185_vm0, %v1197_v3, -inf }
 0x1d8   :  { %2640 = vst.msk [vmem:[#allocation4 + $0x10] sm:$0xff] %vm1996_vm3, %v2593_v18  ;;  %v1405_v48 = vmax.f32 %v1403_v59, %v1404_v35  ;;  %v1406_v18 = vsel %vm185_vm0, %v1195_v14, -inf  ;;  %v762_v59 = vadd.f32 %v6690_v24, %v761_v52 }
 0x1d9   :  { %1976 = vrot.lane.b32.xlu1 %v6512_v50, %s5214_s23  ;;  %2736 = vst.msk [vmem:[#allocation4 + $0x10] sm:$0xff] %vm2093_vm4, %v2689_v28  ;;  %v6815_v21 = vld [vmem:[#allocation3 + $0x50] sm:$0xff] }
 0x1da   :  { %5060 = vmatmul.msk.f32.gmra.mxu0 %vm185_vm0, %v91_v27  ;;  %1491 = vst.msk [vmem:[#allocation2 + $0x200] sm:$0xff] %vm185_vm0, %v1405_v48  ;;  %v6817_v60 = vpop.f32.mrf.mxu3  ;;  %v1109_v46 = vmax.f32 %v762_v59, 0.0 }
 0x1db   :  { %v2705_v63 = vpop.permute.xlu1 %2704  ;;  %2073 = vrot.lane.b32.xlu2 %v6505_v33, %s5212_s17  ;;  %1808 = vst.msk [vmem:[#allocation4 + $0x118] sm:$0xff] %vm185_vm0, %v6815_v21 }
 0x1dc   :  { %2744 = vst.msk [vmem:[#allocation4 + $0x1d0] sm:$0xff] %vm2093_vm4, %v2705_v63  ;;  %v1274_v1 = vsel %vm185_vm0, %v1109_v46, -inf }
 0x1dd   :  { %2201 = vrot.lane.b32.xlu0 %v2572_v4, %s5213_s18  ;;  %v6796_v51 = vpop.permute.xlu2 %2369  ;;  %v6827_v23 = vld [vmem:[#allocation3 + $0x53] sm:$0xff] }
 0x1de   :  { %v6835_v34 = vld [vmem:[#allocation3 + $0x52] sm:$0xff]  ;;  %2451 = vst.msk [vmem:[#allocation4 + $0xf0] sm:$0xff] %vm185_vm0, %v6827_v23 }
 0x1df   :  { %v2178_v32 = vpop.permute.xlu0 %2177  ;;  %v764_v56 = vpop.f32.mrf.mxu0  ;;  %2771 = vst.msk [vmem:[#allocation4 + $0xc0] sm:$0xff] %vm185_vm0, %v6835_v34  ;;  %v6853_v35 = vld [vmem:[#allocation3 + $0x54] sm:$0xff] }
 0x1e0   :  { %2224 = vst.msk [vmem:[#allocation4 + $0x40] sm:$0xff] %vm1899_vm2, %v2178_v32  ;;  %v3748_v4 = vld [vmem:[#allocation4 + $0x10] sm:$0xff] }
 0x1e1   :  { %2712 = vrot.lane.b32.xlu1 %v2668_v38, %s5212_s17  ;;  %4156 = vmatmul.f32.vlgmr.msrb.gmra.mxu3 %v3748_v4  ;;  %2131 = vst.msk [vmem:[#allocation4 + $0x120] sm:$0xff] %vm185_vm0, %v6853_v35 }
 0x1e2   :  { %5061 = vmatmul.msk.f32.gmra.mxu0 %vm185_vm0, %v92_v61  ;;  %v6850_v52 = vpop.f32.mrf.mxu3  ;;  %v3715_v61 = vld [vmem:[#allocation3 + $0x54] sm:$0xff] }
 0x1e3   :  { %v2290_v25 = vpop.permute.xlu1 %2289  ;;  %2393 = vrot.lane.b32.xlu2 %v6512_v50, %s5212_s17  ;;  %v1029_v50 = vadd.f32 %v6690_v24, %v1028_v31  ;;  %v765_v31 = vadd.f32 %v6690_v24, %v764_v56  ;;  %3731 = vst.msk [vmem:[#allocation4 + $0x68] sm:$0xff] %vm185_vm0, %v3715_v61 }
 0x1e4   :  { %2328 = vst.msk [vmem:[#allocation4 + $0x200] sm:$0xff] %vm1996_vm3, %v2290_v25 }
 0x1e5   :  { %2424 = vst.msk [vmem:[#allocation4 + $0x200] sm:$0xff] %vm2093_vm4, %v6731_v12  ;;  %1879 = vrot.lane.b32.xlu0 %v2668_v38, %s5213_s18  ;;  %v2615_v47 = vpop.permute.xlu2 %2614  ;;  %v93_v12 = vld [vmem:[%s8401_s0 + $0x1e0] sm:$0xff]  ;;  %v1198_v27 = vmax.f32 %v1029_v50, 0.0  ;;  %v1110_v25 = vmax.f32 %v765_v31, 0.0  ;;  %v1032_v50 = vadd.f32 %v6690_v24, %v6817_v60 }
 0x1e6   :  { %2651 = vst.msk [vmem:[#allocation4 + $0x278] sm:$0xff] %vm1996_vm3, %v2615_v47 }
 0x1e7   :  { %v2514_v28 = vpop.permute.xlu0 %2513  ;;  %v767_v16 = vpop.f32.mrf.mxu0  ;;  %v1407_v63 = vsel %vm185_vm0, %v1198_v27, -inf }
 0x1e8   :  { %2552 = vst.msk [vmem:[#allocation4 + $0x208] sm:$0xff] %vm1899_vm2, %v2514_v28 }
 0x1e9   :  { %2649 = vst.msk [vmem:[#allocation4 + $0x208] sm:$0xff] %vm1996_vm3, %v6133_v40  ;;  %2297 = vrot.lane.b32.xlu1 %v2668_v38, %s5214_s23  ;;  %v1408_v40 = vmax.f32 %v1406_v18, %v1407_v63  ;;  %v3075_v38 = vld [vmem:[#allocation3 + $0x51] sm:$0xff]  ;;  %v768_v18 = vadd.f32 %v6690_v24, %v767_v16  ;;  %v1199_v16 = vmax.f32 %v1032_v50, 0.0 }
 0x1ea   :  { %2745 = vst.msk [vmem:[#allocation4 + $0x208] sm:$0xff] %vm2093_vm4, %v6256_v22  ;;  %5062 = vmatmul.msk.f32.gmra.mxu0 %vm185_vm0, %v93_v12  ;;  %v1277_v12 = vsel %vm185_vm0, %v1110_v25, -inf }
 0x1eb   :  { %v2833_v3 = vpop.permute.xlu1 %2832  ;;  %2596 = vrot.lane.b32.xlu2 %v6651_v55, %s5214_s23  ;;  %1492 = vst.msk [vmem:[#allocation2 + $0x208] sm:$0xff] %vm185_vm0, %v1408_v40  ;;  %v6877_v56 = vpop.f32.mrf.mxu3  ;;  %v1111_v40 = vmax.f32 %v768_v18, 0.0 }
 0x1ec   :  { %2872 = vst.msk [vmem:[#allocation4 + $0x1d8] sm:$0xff] %vm1899_vm2, %v2833_v3 }
 0x1ed   :  { %2521 = vrot.lane.b32.xlu0 %v6529_v26, %s5213_s18  ;;  %v3030_v22 = vpop.permute.xlu2 %3029  ;;  %3091 = vst.msk [vmem:[#allocation4 + $0x90] sm:$0xff] %vm185_vm0, %v3075_v38  ;;  %v1280_v31 = vsel %vm185_vm0, %v1111_v40, -inf }
 0x1ee   :  { %3067 = vst.msk [vmem:[#allocation4 + $0x248] sm:$0xff] %vm2093_vm4, %v3030_v22 }
 0x1ef   :  { %v2929_v15 = vpop.permute.xlu0 %2928  ;;  %v770_v41 = vpop.f32.mrf.mxu0 }
 0x1f0   :  { %2968 = vst.msk [vmem:[#allocation4 + $0x1d8] sm:$0xff] %vm1996_vm3, %v2929_v15  ;;  %v771_v48 = vadd.f32 %v6690_v24, %v770_v41  ;;  %v6909_v41 = vld [vmem:[#allocation3 + $0x41] sm:$0xff] }
 0x1f1   :  { %3065 = vst.msk [vmem:[#allocation4 + $0x1d8] sm:$0xff] %vm2093_vm4, %v6152_v11  ;;  %2840 = vrot.lane.b32.xlu1 %v6505_v33, %s5213_s18  ;;  %v3395_v11 = vld [vmem:[#allocation3 + $0x50] sm:$0xff] }
 0x1f2   :  { %v1112_v37 = vmax.f32 %v771_v48, 0.0  ;;  %5063 = vmatmul.msk.f32.gmra.mxu0 %vm185_vm0, %v94_v45  ;;  %3411 = vst.msk [vmem:[#allocation4 + $0x60] sm:$0xff] %vm185_vm0, %v3395_v11  ;;  %v1409_v45 = vsel %vm185_vm0, %v1199_v16, -inf  ;;  %v1035_v11 = vadd.f32 %v6690_v24, %v6850_v52 }
 0x1f3   :  { %v1953_v32 = vpop.permute.xlu1 %1952  ;;  %3011 = vrot.lane.b32.xlu2 %v6651_v55, %s5212_s17  ;;  %v1040_v63 = vpop.f32.mrf.mxu3 }
 0x1f4   :  { %v1275_v4 = vsel %vm185_vm0, %v1112_v37, -inf  ;;  %v1041_v46 = vadd.f32 %v6690_v24, %v1040_v63  ;;  %v1621_v63 = vld [vmem:[#allocation2 + $0xa1] ss:$2 sm:$0xf] }
 0x1f5   :  { %2936 = vrot.lane.b32.xlu0 %v6529_v26, %s5214_s23  ;;  %v1276_v33 = vmax.f32 %v1274_v1, %v1275_v4  ;;  %v6875_v19 = vpop.permute.xlu2 %2071  ;;  %v95_v26 = vld [vmem:[%s8401_s0 + $0x1f0] sm:$0xff] }
 0x1f6   :  { %v1202_v48 = vmax.f32 %v1041_v46, 0.0 }
 0x1f7   :  { %v1856_v14 = vpop.permute.xlu0 %1855  ;;  %1448 = vst.msk [vmem:[#allocation2 + $0xa8] sm:$0xff] %vm185_vm0, %v1276_v33  ;;  %v773_v47 = vpop.f32.mrf.mxu0 }
 0x1f8   :  { %1902 = vst.msk [vmem:[#allocation4 + $0x70] sm:$0xff] %vm1899_vm2, %v1856_v14  ;;  %v774_v28 = vadd.f32 %v6690_v24, %v773_v47  ;;  %v1410_v38 = vsel %vm185_vm0, %v1202_v48, -inf  ;;  %v1200_v47 = vmax.f32 %v1035_v11, 0.0 }
 0x1f9   :  { %1956 = vrot.lane.b32.xlu1 %v6655_v58, %s5214_s23  ;;  %1999 = vst.msk [vmem:[#allocation4 + $0x70] sm:$0xff] %vm1996_vm3, %v1953_v32  ;;  %v1411_v4 = vmax.f32 %v1409_v45, %v1410_v38  ;;  %v98_v45 = vld [vmem:[%s8401_s0 + $0x208] sm:$0xff] }
 0x1fa   :  { %2096 = vst.msk [vmem:[#allocation4 + $0x70] sm:$0xff] %vm2093_vm4, %v6756_v8  ;;  %v1113_v27 = vmax.f32 %v774_v28, 0.0  ;;  %5064 = vmatmul.msk.f32.gmra.mxu0 %vm185_vm0, %v95_v26  ;;  %v97_v28 = vld [vmem:[%s8401_s0 + $0x200] sm:$0xff] }
 0x1fb   :  { %v2274_v59 = vpop.permute.xlu1 %2273  ;;  %2618 = vrot.lane.b32.xlu2 %v6446_v6, %s5214_s23  ;;  %1493 = vst.msk [vmem:[#allocation2 + $0x210] sm:$0xff] %vm185_vm0, %v1411_v4  ;;  %v1043_v50 = vpop.f32.mrf.mxu3 }
 0x1fc   :  { %2320 = vst.msk [vmem:[#allocation4 + $0x40] sm:$0xff] %vm1996_vm3, %v2274_v59  ;;  %v1278_v60 = vsel %vm185_vm0, %v1113_v27, -inf  ;;  %v1523_v59 = vld [vmem:[#allocation2 + $0x90] ss:$2 sm:$0xff] }
 0x1fd   :  { %2416 = vst.msk [vmem:[#allocation4 + $0x40] sm:$0xff] %vm2093_vm4, %v6796_v51  ;;  %2181 = vrot.lane.b32.xlu0 %v6651_v55, %s5213_s18  ;;  %v1279_v3 = vmax.f32 %v1277_v12, %v1278_v60  ;;  %v6905_v8 = vpop.permute.xlu2 %2391  ;;  %v96_v51 = vld [vmem:[%s8401_s0 + $0x1f8] sm:$0xff]  ;;  %v1412_v12 = vsel %vm185_vm0, %v1200_v47, -inf }
 0x1fe   :  { %v1619_v60 = vld [vmem:[#allocation2 + $0x91] ss:$2 sm:$0xff] }
 0x1ff   :  { %v2498_v22 = vpop.permute.xlu0 %2497  ;;  %1449 = vst.msk [vmem:[#allocation2 + $0xb0] sm:$0xff] %vm185_vm0, %v1279_v3  ;;  %v776_v15 = vpop.f32.mrf.mxu0  ;;  %v1702_v16 = vmax.f32 %v1523_v59, %v1619_v60  ;;  %v1525_v3 = vld [vmem:[#allocation2 + $0xa0] ss:$2 sm:$0xf] }
 0x200   :  { %2544 = vst.msk [vmem:[#allocation4 + $0x48] sm:$0xff] %vm1899_vm2, %v2498_v22  ;;  %v777_v55 = vadd.f32 %v6690_v24, %v776_v15 }
 0x201   :  { %2692 = vrot.lane.b32.xlu1 %v6909_v41, %s5212_s17  ;;  %v3760_v1 = vld [vmem:[#allocation4 + $0x70] sm:$0xff]  ;;  %1751 = vst.msk [vmem:[#allocation3 + $0x60] sm:$0xff] %vm185_vm0, %v1702_v16 }
 0x202   :  { %4032 = vmatmul.f32.gmra.mxu1 %v3760_v1  ;;  %v1114_v37 = vmax.f32 %v777_v55, 0.0  ;;  %5065 = vmatmul.msk.f32.gmra.mxu0 %vm185_vm0, %v96_v51  ;;  %v1703_v51 = vmax.f32 %v1525_v3, %v1621_v63  ;;  %v1038_v1 = vadd.f32 %v6690_v24, %v6877_v56 }
 0x203   :  { %v2817_v32 = vpop.permute.xlu1 %2816  ;;  %3033 = vrot.lane.b32.xlu2 %v6446_v6, %s5212_s17  ;;  %v1046_v48 = vpop.f32.mrf.mxu3 }
 0x204   :  { %2864 = vst.msk [vmem:[#allocation4 + $0x18] sm:$0xff] %vm1899_vm2, %v2817_v32  ;;  %v3754_v61 = vld [vmem:[#allocation4 + $0x40] sm:$0xff]  ;;  %v1281_v33 = vsel %vm185_vm0, %v1114_v37, -inf  ;;  %v1201_v37 = vmax.f32 %v1038_v1, 0.0  ;;  %v1047_v11 = vadd.f32 %v6690_v24, %v1046_v48 }
 0x205   :  { %2203 = vrot.lane.b32.xlu0 %v6446_v6, %s5213_s18  ;;  %4094 = vmatmul.f32.gmra.mxu2 %v3754_v61  ;;  %v1282_v25 = vmax.f32 %v1280_v31, %v1281_v33  ;;  %v2595_v14 = vpop.permute.xlu2 %2594  ;;  %v1044_v6 = vadd.f32 %v6690_v24, %v1043_v50  ;;  %1752 = vst.msk [vmem:[#allocation3 + $0x68] sm:$0xf] %vm1739_vm1, %v1703_v51 }
 0x206   :  { %2641 = vst.msk [vmem:[#allocation4 + $0x48] sm:$0xff] %vm1996_vm3, %v2595_v14  ;;  %v1415_v4 = vsel %vm185_vm0, %v1201_v37, -inf  ;;  %v1204_v33 = vmax.f32 %v1047_v11, 0.0  ;;  %v101_v37 = vld [vmem:[%s8401_s0 + $0x220] sm:$0xff] }
 0x207   :  { %v2913_v52 = vpop.permute.xlu0 %2912  ;;  %1450 = vst.msk [vmem:[#allocation2 + $0xb8] sm:$0xff] %vm185_vm0, %v1282_v25  ;;  %v779_v26 = vpop.f32.mrf.mxu0  ;;  %v1203_v27 = vmax.f32 %v1044_v6, 0.0 }
 0x208   :  { %2960 = vst.msk [vmem:[#allocation4 + $0x18] sm:$0xff] %vm1996_vm3, %v2913_v52  ;;  %v780_v14 = vadd.f32 %v6690_v24, %v779_v26  ;;  %v1834_v52 = vld [vmem:[#allocation3 + $0x131] sm:$0xff] }
 0x209   :  { %2277 = vrot.lane.b32.xlu1 %v6909_v41, %s5214_s23  ;;  %v1413_v40 = vsel %vm185_vm0, %v1203_v27, -inf }
 0x20a   :  { %5066 = vmatmul.msk.f32.gmra.mxu0 %vm185_vm0, %v97_v28  ;;  %v1414_v46 = vmax.f32 %v1412_v12, %v1413_v40  ;;  %v1416_v28 = vsel %vm185_vm0, %v1204_v33, -inf  ;;  %v1115_v12 = vmax.f32 %v780_v14, 0.0  ;;  %v2477_v40 = vld [vmem:[#allocation3 + $0x134] sm:$0xff] }
 0x20b   :  { %v1975_v18 = vpop.permute.xlu1 %1974  ;;  %2053 = vrot.lane.b32.xlu2 %v6663_v9, %s5212_s17  ;;  %v1417_v50 = vmax.f32 %v1415_v4, %v1416_v28  ;;  %v1585_v28 = vld [vmem:[#allocation2 + $0x208] ss:$2 sm:$0xf] }
 0x20c   :  { %1494 = vst.msk [vmem:[#allocation2 + $0x218] sm:$0xff] %vm185_vm0, %v1414_v46  ;;  %v6984_v25 = vld [vmem:[#allocation3 + $0x63] sm:$0xff]  ;;  %v1283_v60 = vsel %vm185_vm0, %v1115_v12, -inf }
 0x20d   :  { %1859 = vrot.lane.b32.xlu0 %v6909_v41, %s5213_s18  ;;  %v3010_v22 = vpop.permute.xlu2 %3009  ;;  %2452 = vst.msk [vmem:[#allocation4 + $0x128] sm:$0xff] %vm185_vm0, %v6984_v25  ;;  %v6993_v6 = vld [vmem:[#allocation3 + $0x62] sm:$0xff] }
 0x20e   :  { %3057 = vst.msk [vmem:[#allocation4 + $0x18] sm:$0xff] %vm2093_vm4, %v3010_v22  ;;  %v7002_v26 = vld [vmem:[#allocation3 + $0x64] sm:$0xff] }
 0x20f   :  { %v2200_v15 = vpop.permute.xlu0 %2199  ;;  %v782_v55 = vpop.f32.mrf.mxu0  ;;  %1495 = vst.msk [vmem:[#allocation2 + $0x220] sm:$0xff] %vm185_vm0, %v1417_v50  ;;  %v3396_v22 = vld [vmem:[#allocation3 + $0x60] sm:$0xff] }
 0x210   :  { %2235 = vst.msk [vmem:[#allocation4 + $0x2a8] sm:$0xff] %vm1899_vm2, %v2200_v15  ;;  %v783_v16 = vadd.f32 %v6690_v24, %v782_v55  ;;  %v3076_v46 = vld [vmem:[#allocation3 + $0x61] sm:$0xff] }
 0x211   :  { %2820 = vrot.lane.b32.xlu1 %v6663_v9, %s5213_s18  ;;  %v6965_v9 = vld [vmem:[#allocation3 + $0x60] sm:$0xff]  ;;  %v6976_v61 = vpop.f32.mrf.mxu3  ;;  %2772 = vst.msk [vmem:[#allocation4 + $0xf8] sm:$0xff] %vm185_vm0, %v6993_v6 }
 0x212   :  { %5067 = vmatmul.msk.f32.gmra.mxu0 %vm185_vm0, %v98_v45  ;;  %1809 = vst.msk [vmem:[#allocation4 + $0x150] sm:$0xff] %vm185_vm0, %v6965_v9  ;;  %v1116_v45 = vmax.f32 %v783_v16, 0.0  ;;  %v3716_v1 = vld [vmem:[#allocation3 + $0x64] sm:$0xff] }
 0x213   :  { %v2711_v31 = vpop.permute.xlu1 %2710  ;;  %2373 = vrot.lane.b32.xlu2 %v6655_v58, %s5212_s17  ;;  %v99_v58 = vld [vmem:[%s8401_s0 + $0x210] sm:$0xff]  ;;  %2132 = vst.msk [vmem:[#allocation4 + $0x158] sm:$0xff] %vm185_vm0, %v7002_v26 }
 0x214   :  { %2747 = vst.msk [vmem:[#allocation4 + $0x278] sm:$0xff] %vm2093_vm4, %v2711_v31  ;;  %v1286_v4 = vsel %vm185_vm0, %v1116_v45, -inf }
 0x215   :  { %2501 = vrot.lane.b32.xlu0 %v6671_v54, %s5213_s18  ;;  %v6967_v32 = vpop.permute.xlu2 %2051  ;;  %3412 = vst.msk [vmem:[#allocation4 + $0x98] sm:$0xff] %vm185_vm0, %v3396_v22 }
 0x216   :  { %3092 = vst.msk [vmem:[#allocation4 + $0xc8] sm:$0xff] %vm185_vm0, %v3076_v46 }
 0x217   :  { %v1878_v56 = vpop.permute.xlu0 %1877  ;;  %v785_v38 = vpop.f32.mrf.mxu0  ;;  %3732 = vst.msk [vmem:[#allocation4 + $0xa0] sm:$0xff] %vm185_vm0, %v3716_v1 }
 0x218   :  { %1913 = vst.msk [vmem:[#allocation4 + $0x2d8] sm:$0xff] %vm1899_vm2, %v1878_v56 }
 0x219   :  { %2010 = vst.msk [vmem:[#allocation4 + $0x2d8] sm:$0xff] %vm1996_vm3, %v1975_v18  ;;  %2075 = vrot.lane.b32.xlu1 %v6538_v44, %s5212_s17  ;;  %v7010_v59 = vpop.f32.mrf.mxu3 }
 0x21a   :  { %2107 = vst.msk [vmem:[#allocation4 + $0x2d8] sm:$0xff] %vm2093_vm4, %v6875_v19  ;;  %5068 = vmatmul.msk.f32.gmra.mxu0 %vm185_vm0, %v99_v58  ;;  %v786_v58 = vadd.f32 %v6690_v24, %v785_v38 }
 0x21b   :  { %v2296_v47 = vpop.permute.xlu1 %2295  ;;  %1881 = vrot.lane.b32.xlu2 %v1834_v52, %s5213_s18 }
 0x21c   :  { %2331 = vst.msk [vmem:[#allocation4 + $0x2a8] sm:$0xff] %vm1996_vm3, %v2296_v47  ;;  %v1583_v47 = vld [vmem:[#allocation2 + $0x1f8] ss:$2 sm:$0xff]  ;;  %v1117_v12 = vmax.f32 %v786_v58, 0.0 }
 0x21d   :  { %2427 = vst.msk [vmem:[#allocation4 + $0x2a8] sm:$0xff] %vm2093_vm4, %v6905_v8  ;;  %2916 = vrot.lane.b32.xlu0 %v6671_v54, %s5214_s23  ;;  %v6999_v19 = vpop.permute.xlu2 %2371  ;;  %v100_v8 = vld [vmem:[%s8401_s0 + $0x218] sm:$0xff] }
 0x21f   :  { %v2520_v18 = vpop.permute.xlu0 %2519  ;;  %v788_v27 = vpop.f32.mrf.mxu0 }
 0x220   :  { %2555 = vst.msk [vmem:[#allocation4 + $0x2b0] sm:$0xff] %vm1899_vm2, %v2520_v18  ;;  %v789_v54 = vadd.f32 %v6690_v24, %v788_v27  ;;  %v1681_v27 = vld [vmem:[#allocation2 + $0x209] ss:$2 sm:$0xf] }
 0x221   :  { %2714 = vrot.lane.b32.xlu1 %v1834_v52, %s5212_s17  ;;  %v7031_v56 = vpop.f32.mrf.mxu3  ;;  %v1733_v16 = vmax.f32 %v1585_v28, %v1681_v27  ;;  %v1529_v28 = vld [vmem:[#allocation2 + $0xb8] ss:$2 sm:$0xf] }
 0x222   :  { %v1118_v3 = vmax.f32 %v789_v54, 0.0  ;;  %5069 = vmatmul.msk.f32.gmra.mxu0 %vm185_vm0, %v100_v8 }
 0x223   :  { %v2839_v63 = vpop.permute.xlu1 %2838  ;;  %1978 = vrot.lane.b32.xlu2 %v6548_v49, %s5214_s23  ;;  %1782 = vst.msk [vmem:[#allocation3 + $0x158] sm:$0xf] %vm1739_vm1, %v1733_v16 }
 0x224   :  { %2875 = vst.msk [vmem:[#allocation4 + $0x280] sm:$0xff] %vm1899_vm2, %v2839_v63  ;;  %v1284_v15 = vsel %vm185_vm0, %v1118_v3, -inf  ;;  %v102_v3 = vld [vmem:[%s8401_s0 + $0x228] sm:$0xff]  ;;  %s4991_s0 = sshll.u32 %s5215_s26, 4  ;;  %s4992_s0 = int_to_ptr.vmem [resolvable:$true] %s4991_s0 }
 0x225   :  { %2523 = vrot.lane.b32.xlu0 %v2477_v40, %s5213_s18  ;;  %v1285_v51 = vmax.f32 %v1283_v60, %v1284_v15  ;;  %v2617_v55 = vpop.permute.xlu2 %2616  ;;  %v1050_v60 = vadd.f32 %v6690_v24, %v6976_v61  ;;  %v1289_v61 = vsel %vm185_vm0, %v1117_v12, -inf }
 0x226   :  { %2652 = vst.msk [vmem:[#allocation4 + $0x2b0] sm:$0xff] %vm1996_vm3, %v2617_v55  ;;  %v1053_v55 = vadd.f32 %v6690_v24, %v7010_v59 }
 0x227   :  { %v2935_v48 = vpop.permute.xlu0 %2934  ;;  %1451 = vst.msk [vmem:[#allocation2 + $0xc0] sm:$0xff] %vm185_vm0, %v1285_v51  ;;  %v791_v31 = vpop.f32.mrf.mxu0  ;;  %v1205_v15 = vmax.f32 %v1050_v60, 0.0 }
 0x228   :  { %2971 = vst.msk [vmem:[#allocation4 + $0x280] sm:$0xff] %vm1996_vm3, %v2935_v48  ;;  %v792_v11 = vadd.f32 %v6690_v24, %v791_v31  ;;  %v1206_v59 = vmax.f32 %v1053_v55, 0.0 }
 0x229   :  { %2299 = vrot.lane.b32.xlu1 %v1834_v52, %s5214_s23  ;;  %v1679_v52 = vld [vmem:[#allocation2 + $0x1f9] ss:$2 sm:$0xff]  ;;  %v1418_v31 = vsel %vm185_vm0, %v1205_v15, -inf }
 0x22a   :  { %v1119_v33 = vmax.f32 %v792_v11, 0.0  ;;  %5070 = vmatmul.msk.f32.gmra.mxu0 %vm185_vm0, %v101_v37  ;;  %v1732_v8 = vmax.f32 %v1583_v47, %v1679_v52  ;;  %v1058_v63 = vpop.f32.mrf.mxu3  ;;  %v1527_v47 = vld [vmem:[#allocation2 + $0xa8] ss:$2 sm:$0xff]  ;;  %v1623_v52 = vld [vmem:[#allocation2 + $0xa9] ss:$2 sm:$0xff]  ;;  %v1421_v12 = vsel %vm185_vm0, %v1206_v59, -inf }
 0x22b   :  { %v1955_v14 = vpop.permute.xlu1 %1954  ;;  %2395 = vrot.lane.b32.xlu2 %v6548_v49, %s5212_s17  ;;  %v1059_v22 = vadd.f32 %v6690_v24, %v1058_v63  ;;  %v1704_v16 = vmax.f32 %v1527_v47, %v1623_v52 }
 0x22c   :  { %v1287_v50 = vsel %vm185_vm0, %v1119_v33, -inf  ;;  %1781 = vst.msk [vmem:[#allocation3 + $0x150] sm:$0xff] %vm185_vm0, %v1732_v8  ;;  %v1625_v8 = vld [vmem:[#allocation2 + $0xb9] ss:$2 sm:$0xf] }
 0x22d   :  { %2938 = vrot.lane.b32.xlu0 %v2477_v40, %s5214_s23  ;;  %v1288_v38 = vmax.f32 %v1286_v4, %v1287_v50  ;;  %v3032_v18 = vpop.permute.xlu2 %3031  ;;  %v1208_v45 = vmax.f32 %v1059_v22, 0.0  ;;  %1753 = vst.msk [vmem:[#allocation3 + $0x70] sm:$0xff] %vm185_vm0, %v1704_v16 }
 0x22e   :  { %3068 = vst.msk [vmem:[#allocation4 + $0x280] sm:$0xff] %vm2093_vm4, %v3032_v18 }
 0x22f   :  { %v2180_v54 = vpop.permute.xlu0 %2179  ;;  %1452 = vst.msk [vmem:[#allocation2 + $0xc8] sm:$0xff] %vm185_vm0, %v1288_v38  ;;  %v794_v49 = vpop.f32.mrf.mxu0  ;;  %v1419_v11 = vsel %vm185_vm0, %v1208_v45, -inf }
 0x230   :  { %2225 = vst.msk [vmem:[#allocation4 + $0x78] sm:$0xff] %vm1899_vm2, %v2180_v54  ;;  %v795_v40 = vadd.f32 %v6690_v24, %v794_v49  ;;  %v1420_v50 = vmax.f32 %v1418_v31, %v1419_v11  ;;  %v7086_v54 = vld [vmem:[#allocation3 + $0x51] sm:$0xff]  ;;  %v1705_v49 = vmax.f32 %v1529_v28, %v1625_v8 }
 0x231   :  { %2842 = vrot.lane.b32.xlu1 %v6538_v44, %s5213_s18 }
 0x232   :  { %v1120_v46 = vmax.f32 %v795_v40, 0.0  ;;  %5071 = vmatmul.msk.f32.gmra.mxu0 %vm185_vm0, %v102_v3  ;;  %v1061_v4 = vpop.f32.mrf.mxu3  ;;  %1496 = vst.msk [vmem:[#allocation2 + $0x228] sm:$0xff] %vm185_vm0, %v1420_v50 }
 0x233   :  { %v2691_v51 = vpop.permute.xlu1 %2690  ;;  %2598 = vrot.lane.b32.xlu2 %v6815_v21, %s5214_s23  ;;  %v1062_v33 = vadd.f32 %v6690_v24, %v1061_v4  ;;  %1754 = vst.msk [vmem:[#allocation3 + $0x78] sm:$0xf] %vm1739_vm1, %v1705_v49  ;;  %v7128_v4 = vld [vmem:[#allocation3 + $0x154] sm:$0xff] }
 0x234   :  { %2737 = vst.msk [vmem:[#allocation4 + $0x48] sm:$0xff] %vm2093_vm4, %v2691_v51  ;;  %v1290_v44 = vsel %vm185_vm0, %v1120_v46, -inf  ;;  %v7110_v51 = vld [vmem:[#allocation3 + $0x151] sm:$0xff] }
 0x235   :  { %2183 = vrot.lane.b32.xlu0 %v6815_v21, %s5213_s18  ;;  %v1291_v48 = vmax.f32 %v1289_v61, %v1290_v44  ;;  %v7068_v1 = vpop.permute.xlu2 %2073  ;;  %v1209_v27 = vmax.f32 %v1062_v33, 0.0  ;;  %3103 = vst.msk [vmem:[#allocation4 + $0x330] sm:$0xff] %vm185_vm0, %v7110_v51  ;;  %v3397_v49 = vld [vmem:[#allocation3 + $0x70] sm:$0xff] }
 0x236   :  { %3743 = vst.msk [vmem:[#allocation4 + $0x308] sm:$0xff] %vm185_vm0, %v7128_v4 }
 0x237   :  { %v1858_v37 = vpop.permute.xlu0 %1857  ;;  %1453 = vst.msk [vmem:[#allocation2 + $0xd0] sm:$0xff] %vm185_vm0, %v1291_v48  ;;  %v7073_v58 = vpop.f32.mrf.mxu0 }
 0x238   :  { %1903 = vst.msk [vmem:[#allocation4 + $0xa8] sm:$0xff] %vm1899_vm2, %v1858_v37  ;;  %v7118_v37 = vld [vmem:[#allocation3 + $0x70] sm:$0xff]  ;;  %v798_v33 = vadd.f32 %v6690_v24, %v7073_v58 }
 0x239   :  { %1958 = vrot.lane.b32.xlu1 %v6835_v34, %s5214_s23  ;;  %2000 = vst.msk [vmem:[#allocation4 + $0xa8] sm:$0xff] %vm1996_vm3, %v1955_v14 }
 0x23a   :  { %2097 = vst.msk [vmem:[#allocation4 + $0xa8] sm:$0xff] %vm2093_vm4, %v6967_v32  ;;  %v1422_v32 = vsel %vm185_vm0, %v1209_v27, -inf  ;;  %v1064_v15 = vpop.f32.mrf.mxu3  ;;  %v7122_v59 = vld [vmem:[#allocation3 + $0x72] sm:$0xff]  ;;  %v1121_v52 = vmax.f32 %v798_v33, 0.0  ;;  %v7182_v33 = vld [vmem:[#allocation3 + $0x61] sm:$0xff] }
 0x23b   :  { %v2276_v38 = vpop.permute.xlu1 %2275  ;;  %v3755_v18 = vld [vmem:[#allocation4 + $0x48] sm:$0xff]  ;;  %3013 = vrot.lane.b32.xlu2 %v6815_v21, %s5212_s17  ;;  %v1423_v60 = vmax.f32 %v1421_v12, %v1422_v32  ;;  %v1065_v45 = vadd.f32 %v6690_v24, %v1064_v15  ;;  %v7124_v11 = vld [vmem:[#allocation3 + $0x73] sm:$0xff]  ;;  %1810 = vst.msk [vmem:[#allocation4 + $0x188] sm:$0xff] %vm185_vm0, %v7118_v37 }
 0x23c   :  { %2321 = vst.msk [vmem:[#allocation4 + $0x78] sm:$0xff] %vm1996_vm3, %v2276_v38  ;;  %4159 = vmatmul.f32.gmra.mxu3 %v3755_v18  ;;  %v3407_v27 = vld [vmem:[#allocation3 + $0x150] sm:$0xff]  ;;  %v1292_v8 = vsel %vm185_vm0, %v1121_v52, -inf }
 0x23d   :  { %2417 = vst.msk [vmem:[#allocation4 + $0x78] sm:$0xff] %vm2093_vm4, %v6999_v19  ;;  %1861 = vrot.lane.b32.xlu0 %v7086_v54, %s5213_s18  ;;  %v7093_v14 = vpop.permute.xlu2 %2393  ;;  %v1056_v19 = vadd.f32 %v6690_v24, %v7031_v56  ;;  %v2767_v56 = vld [vmem:[#allocation3 + $0x152] sm:$0xff]  ;;  %v1210_v31 = vmax.f32 %v1065_v45, 0.0 }
 0x23e   :  { %1497 = vst.msk [vmem:[#allocation2 + $0x230] sm:$0xff] %vm185_vm0, %v1423_v60 }
 0x23f   :  { %v2500_v21 = vpop.permute.xlu0 %2499  ;;  %v800_v3 = vpop.f32.mrf.mxu0  ;;  %v1207_v61 = vmax.f32 %v1056_v19, 0.0  ;;  %2783 = vst.msk [vmem:[#allocation4 + $0x360] sm:$0xff] %vm185_vm0, %v2767_v56  ;;  %v1425_v28 = vsel %vm185_vm0, %v1210_v31, -inf  ;;  %v3077_v19 = vld [vmem:[#allocation3 + $0x71] sm:$0xff] }
 0x240   :  { %2545 = vst.msk [vmem:[#allocation4 + $0x80] sm:$0xff] %vm1899_vm2, %v2500_v21  ;;  %v801_v32 = vadd.f32 %v6690_v24, %v800_v3  ;;  %v7155_v21 = vld [vmem:[#allocation3 + $0x74] sm:$0xff] }
 0x241   :  { %2694 = vrot.lane.b32.xlu1 %v7086_v54, %s5212_s17  ;;  %v3767_v63 = vld [vmem:[#allocation4 + $0xa8] sm:$0xff]  ;;  %v1424_v48 = vsel %vm185_vm0, %v1207_v61, -inf  ;;  %2453 = vst.msk [vmem:[#allocation4 + $0x160] sm:$0xff] %vm185_vm0, %v7124_v11  ;;  %v7169_v56 = vld [vmem:[%s8403_s2] ss:$0 sm:$0xff] }
 0x242   :  { %4035 = vmatmul.f32.gmra.mxu1 %v3767_v63  ;;  %v1426_v50 = vmax.f32 %v1424_v48, %v1425_v28  ;;  %2773 = vst.msk [vmem:[#allocation4 + $0x130] sm:$0xff] %vm185_vm0, %v7122_v59  ;;  %v3717_v31 = vld [vmem:[#allocation3 + $0x74] sm:$0xff] }
 0x243   :  { %v2819_v40 = vpop.permute.xlu1 %2818  ;;  %2055 = vrot.lane.b32.xlu2 %v6827_v23, %s5212_s17  ;;  %3423 = vst.msk [vmem:[#allocation4 + $0x300] sm:$0xff] %vm185_vm0, %v3407_v27 }
 0x244   :  { %2865 = vst.msk [vmem:[#allocation4 + $0x50] sm:$0xff] %vm1899_vm2, %v2819_v40  ;;  %v3761_v22 = vld [vmem:[#allocation4 + $0x78] sm:$0xff]  ;;  %v1122_v40 = vmax.f32 %v801_v32, 0.0 }
 0x245   :  { %2503 = vrot.lane.b32.xlu0 %v6853_v35, %s5213_s18  ;;  %4097 = vmatmul.f32.gmra.mxu2 %v3761_v22  ;;  %v2597_v46 = vpop.permute.xlu2 %2596  ;;  %1498 = vst.msk [vmem:[#allocation2 + $0x238] sm:$0xff] %vm185_vm0, %v1426_v50 }
 0x246   :  { %2642 = vst.msk [vmem:[#allocation4 + $0x80] sm:$0xff] %vm1996_vm3, %v2597_v46  ;;  %v1295_v15 = vsel %vm185_vm0, %v1122_v40, -inf }
 0x247   :  { %v2915_v55 = vpop.permute.xlu0 %2914  ;;  %v803_v44 = vpop.f32.mrf.mxu0  ;;  %2133 = vst.msk [vmem:[#allocation4 + $0x190] sm:$0xff] %vm185_vm0, %v7155_v21 }
 0x248   :  { %2961 = vst.msk [vmem:[#allocation4 + $0x50] sm:$0xff] %vm1996_vm3, %v2915_v55  ;;  %v804_v55 = vadd.f32 %v7169_v56, %v803_v44 }
 0x249   :  { %2279 = vrot.lane.b32.xlu1 %v7086_v54, %s5214_s23  ;;  %3413 = vst.msk [vmem:[#allocation4 + $0xd0] sm:$0xff] %vm185_vm0, %v3397_v49 }
 0x24a   :  { %3093 = vst.msk [vmem:[#allocation4 + $0x100] sm:$0xff] %vm185_vm0, %v3077_v19 }
 0x24b   :  { %v1977_v47 = vpop.permute.xlu1 %1976  ;;  %2375 = vrot.lane.b32.xlu2 %v6835_v34, %s5212_s17  ;;  %3733 = vst.msk [vmem:[#allocation4 + $0xd8] sm:$0xff] %vm185_vm0, %v3717_v31 }
 0x24d   :  { %2918 = vrot.lane.b32.xlu0 %v6853_v35, %s5214_s23  ;;  %v3012_v58 = vpop.permute.xlu2 %3011 }
 0x24e   :  { %3058 = vst.msk [vmem:[#allocation4 + $0x50] sm:$0xff] %vm2093_vm4, %v3012_v58 }
 0x24f   :  { %v2202_v12 = vpop.permute.xlu0 %2201  ;;  %v806_v38 = vpop.f32.mrf.mxu0 }
 0x250   :  { %2236 = vst.msk [vmem:[#allocation4 + $0x2e0] sm:$0xff] %vm1899_vm2, %v2202_v12  ;;  %v807_v18 = vadd.f32 %v6690_v24, %v806_v38 }
 0x251   :  { %2822 = vrot.lane.b32.xlu1 %v6827_v23, %s5213_s18 }
 0x252   :  { %v1124_v60 = vmax.f32 %v807_v18, 0.0 }
 0x253   :  { %v2713_v16 = vpop.permute.xlu1 %2712  ;;  %2600 = vrot.lane.b32.xlu2 %v6965_v9, %s5214_s23 }
 0x254   :  { %2748 = vst.msk [vmem:[#allocation4 + $0x2b0] sm:$0xff] %vm2093_vm4, %v2713_v16  ;;  %v1293_v63 = vsel %vm185_vm0, %v1124_v60, -inf  ;;  %v1587_v60 = vld [vmem:[#allocation2 + $0x210] ss:$2 sm:$0xff]  ;;  %v1683_v16 = vld [vmem:[#allocation2 + $0x211] ss:$2 sm:$0xff] }
 0x255   :  { %2185 = vrot.lane.b32.xlu0 %v6965_v9, %s5213_s18  ;;  %v1294_v24 = vmax.f32 %v1292_v8, %v1293_v63  ;;  %v2619_v3 = vpop.permute.xlu2 %2618  ;;  %v1734_v49 = vmax.f32 %v1587_v60, %v1683_v16  ;;  %v1589_v63 = vld [vmem:[#allocation2 + $0x220] ss:$2 sm:$0xf] }
 0x256   :  { %v2478_v60 = vld [vmem:[#allocation3 + $0x144] sm:$0xff] }
 0x257   :  { %v1880_v22 = vpop.permute.xlu0 %1879  ;;  %1454 = vst.msk [vmem:[#allocation2 + $0xd8] sm:$0xff] %vm185_vm0, %v1294_v24  ;;  %v809_v61 = vpop.f32.mrf.mxu0  ;;  %v1685_v24 = vld [vmem:[#allocation2 + $0x221] ss:$2 sm:$0xf] }
 0x258   :  { %1914 = vst.msk [vmem:[#allocation4 + $0x310] sm:$0xff] %vm1899_vm2, %v1880_v22  ;;  %v810_v46 = vadd.f32 %v7169_v56, %v809_v61 }
 0x259   :  { %1960 = vrot.lane.b32.xlu1 %v6993_v6, %s5214_s23  ;;  %2011 = vst.msk [vmem:[#allocation4 + $0x310] sm:$0xff] %vm1996_vm3, %v1977_v47  ;;  %v1123_v47 = vmax.f32 %v804_v55, 0.0 }
 0x25a   :  { %2108 = vst.msk [vmem:[#allocation4 + $0x310] sm:$0xff] %vm2093_vm4, %v7068_v1  ;;  %v1125_v45 = vmax.f32 %v810_v46, 0.0 }
 0x25b   :  { %v2298_v48 = vpop.permute.xlu1 %2297  ;;  %3015 = vrot.lane.b32.xlu2 %v6965_v9, %s5212_s17  ;;  %1783 = vst.msk [vmem:[#allocation3 + $0x160] sm:$0xff] %vm185_vm0, %v1734_v49 }
 0x25c   :  { %2332 = vst.msk [vmem:[#allocation4 + $0x2e0] sm:$0xff] %vm1996_vm3, %v2298_v48  ;;  %v1296_v28 = vsel %vm185_vm0, %v1125_v45, -inf }
 0x25d   :  { %2428 = vst.msk [vmem:[#allocation4 + $0x2e0] sm:$0xff] %vm2093_vm4, %v7093_v14  ;;  %1863 = vrot.lane.b32.xlu0 %v7182_v33, %s5213_s18  ;;  %v1297_v44 = vmax.f32 %v1295_v15, %v1296_v28  ;;  %v3034_v1 = vpop.permute.xlu2 %3033  ;;  %v1298_v14 = vsel %vm185_vm0, %v1123_v47, -inf  ;;  %v7238_v47 = vld [vmem:[#allocation3 + $0x71] sm:$0xff] }
 0x25f   :  { %v2522_v50 = vpop.permute.xlu0 %2521  ;;  %1455 = vst.msk [vmem:[#allocation2 + $0xe0] sm:$0xff] %vm185_vm0, %v1297_v44  ;;  %v812_v9 = vpop.f32.mrf.mxu0 }
 0x260   :  { %2556 = vst.msk [vmem:[#allocation4 + $0x2e8] sm:$0xff] %vm1899_vm2, %v2522_v50  ;;  %v813_v58 = vadd.f32 %v7169_v56, %v812_v9 }
 0x261   :  { %2696 = vrot.lane.b32.xlu1 %v7182_v33, %s5212_s17  ;;  %2653 = vst.msk [vmem:[#allocation4 + $0x2e8] sm:$0xff] %vm1996_vm3, %v2619_v3  ;;  %v1735_v3 = vmax.f32 %v1589_v63, %v1685_v24 }
 0x262   :  { %v1126_v52 = vmax.f32 %v813_v58, 0.0 }
 0x263   :  { %v2841_v12 = vpop.permute.xlu1 %2840  ;;  %2057 = vrot.lane.b32.xlu2 %v6984_v25, %s5212_s17  ;;  %1784 = vst.msk [vmem:[#allocation3 + $0x168] sm:$0xf] %vm1739_vm1, %v1735_v3 }
 0x264   :  { %2876 = vst.msk [vmem:[#allocation4 + $0x2b8] sm:$0xff] %vm1899_vm2, %v2841_v12  ;;  %v1299_v38 = vsel %vm185_vm0, %v1126_v52, -inf  ;;  %v3408_v52 = vld [vmem:[#allocation3 + $0x160] sm:$0xff] }
 0x265   :  { %2505 = vrot.lane.b32.xlu0 %v7002_v26, %s5213_s18  ;;  %v1300_v18 = vmax.f32 %v1298_v14, %v1299_v38  ;;  %v2054_v27 = vpop.permute.xlu2 %2053  ;;  %v2671_v14 = vld [vmem:[#allocation3 + $0x151] sm:$0xff]  ;;  %3424 = vst.msk [vmem:[#allocation4 + $0x338] sm:$0xff] %vm185_vm0, %v3408_v52 }
 0x267   :  { %v2937_v8 = vpop.permute.xlu0 %2936  ;;  %1456 = vst.msk [vmem:[#allocation2 + $0xe8] sm:$0xff] %vm185_vm0, %v1300_v18  ;;  %v815_v32 = vpop.f32.mrf.mxu0 }
 0x268   :  { %2972 = vst.msk [vmem:[#allocation4 + $0x2b8] sm:$0xff] %vm1996_vm3, %v2937_v8  ;;  %v816_v28 = vadd.f32 %v7169_v56, %v815_v32  ;;  %v2575_v8 = vld [vmem:[#allocation3 + $0x150] sm:$0xff] }
 0x269   :  { %2281 = vrot.lane.b32.xlu1 %v7182_v33, %s5214_s23  ;;  %3069 = vst.msk [vmem:[#allocation4 + $0x2b8] sm:$0xff] %vm2093_vm4, %v3034_v1 }
 0x26a   :  { %v7224_v48 = vld [vmem:[#allocation3 + $0x161] sm:$0xff]  ;;  %v1127_v50 = vmax.f32 %v816_v28, 0.0 }
 0x26b   :  { %v1957_v19 = vpop.permute.xlu1 %1956  ;;  %2377 = vrot.lane.b32.xlu2 %v6993_v6, %s5212_s17  ;;  %v7228_v31 = vld [vmem:[#allocation3 + $0x164] sm:$0xff]  ;;  %3104 = vst.msk [vmem:[#allocation4 + $0x368] sm:$0xff] %vm185_vm0, %v7224_v48 }
 0x26c   :  { %3744 = vst.msk [vmem:[#allocation4 + $0x340] sm:$0xff] %vm185_vm0, %v7228_v31  ;;  %v1301_v12 = vsel %vm185_vm0, %v1127_v50, -inf }
 0x26d   :  { %2920 = vrot.lane.b32.xlu0 %v7002_v26, %s5214_s23  ;;  %v2374_v40 = vpop.permute.xlu2 %2373 }
 0x26f   :  { %v2182_v22 = vpop.permute.xlu0 %2181  ;;  %v818_v61 = vpop.f32.mrf.mxu0 }
 0x270   :  { %2226 = vst.msk [vmem:[#allocation4 + $0xb0] sm:$0xff] %vm1899_vm2, %v2182_v22  ;;  %v819_v38 = vadd.f32 %v7169_v56, %v818_v61  ;;  %v1627_v22 = vld [vmem:[#allocation2 + $0xc1] ss:$2 sm:$0xff] }
 0x271   :  { %2824 = vrot.lane.b32.xlu1 %v6984_v25, %s5213_s18 }
 0x272   :  { %v1128_v63 = vmax.f32 %v819_v38, 0.0  ;;  %v3201_v38 = vld [vmem:[#allocation3 + $0x33] sm:$0xff] }
 0x273   :  { %v2693_v46 = vpop.permute.xlu1 %2692  ;;  %2602 = vrot.lane.b32.xlu2 %v7118_v37, %s5214_s23 }
 0x274   :  { %2738 = vst.msk [vmem:[#allocation4 + $0x80] sm:$0xff] %vm2093_vm4, %v2693_v46  ;;  %v1304_v28 = vsel %vm185_vm0, %v1128_v63, -inf }
 0x275   :  { %2187 = vrot.lane.b32.xlu0 %v7118_v37, %s5213_s18  ;;  %v1882_v15 = vpop.permute.xlu2 %1881 }
 0x276   :  { %1915 = vst.msk [vmem:[#allocation4 + $0x348] sm:$0xff] %vm1899_vm2, %v1882_v15  ;;  %v1533_v15 = vld [vmem:[#allocation2 + $0xd0] ss:$2 sm:$0xf] }
 0x277   :  { %v2204_v55 = vpop.permute.xlu0 %2203  ;;  %v821_v45 = vpop.f32.mrf.mxu0 }
 0x278   :  { %2237 = vst.msk [vmem:[#allocation4 + $0x318] sm:$0xff] %vm1899_vm2, %v2204_v55  ;;  %v1629_v55 = vld [vmem:[#allocation2 + $0xd1] ss:$2 sm:$0xf] }
 0x279   :  { %2844 = vrot.lane.b32.xlu1 %v5801_v0, %s5213_s18 }
 0x27b   :  { %v2278_v44 = vpop.permute.xlu1 %2277  ;;  %v3762_v1 = vld [vmem:[#allocation4 + $0x80] sm:$0xff]  ;;  %3017 = vrot.lane.b32.xlu2 %v7118_v37, %s5212_s17 }
 0x27c   :  { %2322 = vst.msk [vmem:[#allocation4 + $0xb0] sm:$0xff] %vm1996_vm3, %v2278_v44  ;;  %4162 = vmatmul.f32.gmra.mxu3 %v3762_v1  ;;  %v822_v44 = vadd.f32 %v7169_v56, %v821_v45 }
 0x27d   :  { %2418 = vst.msk [vmem:[#allocation4 + $0xb0] sm:$0xff] %vm2093_vm4, %v2374_v40  ;;  %1865 = vrot.lane.b32.xlu0 %v7238_v47, %s5213_s18  ;;  %v1979_v0 = vpop.permute.xlu2 %1978  ;;  %v1531_v40 = vld [vmem:[#allocation2 + $0xc0] ss:$2 sm:$0xff] }
 0x27e   :  { %2012 = vst.msk [vmem:[#allocation4 + $0x348] sm:$0xff] %vm1996_vm3, %v1979_v0  ;;  %v1706_v50 = vmax.f32 %v1531_v40, %v1627_v22  ;;  %v1129_v52 = vmax.f32 %v822_v44, 0.0  ;;  %v2895_v44 = vld [vmem:[#allocation3 + $0x154] sm:$0xff] }
 0x27f   :  { %v1860_v9 = vpop.permute.xlu0 %1859  ;;  %v824_v58 = vpop.f32.mrf.mxu0 }
 0x280   :  { %1904 = vst.msk [vmem:[#allocation4 + $0xe0] sm:$0xff] %vm1899_vm2, %v1860_v9  ;;  %v825_v37 = vadd.f32 %v7169_v56, %v824_v58 }
 0x281   :  { %2001 = vst.msk [vmem:[#allocation4 + $0xe0] sm:$0xff] %vm1996_vm3, %v1957_v19  ;;  %2718 = vrot.lane.b32.xlu1 %v2671_v14, %s5212_s17 }
 0x282   :  { %2098 = vst.msk [vmem:[#allocation4 + $0xe0] sm:$0xff] %vm2093_vm4, %v2054_v27  ;;  %v1130_v18 = vmax.f32 %v825_v37, 0.0  ;;  %v1707_v37 = vmax.f32 %v1533_v15, %v1629_v55 }
 0x283   :  { %v2821_v32 = vpop.permute.xlu1 %2820  ;;  %2622 = vrot.lane.b32.xlu2 %v2575_v8, %s5214_s23  ;;  %1755 = vst.msk [vmem:[#allocation3 + $0x80] sm:$0xff] %vm185_vm0, %v1706_v50 }
 0x284   :  { %2866 = vst.msk [vmem:[#allocation4 + $0x88] sm:$0xff] %vm1899_vm2, %v2821_v32  ;;  %v3768_v16 = vld [vmem:[#allocation4 + $0xb0] sm:$0xff]  ;;  %v1302_v49 = vsel %vm185_vm0, %v1130_v18, -inf  ;;  %v1307_v32 = vsel %vm185_vm0, %v1129_v52, -inf }
 0x285   :  { %2525 = vrot.lane.b32.xlu0 %v2478_v60, %s5213_s18  ;;  %4100 = vmatmul.f32.gmra.mxu2 %v3768_v16  ;;  %v1303_v27 = vmax.f32 %v1301_v12, %v1302_v49  ;;  %v2396_v19 = vpop.permute.xlu2 %2395  ;;  %1756 = vst.msk [vmem:[#allocation3 + $0x88] sm:$0xf] %vm1739_vm1, %v1707_v37 }
 0x287   :  { %v2502_v24 = vpop.permute.xlu0 %2501  ;;  %1457 = vst.msk [vmem:[#allocation2 + $0xf0] sm:$0xff] %vm185_vm0, %v1303_v27  ;;  %v827_v3 = vpop.f32.mrf.mxu0 }
 0x288   :  { %2546 = vst.msk [vmem:[#allocation4 + $0xb8] sm:$0xff] %vm1899_vm2, %v2502_v24  ;;  %v828_v46 = vadd.f32 %v7169_v56, %v827_v3 }
 0x289   :  { %v3774_v61 = vld [vmem:[#allocation4 + $0xe0] sm:$0xff]  ;;  %1962 = vrot.lane.b32.xlu1 %v7122_v59, %s5214_s23 }
 0x28a   :  { %4038 = vmatmul.f32.gmra.mxu1 %v3774_v61  ;;  %v1131_v1 = vmax.f32 %v828_v46, 0.0  ;;  %v7281_v27 = vld [vmem:[#allocation3 + $0x80] sm:$0xff]  ;;  %v846_v61 = vadd.f32 %v7169_v56, %v5506_v62 }
 0x28b   :  { %v2076_v0 = vpop.permute.xlu1 %2075  ;;  %2059 = vrot.lane.b32.xlu2 %v7124_v11, %s5212_s17  ;;  %3414 = vst.msk [vmem:[#allocation4 + $0x108] sm:$0xff] %vm185_vm0, %v7281_v27 }
 0x28c   :  { %2109 = vst.msk [vmem:[#allocation4 + $0x348] sm:$0xff] %vm2093_vm4, %v2076_v0  ;;  %v1305_v9 = vsel %vm185_vm0, %v1131_v1, -inf  ;;  %v7294_v22 = vld [vmem:[#allocation3 + $0x83] sm:$0xff]  ;;  %v1137_v62 = vmax.f32 %v846_v61, 0.0 }
 0x28d   :  { %2940 = vrot.lane.b32.xlu0 %v2478_v60, %s5214_s23  ;;  %v1306_v58 = vmax.f32 %v1304_v28, %v1305_v9  ;;  %v2599_v14 = vpop.permute.xlu2 %2598  ;;  %2454 = vst.msk [vmem:[#allocation4 + $0x198] sm:$0xff] %vm185_vm0, %v7294_v22  ;;  %v3718_v15 = vld [vmem:[#allocation3 + $0x84] sm:$0xff]  ;;  %v849_v9 = vadd.f32 %v7169_v56, %v5524_v5 }
 0x28e   :  { %2643 = vst.msk [vmem:[#allocation4 + $0xb8] sm:$0xff] %vm1996_vm3, %v2599_v14  ;;  %v2992_v28 = vld [vmem:[#allocation3 + $0x160] sm:$0xff]  ;;  %v1314_v50 = vsel %vm185_vm0, %v1137_v62, -inf }
 0x28f   :  { %v2917_v45 = vpop.permute.xlu0 %2916  ;;  %1458 = vst.msk [vmem:[#allocation2 + $0xf8] sm:$0xff] %vm185_vm0, %v1306_v58  ;;  %v830_v12 = vpop.f32.mrf.mxu0  ;;  %v3522_v0 = vld [vmem:[#allocation3 + $0x42] sm:$0xff] }
 0x290   :  { %2962 = vst.msk [vmem:[#allocation4 + $0x88] sm:$0xff] %vm1996_vm3, %v2917_v45  ;;  %v831_v18 = vadd.f32 %v7169_v56, %v830_v12  ;;  %v3202_v12 = vld [vmem:[#allocation3 + $0x43] sm:$0xff] }
 0x291   :  { %3233 = vrot.lane.b32.xlu1 %v3201_v38, %s5214_s23  ;;  %3734 = vst.msk [vmem:[#allocation4 + $0x110] sm:$0xff] %vm185_vm0, %v3718_v15  ;;  %v1138_v38 = vmax.f32 %v849_v9, 0.0  ;;  %v3298_v15 = vld [vmem:[#allocation3 + $0x44] sm:$0xff] }
 0x292   :  { %v1132_v60 = vmax.f32 %v831_v18, 0.0  ;;  %v1631_v9 = vld [vmem:[#allocation2 + $0xd9] ss:$2 sm:$0xff] }
 0x293   :  { %v2715_v16 = vpop.permute.xlu1 %2714  ;;  %3037 = vrot.lane.b32.xlu2 %v2575_v8, %s5212_s17 }
 0x294   :  { %2749 = vst.msk [vmem:[#allocation4 + $0x2e8] sm:$0xff] %vm2093_vm4, %v2715_v16  ;;  %v1308_v49 = vsel %vm185_vm0, %v1132_v60, -inf }
 0x295   :  { %3137 = vrot.lane.b32.xlu0 %v6402_v2, %s5213_s18  ;;  %v1309_v63 = vmax.f32 %v1307_v32, %v1308_v49  ;;  %v3014_v24 = vpop.permute.xlu2 %3013  ;;  %v2799_v2 = vld [vmem:[#allocation3 + $0x153] sm:$0xff] }
 0x296   :  { %3059 = vst.msk [vmem:[#allocation4 + $0x88] sm:$0xff] %vm2093_vm4, %v3014_v24  ;;  %v3921_v49 = vld [vmem:[%s8404_s3 + $0x1f8] sm:$0xff] }
 0x297   :  { %v2524_v3 = vpop.permute.xlu0 %2523  ;;  %1459 = vst.msk [vmem:[#allocation2 + $0x100] sm:$0xff] %vm185_vm0, %v1309_v63  ;;  %v833_v8 = vpop.f32.mrf.mxu0  ;;  %4205 = vmatpush.msra.mxu1 %v3921_v49  ;;  %v3918_v49 = vld [vmem:[%s8404_s3 + $0x1e0] sm:$0xff] }
 0x298   :  { %2557 = vst.msk [vmem:[#allocation4 + $0x320] sm:$0xff] %vm1899_vm2, %v2524_v3  ;;  %v834_v18 = vadd.f32 %v7169_v56, %v833_v8 }
 0x299   :  { %3458 = vrot.lane.b32.xlu1 %v6909_v41, %s5213_s18  ;;  %2654 = vst.msk [vmem:[#allocation4 + $0x320] sm:$0xff] %vm1996_vm3, %v6171_v57  ;;  %v7303_v57 = vld [vmem:[#allocation3 + $0x82] sm:$0xff] }
 0x29a   :  { %2750 = vst.msk [vmem:[#allocation4 + $0x320] sm:$0xff] %vm2093_vm4, %v6393_v10  ;;  %v7305_v10 = vld [vmem:[#allocation3 + $0x81] sm:$0xff]  ;;  %v1133_v3 = vmax.f32 %v834_v18, 0.0 }
 0x29b   :  { %v2300_v40 = vpop.permute.xlu1 %2299  ;;  %2846 = vrot.lane.b32.xlu2 %v2799_v2, %s5213_s18  ;;  %2774 = vst.msk [vmem:[#allocation4 + $0x168] sm:$0xff] %vm185_vm0, %v7303_v57 }
 0x29c   :  { %2333 = vst.msk [vmem:[#allocation4 + $0x318] sm:$0xff] %vm1996_vm3, %v2300_v40  ;;  %v1310_v61 = vsel %vm185_vm0, %v1133_v3, -inf }
 0x29d   :  { %2429 = vst.msk [vmem:[#allocation4 + $0x318] sm:$0xff] %vm2093_vm4, %v2396_v19  ;;  %3329 = vrot.lane.b32.xlu0 %v6404_v53, %s5212_s17  ;;  %v2056_v41 = vpop.permute.xlu2 %2055 }
 0x29e   :  { %3094 = vst.msk [vmem:[#allocation4 + $0x138] sm:$0xff] %vm185_vm0, %v7305_v10 }
 0x29f   :  { %v2939_v46 = vpop.permute.xlu0 %2938  ;;  %v836_v55 = vpop.f32.mrf.mxu0 }
 0x2a0   :  { %v837_v19 = vadd.f32 %v7169_v56, %v836_v55 }
 0x2a1   :  { %3039 = vrot.lane.b32.xlu1 %v2992_v28, %s5212_s17 }
 0x2a2   :  { %v1134_v53 = vmax.f32 %v837_v19, 0.0 }
 0x2a3   :  { %v2843_v1 = vpop.permute.xlu1 %2842  ;;  %2942 = vrot.lane.b32.xlu2 %v2895_v44, %s5214_s23 }
 0x2a4   :  { %2877 = vst.msk [vmem:[#allocation4 + $0x2f0] sm:$0xff] %vm1899_vm2, %v2843_v1  ;;  %v1313_v58 = vsel %vm185_vm0, %v1134_v53, -inf  ;;  %v1535_v1 = vld [vmem:[#allocation2 + $0xd8] ss:$2 sm:$0xff] }
 0x2a5   :  { %2973 = vst.msk [vmem:[#allocation4 + $0x2f0] sm:$0xff] %vm1996_vm3, %v2939_v46  ;;  %3554 = vrot.lane.b32.xlu0 %v3522_v0, %s5214_s23  ;;  %v1315_v14 = vmax.f32 %v1313_v58, %v1314_v50  ;;  %v7326_v37 = vpop.permute.xlu2 %2375  ;;  %v1633_v58 = vld [vmem:[#allocation2 + $0xe9] ss:$2 sm:$0xf] }
 0x2a6   :  { %3070 = vst.msk [vmem:[#allocation4 + $0x2f0] sm:$0xff] %vm2093_vm4, %v6195_v29  ;;  %v1317_v29 = vsel %vm185_vm0, %v1138_v38, -inf  ;;  %v3919_v38 = vld [vmem:[%s8404_s3 + $0x1e8] sm:$0xff] }
 0x2a7   :  { %v2184_v52 = vpop.permute.xlu0 %2183  ;;  %1461 = vst.msk [vmem:[#allocation2 + $0x110] sm:$0xff] %vm185_vm0, %v1315_v14  ;;  %v839_v45 = vpop.f32.mrf.mxu0 }
 0x2a8   :  { %2227 = vst.msk [vmem:[#allocation4 + $0xe8] sm:$0xff] %vm1899_vm2, %v2184_v52  ;;  %v840_v5 = vadd.f32 %v7169_v56, %v839_v45  ;;  %v1708_v45 = vmax.f32 %v1535_v1, %v1631_v9  ;;  %v1539_v9 = vld [vmem:[#allocation2 + $0xf0] ss:$2 sm:$0xff] }
 0x2a9   :  { %3235 = vrot.lane.b32.xlu1 %v3202_v12, %s5214_s23 }
 0x2aa   :  { %v1135_v32 = vmax.f32 %v840_v5, 0.0  ;;  %1757 = vst.msk [vmem:[#allocation3 + $0x90] sm:$0xff] %vm185_vm0, %v1708_v45  ;;  %v1541_v45 = vld [vmem:[#allocation2 + $0x100] ss:$2 sm:$0xf] }
 0x2ab   :  { %v1959_v60 = vpop.permute.xlu1 %1958  ;;  %3650 = vrot.lane.b32.xlu2 %v3202_v12, %s5212_s17 }
 0x2ac   :  { %v1316_v16 = vsel %vm185_vm0, %v1135_v32, -inf }
 0x2ad   :  { %3139 = vrot.lane.b32.xlu0 %v3522_v0, %s5213_s18  ;;  %v1318_v63 = vmax.f32 %v1316_v16, %v1317_v29  ;;  %v2601_v24 = vpop.permute.xlu2 %2600  ;;  %v1537_v0 = vld [vmem:[#allocation2 + $0xe8] ss:$2 sm:$0xf] }
 0x2ae   :  { %v1709_v12 = vmax.f32 %v1537_v0, %v1633_v58  ;;  %v1635_v58 = vld [vmem:[#allocation2 + $0xf1] ss:$2 sm:$0xff] }
 0x2af   :  { %v1862_v2 = vpop.permute.xlu0 %1861  ;;  %1462 = vst.msk [vmem:[#allocation2 + $0x118] sm:$0xff] %vm185_vm0, %v1318_v63  ;;  %v842_v8 = vpop.f32.mrf.mxu0 }
 0x2b0   :  { %1905 = vst.msk [vmem:[#allocation4 + $0x118] sm:$0xff] %vm1899_vm2, %v1862_v2  ;;  %v843_v40 = vadd.f32 %v7169_v56, %v842_v8  ;;  %v3920_v56 = vld [vmem:[%s8404_s3 + $0x1f0] sm:$0xff]  ;;  %v3917_v8 = vld [vmem:[%s8404_s3 + $0x1d8] sm:$0xff] }
 0x2b1   :  { %3556 = vrot.lane.b32.xlu1 %v6835_v34, %s5214_s23  ;;  %2002 = vst.msk [vmem:[#allocation4 + $0x118] sm:$0xff] %vm1996_vm3, %v1959_v60  ;;  %4206 = vmatpush.msra.mxu1 %v3920_v56  ;;  %v7383_v29 = vld [vmem:[#allocation3 + $0x90] sm:$0xff] }
 0x2b2   :  { %2099 = vst.msk [vmem:[#allocation4 + $0x118] sm:$0xff] %vm2093_vm4, %v2056_v41  ;;  %v1136_v46 = vmax.f32 %v843_v40, 0.0 }
 0x2b3   :  { %v2695_v55 = vpop.permute.xlu1 %2694  ;;  %3331 = vrot.lane.b32.xlu2 %v3298_v15, %s5212_s17  ;;  %4207 = vmatpush.msra.mxu1 %v3919_v38  ;;  %1758 = vst.msk [vmem:[#allocation3 + $0x98] sm:$0xf] %vm1739_vm1, %v1709_v12  ;;  %v3916_v15 = vld [vmem:[%s8404_s3 + $0x1d0] sm:$0xff] }
 0x2b4   :  { %2739 = vst.msk [vmem:[#allocation4 + $0xb8] sm:$0xff] %vm2093_vm4, %v2695_v55  ;;  %v1311_v28 = vsel %vm185_vm0, %v1136_v46, -inf  ;;  %v7457_v38 = vld [vmem:[#allocation3 + $0x84] sm:$0xff] }
 0x2b5   :  { %3460 = vrot.lane.b32.xlu0 %v7086_v54, %s5213_s18  ;;  %v1312_v62 = vmax.f32 %v1310_v61, %v1311_v28  ;;  %v3016_v19 = vpop.permute.xlu2 %3015  ;;  %4208 = vmatpush.msra.mxu1 %v3918_v49  ;;  %3415 = vst.msk [vmem:[#allocation4 + $0x140] sm:$0xff] %vm185_vm0, %v7383_v29 }
 0x2b6   :  { %v1545_v41 = vld [vmem:[#allocation2 + $0x118] ss:$2 sm:$0xf]  ;;  %v1641_v53 = vld [vmem:[#allocation2 + $0x119] ss:$2 sm:$0xf] }
 0x2b7   :  { %v2504_v44 = vpop.permute.xlu0 %2503  ;;  %1460 = vst.msk [vmem:[#allocation2 + $0x108] sm:$0xff] %vm185_vm0, %v1312_v62  ;;  %v1713_v50 = vmax.f32 %v1545_v41, %v1641_v53  ;;  %4209 = vmatpush.msra.mxu1 %v3917_v8  ;;  %v3915_v41 = vld [vmem:[%s8404_s3 + $0x1c8] sm:$0xff] }
 0x2b8   :  { %2547 = vst.msk [vmem:[#allocation4 + $0xf0] sm:$0xff] %vm1899_vm2, %v2504_v44 }
 0x2b9   :  { %3237 = vrot.lane.b32.xlu1 %v6827_v23, %s5214_s23  ;;  %2644 = vst.msk [vmem:[#allocation4 + $0xf0] sm:$0xff] %vm1996_vm3, %v2601_v24  ;;  %v3781_v54 = vld [vmem:[#allocation4 + $0x118] sm:$0xff]  ;;  %4210 = vmatpush.msra.mxu1 %v3916_v15 }
 0x2ba   :  { %4041 = vmatmul.f32.gmra.mxu1 %v3781_v54  ;;  %1762 = vst.msk [vmem:[#allocation3 + $0xb8] sm:$0xf] %vm1739_vm1, %v1713_v50  ;;  %v7391_v24 = vld [vmem:[#allocation3 + $0x92] sm:$0xff] }
 0x2bb   :  { %v2280_v14 = vpop.permute.xlu1 %2279  ;;  %v3769_v52 = vld [vmem:[#allocation4 + $0xb8] sm:$0xff]  ;;  %3652 = vrot.lane.b32.xlu2 %v6827_v23, %s5212_s17  ;;  %2775 = vst.msk [vmem:[#allocation4 + $0x1a0] sm:$0xff] %vm185_vm0, %v7391_v24  ;;  %4211 = vmatpush.msra.mxu1 %v3915_v41 }
 0x2bc   :  { %2323 = vst.msk [vmem:[#allocation4 + $0xe8] sm:$0xff] %vm1996_vm3, %v2280_v14  ;;  %4165 = vmatmul.f32.gmra.mxu3 %v3769_v52  ;;  %v3719_v46 = vld [vmem:[#allocation3 + $0x94] sm:$0xff]  ;;  %v1710_v52 = vmax.f32 %v1539_v9, %v1635_v58 }
 0x2bd   :  { %2419 = vst.msk [vmem:[#allocation4 + $0xe8] sm:$0xff] %vm2093_vm4, %v7326_v37  ;;  %3141 = vrot.lane.b32.xlu0 %v6835_v34, %s5213_s18  ;;  %v2058_v5 = vpop.permute.xlu2 %2057  ;;  %v3914_v50 = vld [vmem:[%s8404_s3 + $0x1c0] sm:$0xff] }
 0x2be   :  { %v1543_v23 = vld [vmem:[#allocation2 + $0x108] ss:$2 sm:$0xff]  ;;  %v1639_v18 = vld [vmem:[#allocation2 + $0x109] ss:$2 sm:$0xff]  ;;  %3735 = vst.msk [vmem:[#allocation4 + $0x148] sm:$0xff] %vm185_vm0, %v3719_v46  ;;  %4212 = vmatpush.msra.mxu1 %v3914_v50  ;;  %v3910_v15 = vld [vmem:[%s8404_s3 + $0x1a0] sm:$0xff] }
 0x2bf   :  { %v2919_v32 = vpop.permute.xlu0 %2918  ;;  %v1712_v60 = vmax.f32 %v1543_v23, %v1639_v18  ;;  %1759 = vst.msk [vmem:[#allocation3 + $0xa0] sm:$0xff] %vm185_vm0, %v1710_v52  ;;  %v3907_v50 = vld [vmem:[%s8404_s3 + $0x188] sm:$0xff] }
 0x2c1   :  { %3558 = vrot.lane.b32.xlu1 %v6993_v6, %s5214_s23  ;;  %1761 = vst.msk [vmem:[#allocation3 + $0xb0] sm:$0xff] %vm185_vm0, %v1712_v60 }
 0x2c3   :  { %v2823_v34 = vpop.permute.xlu1 %2822  ;;  %3333 = vrot.lane.b32.xlu2 %v6853_v35, %s5212_s17  ;;  %v7389_v35 = vld [vmem:[#allocation3 + $0x91] sm:$0xff] }
 0x2c4   :  { %2867 = vst.msk [vmem:[#allocation4 + $0xc0] sm:$0xff] %vm1899_vm2, %v2823_v34  ;;  %v3775_v37 = vld [vmem:[#allocation4 + $0xe8] sm:$0xff] }
 0x2c5   :  { %2963 = vst.msk [vmem:[#allocation4 + $0xc0] sm:$0xff] %vm1996_vm3, %v2919_v32  ;;  %3462 = vrot.lane.b32.xlu0 %v7182_v33, %s5213_s18  ;;  %4103 = vmatmul.f32.gmra.mxu2 %v3775_v37  ;;  %v2378_v16 = vpop.permute.xlu2 %2377  ;;  %v3912_v34 = vld [vmem:[%s8404_s3 + $0x1b0] sm:$0xff] }
 0x2c6   :  { %3060 = vst.msk [vmem:[#allocation4 + $0xc0] sm:$0xff] %vm2093_vm4, %v3016_v19  ;;  %v3400_v49 = vld [vmem:[#allocation3 + $0xa0] sm:$0xff] }
 0x2c7   :  { %v2186_v63 = vpop.permute.xlu0 %2185  ;;  %3095 = vst.msk [vmem:[#allocation4 + $0x170] sm:$0xff] %vm185_vm0, %v7389_v35 }
 0x2c8   :  { %2228 = vst.msk [vmem:[#allocation4 + $0x120] sm:$0xff] %vm1899_vm2, %v2186_v63  ;;  %v3401_v33 = vld [vmem:[#allocation3 + $0xb0] sm:$0xff] }
 0x2c9   :  { %2698 = vrot.lane.b32.xlu1 %v7238_v47, %s5212_s17  ;;  %3417 = vst.msk [vmem:[#allocation4 + $0x1b0] sm:$0xff] %vm185_vm0, %v3401_v33  ;;  %v3721_v2 = vld [vmem:[#allocation3 + $0xb4] sm:$0xff] }
 0x2ca   :  { %3737 = vst.msk [vmem:[#allocation4 + $0x1b8] sm:$0xff] %vm185_vm0, %v3721_v2  ;;  %v3911_v2 = vld [vmem:[%s8404_s3 + $0x1a8] sm:$0xff] }
 0x2cb   :  { %v1961_v3 = vpop.permute.xlu1 %1960  ;;  %3654 = vrot.lane.b32.xlu2 %v6984_v25, %s5212_s17  ;;  %3416 = vst.msk [vmem:[#allocation4 + $0x178] sm:$0xff] %vm185_vm0, %v3400_v49  ;;  %v3934_v49 = vld [vmem:[%s8404_s3 + $0x260] sm:$0xff] }
 0x2cd   :  { %3143 = vrot.lane.b32.xlu0 %v6993_v6, %s5213_s18  ;;  %v2603_v40 = vpop.permute.xlu2 %2602 }
 0x2cf   :  { %v1864_v61 = vpop.permute.xlu0 %1863 }
 0x2d0   :  { %1906 = vst.msk [vmem:[#allocation4 + $0x150] sm:$0xff] %vm1899_vm2, %v1864_v61  ;;  %v7501_v61 = vld [vmem:[#allocation3 + $0x93] sm:$0xff] }
 0x2d1   :  { %2003 = vst.msk [vmem:[#allocation4 + $0x150] sm:$0xff] %vm1996_vm3, %v1961_v3  ;;  %2283 = vrot.lane.b32.xlu1 %v7238_v47, %s5214_s23  ;;  %v7487_v3 = vld [vmem:[#allocation3 + $0x94] sm:$0xff] }
 0x2d2   :  { %2100 = vst.msk [vmem:[#allocation4 + $0x150] sm:$0xff] %vm2093_vm4, %v2058_v5  ;;  %v3913_v5 = vld [vmem:[%s8404_s3 + $0x1b8] sm:$0xff] }
 0x2d3   :  { %v2697_v6 = vpop.permute.xlu1 %2696  ;;  %2379 = vrot.lane.b32.xlu2 %v7122_v59, %s5212_s17  ;;  %4213 = vmatpush.msra.mxu1 %v3913_v5 }
 0x2d4   :  { %2740 = vst.msk [vmem:[#allocation4 + $0xf0] sm:$0xff] %vm2093_vm4, %v2697_v6 }
 0x2d5   :  { %2507 = vrot.lane.b32.xlu0 %v7155_v21, %s5213_s18  ;;  %v3018_v55 = vpop.permute.xlu2 %3017  ;;  %4214 = vmatpush.msra.mxu1 %v3912_v34  ;;  %v3837_v34 = vld [vmem:[#allocation4 + $0x2d8] sm:$0xff] }
 0x2d7   :  { %v2506_v28 = vpop.permute.xlu0 %2505  ;;  %4215 = vmatpush.msra.mxu1 %v3911_v2  ;;  %v3844_v2 = vld [vmem:[#allocation4 + $0x310] sm:$0xff] }
 0x2d8   :  { %2548 = vst.msk [vmem:[#allocation4 + $0x128] sm:$0xff] %vm1899_vm2, %v2506_v28 }
 0x2d9   :  { %2645 = vst.msk [vmem:[#allocation4 + $0x128] sm:$0xff] %vm1996_vm3, %v2603_v40  ;;  %v3788_v56 = vld [vmem:[#allocation4 + $0x150] sm:$0xff]  ;;  %2826 = vrot.lane.b32.xlu1 %v7124_v11, %s5213_s18  ;;  %4216 = vmatpush.msra.mxu1 %v3910_v15 }
 0x2da   :  { %4044 = vmatmul.f32.gmra.mxu1 %v3788_v56 }
 0x2db   :  { %v2282_v62 = vpop.permute.xlu1 %2281  ;;  %v3776_v19 = vld [vmem:[#allocation4 + $0xf0] sm:$0xff]  ;;  %2604 = vrot.lane.b32.xlu2 %v7281_v27, %s5214_s23 }
 0x2dc   :  { %2324 = vst.msk [vmem:[#allocation4 + $0x120] sm:$0xff] %vm1996_vm3, %v2282_v62  ;;  %4168 = vmatmul.f32.gmra.mxu3 %v3776_v19  ;;  %v3909_v62 = vld [vmem:[%s8404_s3 + $0x198] sm:$0xff] }
 0x2dd   :  { %2420 = vst.msk [vmem:[#allocation4 + $0x120] sm:$0xff] %vm2093_vm4, %v2378_v16  ;;  %2922 = vrot.lane.b32.xlu0 %v7155_v21, %s5214_s23  ;;  %v2623_v53 = vpop.permute.xlu2 %2622  ;;  %4217 = vmatpush.msra.mxu1 %v3909_v62  ;;  %v3932_v62 = vld [vmem:[%s8404_s3 + $0x250] sm:$0xff] }
 0x2df   :  { %v2921_v44 = vpop.permute.xlu0 %2920 }
 0x2e1   :  { %2700 = vrot.lane.b32.xlu1 %v7305_v10, %s5212_s17 }
 0x2e3   :  { %v2825_v1 = vpop.permute.xlu1 %2824  ;;  %3019 = vrot.lane.b32.xlu2 %v7281_v27, %s5212_s17 }
 0x2e4   :  { %2868 = vst.msk [vmem:[#allocation4 + $0xf8] sm:$0xff] %vm1899_vm2, %v2825_v1  ;;  %v3782_v0 = vld [vmem:[#allocation4 + $0x120] sm:$0xff] }
 0x2e5   :  { %2964 = vst.msk [vmem:[#allocation4 + $0xf8] sm:$0xff] %vm1996_vm3, %v2921_v44  ;;  %2189 = vrot.lane.b32.xlu0 %v7281_v27, %s5213_s18  ;;  %4106 = vmatmul.f32.gmra.mxu2 %v3782_v0  ;;  %v2060_v54 = vpop.permute.xlu2 %2059  ;;  %v1637_v27 = vld [vmem:[#allocation2 + $0x101] ss:$2 sm:$0xf]  ;;  %v3908_v44 = vld [vmem:[%s8404_s3 + $0x190] sm:$0xff] }
 0x2e6   :  { %3061 = vst.msk [vmem:[#allocation4 + $0xf8] sm:$0xff] %vm2093_vm4, %v3018_v55  ;;  %v1711_v23 = vmax.f32 %v1541_v45, %v1637_v27  ;;  %4218 = vmatpush.msra.mxu1 %v3908_v44  ;;  %v3749_v44 = vld [vmem:[#allocation4 + $0x18] sm:$0xff] }
 0x2e7   :  { %v2188_v14 = vpop.permute.xlu0 %2187 }
 0x2e8   :  { %2229 = vst.msk [vmem:[#allocation4 + $0x158] sm:$0xff] %vm1899_vm2, %v2188_v14  ;;  %4219 = vmatpush.msra.mxu1 %v3907_v50  ;;  %v3953_v14 = vld [vmem:[%s8404_s3 + $0x2f8] sm:$0xff] }
 0x2e9   :  { %2285 = vrot.lane.b32.xlu1 %v7305_v10, %s5214_s23  ;;  %1760 = vst.msk [vmem:[#allocation3 + $0xa8] sm:$0xf] %vm1739_vm1, %v1711_v23  ;;  %4335 = vmatpush.msra.mxu3 %v3953_v14 }
 0x2eb   :  { %v2845_v12 = vpop.permute.xlu1 %2844  ;;  %2381 = vrot.lane.b32.xlu2 %v7303_v57, %s5212_s17 }
 0x2ec   :  { %2878 = vst.msk [vmem:[#allocation4 + $0x328] sm:$0xff] %vm1899_vm2, %v2845_v12  ;;  %v3830_v12 = vld [vmem:[#allocation4 + $0x2a0] sm:$0xff] }
 0x2ed   :  { %2509 = vrot.lane.b32.xlu0 %v7457_v38, %s5213_s18  ;;  %v3038_v18 = vpop.permute.xlu2 %3037 }
 0x2ef   :  { %v1866_v32 = vpop.permute.xlu0 %1865 }
 0x2f0   :  { %1907 = vst.msk [vmem:[#allocation4 + $0x188] sm:$0xff] %vm1899_vm2, %v1866_v32  ;;  %v7481_v33 = vld [vmem:[#allocation3 + $0xa1] sm:$0xff] }
 0x2f1   :  { %2828 = vrot.lane.b32.xlu1 %v7294_v22, %s5213_s18  ;;  %3096 = vst.msk [vmem:[#allocation4 + $0x1a8] sm:$0xff] %vm185_vm0, %v7481_v33  ;;  %v7498_v40 = vld [vmem:[#allocation3 + $0xa4] sm:$0xff] }
 0x2f2   :  { %3736 = vst.msk [vmem:[#allocation4 + $0x180] sm:$0xff] %vm185_vm0, %v7498_v40 }
 0x2f3   :  { %v2719_v60 = vpop.permute.xlu1 %2718  ;;  %2606 = vrot.lane.b32.xlu2 %v7383_v29, %s5214_s23 }
 0x2f5   :  { %2924 = vrot.lane.b32.xlu0 %v7457_v38, %s5214_s23  ;;  %v2847_v37 = vpop.permute.xlu2 %2846 }
 0x2f6   :  { %2879 = vst.msk [vmem:[#allocation4 + $0x360] sm:$0xff] %vm1899_vm2, %v2847_v37 }
 0x2f7   :  { %v2526_v16 = vpop.permute.xlu0 %2525 }
 0x2f8   :  { %2558 = vst.msk [vmem:[#allocation4 + $0x358] sm:$0xff] %vm1899_vm2, %v2526_v16 }
 0x2f9   :  { %2655 = vst.msk [vmem:[#allocation4 + $0x358] sm:$0xff] %vm1996_vm3, %v2623_v53  ;;  %2702 = vrot.lane.b32.xlu1 %v7389_v35, %s5212_s17  ;;  %v3809_v53 = vld [vmem:[#allocation4 + $0x1f8] sm:$0xff] }
 0x2fa   :  { %2751 = vst.msk [vmem:[#allocation4 + $0x358] sm:$0xff] %vm2093_vm4, %v2719_v60  ;;  %v3113_v60 = vld [vmem:[#allocation3 + $0xf2] sm:$0xff] }
 0x2fb   :  { %v1963_v63 = vpop.permute.xlu1 %1962  ;;  %3021 = vrot.lane.b32.xlu2 %v7383_v29, %s5212_s17 }
 0x2fc   :  { %2004 = vst.msk [vmem:[#allocation4 + $0x188] sm:$0xff] %vm1996_vm3, %v1963_v63 }
 0x2fd   :  { %2101 = vst.msk [vmem:[#allocation4 + $0x188] sm:$0xff] %vm2093_vm4, %v2060_v54  ;;  %2926 = vrot.lane.b32.xlu0 %v7487_v3, %s5214_s23  ;;  %v2943_v8 = vpop.permute.xlu2 %2942  ;;  %v3823_v54 = vld [vmem:[#allocation4 + $0x268] sm:$0xff] }
 0x2fe   :  { %2975 = vst.msk [vmem:[#allocation4 + $0x360] sm:$0xff] %vm1996_vm3, %v2943_v8  ;;  %v3950_v8 = vld [vmem:[%s8404_s3 + $0x2e0] sm:$0xff] }
 0x2ff   :  { %v2941_v29 = vpop.permute.xlu0 %2940 }
 0x300   :  { %2974 = vst.msk [vmem:[#allocation4 + $0x328] sm:$0xff] %vm1996_vm3, %v2941_v29 }
 0x301   :  { %3071 = vst.msk [vmem:[#allocation4 + $0x328] sm:$0xff] %vm2093_vm4, %v3038_v18  ;;  %2830 = vrot.lane.b32.xlu1 %v7501_v61, %s5213_s18  ;;  %v3935_v18 = vld [vmem:[%s8404_s3 + $0x268] sm:$0xff] }
 0x303   :  { %v3234_v46 = vpop.permute.xlu1 %3233  ;;  %3335 = vrot.lane.b32.xlu2 %v7002_v26, %s5212_s17  ;;  %v2984_v26 = vld [vmem:[#allocation3 + $0xa0] sm:$0xff] }
 0x304   :  { %v3795_v6 = vld [vmem:[#allocation4 + $0x188] sm:$0xff] }
 0x305   :  { %3464 = vrot.lane.b32.xlu0 %v7238_v47, %s5213_s18  ;;  %4047 = vmatmul.f32.gmra.mxu1 %v3795_v6  ;;  %v3651_v55 = vpop.permute.xlu2 %3650  ;;  %v3802_v47 = vld [vmem:[#allocation4 + $0x1c0] sm:$0xff]  ;;  %v3305_v6 = vld [vmem:[#allocation3 + $0xf4] sm:$0xff] }
 0x307   :  { %v3138_v28 = vpop.permute.xlu0 %3137 }
 0x308   :  { %3185 = vst.msk [vmem:[#allocation4 + $0x20] sm:$0xff] %vm1899_vm2, %v3138_v28  ;;  %v3851_v28 = vld [vmem:[#allocation4 + $0x348] sm:$0xff] }
 0x309   :  { %3281 = vst.msk [vmem:[#allocation4 + $0x20] sm:$0xff] %vm1996_vm3, %v3234_v46  ;;  %3239 = vrot.lane.b32.xlu1 %v6984_v25, %s5214_s23  ;;  %v3209_v46 = vld [vmem:[#allocation3 + $0xf3] sm:$0xff] }
 0x30b   :  { %v3459_v56 = vpop.permute.xlu1 %3458  ;;  %3023 = vrot.lane.b32.xlu2 %v2984_v26, %s5212_s17  ;;  %v3949_v26 = vld [vmem:[%s8404_s3 + $0x2d8] sm:$0xff] }
 0x30c   :  { %3506 = vst.msk [vmem:[#allocation4 + $0x28] sm:$0xff] %vm1899_vm2, %v3459_v56 }
 0x30d   :  { %3145 = vrot.lane.b32.xlu0 %v7122_v59, %s5213_s18  ;;  %4050 = vmatmul.f32.gmra.mxu1 %v3802_v47  ;;  %v3332_v19 = vpop.permute.xlu2 %3331 }
 0x30f   :  { %v3330_v41 = vpop.permute.xlu0 %3329 }
 0x310   :  { %3377 = vst.msk [vmem:[#allocation4 + $0x20] sm:$0xff] %vm2093_vm4, %v3330_v41  ;;  %v3626_v41 = vld [vmem:[#allocation3 + $0x103] sm:$0xff] }
 0x311   :  { %3560 = vrot.lane.b32.xlu1 %v7122_v59, %s5214_s23 }
 0x313   :  { %v3040_v25 = vpop.permute.xlu1 %3039  ;;  %3656 = vrot.lane.b32.xlu2 %v7124_v11, %s5212_s17 }
 0x314   :  { %3072 = vst.msk [vmem:[#allocation4 + $0x360] sm:$0xff] %vm2093_vm4, %v3040_v25 }
 0x315   :  { %3466 = vrot.lane.b32.xlu0 %v7305_v10, %s5213_s18  ;;  %4053 = vmatmul.f32.gmra.mxu1 %v3809_v53  ;;  %v3653_v1 = vpop.permute.xlu2 %3652  ;;  %v3816_v10 = vld [vmem:[#allocation4 + $0x230] sm:$0xff] }
 0x317   :  { %v3555_v0 = vpop.permute.xlu0 %3554 }
 0x318   :  { %3602 = vst.msk [vmem:[#allocation4 + $0x28] sm:$0xff] %vm1996_vm3, %v3555_v0 }
 0x319   :  { %3698 = vst.msk [vmem:[#allocation4 + $0x28] sm:$0xff] %vm2093_vm4, %v3651_v55  ;;  %3241 = vrot.lane.b32.xlu1 %v7124_v11, %s5214_s23  ;;  %v3937_v11 = vld [vmem:[%s8404_s3 + $0x278] sm:$0xff]  ;;  %v3114_v55 = vld [vmem:[#allocation3 + $0x102] sm:$0xff] }
 0x31a   :  { %4270 = vmatpush.msra.mxu2 %v3937_v11  ;;  %v3115_v11 = vld [vmem:[#allocation3 + $0x112] sm:$0xff] }
 0x31b   :  { %v3236_v59 = vpop.permute.xlu1 %3235  ;;  %3337 = vrot.lane.b32.xlu2 %v7155_v21, %s5212_s17 }
 0x31d   :  { %3147 = vrot.lane.b32.xlu0 %v7303_v57, %s5213_s18  ;;  %4056 = vmatmul.f32.gmra.mxu1 %v3816_v10  ;;  %v3334_v9 = vpop.permute.xlu2 %3333  ;;  %v3956_v10 = vld [vmem:[%s8404_s3 + $0x310] sm:$0xff] }
 0x31f   :  { %v3140_v58 = vpop.permute.xlu0 %3139 }
 0x320   :  { %3186 = vst.msk [vmem:[#allocation4 + $0x58] sm:$0xff] %vm1899_vm2, %v3140_v58 }
 0x321   :  { %3282 = vst.msk [vmem:[#allocation4 + $0x58] sm:$0xff] %vm1996_vm3, %v3236_v59  ;;  %3562 = vrot.lane.b32.xlu1 %v7303_v57, %s5214_s23  ;;  %v3906_v57 = vld [vmem:[%s8404_s3 + $0x180] sm:$0xff] }
 0x322   :  { %3378 = vst.msk [vmem:[#allocation4 + $0x58] sm:$0xff] %vm2093_vm4, %v3332_v19  ;;  %4220 = vmatpush.msra.mxu1 %v3906_v57  ;;  %v7632_v19 = vpop.f32.mrf.mxu1  ;;  %v3947_v57 = vld [vmem:[%s8404_s3 + $0x2c8] sm:$0xff] }
 0x323   :  { %v3557_v21 = vpop.permute.xlu1 %3556  ;;  %3658 = vrot.lane.b32.xlu2 %v7294_v22, %s5212_s17 }
 0x325   :  { %3468 = vrot.lane.b32.xlu0 %v7389_v35, %s5213_s18  ;;  %4059 = vmatmul.f32.gmra.mxu1 %v3823_v54  ;;  %v3655_v52 = vpop.permute.xlu2 %3654  ;;  %v3936_v35 = vld [vmem:[%s8404_s3 + $0x270] sm:$0xff] }
 0x326   :  { %4271 = vmatpush.msra.mxu2 %v3936_v35  ;;  %v3627_v35 = vld [vmem:[#allocation3 + $0x113] sm:$0xff] }
 0x327   :  { %v3461_v45 = vpop.permute.xlu0 %3460 }
 0x328   :  { %3507 = vst.msk [vmem:[#allocation4 + $0x60] sm:$0xff] %vm1899_vm2, %v3461_v45  ;;  %4272 = vmatpush.msra.mxu2 %v3935_v18 }
 0x329   :  { %3603 = vst.msk [vmem:[#allocation4 + $0x60] sm:$0xff] %vm1996_vm3, %v3557_v21  ;;  %3243 = vrot.lane.b32.xlu1 %v7294_v22, %s5214_s23  ;;  %v3952_v22 = vld [vmem:[%s8404_s3 + $0x2f0] sm:$0xff]  ;;  %v3756_v21 = vld [vmem:[#allocation4 + $0x50] sm:$0xff] }
 0x32a   :  { %3699 = vst.msk [vmem:[#allocation4 + $0x60] sm:$0xff] %vm2093_vm4, %v3653_v1  ;;  %4336 = vmatpush.msra.mxu3 %v3952_v22  ;;  %4273 = vmatpush.msra.mxu2 %v3934_v49  ;;  %v3948_v1 = vld [vmem:[%s8404_s3 + $0x2d0] sm:$0xff]  ;;  %v7650_v50 = vpop.f32.mrf.mxu1 }
 0x32b   :  { %v3238_v27 = vpop.permute.xlu1 %3237  ;;  %3339 = vrot.lane.b32.xlu2 %v7457_v38, %s5212_s17  ;;  %v3957_v38 = vld [vmem:[%s8404_s3 + $0x318] sm:$0xff]  ;;  %v3763_v22 = vld [vmem:[#allocation4 + $0x88] sm:$0xff] }
 0x32c   :  { %4412 = vmatpush.msrb.mxu1 %v3957_v38 }
 0x32d   :  { %3149 = vrot.lane.b32.xlu0 %v7391_v24, %s5213_s18  ;;  %4062 = vmatmul.f32.gmra.mxu1 %v3830_v12  ;;  %v2380_v5 = vpop.permute.xlu2 %2379 }
 0x32e   :  { %4413 = vmatpush.msrb.mxu1 %v3956_v10 }
 0x32f   :  { %v3142_v23 = vpop.permute.xlu0 %3141 }
 0x330   :  { %3187 = vst.msk [vmem:[#allocation4 + $0x90] sm:$0xff] %vm1899_vm2, %v3142_v23 }
 0x331   :  { %3283 = vst.msk [vmem:[#allocation4 + $0x90] sm:$0xff] %vm1996_vm3, %v3238_v27  ;;  %3564 = vrot.lane.b32.xlu1 %v7391_v24, %s5214_s23  ;;  %v3951_v24 = vld [vmem:[%s8404_s3 + $0x2e8] sm:$0xff] }
 0x332   :  { %3379 = vst.msk [vmem:[#allocation4 + $0x90] sm:$0xff] %vm2093_vm4, %v3334_v9  ;;  %4337 = vmatpush.msra.mxu3 %v3951_v24  ;;  %v3306_v9 = vld [vmem:[#allocation3 + $0x104] sm:$0xff]  ;;  %v7663_v45 = vpop.f32.mrf.mxu1 }
 0x333   :  { %v3559_v32 = vpop.permute.xlu1 %3558  ;;  %3660 = vrot.lane.b32.xlu2 %v7501_v61, %s5212_s17  ;;  %v3770_v24 = vld [vmem:[#allocation4 + $0xc0] sm:$0xff] }
 0x334   :  { %4338 = vmatpush.msra.mxu3 %v3950_v8 }
 0x335   :  { %3153 = vrot.lane.b32.xlu0 %v3113_v60, %s5213_s18  ;;  %4065 = vmatmul.f32.gmra.mxu1 %v3837_v34  ;;  %v2605_v37 = vpop.permute.xlu2 %2604  ;;  %v3929_v60 = vld [vmem:[%s8404_s3 + $0x238] sm:$0xff] }
 0x336   :  { %4339 = vmatpush.msra.mxu3 %v3949_v26  ;;  %v3624_v26 = vld [vmem:[#allocation3 + $0xa3] sm:$0xff] }
 0x337   :  { %v3463_v16 = vpop.permute.xlu0 %3462 }
 0x338   :  { %3508 = vst.msk [vmem:[#allocation4 + $0x98] sm:$0xff] %vm1899_vm2, %v3463_v16  ;;  %4340 = vmatpush.msra.mxu3 %v3948_v1 }
 0x339   :  { %3604 = vst.msk [vmem:[#allocation4 + $0x98] sm:$0xff] %vm1996_vm3, %v3559_v32  ;;  %3245 = vrot.lane.b32.xlu1 %v7501_v61, %s5214_s23  ;;  %v3307_v32 = vld [vmem:[#allocation3 + $0x114] sm:$0xff] }
 0x33a   :  { %3700 = vst.msk [vmem:[#allocation4 + $0x98] sm:$0xff] %vm2093_vm4, %v3655_v52  ;;  %4341 = vmatpush.msra.mxu3 %v3947_v57  ;;  %v3930_v52 = vld [vmem:[%s8404_s3 + $0x240] sm:$0xff]  ;;  %v7678_v18 = vpop.f32.mrf.mxu1 }
 0x33b   :  { %v2699_v63 = vpop.permute.xlu1 %2698  ;;  %3341 = vrot.lane.b32.xlu2 %v7487_v3, %s5212_s17  ;;  %v3933_v3 = vld [vmem:[%s8404_s3 + $0x258] sm:$0xff] }
 0x33c   :  { %2741 = vst.msk [vmem:[#allocation4 + $0x128] sm:$0xff] %vm2093_vm4, %v2699_v63  ;;  %4274 = vmatpush.msra.mxu2 %v3933_v3  ;;  %v3532_v63 = vld [vmem:[#allocation3 + $0x122] sm:$0xff]  ;;  %v3777_v3 = vld [vmem:[#allocation4 + $0xf8] sm:$0xff] }
 0x33d   :  { %3474 = vrot.lane.b32.xlu0 %v5998_v43, %s5213_s18  ;;  %4068 = vmatmul.f32.gmra.mxu1 %v3844_v2  ;;  %v3020_v29 = vpop.permute.xlu2 %3019  ;;  %v3529_v57 = vld [vmem:[#allocation3 + $0xb2] sm:$0xff] }
 0x33e   :  { %4275 = vmatpush.msra.mxu2 %v3932_v62  ;;  %v3927_v62 = vld [vmem:[%s8404_s3 + $0x228] sm:$0xff] }
 0x33f   :  { %v3144_v61 = vpop.permute.xlu0 %3143 }
 0x340   :  { %3188 = vst.msk [vmem:[#allocation4 + $0xc8] sm:$0xff] %vm1899_vm2, %v3144_v61  ;;  %v3112_v61 = vld [vmem:[#allocation3 + $0xa2] sm:$0xff] }
 0x341   :  { %3249 = vrot.lane.b32.xlu1 %v3209_v46, %s5214_s23  ;;  %v3803_v46 = vld [vmem:[#allocation4 + $0x1c8] sm:$0xff] }
 0x342   :  { %v7693_v2 = vpop.f32.mrf.mxu1 }
 0x343   :  { %v2284_v43 = vpop.permute.xlu1 %2283  ;;  %v3783_v15 = vld [vmem:[#allocation4 + $0x128] sm:$0xff]  ;;  %3345 = vrot.lane.b32.xlu2 %v3305_v6, %s5212_s17 }
 0x344   :  { %2325 = vst.msk [vmem:[#allocation4 + $0x158] sm:$0xff] %vm1996_vm3, %v2284_v43  ;;  %4171 = vmatmul.f32.gmra.mxu3 %v3783_v15  ;;  %v3944_v6 = vld [vmem:[%s8404_s3 + $0x2b0] sm:$0xff] }
 0x345   :  { %2421 = vst.msk [vmem:[#allocation4 + $0x158] sm:$0xff] %vm2093_vm4, %v2380_v5  ;;  %3155 = vrot.lane.b32.xlu0 %v3114_v55, %s5213_s18  ;;  %4071 = vmatmul.f32.gmra.mxu1 %v3851_v28  ;;  %v2382_v56 = vpop.permute.xlu2 %2381  ;;  %v3946_v5 = vld [vmem:[%s8404_s3 + $0x2c0] sm:$0xff] }
 0x346   :  { %4342 = vmatpush.msra.mxu3 %v3946_v5 }
 0x347   :  { %v2508_v47 = vpop.permute.xlu0 %2507 }
 0x348   :  { %2549 = vst.msk [vmem:[#allocation4 + $0x160] sm:$0xff] %vm1899_vm2, %v2508_v47 }
 0x349   :  { %2646 = vst.msk [vmem:[#allocation4 + $0x160] sm:$0xff] %vm1996_vm3, %v2605_v37  ;;  %3570 = vrot.lane.b32.xlu1 %v3114_v55, %s5214_s23  ;;  %v3945_v37 = vld [vmem:[%s8404_s3 + $0x2b8] sm:$0xff]  ;;  %v3955_v55 = vld [vmem:[%s8404_s3 + $0x308] sm:$0xff] }
 0x34a   :  { %4343 = vmatpush.msra.mxu3 %v3945_v37  ;;  %4414 = vmatpush.msrb.mxu1 %v3955_v55  ;;  %v7711_v28 = vpop.f32.mrf.mxu1  ;;  %v3117_v37 = vld [vmem:[#allocation3 + $0x132] sm:$0xff] }
 0x34b   :  { %v2827_v25 = vpop.permute.xlu1 %2826  ;;  %3666 = vrot.lane.b32.xlu2 %v3626_v41, %s5212_s17  ;;  %v1687_v55 = vld [vmem:[#allocation2 + $0x229] ss:$2 sm:$0xff] }
 0x34c   :  { %2869 = vst.msk [vmem:[#allocation4 + $0x130] sm:$0xff] %vm1899_vm2, %v2827_v25  ;;  %v3789_v53 = vld [vmem:[#allocation4 + $0x158] sm:$0xff]  ;;  %4344 = vmatpush.msra.mxu3 %v3944_v6  ;;  %v3810_v25 = vld [vmem:[#allocation4 + $0x200] sm:$0xff] }
 0x34d   :  { %3476 = vrot.lane.b32.xlu0 %v6273_v7, %s5213_s18  ;;  %4109 = vmatmul.f32.gmra.mxu2 %v3789_v53  ;;  %v2607_v0 = vpop.permute.xlu2 %2606  ;;  %v3931_v7 = vld [vmem:[%s8404_s3 + $0x248] sm:$0xff]  ;;  %v1593_v6 = vld [vmem:[#allocation2 + $0x238] ss:$2 sm:$0xf] }
 0x34e   :  { %4221 = vmatmul.f32.vlgmr.msra.gmra.mxu1 %v3749_v44  ;;  %4276 = vmatpush.msra.mxu2 %v3931_v7  ;;  %v3943_v44 = vld [vmem:[%s8404_s3 + $0x2a8] sm:$0xff]  ;;  %v3804_v7 = vld [vmem:[#allocation4 + $0x1d0] sm:$0xff] }
 0x34f   :  { %v2923_v59 = vpop.permute.xlu0 %2922  ;;  %4345 = vmatpush.msra.mxu3 %v3943_v44 }
 0x350   :  { %2965 = vst.msk [vmem:[#allocation4 + $0x130] sm:$0xff] %vm1996_vm3, %v2923_v59  ;;  %4277 = vmatpush.msra.mxu2 %v3930_v52  ;;  %v3625_v52 = vld [vmem:[#allocation3 + $0xb3] sm:$0xff] }
 0x351   :  { %3062 = vst.msk [vmem:[#allocation4 + $0x130] sm:$0xff] %vm2093_vm4, %v3020_v29  ;;  %3251 = vrot.lane.b32.xlu1 %v3626_v41, %s5214_s23  ;;  %v3928_v29 = vld [vmem:[%s8404_s3 + $0x230] sm:$0xff]  ;;  %v3433_v41 = vld [vmem:[#allocation3 + $0xb1] sm:$0xff] }
 0x352   :  { %4278 = vmatpush.msra.mxu2 %v3929_v60 }
 0x353   :  { %v2701_v58 = vpop.permute.xlu1 %2700  ;;  %3347 = vrot.lane.b32.xlu2 %v3306_v9, %s5212_s17  ;;  %v3926_v9 = vld [vmem:[%s8404_s3 + $0x220] sm:$0xff] }
 0x354   :  { %2742 = vst.msk [vmem:[#allocation4 + $0x160] sm:$0xff] %vm2093_vm4, %v2701_v58  ;;  %4279 = vmatpush.msra.mxu2 %v3928_v29  ;;  %v3817_v58 = vld [vmem:[#allocation4 + $0x238] sm:$0xff] }
 0x355   :  { %3157 = vrot.lane.b32.xlu0 %v3115_v11, %s5213_s18  ;;  %v3022_v54 = vpop.permute.xlu2 %3021  ;;  %v3954_v29 = vld [vmem:[%s8404_s3 + $0x300] sm:$0xff] }
 0x356   :  { %4224 = vmatmul.f32.gmra.mxu1 %v3756_v21  ;;  %4280 = vmatpush.msra.mxu2 %v3927_v62  ;;  %v3942_v21 = vld [vmem:[%s8404_s3 + $0x2a0] sm:$0xff] }
 0x357   :  { %v2190_v14 = vpop.permute.xlu0 %2189  ;;  %v7726_v59 = vpop.f32.mrf.mxu1  ;;  %4346 = vmatpush.msra.mxu3 %v3942_v21  ;;  %4415 = vmatpush.msrb.mxu1 %v3954_v29  ;;  %v3630_v21 = vld [vmem:[#allocation3 + $0x143] sm:$0xff] }
 0x358   :  { %2230 = vst.msk [vmem:[#allocation4 + $0x190] sm:$0xff] %vm1899_vm2, %v2190_v14  ;;  %v3784_v53 = vld [vmem:[#allocation4 + $0x130] sm:$0xff]  ;;  %4281 = vmatpush.msra.mxu2 %v3926_v9  ;;  %v3819_v9 = vld [vmem:[#allocation4 + $0x248] sm:$0xff] }
 0x359   :  { %3572 = vrot.lane.b32.xlu1 %v3115_v11, %s5214_s23 }
 0x35b   :  { %v2286_v27 = vpop.permute.xlu1 %2285  ;;  %v3790_v12 = vld [vmem:[#allocation4 + $0x160] sm:$0xff]  ;;  %3668 = vrot.lane.b32.xlu2 %v3627_v35, %s5212_s17 }
 0x35c   :  { %2326 = vst.msk [vmem:[#allocation4 + $0x190] sm:$0xff] %vm1996_vm3, %v2286_v27  ;;  %4174 = vmatmul.f32.gmra.mxu3 %v3790_v12  ;;  %v3811_v27 = vld [vmem:[#allocation4 + $0x208] sm:$0xff]  ;;  %v3925_v12 = vld [vmem:[%s8404_s3 + $0x218] sm:$0xff] }
 0x35d   :  { %2422 = vst.msk [vmem:[#allocation4 + $0x190] sm:$0xff] %vm2093_vm4, %v2382_v56  ;;  %3478 = vrot.lane.b32.xlu0 %v6561_v13, %s5213_s18  ;;  %v7673_v23 = vpop.permute.xlu2 %3335  ;;  %4282 = vmatpush.msra.mxu2 %v3925_v12 }
 0x35e   :  { %4227 = vmatmul.f32.gmra.mxu1 %v3763_v22  ;;  %v3824_v22 = vld [vmem:[#allocation4 + $0x270] sm:$0xff] }
 0x35f   :  { %v2510_v38 = vpop.permute.xlu0 %2509 }
 0x360   :  { %2550 = vst.msk [vmem:[#allocation4 + $0x198] sm:$0xff] %vm1899_vm2, %v2510_v38 }
 0x361   :  { %2647 = vst.msk [vmem:[#allocation4 + $0x198] sm:$0xff] %vm1996_vm3, %v2607_v0  ;;  %3253 = vrot.lane.b32.xlu1 %v3627_v35, %s5214_s23 }
 0x363   :  { %v2829_v13 = vpop.permute.xlu1 %2828  ;;  %3349 = vrot.lane.b32.xlu2 %v3307_v32, %s5212_s17 }
 0x364   :  { %2870 = vst.msk [vmem:[#allocation4 + $0x168] sm:$0xff] %vm1899_vm2, %v2829_v13  ;;  %v3796_v34 = vld [vmem:[#allocation4 + $0x190] sm:$0xff]  ;;  %v3924_v13 = vld [vmem:[%s8404_s3 + $0x210] sm:$0xff] }
 0x365   :  { %3470 = vrot.lane.b32.xlu0 %v7481_v33, %s5213_s18  ;;  %4112 = vmatmul.f32.gmra.mxu2 %v3796_v34  ;;  %v3024_v16 = vpop.permute.xlu2 %3023  ;;  %v7695_v33 = vld [vmem:[#allocation3 + $0x123] sm:$0xff] }
 0x366   :  { %4230 = vmatmul.f32.gmra.mxu1 %v3770_v24  ;;  %4283 = vmatpush.msra.mxu2 %v3924_v13  ;;  %v3818_v34 = vld [vmem:[#allocation4 + $0x240] sm:$0xff] }
 0x367   :  { %v2925_v49 = vpop.permute.xlu0 %2924  ;;  %v3923_v24 = vld [vmem:[%s8404_s3 + $0x208] sm:$0xff] }
 0x368   :  { %2966 = vst.msk [vmem:[#allocation4 + $0x168] sm:$0xff] %vm1996_vm3, %v2925_v49  ;;  %v3805_v49 = vld [vmem:[#allocation4 + $0x1d8] sm:$0xff]  ;;  %4284 = vmatpush.msra.mxu2 %v3923_v24 }
 0x369   :  { %3063 = vst.msk [vmem:[#allocation4 + $0x168] sm:$0xff] %vm2093_vm4, %v3022_v54  ;;  %3574 = vrot.lane.b32.xlu1 %v3532_v63, %s5214_s23  ;;  %v3631_v24 = vld [vmem:[#allocation3 + $0x153] sm:$0xff] }
 0x36b   :  { %v2703_v8 = vpop.permute.xlu1 %2702  ;;  %3670 = vrot.lane.b32.xlu2 %v7695_v33, %s5212_s17 }
 0x36c   :  { %2743 = vst.msk [vmem:[#allocation4 + $0x198] sm:$0xff] %vm2093_vm4, %v2703_v8 }
 0x36d   :  { %3151 = vrot.lane.b32.xlu0 %v3112_v61, %s5213_s18  ;;  %4115 = vmatmul.f32.gmra.mxu2 %v3803_v46  ;;  %v3657_v43 = vpop.permute.xlu2 %3656  ;;  %v3629_v46 = vld [vmem:[#allocation3 + $0x133] sm:$0xff] }
 0x36e   :  { %4233 = vmatmul.f32.gmra.mxu1 %v3777_v3  ;;  %v1591_v3 = vld [vmem:[#allocation2 + $0x228] ss:$2 sm:$0xff] }
 0x36f   :  { %v2927_v15 = vpop.permute.xlu0 %2926 }
 0x370   :  { %v3791_v11 = vld [vmem:[#allocation4 + $0x168] sm:$0xff] }
 0x371   :  { %3566 = vrot.lane.b32.xlu1 %v3112_v61, %s5214_s23 }
 0x373   :  { %v2831_v56 = vpop.permute.xlu1 %2830  ;;  %v3797_v47 = vld [vmem:[#allocation4 + $0x198] sm:$0xff]  ;;  %3662 = vrot.lane.b32.xlu2 %v3624_v26, %s5212_s17 }
 0x374   :  { %2871 = vst.msk [vmem:[#allocation4 + $0x1a0] sm:$0xff] %vm1899_vm2, %v2831_v56  ;;  %4177 = vmatmul.f32.gmra.mxu3 %v3797_v47  ;;  %v3838_v56 = vld [vmem:[#allocation4 + $0x2e0] sm:$0xff]  ;;  %v1736_v47 = vmax.f32 %v1591_v3, %v1687_v55  ;;  %v3751_v3 = vld [vmem:[#allocation4 + $0x28] sm:$0xff]  ;;  %v7859_v55 = vpop.f32.mrf.mxu3 }
 0x375   :  { %2967 = vst.msk [vmem:[#allocation4 + $0x1a0] sm:$0xff] %vm1996_vm3, %v2927_v15  ;;  %3472 = vrot.lane.b32.xlu0 %v3433_v41, %s5213_s18  ;;  %4118 = vmatmul.f32.gmra.mxu2 %v3810_v25  ;;  %v3338_v1 = vpop.permute.xlu2 %3337  ;;  %v3825_v15 = vld [vmem:[#allocation4 + $0x278] sm:$0xff]  ;;  %v3812_v41 = vld [vmem:[#allocation4 + $0x210] sm:$0xff]  ;;  %v3939_v25 = vld [vmem:[%s8404_s3 + $0x288] sm:$0xff] }
 0x376   :  { %3064 = vst.msk [vmem:[#allocation4 + $0x1a0] sm:$0xff] %vm2093_vm4, %v3024_v16  ;;  %4236 = vmatmul.f32.gmra.mxu1 %v3784_v53  ;;  %v3831_v16 = vld [vmem:[#allocation4 + $0x2a8] sm:$0xff] }
 0x377   :  { %v3465_v0 = vpop.permute.xlu0 %3464  ;;  %1785 = vst.msk [vmem:[#allocation3 + $0x170] sm:$0xff] %vm185_vm0, %v1736_v47  ;;  %v3632_v47 = vld [vmem:[#allocation3 + $0x163] sm:$0xff] }
 0x378   :  { %3509 = vst.msk [vmem:[#allocation4 + $0xd0] sm:$0xff] %vm1899_vm2, %v3465_v0  ;;  %v3832_v0 = vld [vmem:[#allocation4 + $0x2b0] sm:$0xff] }
 0x379   :  { %3247 = vrot.lane.b32.xlu1 %v3624_v26, %s5214_s23  ;;  %v1689_v26 = vld [vmem:[#allocation2 + $0x239] ss:$2 sm:$0xf] }
 0x37a   :  { %v1737_v62 = vmax.f32 %v1593_v6, %v1689_v26  ;;  %v3764_v6 = vld [vmem:[#allocation4 + $0x90] sm:$0xff] }
 0x37b   :  { %v3240_v10 = vpop.permute.xlu1 %3239  ;;  %3343 = vrot.lane.b32.xlu2 %v7498_v40, %s5212_s17 }
 0x37c   :  { %3284 = vst.msk [vmem:[#allocation4 + $0xc8] sm:$0xff] %vm1996_vm3, %v3240_v10  ;;  %4180 = vmatmul.f32.gmra.mxu3 %v3804_v7  ;;  %v3938_v10 = vld [vmem:[%s8404_s3 + $0x280] sm:$0xff] }
 0x37d   :  { %3380 = vst.msk [vmem:[#allocation4 + $0xc8] sm:$0xff] %vm2093_vm4, %v7673_v23  ;;  %3159 = vrot.lane.b32.xlu0 %v3532_v63, %s5213_s18  ;;  %4121 = vmatmul.f32.gmra.mxu2 %v3817_v58  ;;  %v7740_v54 = vpop.permute.xlu2 %3658  ;;  %v3798_v5 = vld [vmem:[#allocation4 + $0x1a0] sm:$0xff]  ;;  %v3941_v23 = vld [vmem:[%s8404_s3 + $0x298] sm:$0xff]  ;;  %v3922_v63 = vld [vmem:[%s8404_s3 + $0x200] sm:$0xff] }
 0x37e   :  { %4239 = vmatmul.f32.gmra.mxu1 %v3791_v11  ;;  %4347 = vmatpush.msra.mxu3 %v3941_v23  ;;  %1786 = vst.msk [vmem:[#allocation3 + $0x178] sm:$0xf] %vm1739_vm1, %v1737_v62  ;;  %v3845_v7 = vld [vmem:[#allocation4 + $0x318] sm:$0xff]  ;;  %v3409_v12 = vld [vmem:[#allocation3 + $0x170] sm:$0xff] }
 0x37f   :  { %v3146_v40 = vpop.permute.xlu0 %3145  ;;  %4285 = vmatpush.msra.mxu2 %v3922_v63  ;;  %3425 = vst.msk [vmem:[#allocation4 + $0x370] sm:$0xff] %vm185_vm0, %v3409_v12  ;;  %v3840_v63 = vld [vmem:[#allocation4 + $0x2f0] sm:$0xff] }
 0x380   :  { %3189 = vst.msk [vmem:[#allocation4 + $0x100] sm:$0xff] %vm1899_vm2, %v3146_v40  ;;  %v3839_v40 = vld [vmem:[#allocation4 + $0x2e8] sm:$0xff] }
 0x381   :  { %3568 = vrot.lane.b32.xlu1 %v3529_v57, %s5214_s23  ;;  %v3852_v57 = vld [vmem:[#allocation4 + $0x350] sm:$0xff] }
 0x382   :  { %v7744_v14 = vpop.f32.mrf.mxu1 }
 0x383   :  { %v3561_v35 = vpop.permute.xlu1 %3560  ;;  %3664 = vrot.lane.b32.xlu2 %v3625_v52, %s5212_s17  ;;  %v3826_v52 = vld [vmem:[#allocation4 + $0x280] sm:$0xff] }
 0x384   :  { %3605 = vst.msk [vmem:[#allocation4 + $0xd0] sm:$0xff] %vm1996_vm3, %v3561_v35  ;;  %4183 = vmatmul.f32.gmra.mxu3 %v3811_v27 }
 0x385   :  { %3701 = vst.msk [vmem:[#allocation4 + $0xd0] sm:$0xff] %vm2093_vm4, %v3657_v43  ;;  %3480 = vrot.lane.b32.xlu0 %v6607_v36, %s5213_s18  ;;  %4124 = vmatmul.f32.gmra.mxu2 %v3824_v22  ;;  %v7757_v38 = vpop.permute.xlu2 %3339  ;;  %v3729_v23 = vld [vmem:[#allocation3 + $0x174] sm:$0xff] }
 0x386   :  { %4242 = vmatmul.f32.gmra.mxu1 %v3798_v5  ;;  %v3846_v5 = vld [vmem:[#allocation4 + $0x320] sm:$0xff]  ;;  %3745 = vst.msk [vmem:[#allocation4 + $0x378] sm:$0xff] %vm185_vm0, %v3729_v23  ;;  %v3633_v12 = vld [vmem:[#allocation3 + $0x173] sm:$0xff] }
 0x387   :  { %v3467_v32 = vpop.permute.xlu0 %3466 }
 0x388   :  { %3510 = vst.msk [vmem:[#allocation4 + $0x108] sm:$0xff] %vm1899_vm2, %v3467_v32  ;;  %v3833_v32 = vld [vmem:[#allocation4 + $0x2b8] sm:$0xff] }
 0x389   :  { %3255 = vrot.lane.b32.xlu1 %v7695_v33, %s5214_s23  ;;  %v3940_v33 = vld [vmem:[%s8404_s3 + $0x290] sm:$0xff] }
 0x38a   :  { %v7765_v36 = vpop.f32.mrf.mxu1  ;;  %4348 = vmatpush.msra.mxu3 %v3940_v33 }
 0x38b   :  { %v3242_v60 = vpop.permute.xlu1 %3241  ;;  %3351 = vrot.lane.b32.xlu2 %v6613_v30, %s5212_s17 }
 0x38c   :  { %3285 = vst.msk [vmem:[#allocation4 + $0x100] sm:$0xff] %vm1996_vm3, %v3242_v60  ;;  %4186 = vmatmul.f32.gmra.mxu3 %v3818_v34  ;;  %v7837_v34 = vpop.f32.mrf.mxu2 }
 0x38d   :  { %3381 = vst.msk [vmem:[#allocation4 + $0x100] sm:$0xff] %vm2093_vm4, %v3338_v1  ;;  %3161 = vrot.lane.b32.xlu0 %v3117_v37, %s5213_s18  ;;  %4127 = vmatmul.f32.gmra.mxu2 %v3831_v16  ;;  %v7781_v30 = vpop.permute.xlu2 %3660  ;;  %v3853_v16 = vld [vmem:[#allocation4 + $0x358] sm:$0xff] }
 0x38e   :  { %4245 = vmatmul.f32.gmra.mxu1 %v3805_v49  ;;  %4349 = vmatpush.msra.mxu3 %v3939_v25  ;;  %v3757_v49 = vld [vmem:[#allocation4 + $0x58] sm:$0xff] }
 0x38f   :  { %v3148_v8 = vpop.permute.xlu0 %3147  ;;  %v3441_v25 = vld [vmem:[#allocation3 + $0x171] sm:$0xff] }
 0x390   :  { %3190 = vst.msk [vmem:[#allocation4 + $0x138] sm:$0xff] %vm1899_vm2, %v3148_v8  ;;  %4350 = vmatpush.msra.mxu3 %v3938_v10 }
 0x391   :  { %3576 = vrot.lane.b32.xlu1 %v3117_v37, %s5214_s23 }
 0x392   :  { %v7788_v61 = vpop.f32.mrf.mxu1 }
 0x393   :  { %v3563_v43 = vpop.permute.xlu1 %3562  ;;  %3672 = vrot.lane.b32.xlu2 %v3629_v46, %s5212_s17 }
 0x394   :  { %3606 = vst.msk [vmem:[#allocation4 + $0x108] sm:$0xff] %vm1996_vm3, %v3563_v43  ;;  %4189 = vmatmul.f32.gmra.mxu3 %v3825_v15  ;;  %v7848_v8 = vpop.f32.mrf.mxu2  ;;  %v3847_v43 = vld [vmem:[#allocation4 + $0x328] sm:$0xff] }
 0x395   :  { %3702 = vst.msk [vmem:[#allocation4 + $0x108] sm:$0xff] %vm2093_vm4, %v7740_v54  ;;  %3482 = vrot.lane.b32.xlu0 %v5825_v39, %s5213_s18  ;;  %4130 = vmatmul.f32.gmra.mxu2 %v3838_v56  ;;  %v3342_v53 = vpop.permute.xlu2 %3341 }
 0x396   :  { %4248 = vmatmul.f32.gmra.mxu1 %v3812_v41  ;;  %v3758_v41 = vld [vmem:[#allocation4 + $0x60] sm:$0xff] }
 0x397   :  { %v3469_v44 = vpop.permute.xlu0 %3468 }
 0x398   :  { %3511 = vst.msk [vmem:[#allocation4 + $0x140] sm:$0xff] %vm1899_vm2, %v3469_v44  ;;  %v3854_v44 = vld [vmem:[#allocation4 + $0x360] sm:$0xff] }
 0x399   :  { %3257 = vrot.lane.b32.xlu1 %v3629_v46, %s5214_s23 }
 0x39a   :  { %v7803_v1 = vpop.f32.mrf.mxu1 }
 0x39b   :  { %v3244_v39 = vpop.permute.xlu1 %3243  ;;  %3353 = vrot.lane.b32.xlu2 %v6621_v17, %s5212_s17 }
 0x39c   :  { %3286 = vst.msk [vmem:[#allocation4 + $0x138] sm:$0xff] %vm1996_vm3, %v3244_v39  ;;  %4192 = vmatmul.f32.gmra.mxu3 %v3832_v0  ;;  %v7861_v56 = vpop.f32.mrf.mxu2  ;;  %v7871_v0 = vpop.f32.mrf.mxu3 }
 0x39d   :  { %3382 = vst.msk [vmem:[#allocation4 + $0x138] sm:$0xff] %vm2093_vm4, %v7757_v38  ;;  %3163 = vrot.lane.b32.xlu0 %v5789_v20, %s5213_s18  ;;  %4133 = vmatmul.f32.gmra.mxu2 %v3845_v7  ;;  %v3346_v58 = vpop.permute.xlu2 %3345  ;;  %v3750_v38 = vld [vmem:[#allocation4 + $0x20] sm:$0xff] }
 0x39e   :  { %4251 = vmatmul.f32.gmra.mxu1 %v3819_v9 }
 0x39f   :  { %v3150_v11 = vpop.permute.xlu0 %3149 }
 0x3a0   :  { %3191 = vst.msk [vmem:[#allocation4 + $0x170] sm:$0xff] %vm1899_vm2, %v3150_v11  ;;  %v3765_v11 = vld [vmem:[#allocation4 + $0x98] sm:$0xff] }
 0x3a1   :  { %3578 = vrot.lane.b32.xlu1 %v5789_v20, %s5214_s23 }
 0x3a2   :  { %v7818_v17 = vpop.f32.mrf.mxu1 }
 0x3a3   :  { %v3565_v54 = vpop.permute.xlu1 %3564  ;;  %3674 = vrot.lane.b32.xlu2 %v3630_v21, %s5212_s17 }
 0x3a4   :  { %3607 = vst.msk [vmem:[#allocation4 + $0x140] sm:$0xff] %vm1996_vm3, %v3565_v54  ;;  %4195 = vmatmul.f32.gmra.mxu3 %v3839_v40  ;;  %v7873_v7 = vpop.f32.mrf.mxu2  ;;  %v3752_v54 = vld [vmem:[#allocation4 + $0x30] sm:$0xff]  ;;  %v3785_v23 = vld [vmem:[#allocation4 + $0x138] sm:$0xff] }
 0x3a5   :  { %3703 = vst.msk [vmem:[#allocation4 + $0x140] sm:$0xff] %vm2093_vm4, %v7781_v30  ;;  %3484 = vrot.lane.b32.xlu0 %v7110_v51, %s5213_s18  ;;  %4136 = vmatmul.f32.gmra.mxu2 %v3852_v57  ;;  %v3667_v20 = vpop.permute.xlu2 %3666  ;;  %v3119_v51 = vld [vmem:[#allocation3 + $0x152] sm:$0xff]  ;;  %v7884_v57 = vpop.f32.mrf.mxu3 }
 0x3a6   :  { %4254 = vmatmul.f32.gmra.mxu1 %v3826_v52 }
 0x3a7   :  { %v3154_v35 = vpop.permute.xlu0 %3153 }
 0x3a8   :  { %3193 = vst.msk [vmem:[#allocation4 + $0x1e0] sm:$0xff] %vm1899_vm2, %v3154_v35  ;;  %v3537_v35 = vld [vmem:[#allocation3 + $0x172] sm:$0xff] }
 0x3a9   :  { %3259 = vrot.lane.b32.xlu1 %v3630_v21, %s5214_s23  ;;  %v3778_v21 = vld [vmem:[#allocation4 + $0x100] sm:$0xff] }
 0x3aa   :  { %v7828_v27 = vpop.f32.mrf.mxu1 }
 0x3ab   :  { %v3246_v22 = vpop.permute.xlu1 %3245  ;;  %3355 = vrot.lane.b32.xlu2 %v5831_v42, %s5212_s17 }
 0x3ac   :  { %3287 = vst.msk [vmem:[#allocation4 + $0x170] sm:$0xff] %vm1996_vm3, %v3246_v22  ;;  %4198 = vmatmul.f32.gmra.mxu3 %v3846_v5  ;;  %v3772_v5 = vld [vmem:[#allocation4 + $0xd0] sm:$0xff] }
 0x3ad   :  { %3383 = vst.msk [vmem:[#allocation4 + $0x170] sm:$0xff] %vm2093_vm4, %v3342_v53  ;;  %3165 = vrot.lane.b32.xlu0 %v3119_v51, %s5213_s18  ;;  %4286 = vmatmul.f32.vlgmr.msra.gmra.mxu2 %v3750_v38  ;;  %v3348_v13 = vpop.permute.xlu2 %3347  ;;  %v3771_v53 = vld [vmem:[#allocation4 + $0xc8] sm:$0xff] }
 0x3ae   :  { %4257 = vmatmul.f32.gmra.mxu1 %v3833_v32  ;;  %v7896_v32 = vpop.f32.mrf.mxu3 }
 0x3af   :  { %v3475_v60 = vpop.permute.xlu0 %3474 }
 0x3b0   :  { %3514 = vst.msk [vmem:[#allocation4 + $0x1e8] sm:$0xff] %vm1899_vm2, %v3475_v60 }
 0x3b1   :  { %3580 = vrot.lane.b32.xlu1 %v3119_v51, %s5214_s23  ;;  %v3759_v51 = vld [vmem:[#allocation4 + $0x68] sm:$0xff] }
 0x3b2   :  { %v7841_v42 = vpop.f32.mrf.mxu1 }
 0x3b3   :  { %v3250_v37 = vpop.permute.xlu1 %3249  ;;  %3676 = vrot.lane.b32.xlu2 %v3631_v24, %s5212_s17 }
 0x3b4   :  { %3289 = vst.msk [vmem:[#allocation4 + $0x1e0] sm:$0xff] %vm1996_vm3, %v3250_v37  ;;  %4201 = vmatmul.f32.gmra.mxu3 %v3853_v16  ;;  %v3779_v16 = vld [vmem:[#allocation4 + $0x108] sm:$0xff] }
 0x3b5   :  { %3385 = vst.msk [vmem:[#allocation4 + $0x1e0] sm:$0xff] %vm2093_vm4, %v3346_v58  ;;  %3486 = vrot.lane.b32.xlu0 %v7224_v48, %s5213_s18  ;;  %4289 = vmatmul.f32.gmra.mxu2 %v3757_v49  ;;  %v3669_v33 = vpop.permute.xlu2 %3668  ;;  %v3120_v48 = vld [vmem:[#allocation3 + $0x162] sm:$0xff]  ;;  %v3792_v49 = vld [vmem:[#allocation4 + $0x170] sm:$0xff] }
 0x3b6   :  { %4260 = vmatmul.f32.gmra.mxu1 %v3840_v63  ;;  %v3766_v63 = vld [vmem:[#allocation4 + $0xa0] sm:$0xff] }
 0x3b7   :  { %v3156_v30 = vpop.permute.xlu0 %3155 }
 0x3b8   :  { %3194 = vst.msk [vmem:[#allocation4 + $0x218] sm:$0xff] %vm1899_vm2, %v3156_v30 }
 0x3b9   :  { %3261 = vrot.lane.b32.xlu1 %v3631_v24, %s5214_s23 }
 0x3ba   :  { %v7852_v29 = vpop.f32.mrf.mxu1 }
 0x3bb   :  { %v3571_v46 = vpop.permute.xlu1 %3570  ;;  %3357 = vrot.lane.b32.xlu2 %v7128_v4, %s5212_s17 }
 0x3bc   :  { %3610 = vst.msk [vmem:[#allocation4 + $0x1e8] sm:$0xff] %vm1996_vm3, %v3571_v46  ;;  %4351 = vmatmul.f32.vlgmr.msra.gmra.mxu3 %v3751_v3 }
 0x3bd   :  { %3706 = vst.msk [vmem:[#allocation4 + $0x1e8] sm:$0xff] %vm2093_vm4, %v3667_v20  ;;  %3167 = vrot.lane.b32.xlu0 %v3120_v48, %s5213_s18  ;;  %4292 = vmatmul.f32.gmra.mxu2 %v3764_v6  ;;  %v3350_v15 = vpop.permute.xlu2 %3349  ;;  %v7886_v20 = vpop.f32.mrf.mxu2 }
 0x3be   :  { %4263 = vmatmul.f32.gmra.mxu1 %v3847_v43  ;;  %v3786_v43 = vld [vmem:[#allocation4 + $0x140] sm:$0xff] }
 0x3bf   :  { %v3477_v26 = vpop.permute.xlu0 %3476 }
 0x3c0   :  { %3515 = vst.msk [vmem:[#allocation4 + $0x220] sm:$0xff] %vm1899_vm2, %v3477_v26 }
 0x3c1   :  { %3582 = vrot.lane.b32.xlu1 %v3120_v48, %s5214_s23 }
 0x3c2   :  { %v7865_v4 = vpop.f32.mrf.mxu1 }
 0x3c3   :  { %v3252_v62 = vpop.permute.xlu1 %3251  ;;  %3678 = vrot.lane.b32.xlu2 %v3632_v47, %s5212_s17 }
 0x3c4   :  { %3290 = vst.msk [vmem:[#allocation4 + $0x218] sm:$0xff] %vm1996_vm3, %v3252_v62  ;;  %4354 = vmatmul.f32.gmra.mxu3 %v3758_v41 }
 0x3c5   :  { %3386 = vst.msk [vmem:[#allocation4 + $0x218] sm:$0xff] %vm2093_vm4, %v3348_v13  ;;  %3488 = vrot.lane.b32.xlu0 %v3441_v25, %s5213_s18  ;;  %4295 = vmatmul.f32.gmra.mxu2 %v3771_v53  ;;  %v3671_v39 = vpop.permute.xlu2 %3670  ;;  %v7898_v60 = vpop.f32.mrf.mxu2 }
 0x3c6   :  { %4266 = vmatmul.f32.gmra.mxu1 %v3854_v44 }
 0x3c7   :  { %v3158_v10 = vpop.permute.xlu0 %3157 }
 0x3c8   :  { %3195 = vst.msk [vmem:[#allocation4 + $0x250] sm:$0xff] %vm1899_vm2, %v3158_v10 }
 0x3c9   :  { %3263 = vrot.lane.b32.xlu1 %v3632_v47, %s5214_s23 }
 0x3cb   :  { %v7877_v9 = vpop.f32.mrf.mxu1  ;;  %v3573_v58 = vpop.permute.xlu1 %3572  ;;  %3359 = vrot.lane.b32.xlu2 %v7228_v31, %s5212_s17 }
 0x3cc   :  { %3611 = vst.msk [vmem:[#allocation4 + $0x220] sm:$0xff] %vm1996_vm3, %v3573_v58  ;;  %4357 = vmatmul.f32.gmra.mxu3 %v3765_v11 }
 0x3cd   :  { %3707 = vst.msk [vmem:[#allocation4 + $0x220] sm:$0xff] %vm2093_vm4, %v3669_v33  ;;  %4298 = vmatmul.f32.gmra.mxu2 %v3778_v21  ;;  %v3663_v40 = vpop.permute.xlu2 %3662  ;;  %v7906_v33 = vpop.f32.mrf.mxu3 }
 0x3ce   :  { %5146 = vmatmul.msk.f32.vlgmr.msrb.gmra.mxu1 %vm185_vm0, %v3752_v54 }
 0x3cf   :  { %v3479_v52 = vpop.permute.xlu0 %3478 }
 0x3d0   :  { %3516 = vst.msk [vmem:[#allocation4 + $0x258] sm:$0xff] %vm1899_vm2, %v3479_v52  ;;  %v7908_v46 = vpop.f32.mrf.mxu2 }
 0x3d1   :  { %3584 = vrot.lane.b32.xlu1 %v3537_v35, %s5214_s23  ;;  %v3787_v35 = vld [vmem:[#allocation4 + $0x148] sm:$0xff] }
 0x3d3   :  { %v7890_v31 = vpop.f32.mrf.mxu1  ;;  %v3254_v22 = vpop.permute.xlu1 %3253  ;;  %3680 = vrot.lane.b32.xlu2 %v3633_v12, %s5212_s17 }
 0x3d4   :  { %3291 = vst.msk [vmem:[#allocation4 + $0x250] sm:$0xff] %vm1996_vm3, %v3254_v22  ;;  %4360 = vmatmul.f32.gmra.mxu3 %v3772_v5 }
 0x3d5   :  { %3387 = vst.msk [vmem:[#allocation4 + $0x250] sm:$0xff] %vm2093_vm4, %v3350_v15  ;;  %4301 = vmatmul.f32.gmra.mxu2 %v3785_v23  ;;  %v3344_v38 = vpop.permute.xlu2 %3343  ;;  %v3773_v15 = vld [vmem:[#allocation4 + $0xd8] sm:$0xff]  ;;  %v7916_v26 = vpop.f32.mrf.mxu3 }
 0x3d6   :  { %5147 = vmatmul.msk.f32.gmra.mxu1 %vm185_vm0, %v3759_v51 }
 0x3d7   :  { %v3471_v13 = vpop.permute.xlu0 %3470 }
 0x3d8   :  { %3512 = vst.msk [vmem:[#allocation4 + $0x178] sm:$0xff] %vm1899_vm2, %v3471_v13 }
 0x3db   :  { %v7901_v24 = vpop.f32.mrf.mxu1  ;;  %v3575_v37 = vpop.permute.xlu1 %3574 }
 0x3dc   :  { %3612 = vst.msk [vmem:[#allocation4 + $0x258] sm:$0xff] %vm1996_vm3, %v3575_v37  ;;  %4363 = vmatmul.f32.gmra.mxu3 %v3779_v16  ;;  %v3794_v37 = vld [vmem:[#allocation4 + $0x180] sm:$0xff] }
 0x3dd   :  { %3708 = vst.msk [vmem:[#allocation4 + $0x258] sm:$0xff] %vm2093_vm4, %v3671_v39  ;;  %4304 = vmatmul.f32.gmra.mxu2 %v3792_v49  ;;  %v3665_v3 = vpop.permute.xlu2 %3664  ;;  %v3780_v39 = vld [vmem:[#allocation4 + $0x110] sm:$0xff] }
 0x3de   :  { %5148 = vmatmul.msk.f32.gmra.mxu1 %vm185_vm0, %v3766_v63 }
 0x3df   :  { %v3152_v30 = vpop.permute.xlu0 %3151  ;;  %v7926_v10 = vpop.f32.mrf.mxu3 }
 0x3e0   :  { %3192 = vst.msk [vmem:[#allocation4 + $0x1a8] sm:$0xff] %vm1899_vm2, %v3152_v30 }
 0x3e3   :  { %v7911_v48 = vpop.f32.mrf.mxu1  ;;  %v3567_v6 = vpop.permute.xlu1 %3566 }
 0x3e4   :  { %3608 = vst.msk [vmem:[#allocation4 + $0x178] sm:$0xff] %vm1996_vm3, %v3567_v6  ;;  %4366 = vmatmul.f32.gmra.mxu3 %v3786_v43  ;;  %v3813_v43 = vld [vmem:[#allocation4 + $0x218] sm:$0xff] }
 0x3e5   :  { %3704 = vst.msk [vmem:[#allocation4 + $0x178] sm:$0xff] %vm2093_vm4, %v3663_v40  ;;  %v3352_v41 = vpop.permute.xlu2 %3351 }
 0x3e6   :  { %5149 = vmatmul.msk.f32.gmra.mxu1 %vm185_vm0, %v3773_v15  ;;  %v3807_v15 = vld [vmem:[#allocation4 + $0x1e8] sm:$0xff] }
 0x3e7   :  { %v3473_v47 = vpop.permute.xlu0 %3472 }
 0x3e8   :  { %3513 = vst.msk [vmem:[#allocation4 + $0x1b0] sm:$0xff] %vm1899_vm2, %v3473_v47  ;;  %v7919_v62 = vpop.f32.mrf.mxu2  ;;  %v3801_v47 = vld [vmem:[#allocation4 + $0x1b8] sm:$0xff] }
 0x3eb   :  { %v7921_v25 = vpop.f32.mrf.mxu1  ;;  %v3248_v53 = vpop.permute.xlu1 %3247 }
 0x3ec   :  { %3288 = vst.msk [vmem:[#allocation4 + $0x1a8] sm:$0xff] %vm1996_vm3, %v3248_v53  ;;  %v3793_v44 = vld [vmem:[#allocation4 + $0x178] sm:$0xff] }
 0x3ed   :  { %3384 = vst.msk [vmem:[#allocation4 + $0x1a8] sm:$0xff] %vm2093_vm4, %v3344_v38  ;;  %4369 = vmatmul.f32.gmra.mxu3 %v3793_v44  ;;  %v3673_v40 = vpop.permute.xlu2 %3672  ;;  %v3806_v38 = vld [vmem:[#allocation4 + $0x1e0] sm:$0xff] }
 0x3ee   :  { %5150 = vmatmul.msk.f32.gmra.mxu1 %vm185_vm0, %v3780_v39 }
 0x3ef   :  { %v3160_v58 = vpop.permute.xlu0 %3159 }
 0x3f0   :  { %3196 = vst.msk [vmem:[#allocation4 + $0x288] sm:$0xff] %vm1899_vm2, %v3160_v58  ;;  %v7929_v11 = vpop.f32.mrf.mxu2 }
 0x3f3   :  { %v7931_v21 = vpop.f32.mrf.mxu1  ;;  %v3569_v54 = vpop.permute.xlu1 %3568 }
 0x3f4   :  { %3609 = vst.msk [vmem:[#allocation4 + $0x1b0] sm:$0xff] %vm1996_vm3, %v3569_v54  ;;  %v3799_v52 = vld [vmem:[#allocation4 + $0x1a8] sm:$0xff] }
 0x3f5   :  { %3705 = vst.msk [vmem:[#allocation4 + $0x1b0] sm:$0xff] %vm2093_vm4, %v3665_v3  ;;  %4307 = vmatmul.f32.gmra.mxu2 %v3799_v52  ;;  %v3354_v16 = vpop.permute.xlu2 %3353  ;;  %v3820_v52 = vld [vmem:[#allocation4 + $0x250] sm:$0xff] }
 0x3f6   :  { %5151 = vmatmul.msk.f32.gmra.mxu1 %vm185_vm0, %v3787_v35  ;;  %v3814_v35 = vld [vmem:[#allocation4 + $0x220] sm:$0xff] }
 0x3f7   :  { %v3481_v12 = vpop.permute.xlu0 %3480  ;;  %v7936_v22 = vpop.f32.mrf.mxu3 }
 0x3f8   :  { %3517 = vst.msk [vmem:[#allocation4 + $0x290] sm:$0xff] %vm1899_vm2, %v3481_v12  ;;  %v7939_v5 = vpop.f32.mrf.mxu2 }
 0x3fb   :  { %v7941_v23 = vpop.f32.mrf.mxu1  ;;  %v3256_v51 = vpop.permute.xlu1 %3255 }
 0x3fc   :  { %3292 = vst.msk [vmem:[#allocation4 + $0x288] sm:$0xff] %vm1996_vm3, %v3256_v51  ;;  %v3800_v13 = vld [vmem:[#allocation4 + $0x1b0] sm:$0xff] }
 0x3fd   :  { %3388 = vst.msk [vmem:[#allocation4 + $0x288] sm:$0xff] %vm2093_vm4, %v3352_v41  ;;  %4310 = vmatmul.f32.gmra.mxu2 %v3806_v38  ;;  %4372 = vmatmul.f32.gmra.mxu3 %v3800_v13  ;;  %v3675_v44 = vpop.permute.xlu2 %3674  ;;  %v7970_v13 = vld [vmem:[%s8405_s4] ss:$0 sm:$0xff]  ;;  %s4993_s4 = sshll.u32 %s8410_s9, 4  ;;  %s4994_s4 = int_to_ptr.hbm [resolvable:$true] %s4993_s4 }
 0x3fe   :  { %5152 = vmatmul.msk.f32.gmra.mxu1 %vm185_vm0, %v3794_v37 }
 0x3ff   :  { %v3162_v49 = vpop.permute.xlu0 %3161  ;;  %v7946_v63 = vpop.f32.mrf.mxu3 }
 0x400   :  { %3197 = vst.msk [vmem:[#allocation4 + $0x2c0] sm:$0xff] %vm1899_vm2, %v3162_v49  ;;  %v7949_v30 = vpop.f32.mrf.mxu2 }
 0x403   :  { %v7951_v3 = vpop.f32.mrf.mxu1  ;;  %v3577_v6 = vpop.permute.xlu1 %3576 }
 0x404   :  { %3613 = vst.msk [vmem:[#allocation4 + $0x290] sm:$0xff] %vm1996_vm3, %v3577_v6  ;;  %v4061_v6 = vadd.f32 %v7970_v13, %v7818_v17 }
 0x405   :  { %3709 = vst.msk [vmem:[#allocation4 + $0x290] sm:$0xff] %vm2093_vm4, %v3673_v40  ;;  %4313 = vmatmul.f32.gmra.mxu2 %v3813_v43  ;;  %4375 = vmatmul.f32.gmra.mxu3 %v3807_v15  ;;  %v3808_v40 = vld [vmem:[#allocation4 + $0x1f0] sm:$0xff]  ;;  %v3356_v37 = vpop.permute.xlu2 %3355  ;;  %v3827_v43 = vld [vmem:[#allocation4 + $0x288] sm:$0xff]  ;;  %v3821_v15 = vld [vmem:[#allocation4 + $0x258] sm:$0xff] }
 0x406   :  { %5153 = vmatmul.msk.f32.gmra.mxu1 %vm185_vm0, %v3801_v47  ;;  %v3815_v47 = vld [vmem:[#allocation4 + $0x228] sm:$0xff] }
 0x407   :  { %v3483_v41 = vpop.permute.xlu0 %3482  ;;  %v7956_v53 = vpop.f32.mrf.mxu3 }
 0x408   :  { %3518 = vst.msk [vmem:[#allocation4 + $0x2c8] sm:$0xff] %vm1899_vm2, %v3483_v41  ;;  %v4125_v39 = vpop.f32.mrf.mxu2 }
 0x409   :  { %v4126_v41 = vadd.f32 %v4125_v39, %v4061_v6  ;;  %v3822_v39 = vld [vmem:[#allocation4 + $0x260] sm:$0xff] }
 0x40b   :  { %v7959_v58 = vpop.f32.mrf.mxu1  ;;  %v3258_v54 = vpop.permute.xlu1 %3257 }
 0x40c   :  { %3293 = vst.msk [vmem:[#allocation4 + $0x2c0] sm:$0xff] %vm1996_vm3, %v3258_v54 }
 0x40d   :  { %3389 = vst.msk [vmem:[#allocation4 + $0x2c0] sm:$0xff] %vm2093_vm4, %v3354_v16  ;;  %4316 = vmatmul.f32.gmra.mxu2 %v3820_v52  ;;  %4378 = vmatmul.f32.gmra.mxu3 %v3814_v35 }
 0x40e   :  { %5154 = vmatmul.msk.f32.gmra.mxu1 %vm185_vm0, %v3808_v40 }
 0x40f   :  { %v3164_v12 = vpop.permute.xlu0 %3163  ;;  %v7964_v51 = vpop.f32.mrf.mxu3 }
 0x410   :  { %8411 = vst [vmem:[#allocation11_spill] sm:$0xff] %v7964_v51  ;;  %v4128_v38 = vpop.f32.mrf.mxu2  ;;  %v3677_v51 = vpop.permute.xlu2 %3676 }
 0x411   :  { %3198 = vst.msk [vmem:[#allocation4 + $0x2f8] sm:$0xff] %vm1899_vm2, %v3164_v12 }
 0x413   :  { %v7972_v49 = vpop.f32.mrf.mxu1  ;;  %v3579_v16 = vpop.permute.xlu1 %3578 }
 0x414   :  { %3614 = vst.msk [vmem:[#allocation4 + $0x2c8] sm:$0xff] %vm1996_vm3, %v3579_v16  ;;  %v4064_v16 = vadd.f32 %v7970_v13, %v7828_v27 }
 0x415   :  { %3710 = vst.msk [vmem:[#allocation4 + $0x2c8] sm:$0xff] %vm2093_vm4, %v3675_v44  ;;  %4319 = vmatmul.f32.gmra.mxu2 %v3827_v43  ;;  %4381 = vmatmul.f32.gmra.mxu3 %v3821_v15  ;;  %v3834_v44 = vld [vmem:[#allocation4 + $0x2c0] sm:$0xff]  ;;  %v3828_v43 = vld [vmem:[#allocation4 + $0x290] sm:$0xff] }
 0x416   :  { %5155 = vmatmul.msk.f32.gmra.mxu1 %vm185_vm0, %v3815_v47  ;;  %v4129_v6 = vadd.f32 %v4128_v38, %v4064_v16  ;;  %v3829_v38 = vld [vmem:[#allocation4 + $0x298] sm:$0xff] }
 0x417   :  { %v3485_v54 = vpop.permute.xlu0 %3484  ;;  %v4190_v52 = vpop.f32.mrf.mxu3 }
 0x418   :  { %3519 = vst.msk [vmem:[#allocation4 + $0x300] sm:$0xff] %vm1899_vm2, %v3485_v54  ;;  %v4191_v35 = vadd.f32 %v4190_v52, %v4126_v41  ;;  %v4131_v40 = vpop.f32.mrf.mxu2  ;;  %v3358_v16 = vpop.permute.xlu2 %3357 }
 0x41b   :  { %v7980_v12 = vpop.f32.mrf.mxu1  ;;  %v3260_v17 = vpop.permute.xlu1 %3259 }
 0x41c   :  { %8412 = vst [vmem:[#allocation12_spill] sm:$0xff] %v7980_v12 }
 0x41d   :  { %3294 = vst.msk [vmem:[#allocation4 + $0x2f8] sm:$0xff] %vm1996_vm3, %v3260_v17  ;;  %4322 = vmatmul.f32.gmra.mxu2 %v3834_v44  ;;  %4384 = vmatmul.f32.gmra.mxu3 %v3828_v43  ;;  %v4067_v17 = vadd.f32 %v7970_v13, %v7841_v42  ;;  %v3835_v44 = vld [vmem:[#allocation4 + $0x2c8] sm:$0xff] }
 0x41e   :  { %3390 = vst.msk [vmem:[#allocation4 + $0x2f8] sm:$0xff] %vm2093_vm4, %v3356_v37  ;;  %5156 = vmatmul.msk.f32.gmra.mxu1 %vm185_vm0, %v3822_v39 }
 0x41f   :  { %v3166_v15 = vpop.permute.xlu0 %3165  ;;  %v4193_v47 = vpop.f32.mrf.mxu3  ;;  %v4132_v43 = vadd.f32 %v4131_v40, %v4067_v17  ;;  %v3836_v40 = vld [vmem:[#allocation4 + $0x2d0] sm:$0xff] }
 0x420   :  { %3199 = vst.msk [vmem:[#allocation4 + $0x330] sm:$0xff] %vm1899_vm2, %v3166_v15  ;;  %v4194_v41 = vadd.f32 %v4193_v47, %v4129_v6  ;;  %v4134_v54 = vpop.f32.mrf.mxu2 }
 0x423   :  { %v4255_v27 = vpop.f32.mrf.mxu1  ;;  %v3581_v52 = vpop.permute.xlu1 %3580 }
 0x424   :  { %v7990_v12 = vadd.f32 %v4255_v27, %v4191_v35  ;;  %3615 = vst.msk [vmem:[#allocation4 + $0x300] sm:$0xff] %vm1996_vm3, %v3581_v52  ;;  %v4070_v27 = vadd.f32 %v7970_v13, %v7852_v29 }
 0x425   :  { %v3841_v37 = vld [vmem:[#allocation4 + $0x2f8] sm:$0xff]  ;;  %3711 = vst.msk [vmem:[#allocation4 + $0x300] sm:$0xff] %vm2093_vm4, %v3677_v51  ;;  %4387 = vmatmul.f32.gmra.mxu3 %v3835_v44 }
 0x426   :  { %4325 = vmatmul.f32.gmra.mxu2 %v3841_v37  ;;  %5157 = vmatmul.msk.f32.gmra.mxu1 %vm185_vm0, %v3829_v38  ;;  %v4135_v17 = vadd.f32 %v4134_v54, %v4070_v27  ;;  %v3679_v38 = vpop.permute.xlu2 %3678  ;;  %v3843_v54 = vld [vmem:[#allocation4 + $0x308] sm:$0xff] }
 0x427   :  { %v3487_v39 = vpop.permute.xlu0 %3486  ;;  %v4196_v6 = vpop.f32.mrf.mxu3 }
 0x428   :  { %3520 = vst.msk [vmem:[#allocation4 + $0x338] sm:$0xff] %vm1899_vm2, %v3487_v39  ;;  %v4197_v42 = vadd.f32 %v4196_v6, %v4132_v43  ;;  %v4137_v35 = vpop.f32.mrf.mxu2 }
 0x42b   :  { %v4258_v15 = vpop.f32.mrf.mxu1  ;;  %v3262_v47 = vpop.permute.xlu1 %3261 }
 0x42c   :  { %v7998_v52 = vadd.f32 %v4258_v15, %v4194_v41  ;;  %3295 = vst.msk [vmem:[#allocation4 + $0x330] sm:$0xff] %vm1996_vm3, %v3262_v47  ;;  %v3842_v51 = vld [vmem:[#allocation4 + $0x300] sm:$0xff]  ;;  %v4073_v41 = vadd.f32 %v7970_v13, %v7865_v4 }
 0x42d   :  { %3391 = vst.msk [vmem:[#allocation4 + $0x330] sm:$0xff] %vm2093_vm4, %v3358_v16  ;;  %4390 = vmatmul.f32.gmra.mxu3 %v3842_v51 }
 0x42e   :  { %5158 = vmatmul.msk.f32.gmra.mxu1 %vm185_vm0, %v3836_v40  ;;  %v4138_v47 = vadd.f32 %v4137_v35, %v4073_v41 }
 0x42f   :  { %v3168_v37 = vpop.permute.xlu0 %3167  ;;  %v4199_v44 = vpop.f32.mrf.mxu3 }
 0x430   :  { %3200 = vst.msk [vmem:[#allocation4 + $0x368] sm:$0xff] %vm1899_vm2, %v3168_v37  ;;  %v4200_v43 = vadd.f32 %v4199_v44, %v4135_v17  ;;  %v4287_v6 = vpop.f32.mrf.mxu2  ;;  %v3360_v17 = vpop.permute.xlu2 %3359 }
 0x433   :  { %v4261_v39 = vpop.f32.mrf.mxu1  ;;  %v3583_v29 = vpop.permute.xlu1 %3582 }
 0x434   :  { %v8006_v15 = vadd.f32 %v4261_v39, %v4197_v42  ;;  %3616 = vst.msk [vmem:[#allocation4 + $0x338] sm:$0xff] %vm1996_vm3, %v3583_v29  ;;  %v3848_v16 = vld [vmem:[#allocation4 + $0x330] sm:$0xff] }
 0x435   :  { %3712 = vst.msk [vmem:[#allocation4 + $0x338] sm:$0xff] %vm2093_vm4, %v3679_v38  ;;  %4328 = vmatmul.f32.gmra.mxu2 %v3848_v16  ;;  %v3850_v38 = vld [vmem:[#allocation4 + $0x340] sm:$0xff]  ;;  %v4028_v16 = vadd.f32 %v7970_v13, %v7632_v19 }
 0x436   :  { %5159 = vmatmul.msk.f32.gmra.mxu1 %vm185_vm0, %v3843_v54 }
 0x437   :  { %v3489_v27 = vpop.permute.xlu0 %3488  ;;  %v4202_v51 = vpop.f32.mrf.mxu3 }
 0x438   :  { %3521 = vst.msk [vmem:[#allocation4 + $0x370] sm:$0xff] %vm1899_vm2, %v3489_v27  ;;  %v4203_v40 = vadd.f32 %v4202_v51, %v4138_v47  ;;  %v4290_v35 = vpop.f32.mrf.mxu2  ;;  %v3681_v54 = vpop.permute.xlu2 %3680  ;;  %v3857_v27 = vld [vmem:[#allocation4 + $0x378] sm:$0xff]  ;;  %v4093_v51 = vadd.f32 %v7837_v34, %v4028_v16 }
 0x43a   :  { %v4158_v19 = vadd.f32 %v7859_v55, %v4093_v51 }
 0x43b   :  { %v4264_v4 = vpop.f32.mrf.mxu1  ;;  %v3264_v37 = vpop.permute.xlu1 %3263 }
 0x43c   :  { %v8012_v42 = vadd.f32 %v4264_v4, %v4200_v43  ;;  %3296 = vst.msk [vmem:[#allocation4 + $0x368] sm:$0xff] %vm1996_vm3, %v3264_v37  ;;  %v3849_v44 = vld [vmem:[#allocation4 + $0x338] sm:$0xff]  ;;  %v4031_v4 = vadd.f32 %v7970_v13, %v7650_v50 }
 0x43d   :  { %3392 = vst.msk [vmem:[#allocation4 + $0x368] sm:$0xff] %vm2093_vm4, %v3360_v17  ;;  %4393 = vmatmul.f32.gmra.mxu3 %v3849_v44  ;;  %v4223_v44 = vadd.f32 %v7877_v9, %v4158_v19 }
 0x43e   :  { %8413 = vst [vmem:[#allocation13_spill] sm:$0xff] %v8012_v42  ;;  %5160 = vmatmul.msk.f32.gmra.mxu1 %vm185_vm0, %v3850_v38 }
 0x43f   :  { %v4352_v39 = vpop.f32.mrf.mxu3 }
 0x440   :  { %v4293_v37 = vpop.f32.mrf.mxu2 }
 0x443   :  { %v4267_v29 = vpop.f32.mrf.mxu1  ;;  %v3585_v41 = vpop.permute.xlu1 %3584 }
 0x444   :  { %v8019_v47 = vadd.f32 %v4267_v29, %v4203_v40  ;;  %3617 = vst.msk [vmem:[#allocation4 + $0x370] sm:$0xff] %vm1996_vm3, %v3585_v41  ;;  %v3855_v43 = vld [vmem:[#allocation4 + $0x368] sm:$0xff]  ;;  %v4096_v40 = vadd.f32 %v7848_v8, %v4031_v4  ;;  %v4288_v41 = vadd.f32 %v4287_v6, %v4223_v44  ;;  %v4034_v8 = vadd.f32 %v7970_v13, %v7663_v45 }
 0x445   :  { %3713 = vst.msk [vmem:[#allocation4 + $0x370] sm:$0xff] %vm2093_vm4, %v3681_v54  ;;  %4331 = vmatmul.f32.gmra.mxu2 %v3855_v43  ;;  %v4037_v4 = vadd.f32 %v7970_v13, %v7678_v18 }
 0x446   :  { %8414 = vst [vmem:[#allocation14_spill] sm:$0xff] %v8019_v47  ;;  %5161 = vmatmul.msk.f32.gmra.mxu1 %vm185_vm0, %v3857_v27  ;;  %v4161_v29 = vadd.f32 %v7871_v0, %v4096_v40  ;;  %v4353_v16 = vadd.f32 %v4352_v39, %v4288_v41  ;;  %v4099_v0 = vadd.f32 %v7861_v56, %v4034_v8 }
 0x447   :  { %v4355_v17 = vpop.f32.mrf.mxu3  ;;  %v4102_v19 = vadd.f32 %v7873_v7, %v4037_v4 }
 0x448   :  { %v4226_v34 = vadd.f32 %v7890_v31, %v4161_v29  ;;  %v4296_v42 = vpop.f32.mrf.mxu2  ;;  %v4164_v31 = vadd.f32 %v7884_v57, %v4099_v0 }
 0x449   :  { %v4167_v56 = vadd.f32 %v7896_v32, %v4102_v19 }
 0x44a   :  { %v4291_v43 = vadd.f32 %v4290_v35, %v4226_v34  ;;  %v4229_v45 = vadd.f32 %v7901_v24, %v4164_v31  ;;  %v4040_v24 = vadd.f32 %v7970_v13, %v7693_v2 }
 0x44b   :  { %v4417_v38 = vpop.f32.mrf.mxu1  ;;  %v4232_v18 = vadd.f32 %v7911_v48, %v4167_v56 }
 0x44c   :  { %v3856_v54 = vld [vmem:[#allocation4 + $0x370] sm:$0xff]  ;;  %v4418_v27 = vadd.f32 %v4417_v38, %v4353_v16  ;;  %v4356_v50 = vadd.f32 %v4355_v17, %v4291_v43  ;;  %v4294_v38 = vadd.f32 %v4293_v37, %v4229_v45  ;;  %v4105_v32 = vadd.f32 %v7886_v20, %v4040_v24 }
 0x44d   :  { %4396 = vmatmul.f32.gmra.mxu3 %v3856_v54  ;;  %v4297_v41 = vadd.f32 %v4296_v42, %v4232_v18  ;;  %v4043_v42 = vadd.f32 %v7970_v13, %v7711_v28 }
 0x44e   :  { %v4465_v51 = vmax.f32 %v4418_v27, 0.0  ;;  %v4170_v37 = vadd.f32 %v7906_v33, %v4105_v32 }
 0x44f   :  { %v4358_v47 = vpop.f32.mrf.mxu3  ;;  %v4108_v2 = vadd.f32 %v7898_v60, %v4043_v42 }
 0x450   :  { %v4482_v35 = vsel %vm4481_vm5, %v4465_v51, -inf  ;;  %v4299_v29 = vpop.f32.mrf.mxu2  ;;  %v4359_v57 = vadd.f32 %v4358_v47, %v4294_v38  ;;  %v4046_v38 = vadd.f32 %v7970_v13, %v7726_v59 }
 0x451   :  { %v4173_v20 = vadd.f32 %v7916_v26, %v4108_v2 }
 0x453   :  { %v4420_v55 = vpop.f32.mrf.mxu1  ;;  %v4238_v28 = vadd.f32 %v7931_v21, %v4173_v20 }
 0x454   :  { %v4421_v9 = vadd.f32 %v4420_v55, %v4356_v50 }
 0x456   :  { %v4466_v6 = vmax.f32 %v4421_v9, 0.0 }
 0x457   :  { %v4361_v40 = vpop.f32.mrf.mxu3 }
 0x458   :  { %v4483_v39 = vsel %vm4481_vm5, %v4466_v6, -inf  ;;  %v4362_v43 = vadd.f32 %v4361_v40, %v4297_v41  ;;  %v4302_v48 = vpop.f32.mrf.mxu2  ;;  %v4235_v6 = vadd.f32 %v7921_v25, %v4170_v37 }
 0x459   :  { %v4484_v17 = vmax.f32 %v4482_v35, %v4483_v39 }
 0x45a   :  { %v4300_v31 = vadd.f32 %v4299_v29, %v4235_v6  ;;  %v4111_v29 = vadd.f32 %v7908_v46, %v4046_v38 }
 0x45b   :  { %4506 = vst.msk [vmem:[#allocation5] sm:$0xff] %vm4481_vm5, %v4484_v17  ;;  %v4423_v44 = vpop.f32.mrf.mxu1  ;;  %v4303_v17 = vadd.f32 %v4302_v48, %v4238_v28 }
 0x45c   :  { %v4424_v54 = vadd.f32 %v4423_v44, %v4359_v57  ;;  %v4049_v57 = vadd.f32 %v7970_v13, %v7744_v14  ;;  %v4176_v41 = vadd.f32 %v7926_v10, %v4111_v29 }
 0x45e   :  { %v4467_v50 = vmax.f32 %v4424_v54, 0.0  ;;  %v4114_v59 = vadd.f32 %v7919_v62, %v4049_v57  ;;  %v4052_v62 = vadd.f32 %v7970_v13, %v7765_v36 }
 0x45f   :  { %v4364_v55 = vpop.f32.mrf.mxu3 }
 0x460   :  { %v4485_v51 = vsel %vm4481_vm5, %v4467_v50, -inf  ;;  %v4365_v33 = vadd.f32 %v4364_v55, %v4300_v31  ;;  %v4305_v19 = vpop.f32.mrf.mxu2  ;;  %v4179_v24 = vadd.f32 %v7936_v22, %v4114_v59 }
 0x462   :  { %v4514_v34 = vld [vmem:[#allocation5] ss:$2 sm:$0xf]  ;;  %v4530_v16 = vld [vmem:[#allocation5 + $0x1] ss:$2 sm:$0xf]  ;;  %v4244_v10 = vadd.f32 %v7951_v3, %v4179_v24 }
 0x463   :  { %v4545_v7 = vmax.f32 %v4514_v34, %v4530_v16  ;;  %v4426_v27 = vpop.f32.mrf.mxu1 }
 0x464   :  { %v4427_v8 = vadd.f32 %v4426_v27, %v4362_v43  ;;  %v4241_v27 = vadd.f32 %v7941_v23, %v4176_v41  ;;  %v8416_v41 = vld [vmem:[#allocation12_spill] sm:$0xff] }
 0x465   :  { %4554 = vst.msk [vmem:[#allocation6] sm:$0xf] %vm4553_vm6, %v4545_v7 }
 0x466   :  { %v4468_v47 = vmax.f32 %v4427_v8, 0.0  ;;  %v4306_v50 = vadd.f32 %v4305_v19, %v4241_v27 }
 0x467   :  { %v4367_v39 = vpop.f32.mrf.mxu3 }
 0x468   :  { %v4486_v9 = vsel %vm4481_vm5, %v4468_v47, -inf  ;;  %v4368_v60 = vadd.f32 %v4367_v39, %v4303_v17 }
 0x469   :  { %v4487_v0 = vmax.f32 %v4485_v51, %v4486_v9  ;;  %v4117_v9 = vadd.f32 %v7929_v11, %v4052_v62 }
 0x46b   :  { %4507 = vst.msk [vmem:[#allocation5 + $0x8] sm:$0xff] %vm4481_vm5, %v4487_v0  ;;  %v4429_v4 = vpop.f32.mrf.mxu1  ;;  %v4182_v3 = vadd.f32 %v7946_v63, %v4117_v9 }
 0x46c   :  { %v4562_v35 = vld [vmem:[#allocation6] sm:$0x3]  ;;  %v4430_v45 = vadd.f32 %v4429_v4, %v4365_v33  ;;  %v4055_v4 = vadd.f32 %v7970_v13, %v7788_v61 }
 0x46d   :  { %4570 = vst [vmem:[#allocation1] ss:$4 sm:$0xff] %v4562_v35  ;;  %v4247_v20 = vadd.f32 %v7959_v58, %v4182_v3 }
 0x46e   :  { %v4469_v18 = vmax.f32 %v4430_v45, 0.0  ;;  %v4120_v11 = vadd.f32 %v7939_v5, %v4055_v4 }
 0x470   :  { %v4488_v54 = vsel %vm4481_vm5, %v4469_v18, -inf  ;;  %v4370_v34 = vpop.f32.mrf.mxu3  ;;  %v4185_v17 = vadd.f32 %v7956_v53, %v4120_v11 }
 0x471   :  { %v4371_v55 = vadd.f32 %v4370_v34, %v4306_v50 }
 0x472   :  { %v4516_v40 = vld [vmem:[#allocation5 + $0x8] ss:$2 sm:$0xf]  ;;  %v4532_v44 = vld [vmem:[#allocation5 + $0x9] ss:$2 sm:$0xf]  ;;  %v4250_v61 = vadd.f32 %v7972_v49, %v4185_v17 }
 0x473   :  { %v4546_v56 = vmax.f32 %v4516_v40, %v4532_v44  ;;  %v4432_v25 = vpop.f32.mrf.mxu1 }
 0x474   :  { %v4433_v26 = vadd.f32 %v4432_v25, %v4368_v60 }
 0x475   :  { %4555 = vst.msk [vmem:[#allocation6 + $0x4] sm:$0xf] %vm4553_vm6, %v4546_v56  ;;  %v4058_v56 = vadd.f32 %v7970_v13, %v7803_v1 }
 0x476   :  { %v4470_v21 = vmax.f32 %v4433_v26, 0.0 }
 0x477   :  { %v4123_v53 = vadd.f32 %v7949_v30, %v4058_v56 }
 0x478   :  { %v4489_v16 = vsel %vm4481_vm5, %v4470_v21, -inf  ;;  %v4308_v43 = vpop.f32.mrf.mxu2  ;;  %v8415_v21 = vld [vmem:[#allocation11_spill] sm:$0xff] }
 0x479   :  { %v4490_v7 = vmax.f32 %v4488_v54, %v4489_v16  ;;  %v4309_v8 = vadd.f32 %v4308_v43, %v4244_v10  ;;  %v4188_v49 = vadd.f32 %v8415_v21, %v4123_v53 }
 0x47b   :  { %4508 = vst.msk [vmem:[#allocation5 + $0x10] sm:$0xff] %vm4481_vm5, %v4490_v7  ;;  %v4435_v46 = vpop.f32.mrf.mxu1  ;;  %v4253_v54 = vadd.f32 %v8416_v41, %v4188_v49  ;;  %v4601_v49 = vld [vmem:[#allocation6 + $0x2] sm:$0x3] }
 0x47c   :  { %v4563_v14 = vld [vmem:[#allocation6 + $0x4] sm:$0x3]  ;;  %v4436_v32 = vadd.f32 %v4435_v46, %v4371_v55 }
 0x47d   :  { %4572 = vst [vmem:[#allocation1 + $0x1] ss:$4 sm:$0xff] %v4563_v14 }
 0x47e   :  { %v4471_v0 = vmax.f32 %v4436_v32, 0.0 }
 0x480   :  { %v4311_v48 = vpop.f32.mrf.mxu2  ;;  %v4373_v47 = vpop.f32.mrf.mxu3  ;;  %v4491_v36 = vsel %vm4481_vm5, %v4471_v0, -inf }
 0x481   :  { %v4374_v42 = vadd.f32 %v4373_v47, %v4309_v8  ;;  %v4312_v39 = vadd.f32 %v4311_v48, %v4247_v20 }
 0x482   :  { %v4518_v23 = vld [vmem:[#allocation5 + $0x10] ss:$2 sm:$0xf]  ;;  %v4534_v37 = vld [vmem:[#allocation5 + $0x11] ss:$2 sm:$0xf] }
 0x483   :  { %v4547_v22 = vmax.f32 %v4518_v23, %v4534_v37  ;;  %v4438_v51 = vpop.f32.mrf.mxu1 }
 0x484   :  { %v4439_v2 = vadd.f32 %v4438_v51, %v4374_v42 }
 0x485   :  { %4556 = vst.msk [vmem:[#allocation6 + $0x8] sm:$0xf] %vm4553_vm6, %v4547_v22 }
 0x486   :  { %v4472_v6 = vmax.f32 %v4439_v2, 0.0 }
 0x488   :  { %v4492_v31 = vsel %vm4481_vm5, %v4472_v6, -inf  ;;  %v4314_v35 = vpop.f32.mrf.mxu2  ;;  %v4376_v28 = vpop.f32.mrf.mxu3 }
 0x489   :  { %v4493_v33 = vmax.f32 %v4491_v36, %v4492_v31  ;;  %v4377_v19 = vadd.f32 %v4376_v28, %v4312_v39  ;;  %v4315_v45 = vadd.f32 %v4314_v35, %v4250_v61  ;;  %v4581_v61 = vld [vmem:[#allocation6 + $0x5] sm:$0x3] }
 0x48b   :  { %4509 = vst.msk [vmem:[#allocation5 + $0x18] sm:$0xff] %vm4481_vm5, %v4493_v33  ;;  %v4441_v63 = vpop.f32.mrf.mxu1 }
 0x48c   :  { %v4442_v58 = vadd.f32 %v4441_v63, %v4377_v19 }
 0x48e   :  { %v4473_v26 = vmax.f32 %v4442_v58, 0.0 }
 0x490   :  { %v4379_v40 = vpop.f32.mrf.mxu3  ;;  %v4317_v44 = vpop.f32.mrf.mxu2  ;;  %v4494_v34 = vsel %vm4481_vm5, %v4473_v26, -inf  ;;  %v4755_v26 = vld [vmem:[%s8406_s5 + $0x78] sm:$0xff] }
 0x491   :  { %v4380_v60 = vadd.f32 %v4379_v40, %v4315_v45  ;;  %v4318_v43 = vadd.f32 %v4317_v44, %v4253_v54  ;;  %4819 = vmatpush.msrb.mxu2 %v4755_v26  ;;  %v8418_v54 = vld [vmem:[#allocation14_spill] sm:$0xff]  ;;  %v4743_v26 = vld [vmem:[%s8406_s5 + $0x18] sm:$0xff] }
 0x492   :  { %v4520_v25 = vld [vmem:[#allocation5 + $0x18] ss:$2 sm:$0xf]  ;;  %v4536_v5 = vld [vmem:[#allocation5 + $0x19] ss:$2 sm:$0xf] }
 0x493   :  { %v4548_v38 = vmax.f32 %v4520_v25, %v4536_v5  ;;  %v4444_v18 = vpop.f32.mrf.mxu1 }
 0x494   :  { %v4445_v29 = vadd.f32 %v4444_v18, %v4380_v60  ;;  %v8417_v18 = vld [vmem:[#allocation13_spill] sm:$0xff] }
 0x495   :  { %4557 = vst.msk [vmem:[#allocation6 + $0xc] sm:$0xf] %vm4553_vm6, %v4548_v38 }
 0x496   :  { %v4474_v57 = vmax.f32 %v4445_v29, 0.0 }
 0x498   :  { %v4495_v16 = vsel %vm4481_vm5, %v4474_v57, -inf  ;;  %v4382_v1 = vpop.f32.mrf.mxu3  ;;  %v4320_v59 = vpop.f32.mrf.mxu2 }
 0x499   :  { %v4496_v13 = vmax.f32 %v4494_v34, %v4495_v16  ;;  %v4383_v7 = vadd.f32 %v4382_v1, %v4318_v43  ;;  %v4321_v27 = vadd.f32 %v4320_v59, %v7990_v12  ;;  %v4602_v16 = vld [vmem:[#allocation6 + $0x6] sm:$0x3] }
 0x49b   :  { %4510 = vst.msk [vmem:[#allocation5 + $0x20] sm:$0xff] %vm4481_vm5, %v4496_v13  ;;  %v4447_v30 = vpop.f32.mrf.mxu1 }
 0x49c   :  { %v4448_v24 = vadd.f32 %v4447_v30, %v4383_v7 }
 0x49e   :  { %v4475_v32 = vmax.f32 %v4448_v24, 0.0 }
 0x4a0   :  { %v4385_v46 = vpop.f32.mrf.mxu3  ;;  %v4323_v47 = vpop.f32.mrf.mxu2  ;;  %v4497_v62 = vsel %vm4481_vm5, %v4475_v32, -inf  ;;  %v4621_v32 = vld [vmem:[#allocation6 + $0x8] sm:$0x3] }
 0x4a1   :  { %v4386_v50 = vadd.f32 %v4385_v46, %v4321_v27  ;;  %v4324_v51 = vadd.f32 %v4323_v47, %v7998_v52  ;;  %v4771_v47 = vld [vmem:[%s8406_s5 + $0xf8] sm:$0xff] }
 0x4a2   :  { %v4522_v14 = vld [vmem:[#allocation5 + $0x20] ss:$2 sm:$0xf]  ;;  %v4538_v10 = vld [vmem:[#allocation5 + $0x21] ss:$2 sm:$0xf]  ;;  %4839 = vmatpush.msrb.mxu3 %v4771_v47 }
 0x4a3   :  { %v4549_v55 = vmax.f32 %v4522_v14, %v4538_v10  ;;  %v4450_v8 = vpop.f32.mrf.mxu1  ;;  %v4777_v47 = vld [vmem:[%s8406_s5 + $0x128] sm:$0xff] }
 0x4a4   :  { %v4451_v48 = vadd.f32 %v4450_v8, %v4386_v50  ;;  %v4620_v8 = vld [vmem:[#allocation6 + $0x4] sm:$0x3] }
 0x4a5   :  { %4558 = vst.msk [vmem:[#allocation6 + $0x10] sm:$0xf] %vm4553_vm6, %v4549_v55 }
 0x4a6   :  { %v4476_v42 = vmax.f32 %v4451_v48, 0.0 }
 0x4a8   :  { %v4498_v23 = vsel %vm4481_vm5, %v4476_v42, -inf  ;;  %v4388_v12 = vpop.f32.mrf.mxu3  ;;  %v4754_v42 = vld [vmem:[%s8406_s5 + $0x70] sm:$0xff] }
 0x4a9   :  { %v4499_v37 = vmax.f32 %v4497_v62, %v4498_v23  ;;  %v4389_v0 = vadd.f32 %v4388_v12, %v4324_v51  ;;  %v4326_v2 = vpop.f32.mrf.mxu2  ;;  %v4770_v62 = vld [vmem:[%s8406_s5 + $0xf0] sm:$0xff]  ;;  %4820 = vmatpush.msrb.mxu2 %v4754_v42  ;;  %v4753_v23 = vld [vmem:[%s8406_s5 + $0x68] sm:$0xff] }
 0x4aa   :  { %v4327_v4 = vadd.f32 %v4326_v2, %v8006_v15  ;;  %v4580_v15 = vld [vmem:[#allocation6 + $0x1] sm:$0x3]  ;;  %4840 = vmatpush.msrb.mxu3 %v4770_v62  ;;  %v4641_v2 = vld [vmem:[#allocation6 + $0x9] sm:$0x3]  ;;  %v4776_v62 = vld [vmem:[%s8406_s5 + $0x120] sm:$0xff] }
 0x4ab   :  { %4511 = vst.msk [vmem:[#allocation5 + $0x28] sm:$0xff] %vm4481_vm5, %v4499_v37  ;;  %v4453_v9 = vpop.f32.mrf.mxu1  ;;  %4821 = vmatpush.msrb.mxu2 %v4753_v23  ;;  %v4761_v42 = vld [vmem:[%s8406_s5 + $0xa8] sm:$0xff]  ;;  %v4775_v23 = vld [vmem:[%s8406_s5 + $0x118] sm:$0xff] }
 0x4ac   :  { %v4564_v22 = vld [vmem:[#allocation6 + $0x10] sm:$0x3]  ;;  %v4454_v20 = vadd.f32 %v4453_v9, %v4389_v0  ;;  %v4603_v13 = vld [vmem:[#allocation6 + $0x12] sm:$0x3]  ;;  %v4640_v0 = vld [vmem:[#allocation6 + $0x5] sm:$0x3] }
 0x4ad   :  { %4574 = vst [vmem:[#allocation1 + $0x2] ss:$4 sm:$0xff] %v4564_v22  ;;  %v4582_v45 = vld [vmem:[#allocation6 + $0x11] sm:$0x3] }
 0x4ae   :  { %v4477_v11 = vmax.f32 %v4454_v20, 0.0  ;;  %v4659_v20 = vld [vmem:[#allocation6 + $0xa] sm:$0x3] }
 0x4b0   :  { %v4391_v31 = vpop.f32.mrf.mxu3  ;;  %v4500_v52 = vsel %vm4481_vm5, %v4477_v11, -inf  ;;  %v4768_v11 = vld [vmem:[%s8406_s5 + $0xe0] sm:$0xff] }
 0x4b1   :  { %v4392_v35 = vadd.f32 %v4391_v31, %v4327_v4 }
 0x4b2   :  { %v4524_v3 = vld [vmem:[#allocation5 + $0x28] ss:$2 sm:$0xf]  ;;  %v4540_v6 = vld [vmem:[#allocation5 + $0x29] ss:$2 sm:$0xf] }
 0x4b3   :  { %v4550_v36 = vmax.f32 %v4524_v3, %v4540_v6  ;;  %v4456_v28 = vpop.f32.mrf.mxu1  ;;  %v4658_v6 = vld [vmem:[#allocation6 + $0x6] sm:$0x3] }
 0x4b4   :  { %v4457_v33 = vadd.f32 %v4456_v28, %v4392_v35  ;;  %v4769_v35 = vld [vmem:[%s8406_s5 + $0xe8] sm:$0xff]  ;;  %v4752_v28 = vld [vmem:[%s8406_s5 + $0x60] sm:$0xff] }
 0x4b5   :  { %4559 = vst.msk [vmem:[#allocation6 + $0x14] sm:$0xf] %vm4553_vm6, %v4550_v36  ;;  %4841 = vmatpush.msrb.mxu3 %v4769_v35  ;;  %4822 = vmatpush.msrb.mxu2 %v4752_v28  ;;  %v4801_v35 = vld [vmem:[%s8406_s5 + $0x1e8] sm:$0xff]  ;;  %v4810_v28 = vld [vmem:[%s8406_s5 + $0x230] sm:$0xff] }
 0x4b6   :  { %v4478_v39 = vmax.f32 %v4457_v33, 0.0  ;;  %v4751_v33 = vld [vmem:[%s8406_s5 + $0x58] sm:$0xff] }
 0x4b7   :  { %4842 = vmatpush.msrb.mxu3 %v4768_v11  ;;  %4823 = vmatpush.msrb.mxu2 %v4751_v33  ;;  %v4800_v11 = vld [vmem:[%s8406_s5 + $0x1e0] sm:$0xff]  ;;  %v4809_v33 = vld [vmem:[%s8406_s5 + $0x228] sm:$0xff] }
 0x4b8   :  { %v4501_v17 = vsel %vm4481_vm5, %v4478_v39, -inf  ;;  %v4329_v40 = vpop.f32.mrf.mxu2  ;;  %v4767_v39 = vld [vmem:[%s8406_s5 + $0xd8] sm:$0xff] }
 0x4b9   :  { %v4502_v63 = vmax.f32 %v4500_v52, %v4501_v17  ;;  %v4330_v53 = vadd.f32 %v4329_v40, %v8417_v18  ;;  %v4750_v52 = vld [vmem:[%s8406_s5 + $0x50] sm:$0xff]  ;;  %v4749_v17 = vld [vmem:[%s8406_s5 + $0x48] sm:$0xff]  ;;  %4843 = vmatpush.msrb.mxu3 %v4767_v39  ;;  %v4799_v39 = vld [vmem:[%s8406_s5 + $0x1d8] sm:$0xff] }
 0x4ba   :  { %4824 = vmatpush.msrb.mxu2 %v4750_v52  ;;  %v4765_v40 = vld [vmem:[%s8406_s5 + $0xc8] sm:$0xff]  ;;  %v4762_v18 = vld [vmem:[%s8406_s5 + $0xb0] sm:$0xff]  ;;  %v4808_v52 = vld [vmem:[%s8406_s5 + $0x220] sm:$0xff] }
 0x4bb   :  { %4512 = vst.msk [vmem:[#allocation5 + $0x30] sm:$0xff] %vm4481_vm5, %v4502_v63  ;;  %v4459_v5 = vpop.f32.mrf.mxu1  ;;  %v4679_v63 = vld [vmem:[#allocation6 + $0x8] sm:$0x3] }
 0x4bc   :  { %v4565_v19 = vld [vmem:[#allocation6 + $0x14] sm:$0x3]  ;;  %v4604_v59 = vld [vmem:[#allocation6 + $0x16] sm:$0x3]  ;;  %4825 = vmatpush.msrb.mxu2 %v4749_v17  ;;  %v4798_v17 = vld [vmem:[%s8406_s5 + $0x1d0] sm:$0xff] }
 0x4bd   :  { %4576 = vst [vmem:[#allocation1 + $0x3] ss:$4 sm:$0xff] %v4565_v19  ;;  %v4583_v56 = vld [vmem:[#allocation6 + $0x15] sm:$0x3]  ;;  %v4766_v19 = vld [vmem:[%s8406_s5 + $0xd0] sm:$0xff] }
 0x4be   :  { %v4622_v55 = vld [vmem:[#allocation6 + $0x14] sm:$0x3]  ;;  %v4660_v36 = vld [vmem:[#allocation6 + $0x16] sm:$0x3]  ;;  %4844 = vmatpush.msrb.mxu3 %v4766_v19  ;;  %v4797_v19 = vld [vmem:[%s8406_s5 + $0x1c8] sm:$0xff] }
 0x4bf   :  { %v4642_v3 = vld [vmem:[#allocation6 + $0x15] sm:$0x3] }
 0x4c0   :  { %v4394_v38 = vpop.f32.mrf.mxu3  ;;  %4845 = vmatpush.msrb.mxu3 %v4765_v40 }
 0x4c1   :  { %v4395_v29 = vadd.f32 %v4394_v38, %v4330_v53  ;;  %v4745_v38 = vld [vmem:[%s8406_s5 + $0x28] sm:$0xff]  ;;  %v4744_v53 = vld [vmem:[%s8406_s5 + $0x20] sm:$0xff] }
 0x4c2   :  { %v4526_v44 = vld [vmem:[#allocation5 + $0x30] ss:$2 sm:$0xf]  ;;  %v4542_v60 = vld [vmem:[#allocation5 + $0x31] ss:$2 sm:$0xf] }
 0x4c3   :  { %v4551_v25 = vmax.f32 %v4526_v44, %v4542_v60  ;;  %v4460_v41 = vadd.f32 %v4459_v5, %v4395_v29  ;;  %v4462_v30 = vpop.f32.mrf.mxu1  ;;  %v4747_v60 = vld [vmem:[%s8406_s5 + $0x38] sm:$0xff] }
 0x4c4   :  { %v4577_v58 = vld.sshfl [vmem:[#allocation1] sm:$0xff pattern:$0x73625140]  ;;  %v4763_v5 = vld [vmem:[%s8406_s5 + $0xb8] sm:$0xff] }
 0x4c5   :  { %4588 = vst [vmem:[#allocation1] ss:$4 sm:$0xff] %v4580_v15  ;;  %v4479_v7 = vmax.f32 %v4460_v41, 0.0  ;;  %v4680_v15 = vld [vmem:[#allocation6 + $0xc] sm:$0x3] }
 0x4c6   :  { %4590 = vst [vmem:[#allocation1 + $0x1] ss:$4 sm:$0xff] %v4581_v61 }
 0x4c7   :  { %4592 = vst [vmem:[#allocation1 + $0x2] ss:$4 sm:$0xff] %v4582_v45  ;;  %v4503_v46 = vsel %vm4481_vm5, %v4479_v7, -inf  ;;  %v4748_v45 = vld [vmem:[%s8406_s5 + $0x40] sm:$0xff]  ;;  %v4718_v7 = vld [vmem:[#allocation6 + $0xe] sm:$0x3] }
 0x4c8   :  { %4594 = vst [vmem:[#allocation1 + $0x3] ss:$4 sm:$0xff] %v4583_v56  ;;  %v4332_v21 = vpop.f32.mrf.mxu2  ;;  %4826 = vmatpush.msrb.mxu2 %v4748_v45  ;;  %v4764_v56 = vld [vmem:[%s8406_s5 + $0xc0] sm:$0xff]  ;;  %v4805_v45 = vld [vmem:[%s8406_s5 + $0x208] sm:$0xff] }
 0x4c9   :  { %4579 = vst.msk [vmem:[#allocation7] sm:$0xff] %vm4481_vm5, %v4577_v58  ;;  %v4333_v34 = vadd.f32 %v4332_v21, %v8418_v54  ;;  %4846 = vmatpush.msrb.mxu3 %v4764_v56  ;;  %v4697_v21 = vld [vmem:[#allocation6 + $0x9] sm:$0x3] }
 0x4ca   :  { %4560 = vst.msk [vmem:[#allocation6 + $0x18] sm:$0xf] %vm4553_vm6, %v4551_v25  ;;  %v4746_v25 = vld [vmem:[%s8406_s5 + $0x30] sm:$0xff]  ;;  %4827 = vmatpush.msrb.mxu2 %v4747_v60 }
 0x4cb   :  { %4847 = vmatpush.msrb.mxu3 %v4763_v5  ;;  %v4794_v60 = vld [vmem:[%s8406_s5 + $0x1b0] sm:$0xff]  ;;  %v4792_v5 = vld [vmem:[%s8406_s5 + $0x1a0] sm:$0xff] }
 0x4cc   :  { %4828 = vmatpush.msrb.mxu2 %v4746_v25  ;;  %v4793_v25 = vld [vmem:[%s8406_s5 + $0x1a8] sm:$0xff] }
 0x4cd   :  { %4848 = vmatpush.msrb.mxu3 %v4762_v18 }
 0x4ce   :  { %4829 = vmatpush.msrb.mxu2 %v4745_v38 }
 0x4cf   :  { %v4595_v57 = vld.sshfl [vmem:[#allocation1] sm:$0xff pattern:$0x73625140]  ;;  %4849 = vmatpush.msrb.mxu3 %v4761_v42 }
 0x4d0   :  { %4609 = vst [vmem:[#allocation1] ss:$4 sm:$0xff] %v4601_v49  ;;  %4596 = vrot.lane.b32.xlu0 %v4595_v57, %s5214_s23  ;;  %v4397_v1 = vpop.f32.mrf.mxu3  ;;  %4830 = vmatpush.msrb.mxu2 %v4744_v53  ;;  %v4698_v49 = vld [vmem:[#allocation6 + $0xd] sm:$0x3]  ;;  %v4791_v53 = vld [vmem:[%s8406_s5 + $0x198] sm:$0xff] }
 0x4d1   :  { %4611 = vst [vmem:[#allocation1 + $0x1] ss:$4 sm:$0xff] %v4602_v16  ;;  %v4398_v43 = vadd.f32 %v4397_v1, %v4333_v34  ;;  %v4623_v48 = vld [vmem:[#allocation6 + $0x18] sm:$0x3]  ;;  %v4661_v31 = vld [vmem:[#allocation6 + $0x1a] sm:$0x3] }
 0x4d2   :  { %4613 = vst [vmem:[#allocation1 + $0x2] ss:$4 sm:$0xff] %v4603_v13  ;;  %v4643_v9 = vld [vmem:[#allocation6 + $0x19] sm:$0x3]  ;;  %v4742_v57 = vld [vmem:[%s8406_s5 + $0x10] sm:$0xff]  ;;  %4831 = vmatpush.msrb.mxu2 %v4743_v26  ;;  %v4741_v34 = vld [vmem:[%s8406_s5 + $0x8] sm:$0xff] }
 0x4d3   :  { %4615 = vst [vmem:[#allocation1 + $0x3] ss:$4 sm:$0xff] %v4604_v59  ;;  %v4463_v27 = vadd.f32 %v4462_v30, %v4398_v43  ;;  %v4681_v44 = vld [vmem:[#allocation6 + $0x18] sm:$0x3]  ;;  %v4787_v1 = vld [vmem:[%s8406_s5 + $0x178] sm:$0xff]  ;;  %v4786_v13 = vld [vmem:[%s8406_s5 + $0x170] sm:$0xff] }
 0x4d4   :  { %v4699_v41 = vld [vmem:[#allocation6 + $0x19] sm:$0x3]  ;;  %4832 = vmatpush.msrb.mxu2 %v4742_v57  ;;  %v4785_v43 = vld [vmem:[%s8406_s5 + $0x168] sm:$0xff]  ;;  %v4717_v30 = vld [vmem:[#allocation6 + $0xa] sm:$0x3] }
 0x4d5   :  { %v4480_v24 = vmax.f32 %v4463_v27, 0.0  ;;  %v4740_v16 = vld [vmem:[%s8406_s5] sm:$0xff]  ;;  %v4790_v26 = vld [vmem:[%s8406_s5 + $0x190] sm:$0xff] }
 0x4d6   :  { %4833 = vmatpush.msrb.mxu2 %v4741_v34  ;;  %v4784_v27 = vld [vmem:[%s8406_s5 + $0x160] sm:$0xff]  ;;  %v4954_v34 = vld [vmem:[%s8408_s7 + $0x70] sm:$0xff] }
 0x4d7   :  { %v4504_v50 = vsel %vm4481_vm5, %v4480_v24, -inf  ;;  %v4719_v24 = vld [vmem:[#allocation6 + $0x1a] sm:$0x3] }
 0x4d8   :  { %v4505_v14 = vmax.f32 %v4503_v46, %v4504_v50  ;;  %4834 = vmatpush.msrb.mxu2 %v4740_v16  ;;  %v4783_v50 = vld [vmem:[%s8406_s5 + $0x158] sm:$0xff]  ;;  %v4953_v16 = vld [vmem:[%s8408_s7 + $0x68] sm:$0xff] }
 0x4da   :  { %v4616_v10 = vld.sshfl [vmem:[#allocation1] sm:$0xff pattern:$0x73625140]  ;;  %4513 = vst.msk [vmem:[#allocation5 + $0x38] sm:$0xff] %vm4481_vm5, %v4505_v14  ;;  %4859 = vmatpush.msra.mxu2 %v4787_v1  ;;  %v4782_v14 = vld [vmem:[%s8406_s5 + $0x150] sm:$0xff] }
 0x4db   :  { %4632 = vst [vmem:[#allocation1 + $0x2] ss:$4 sm:$0xff] %v4622_v55  ;;  %v4780_v55 = vld [vmem:[%s8406_s5 + $0x140] sm:$0xff] }
 0x4dc   :  { %4618 = vst.msk [vmem:[#allocation7 + $0x8] sm:$0xff] %vm4481_vm5, %v4616_v10  ;;  %4860 = vmatpush.msra.mxu2 %v4786_v13  ;;  %v4781_v10 = vld [vmem:[%s8406_s5 + $0x148] sm:$0xff]  ;;  %v4952_v1 = vld [vmem:[%s8408_s7 + $0x60] sm:$0xff]  ;;  %v4951_v13 = vld [vmem:[%s8408_s7 + $0x58] sm:$0xff] }
 0x4dd   :  { %4628 = vst [vmem:[#allocation1] ss:$4 sm:$0xff] %v4620_v8  ;;  %v4779_v8 = vld [vmem:[%s8406_s5 + $0x138] sm:$0xff] }
 0x4de   :  { %4630 = vst [vmem:[#allocation1 + $0x1] ss:$4 sm:$0xff] %v4621_v32  ;;  %4861 = vmatpush.msra.mxu2 %v4785_v43 }
 0x4df   :  { %4634 = vst [vmem:[#allocation1 + $0x3] ss:$4 sm:$0xff] %v4623_v48  ;;  %v4778_v48 = vld [vmem:[%s8406_s5 + $0x130] sm:$0xff] }
 0x4e0   :  { %4862 = vmatpush.msra.mxu2 %v4784_v27  ;;  %v4947_v27 = vld [vmem:[%s8408_s7 + $0x38] sm:$0xff] }
 0x4e1   :  { %v4528_v37 = vld [vmem:[#allocation5 + $0x38] ss:$2 sm:$0xf]  ;;  %v4544_v12 = vld [vmem:[#allocation5 + $0x39] ss:$2 sm:$0xf] }
 0x4e2   :  { %v4552_v22 = vmax.f32 %v4528_v37, %v4544_v12  ;;  %4863 = vmatpush.msra.mxu2 %v4783_v50  ;;  %v4774_v37 = vld [vmem:[%s8406_s5 + $0x110] sm:$0xff]  ;;  %v4773_v12 = vld [vmem:[%s8406_s5 + $0x108] sm:$0xff] }
 0x4e3   :  { %v4945_v50 = vld [vmem:[%s8408_s7 + $0x28] sm:$0xff] }
 0x4e4   :  { %4561 = vst.msk [vmem:[#allocation6 + $0x1c] sm:$0xf] %vm4553_vm6, %v4552_v22  ;;  %4864 = vmatpush.msra.mxu2 %v4782_v14  ;;  %v4760_v22 = vld [vmem:[%s8406_s5 + $0xa0] sm:$0xff] }
 0x4e5   :  { %4850 = vmatpush.msrb.mxu3 %v4760_v22 }
 0x4e6   :  { %v4635_v51 = vld.sshfl [vmem:[#allocation1] sm:$0xff pattern:$0x73625140]  ;;  %4865 = vmatpush.msra.mxu2 %v4781_v10 }
 0x4e7   :  { %4654 = vst [vmem:[#allocation1 + $0x3] ss:$4 sm:$0xff] %v4643_v9  ;;  %4636 = vrot.lane.b32.xlu1 %v4635_v51, %s5214_s23  ;;  %v4772_v51 = vld [vmem:[%s8406_s5 + $0x100] sm:$0xff]  ;;  %v4759_v9 = vld [vmem:[%s8406_s5 + $0x98] sm:$0xff] }
 0x4e8   :  { %4648 = vst [vmem:[#allocation1] ss:$4 sm:$0xff] %v4640_v0  ;;  %4866 = vmatpush.msra.mxu2 %v4780_v55  ;;  %4851 = vmatpush.msrb.mxu3 %v4759_v9  ;;  %v4758_v0 = vld [vmem:[%s8406_s5 + $0x90] sm:$0xff] }
 0x4e9   :  { %4650 = vst [vmem:[#allocation1 + $0x1] ss:$4 sm:$0xff] %v4641_v2  ;;  %v4757_v2 = vld [vmem:[%s8406_s5 + $0x88] sm:$0xff] }
 0x4ea   :  { %4652 = vst [vmem:[#allocation1 + $0x2] ss:$4 sm:$0xff] %v4642_v3  ;;  %4867 = vmatpush.msra.mxu2 %v4779_v8  ;;  %4852 = vmatpush.msrb.mxu3 %v4758_v0  ;;  %v4944_v8 = vld [vmem:[%s8408_s7 + $0x20] sm:$0xff] }
 0x4eb   :  { %v4682_v58 = vld [vmem:[#allocation6 + $0x1c] sm:$0x3]  ;;  %v4720_v46 = vld [vmem:[#allocation6 + $0x1e] sm:$0x3] }
 0x4ec   :  { %v4700_v54 = vld [vmem:[#allocation6 + $0x1d] sm:$0x3]  ;;  %4868 = vmatpush.msra.mxu2 %v4778_v48  ;;  %4853 = vmatpush.msrb.mxu3 %v4757_v2  ;;  %v4943_v48 = vld [vmem:[%s8408_s7 + $0x18] sm:$0xff] }
 0x4ee   :  { %4869 = vmatpush.msra.mxu2 %v4777_v47  ;;  %v4942_v47 = vld [vmem:[%s8408_s7 + $0x10] sm:$0xff] }
 0x4f0   :  { %4870 = vmatpush.msra.mxu2 %v4776_v62  ;;  %v4941_v62 = vld [vmem:[%s8408_s7 + $0x8] sm:$0xff] }
 0x4f1   :  { %v4655_v4 = vld.sshfl [vmem:[#allocation1] sm:$0xff pattern:$0x73625140] }
 0x4f2   :  { %4666 = vst [vmem:[#allocation1] ss:$4 sm:$0xff] %v4658_v6  ;;  %4871 = vmatpush.msra.mxu2 %v4775_v23  ;;  %v4756_v6 = vld [vmem:[%s8406_s5 + $0x80] sm:$0xff] }
 0x4f3   :  { %4668 = vst [vmem:[#allocation1 + $0x1] ss:$4 sm:$0xff] %v4659_v20  ;;  %4854 = vmatpush.msrb.mxu3 %v4756_v6  ;;  %v4802_v20 = vld [vmem:[%s8406_s5 + $0x1f0] sm:$0xff] }
 0x4f4   :  { %4670 = vst [vmem:[#allocation1 + $0x2] ss:$4 sm:$0xff] %v4660_v36  ;;  %4872 = vmatpush.msra.mxu2 %v4774_v37  ;;  %v4811_v36 = vld [vmem:[%s8406_s5 + $0x238] sm:$0xff] }
 0x4f5   :  { %4672 = vst [vmem:[#allocation1 + $0x3] ss:$4 sm:$0xff] %v4661_v31 }
 0x4f6   :  { %4657 = vst.msk [vmem:[#allocation7 + $0x10] sm:$0xff] %vm4481_vm5, %v4655_v4  ;;  %4873 = vmatpush.msra.mxu2 %v4773_v12  ;;  %v4803_v4 = vld [vmem:[%s8406_s5 + $0x1f8] sm:$0xff]  ;;  %v4940_v12 = vld [vmem:[%s8408_s7] sm:$0xff] }
 0x4f7   :  { %4879 = vmatpush.msra.mxu3 %v4803_v4 }
 0x4f8   :  { %4874 = vmatpush.msra.mxu2 %v4772_v51 }
 0x4f9   :  { %4880 = vmatpush.msra.mxu3 %v4802_v20 }
 0x4fb   :  { %4881 = vmatpush.msra.mxu3 %v4801_v35 }
 0x4fc   :  { %v4673_v61 = vld.sshfl [vmem:[#allocation1] sm:$0xff pattern:$0x73625140] }
 0x4fd   :  { %4674 = vrot.lane.b32.xlu2 %v4673_v61, %s5214_s23  ;;  %4687 = vst [vmem:[#allocation1] ss:$4 sm:$0xff] %v4679_v63  ;;  %4882 = vmatpush.msra.mxu3 %v4800_v11  ;;  %v4807_v63 = vld [vmem:[%s8406_s5 + $0x218] sm:$0xff]  ;;  %v4796_v61 = vld [vmem:[%s8406_s5 + $0x1c0] sm:$0xff] }
 0x4fe   :  { %4689 = vst [vmem:[#allocation1 + $0x1] ss:$4 sm:$0xff] %v4680_v15  ;;  %v4806_v15 = vld [vmem:[%s8406_s5 + $0x210] sm:$0xff] }
 0x4ff   :  { %4691 = vst [vmem:[#allocation1 + $0x2] ss:$4 sm:$0xff] %v4681_v44  ;;  %4883 = vmatpush.msra.mxu3 %v4799_v39  ;;  %v4804_v44 = vld [vmem:[%s8406_s5 + $0x200] sm:$0xff] }
 0x500   :  { %4693 = vst [vmem:[#allocation1 + $0x3] ss:$4 sm:$0xff] %v4682_v58  ;;  %v4795_v58 = vld [vmem:[%s8406_s5 + $0x1b8] sm:$0xff] }
 0x501   :  { %4884 = vmatpush.msra.mxu3 %v4798_v17 }
 0x503   :  { %4885 = vmatpush.msra.mxu3 %v4797_v19 }
 0x505   :  { %4886 = vmatpush.msra.mxu3 %v4796_v61  ;;  %v5182_v61 = vld [vmem:[%s8409_s8] ss:$0 sm:$0xff] }
 0x507   :  { %v4694_v29 = vld.sshfl [vmem:[#allocation1] sm:$0xff pattern:$0x73625140]  ;;  %4887 = vmatpush.msra.mxu3 %v4795_v58 }
 0x508   :  { %4705 = vst [vmem:[#allocation1] ss:$4 sm:$0xff] %v4697_v21  ;;  %v4789_v21 = vld [vmem:[%s8406_s5 + $0x188] sm:$0xff] }
 0x509   :  { %4707 = vst [vmem:[#allocation1 + $0x1] ss:$4 sm:$0xff] %v4698_v49  ;;  %4888 = vmatpush.msra.mxu3 %v4794_v60  ;;  %v4788_v49 = vld [vmem:[%s8406_s5 + $0x180] sm:$0xff] }
 0x50a   :  { %4709 = vst [vmem:[#allocation1 + $0x2] ss:$4 sm:$0xff] %v4699_v41 }
 0x50b   :  { %4711 = vst [vmem:[#allocation1 + $0x3] ss:$4 sm:$0xff] %v4700_v54  ;;  %4889 = vmatpush.msra.mxu3 %v4793_v25  ;;  %v4955_v54 = vld [vmem:[%s8408_s7 + $0x78] sm:$0xff] }
 0x50c   :  { %4696 = vst.msk [vmem:[#allocation7 + $0x18] sm:$0xff] %vm4481_vm5, %v4694_v29 }
 0x50d   :  { %4890 = vmatpush.msra.mxu3 %v4792_v5 }
 0x50f   :  { %4891 = vmatpush.msra.mxu3 %v4791_v53 }
 0x511   :  { %4892 = vmatpush.msra.mxu3 %v4790_v26 }
 0x512   :  { %v4712_v59 = vld.sshfl [vmem:[#allocation1] sm:$0xff pattern:$0x73625140] }
 0x513   :  { %4713 = vrot.lane.b32.xlu0 %v4712_v59, %s5214_s23  ;;  %4725 = vst [vmem:[#allocation1] ss:$4 sm:$0xff] %v4717_v30  ;;  %4893 = vmatpush.msra.mxu3 %v4789_v21  ;;  %v4950_v59 = vld [vmem:[%s8408_s7 + $0x50] sm:$0xff]  ;;  %v4949_v30 = vld [vmem:[%s8408_s7 + $0x48] sm:$0xff] }
 0x514   :  { %4727 = vst [vmem:[#allocation1 + $0x1] ss:$4 sm:$0xff] %v4718_v7  ;;  %v4948_v7 = vld [vmem:[%s8408_s7 + $0x40] sm:$0xff] }
 0x515   :  { %4729 = vst [vmem:[#allocation1 + $0x2] ss:$4 sm:$0xff] %v4719_v24  ;;  %4894 = vmatpush.msra.mxu3 %v4788_v49  ;;  %v5181_v24 = vld [vmem:[%s8407_s6] ss:$0 sm:$0xff] }
 0x516   :  { %4731 = vst [vmem:[#allocation1 + $0x3] ss:$4 sm:$0xff] %v4720_v46  ;;  %v4946_v46 = vld [vmem:[%s8408_s7 + $0x30] sm:$0xff] }
 0x51d   :  { %v4732_v32 = vld.sshfl [vmem:[#allocation1] sm:$0xff pattern:$0x73625140] }
 0x51e   :  { %4734 = vst.msk [vmem:[#allocation7 + $0x20] sm:$0xff] %vm4481_vm5, %v4732_v32 }
 0x525   :  { %v4739_v29 = vld [vmem:[#allocation7 + $0x20] sm:$0xff] }
 0x542   :  { %v4597_v3 = vpop.permute.xlu0 %4596 }
 0x543   :  { %4600 = vst.msk [vmem:[#allocation7] sm:$0xff] %vm4599_vm7, %v4597_v3 }
 0x54a   :  { %v4735_v31 = vld [vmem:[#allocation7] sm:$0xff] }
 0x54b   :  { %4835 = vmatmul.f32.vlgmr.msrb.gmra.mxu2 %v4735_v31 }
 0x54c   :  { %4907 = vmatpush.msrb.mxu2 %v4811_v36 }
 0x54e   :  { %4908 = vmatpush.msrb.mxu2 %v4810_v28 }
 0x550   :  { %4909 = vmatpush.msrb.mxu2 %v4809_v33 }
 0x552   :  { %4910 = vmatpush.msrb.mxu2 %v4808_v52 }
 0x554   :  { %4911 = vmatpush.msrb.mxu2 %v4807_v63 }
 0x556   :  { %4912 = vmatpush.msrb.mxu2 %v4806_v15 }
 0x557   :  { %v4675_v40 = vpop.permute.xlu2 %4674 }
 0x558   :  { %4677 = vst.msk [vmem:[#allocation7 + $0x10] sm:$0xff] %vm4599_vm7, %v4675_v40  ;;  %4913 = vmatpush.msrb.mxu2 %v4805_v45 }
 0x559   :  { %v4637_v56 = vpop.permute.xlu1 %4636 }
 0x55a   :  { %4639 = vst.msk [vmem:[#allocation7 + $0x8] sm:$0xff] %vm4599_vm7, %v4637_v56  ;;  %4914 = vmatpush.msrb.mxu2 %v4804_v44 }
 0x55f   :  { %v4737_v38 = vld [vmem:[#allocation7 + $0x10] sm:$0xff] }
 0x560   :  { %4875 = vmatmul.f32.vlgmr.msra.gmra.mxu2 %v4737_v38 }
 0x561   :  { %v4736_v18 = vld [vmem:[#allocation7 + $0x8] sm:$0xff] }
 0x562   :  { %4855 = vmatmul.f32.vlgmr.msrb.gmra.mxu3 %v4736_v18 }
 0x563   :  { %4965 = vmatpush.msrb.mxu3 %v4955_v54 }
 0x565   :  { %4966 = vmatpush.msrb.mxu3 %v4954_v34 }
 0x567   :  { %4967 = vmatpush.msrb.mxu3 %v4953_v16 }
 0x568   :  { %5162 = vmatmul.msk.f32.vlgmr.msrb.gmra.mxu2 %vm4481_vm5, %v4739_v29 }
 0x569   :  { %4968 = vmatpush.msrb.mxu3 %v4952_v1 }
 0x56b   :  { %4969 = vmatpush.msrb.mxu3 %v4951_v13 }
 0x56d   :  { %4970 = vmatpush.msrb.mxu3 %v4950_v59 }
 0x56f   :  { %4971 = vmatpush.msrb.mxu3 %v4949_v30 }
 0x571   :  { %4972 = vmatpush.msrb.mxu3 %v4948_v7 }
 0x573   :  { %4973 = vmatpush.msrb.mxu3 %v4947_v27 }
 0x575   :  { %4974 = vmatpush.msrb.mxu3 %v4946_v46 }
 0x577   :  { %4975 = vmatpush.msrb.mxu3 %v4945_v50 }
 0x579   :  { %4976 = vmatpush.msrb.mxu3 %v4944_v8 }
 0x57b   :  { %4977 = vmatpush.msrb.mxu3 %v4943_v48 }
 0x57d   :  { %4978 = vmatpush.msrb.mxu3 %v4942_v47 }
 0x57f   :  { %4979 = vmatpush.msrb.mxu3 %v4941_v62 }
 0x581   :  { %4980 = vmatpush.msrb.mxu3 %v4940_v12 }
 0x585   :  { %v4714_v57 = vpop.permute.xlu0 %4713 }
 0x586   :  { %4716 = vst.msk [vmem:[#allocation7 + $0x18] sm:$0xff] %vm4599_vm7, %v4714_v57 }
 0x58d   :  { %v4738_v41 = vld [vmem:[#allocation7 + $0x18] sm:$0xff] }
 0x58e   :  { %4895 = vmatmul.f32.vlgmr.msra.gmra.mxu3 %v4738_v41 }
 0x5ce   :  { %v4836_v43 = vpop.f32.mrf.mxu2 }
 0x5cf   :  { %v4837_v55 = vadd.f32 %v5181_v24, %v4836_v43 }
 0x5e3   :  { %v4876_v14 = vpop.f32.mrf.mxu2 }
 0x5e5   :  { %v4856_v10 = vpop.f32.mrf.mxu3 }
 0x5e6   :  { %v4857_v32 = vadd.f32 %v4856_v10, %v4837_v55 }
 0x5e8   :  { %v4877_v42 = vadd.f32 %v4876_v14, %v4857_v32 }
 0x5eb   :  { %v4916_v22 = vpop.f32.mrf.mxu2 }
 0x611   :  { %v4896_v23 = vpop.f32.mrf.mxu3 }
 0x612   :  { %v4897_v37 = vadd.f32 %v4896_v23, %v4877_v42 }
 0x614   :  { %v4917_v51 = vadd.f32 %v4916_v22, %v4897_v37 }
 0x616   :  { %v4919_v9 = vmax.f32 %v4917_v51, 0.0 }
 0x618   :  { %v4921_v0 = vrot.slane %v4919_v9, 4  ;;  %v4924_v2 = vsel %vm4923_vm8, %v4919_v9, 0.0 }
 0x619   :  { %v4925_v3 = vrot.slane %v4924_v2, 4 }
 0x61a   :  { %v4931_v6 = vsel %vm4923_vm8, %v4921_v0, 0.0 }
 0x61b   :  { %v4926_v4 = vadd.f32 %v4925_v3, %v4924_v2  ;;  %v4932_v20 = vrot.slane %v4931_v6, 4 }
 0x61d   :  { %v4927_v36 = vrot.slane %v4926_v4, 2  ;;  %v4933_v31 = vadd.f32 %v4932_v20, %v4931_v6 }
 0x61f   :  { %v4928_v35 = vadd.f32 %v4927_v36, %v4926_v4  ;;  %v4934_v28 = vrot.slane %v4933_v31, 2 }
 0x621   :  { %v4929_v11 = vrot.slane %v4928_v35, 1  ;;  %v4935_v33 = vadd.f32 %v4934_v28, %v4933_v31 }
 0x623   :  { %v4930_v39 = vadd.f32 %v4929_v11, %v4928_v35  ;;  %v4936_v52 = vrot.slane %v4935_v33, 1 }
 0x625   :  { %v4937_v17 = vadd.f32 %v4936_v52, %v4935_v33  ;;  %v4938_v63 = vmul.f32 0.25, %v4930_v39 }
 0x627   :  { %v4939_v19 = vmul.f32 0.25, %v4937_v17 }
 0x629   :  { %v4963_v15 = vsel %vm4962_vm9, %v4939_v19, %v4938_v63 }
 0x62a   :  { %4981 = vmatmul.f32.vlgmr.msrb.gmra.mxu3 %v4963_v15 }
 0x6ad   :  { %v4982_v45 = vpop.f32.mrf.mxu3 }
 0x6ae   :  { %v4983_v58 = vadd.f32 %v5182_v61, %v4982_v45 }
 0x6b0   :  { %4985 = vst [vmem:[#allocation8] sm:$0x3] %v4983_v58 }
 0x6b1   :  { %4996 = dma.vmem_to_hbm [thread:$0]  %s4992_s0, 32, %s4994_s4, [#allocation9]  }
 0x6b2   :  { %5210 = dma.done.wait [#allocation9], 32  }
 0x6b3   :  { %5211 = vsyncadd [#allocation9], 4294967264 }
 0x6b4   :  { %5001 = vsyncpa [#allocation9], 1 }

</bundles_post_ra>
